<compile_context>
chip_gen: v7x
topology: tpu7x:2x2x1
jax: 0.10.0
libtpu: 0.0.40
codegen_flags: <defaults>
</compile_context>

<pallas_src>
import numpy as np
import jax
import jax.numpy as jnp
from jax import lax
from jax.experimental import pallas as pl
from jax.experimental.pallas import tpu as pltpu

# -----------------------------------------------------------------------------
# Synthetic "template mesh": icosahedron connectivity (12 vertices, 20 faces).
# -----------------------------------------------------------------------------
ICO_FACES = np.array([
    [0, 11, 5], [0, 5, 1], [0, 1, 7], [0, 7, 10], [0, 10, 11],
    [1, 5, 9], [5, 11, 4], [11, 10, 2], [10, 7, 6], [7, 1, 8],
    [3, 9, 4], [3, 4, 2], [3, 2, 6], [3, 6, 8], [3, 8, 9],
    [4, 9, 5], [2, 4, 11], [6, 2, 10], [8, 6, 7], [9, 8, 1],
], dtype=np.int32)
NUM_VERTICES = 12
NUM_FACES = 20

# Demo sizes (original module: CHANNELS=256, HIDDEN=5000).
BATCH = 2
CHANNELS = 16
SPATIAL = 15
IN_DIM = SPATIAL * SPATIAL * CHANNELS      # 3600
HIDDEN = 512

LANES = 128   # lane-padded width for all vertex-sized (3N = 36) axes
TK = 1280     # fc1 K-tile (multiple of 128); K is zero-padded to a multiple


# -----------------------------------------------------------------------------
# SoftRas loss pre-computation (glue, replicates sr.LaplacianLoss / FlattenLoss
# __init__ exactly; runs once in numpy).
# -----------------------------------------------------------------------------
def build_laplacian(nv, faces):
    lap = np.zeros((nv, nv), np.float32)
    for a, b, c in faces:
        lap[a, b] = -1.0; lap[b, a] = -1.0
        lap[b, c] = -1.0; lap[c, b] = -1.0
        lap[c, a] = -1.0; lap[a, c] = -1.0
    r, cc = np.diag_indices(nv)
    lap[r, cc] = -lap.sum(1)
    for i in range(nv):
        lap[i, :] /= lap[i, i]
    return lap


def build_flatten_pairs(faces):
    # Edge list from face columns (0,1) and (1,2), like SoftRas FlattenLoss.
    edge_cand = np.sort(np.concatenate((faces[:, 0:2], faces[:, 1:3]), axis=0), axis=-1)
    edges = sorted(set(tuple(int(x) for x in e) for e in edge_cand))
    faces_list = [list(int(x) for x in f) for f in faces]
    v0s = [e[0] for e in edges]
    v1s = [e[1] for e in edges]
    v2s, v3s = [], []
    for v0, v1 in zip(v0s, v1s):
        count = 0
        for face in faces_list:
            if (v0 in face) and (v1 in face):
                rest = [x for x in face if x != v0 and x != v1]
                if count == 0:
                    v2s.append(rest[0]); count += 1
                else:
                    v3s.append(rest[0])
    return (np.array(v0s, np.int32), np.array(v1s, np.int32),
            np.array(v2s, np.int32), np.array(v3s, np.int32))


# -----------------------------------------------------------------------------
# Dihedral cosine (SoftRas FlattenLoss.forward), vector form — used by the
# pure-JAX reference.  (The kernel uses an equivalent component-separated
# version with edges on the lane axis.)
# -----------------------------------------------------------------------------
def _dihedral_cos(v0, v1, v2, v3, eps=1e-6):
    a1 = v1 - v0
    b1 = v2 - v0
    a1l2 = jnp.sum(a1 * a1, axis=-1, keepdims=True)
    b1l2 = jnp.sum(b1 * b1, axis=-1, keepdims=True)
    a1l1 = jnp.sqrt(a1l2 + eps)
    b1l1 = jnp.sqrt(b1l2 + eps)
    ab1 = jnp.sum(a1 * b1, axis=-1, keepdims=True)
    cos1 = ab1 / (a1l1 * b1l1 + eps)
    sin1 = jnp.sqrt(1.0 - cos1 * cos1 + eps)
    c1 = a1 * (ab1 / (a1l2 + eps))
    cb1 = b1 - c1
    cb1l1 = b1l1 * sin1

    a2 = v1 - v0
    b2 = v3 - v0
    a2l2 = jnp.sum(a2 * a2, axis=-1, keepdims=True)
    b2l2 = jnp.sum(b2 * b2, axis=-1, keepdims=True)
    a2l1 = jnp.sqrt(a2l2 + eps)
    b2l1 = jnp.sqrt(b2l2 + eps)
    ab2 = jnp.sum(a2 * b2, axis=-1, keepdims=True)
    cos2 = ab2 / (a2l1 * b2l1 + eps)
    sin2 = jnp.sqrt(1.0 - cos2 * cos2 + eps)
    c2 = a2 * (ab2 / (a2l2 + eps))
    cb2 = b2 - c2
    cb2l1 = b2l1 * sin2

    return jnp.sum(cb1 * cb2, axis=-1, keepdims=True) / (cb1l1 * cb2l1 + eps)


# -----------------------------------------------------------------------------
# Single fused kernel, K-tiled over the grid:
#   fc1 (int8 weights, bf16 activations, f32 scratch accumulator)
#   + epilogue under pl.when(last): [fc_displace | fc_center] (bf16) + vertex
#     transform + Laplacian loss + Flatten loss.
# The vertex axis is padded to 128 lanes everywhere.
# -----------------------------------------------------------------------------
def _decoder_kernel(x_ref, w1_ref, scale1_ref, b1_ref, w2_ref, b2_ref,
                    base_ref, sign_ref, lapk_ref, sel_ref, mask_ref,
                    verts_ref, lap_ref, flat_ref, acc_ref):
    k = pl.program_id(0)
    nk = pl.num_programs(0)
    batch = x_ref.shape[0]
    hi = lax.Precision.HIGHEST

    @pl.when(k == 0)
    def _init():
        acc_ref[...] = jnp.zeros_like(acc_ref)

    # fc1 partial product: int8 weight block dequantized in-kernel (exact
    # int8 -> f32 -> bf16 upcast), bf16 activations, f32 MXU accumulation.
    w_blk = w1_ref[...].astype(jnp.float32).astype(jnp.bfloat16)
    acc_ref[...] += jnp.dot(x_ref[...], w_blk, preferred_element_type=jnp.float32)

    @pl.when(k == nk - 1)
    def _epilogue():
        # Per-output-column dequant scale + bias + ReLU, all in f32.
        h = jnp.maximum(acc_ref[...] * scale1_ref[...] + b1_ref[...], 0.0)

        # Fused fc_displace | fc_center(tiled): one lane-dense (HIDDEN, 256)
        # bf16 matmul with f32 accumulation.
        y = jnp.dot(h.astype(jnp.bfloat16), w2_ref[...],
                    preferred_element_type=jnp.float32) + b2_ref[...]
        disp = y[:, 0:LANES]                              # (B,128); cols >= 3N are 0
        centroid = jnp.tanh(y[:, LANES:2 * LANES])        # (B,128); cols >= 3N are 0

        v = jax.nn.sigmoid(base_ref[...] + disp) * sign_ref[...]
        v = jnp.maximum(v, 0.0) * (1.0 - centroid) - jnp.maximum(-v, 0.0) * (centroid + 1.0)
        v = v + centroid                                  # (B,128); padding cols exactly 0
        verts_ref[...] = v

        # Laplacian loss: (L @ V_b) as a flat matmul with zero-padded kron(L, I3).T.
        lap_res = jnp.dot(v, lapk_ref[...],
                          preferred_element_type=jnp.float32, precision=hi)
        lap_ref[...] = jnp.sum(lap_res * lap_res, axis=(0, 1), keepdims=True) / float(batch)

        # Flatten loss: static edge gather via one 0/1 selection matmul with
        # edges on the lane axis.  sel is stored int8 and upcast to f32 here so
        # the gather of vertex coordinates stays exact.
        sel_f = sel_ref[...].astype(jnp.float32)
        g = jnp.dot(v, sel_f, preferred_element_type=jnp.float32, precision=hi)
        comp = [g[:, i * LANES:(i + 1) * LANES] for i in range(12)]
        v0x, v0y, v0z, v1x, v1y, v1z, v2x, v2y, v2z, v3x, v3y, v3z = comp

        eps = 1e-6
        ax, ay, az = v1x - v0x, v1y - v0y, v1z - v0z          # a  = v1 - v0
        b1x, b1y, b1z = v2x - v0x, v2y - v0y, v2z - v0z       # b1 = v2 - v0
        b2x, b2y, b2z = v3x - v0x, v3y - v0y, v3z - v0z       # b2 = v3 - v0

        a_l2 = ax * ax + ay * ay + az * az
        b1_l2 = b1x * b1x + b1y * b1y + b1z * b1z
        b2_l2 = b2x * b2x + b2y * b2y + b2z * b2z
        a_l1 = jnp.sqrt(a_l2 + eps)
        b1_l1 = jnp.sqrt(b1_l2 + eps)
        b2_l1 = jnp.sqrt(b2_l2 + eps)
        ab1 = ax * b1x + ay * b1y + az * b1z
        ab2 = ax * b2x + ay * b2y + az * b2z
        cos1 = ab1 / (a_l1 * b1_l1 + eps)
        cos2 = ab2 / (a_l1 * b2_l1 + eps)
        sin1 = jnp.sqrt(1.0 - cos1 * cos1 + eps)
        sin2 = jnp.sqrt(1.0 - cos2 * cos2 + eps)
        k1 = ab1 / (a_l2 + eps)
        k2 = ab2 / (a_l2 + eps)
        cb1x, cb1y, cb1z = b1x - ax * k1, b1y - ay * k1, b1z - az * k1
        cb2x, cb2y, cb2z = b2x - ax * k2, b2y - ay * k2, b2z - az * k2
        cb1l1 = b1_l1 * sin1
        cb2l1 = b2_l1 * sin2
        cos = (cb1x * cb2x + cb1y * cb2y + cb1z * cb2z) / (cb1l1 * cb2l1 + eps)

        terms = (cos + 1.0) ** 2 * mask_ref[...]              # mask out padding lanes
        flat_ref[...] = jnp.sum(terms, axis=(0, 1), keepdims=True) / float(batch)


# -----------------------------------------------------------------------------
# One-time constant preparation (glue): int8-quantized fc1 weight with
# per-column scales, bf16 fused fc2 weight, padded operators, int8 static
# edge-gather selection matrix.
# -----------------------------------------------------------------------------
def prepare_constants(params, vertices_buf, laplacian, edge_pairs):
    w1, b1, wc, bc, wd, bd = params
    N = vertices_buf.shape[1]
    n3 = N * 3
    assert n3 <= LANES, "vertex axis must fit in one 128-lane group"
    K, hidden = w1.shape
    k_pad = ((K + TK - 1) // TK) * TK

    # fc1 weight: pad K, symmetric per-output-column int8 quantization.
    w1_np = np.pad(np.asarray(w1, np.float32), ((0, k_pad - K), (0, 0)))
    scale1 = np.maximum(np.abs(w1_np).max(axis=0, keepdims=True), 1e-12) / 127.0
    w1_q = np.clip(np.rint(w1_np / scale1), -127, 127).astype(np.int8)

    # base / sign, padded to 128 lanes (padding lanes -> v == 0 in-kernel).
    vabs = jnp.abs(vertices_buf).reshape(1, n3)
    base_pad = jnp.pad(jnp.log(vabs / (1.0 - vabs)), ((0, 0), (0, LANES - n3)))
    sign_pad = jnp.pad(jnp.sign(vertices_buf).reshape(1, n3), ((0, 0), (0, LANES - n3)))

    # Merge fc_displace / fc_center into one (HIDDEN, 256) bf16 weight:
    #   group 0 (lanes   0..127): wd  (cols 0..3N-1 valid)
    #   group 1 (lanes 128..255): wc @ tile_m (tanh commutes with replication)
    tile_m = jnp.tile(jnp.eye(3, dtype=jnp.float32), (1, N))     # (3, 3N)
    wc_tiled = wc @ tile_m                                       # (HIDDEN, 3N)
    bc_tiled = bc @ tile_m                                       # (1, 3N)
    w2 = jnp.zeros((hidden, 2 * LANES), jnp.float32)
    w2 = w2.at[:, :n3].set(wd).at[:, LANES:LANES + n3].set(wc_tiled)
    b2 = jnp.zeros((1, 2 * LANES), jnp.float32)
    b2 = b2.at[:, :n3].set(bd).at[:, LANES:LANES + n3].set(bc_tiled)

    # Laplacian operator: kron(L, I3).T, zero-padded to 128x128 (stays f32).
    lapk = jnp.kron(laplacian, jnp.eye(3, dtype=jnp.float32)).T  # (3N, 3N)
    lapk_pad = jnp.zeros((LANES, LANES), jnp.float32).at[:n3, :n3].set(lapk)

    # One-hot selection matrix for the flatten-loss edge gather (stored int8):
    # columns = 12 groups of 128 lanes (v0x v0y v0z v1x ... v3z), edges on lanes.
    v0s, v1s, v2s, v3s = edge_pairs
    num_edges = len(v0s)
    assert num_edges <= LANES
    sel_np = np.zeros((LANES, 12 * LANES), np.int8)
    for slot, idxs in enumerate((v0s, v1s, v2s, v3s)):
        for comp in range(3):
            gcol = (slot * 3 + comp) * LANES
            for e, vtx in enumerate(idxs):
                sel_np[int(vtx) * 3 + comp, gcol + e] = 1
    mask_np = np.zeros((1, LANES), np.float32)
    mask_np[0, :num_edges] = 1.0

    return dict(
        w1q=jnp.asarray(w1_q), scale1=jnp.asarray(scale1.astype(np.float32)),
        b1=b1, w2=w2.astype(jnp.bfloat16), b2=b2,
        base=base_pad, sign=sign_pad, lapk=lapk_pad,
        sel=jnp.asarray(sel_np), mask=jnp.asarray(mask_np),
        k_pad=k_pad, n_verts=N)


# -----------------------------------------------------------------------------
# Decoder forward (wrapper / glue around the single fused Pallas kernel).
# -----------------------------------------------------------------------------
def decoder_forward(inputs_nchw, consts):
    B = inputs_nchw.shape[0]
    N = consts["n_verts"]
    n3 = N * 3
    x = inputs_nchw.reshape(B, -1)                       # torch .view(-1, C*H*W)
    K = x.shape[1]
    k_pad = consts["k_pad"]
    x_p = jnp.pad(x, ((0, 0), (0, k_pad - K))).astype(jnp.bfloat16)
    nk = k_pad // TK

    const_args = (consts["scale1"], consts["b1"], consts["w2"], consts["b2"],
                  consts["base"], consts["sign"], consts["lapk"], consts["sel"],
                  consts["mask"])
    in_specs = ([pl.BlockSpec((B, TK), lambda k: (0, k)),          # x: K-tiled
                 pl.BlockSpec((TK, HIDDEN), lambda k: (k, 0))]     # w1q: K-tiled
                # constants: same block every step -> fetched once, kept resident
                + [pl.BlockSpec(a.shape, lambda k: (0, 0)) for a in const_args])
    out_specs = (pl.BlockSpec((B, LANES), lambda k: (0, 0)),
                 pl.BlockSpec((1, 1), lambda k: (0, 0)),
                 pl.BlockSpec((1, 1), lambda k: (0, 0)))
    out_shape = (jax.ShapeDtypeStruct((B, LANES), jnp.float32),
                 jax.ShapeDtypeStruct((1, 1), jnp.float32),
                 jax.ShapeDtypeStruct((1, 1), jnp.float32))

    verts_pad, lap_loss, flat_loss = pl.pallas_call(
        _decoder_kernel,
        grid=(nk,),
        in_specs=in_specs,
        out_specs=out_specs,
        out_shape=out_shape,
        scratch_shapes=[pltpu.VMEM((B, HIDDEN), jnp.float32)],      # fc1 accumulator
        compiler_params=pltpu.CompilerParams(
            dimension_semantics=("arbitrary",),           # K is a reduction axis
            vmem_limit_bytes=32 * 1024 * 1024),           # fits v7x's 64 MiB VMEM
    )(x_p, consts["w1q"], *const_args)

    verts = verts_pad[:, :n3].reshape(B, N, 3)
    faces_b = jnp.broadcast_to(jnp.asarray(ICO_FACES)[None], (B, NUM_FACES, 3))
    # TODO(synk): sr.Mesh object construction has no Pallas/JAX equivalent; we
    # return the (vertices, faces) arrays that would parameterize it.
    return verts, faces_b, lap_loss[0, 0], flat_loss[0, 0]


# -----------------------------------------------------------------------------
# Pure-JAX f32 reference (mirrors the PyTorch forward) for a correctness check.
# -----------------------------------------------------------------------------
def decoder_reference(inputs_nchw, params, vertices_buf, laplacian, edge_pairs):
    w1, b1, wc, bc, wd, bd = params
    hi = lax.Precision.HIGHEST
    B = inputs_nchw.shape[0]
    N = vertices_buf.shape[1]
    x = inputs_nchw.reshape(B, -1)
    h = jax.nn.relu(jnp.dot(x, w1, precision=hi) + b1)
    center = jnp.tanh(jnp.dot(h, wc, precision=hi) + bc).reshape(B, 1, 3)
    disp = (jnp.dot(h, wd, precision=hi) + bd).reshape(B, N, 3)
    base = jnp.log(jnp.abs(vertices_buf) / (1.0 - jnp.abs(vertices_buf)))
    centroid = jnp.broadcast_to(center, (B, N, 3))
    v = jax.nn.sigmoid(base + disp) * jnp.sign(vertices_buf)
    v = jax.nn.relu(v) * (1.0 - centroid) - jax.nn.relu(-v) * (centroid + 1.0)
    v = v + centroid
    lap_res = jnp.einsum('ij,bjc->bic', laplacian, v, precision=hi)
    lap_loss = jnp.mean(jnp.sum(lap_res ** 2, axis=(1, 2)))
    v0s, v1s, v2s, v3s = edge_pairs
    cos = _dihedral_cos(v[:, v0s], v[:, v1s], v[:, v2s], v[:, v3s])[..., 0]
    flat_loss = jnp.mean(jnp.sum((cos + 1.0) ** 2, axis=1))
    return v, lap_loss, flat_loss


if __name__ == "__main__":
    key = jax.random.PRNGKey(0)
    keys = jax.random.split(key, 8)

    # Example input: (B, C, H, W) conv-feature tensor (NCHW).
    inputs = jax.random.normal(keys[0], (BATCH, CHANNELS, SPATIAL, SPATIAL), jnp.float32)

    # Template mesh vertices (synthetic, |v| < 1), buffer = vertices * 0.55.
    template_v = jax.random.uniform(keys[1], (NUM_VERTICES, 3), jnp.float32,
                                    minval=-0.95, maxval=0.95)
    vertices_buf = template_v[None] * 0.55                                   # (1, N, 3)

    # Deterministic parameter init (Linear layers, stored as (in, out)).
    w1 = jax.random.normal(keys[2], (IN_DIM, HIDDEN), jnp.float32) * 0.02
    b1 = jax.random.normal(keys[3], (1, HIDDEN), jnp.float32) * 0.01
    wc = jax.random.normal(keys[4], (HIDDEN, 3), jnp.float32) * 0.02
    bc = jax.random.normal(keys[5], (1, 3), jnp.float32) * 0.01
    wd = jax.random.normal(keys[6], (HIDDEN, NUM_VERTICES * 3), jnp.float32) * 0.02
    bd = jax.random.normal(keys[7], (1, NUM_VERTICES * 3), jnp.float32) * 0.01
    params = (w1, b1, wc, bc, wd, bd)

    laplacian = jnp.asarray(build_laplacian(NUM_VERTICES, ICO_FACES))
    edge_pairs = build_flatten_pairs(ICO_FACES)          # numpy (compile-time) indices

    consts = prepare_constants(params, vertices_buf, laplacian, edge_pairs)

    verts, faces_b, lap_loss, flat_loss = decoder_forward(inputs, consts)
    jax.block_until_ready((verts, faces_b, lap_loss, flat_loss))

    # Correctness check against the pure-JAX f32 reference.  Tolerances cover
    # bf16 activations + int8 (per-column-scaled) fc1 weights inside the kernel.
    v_ref, lap_ref, flat_ref = decoder_reference(
        inputs, params, vertices_buf, laplacian, edge_pairs)
    assert jnp.allclose(verts, v_ref, atol=2e-2, rtol=2e-2), "vertices mismatch"
    assert jnp.allclose(lap_loss, lap_ref, atol=5e-2, rtol=5e-2), "laplacian loss mismatch"
    assert jnp.allclose(flat_loss, flat_ref, atol=5e-2, rtol=5e-2), "flatten loss mismatch"

    print("KERNEL_OK")
</pallas_src>

<mosaic_0001>
module attributes {stable_mosaic.version = 11 : i64} {
  func.func @_decoder_kernel(%arg0: i32, %arg1: memref<2x1280xbf16, #tpu.memory_space<vmem>>, %arg2: memref<1280x512xi8, #tpu.memory_space<vmem>>, %arg3: memref<1x512xf32, #tpu.memory_space<vmem>>, %arg4: memref<1x512xf32, #tpu.memory_space<vmem>>, %arg5: memref<512x256xbf16, #tpu.memory_space<vmem>>, %arg6: memref<1x256xf32, #tpu.memory_space<vmem>>, %arg7: memref<1x128xf32, #tpu.memory_space<vmem>>, %arg8: memref<1x128xf32, #tpu.memory_space<vmem>>, %arg9: memref<128x128xf32, #tpu.memory_space<vmem>>, %arg10: memref<128x1536xi8, #tpu.memory_space<vmem>>, %arg11: memref<1x128xf32, #tpu.memory_space<vmem>>, %arg12: memref<2x128xf32, #tpu.memory_space<vmem>>, %arg13: memref<1x1xf32, #tpu.memory_space<vmem>>, %arg14: memref<1x1xf32, #tpu.memory_space<vmem>>, %arg15: memref<2x512xf32, #tpu.memory_space<vmem>>) attributes {dimension_semantics = [#tpu.dimension_semantics<arbitrary>], iteration_bounds = array<i64: 3>, scalar_prefetch = 0 : i64, scratch_operands = 1 : i64, tpu.core_type = #tpu.core_type<tc>, window_params = [{transform_indices = @transform_0, window_bounds = array<i64: 2, 1280>}, {transform_indices = @transform_1, window_bounds = array<i64: 1280, 512>}, {pipeline_mode = #tpu.pipeline_mode<synchronous>, transform_indices = @transform_2, window_bounds = array<i64: 1, 512>}, {pipeline_mode = #tpu.pipeline_mode<synchronous>, transform_indices = @transform_3, window_bounds = array<i64: 1, 512>}, {pipeline_mode = #tpu.pipeline_mode<synchronous>, transform_indices = @transform_4, window_bounds = array<i64: 512, 256>}, {pipeline_mode = #tpu.pipeline_mode<synchronous>, transform_indices = @transform_5, window_bounds = array<i64: 1, 256>}, {pipeline_mode = #tpu.pipeline_mode<synchronous>, transform_indices = @transform_6, window_bounds = array<i64: 1, 128>}, {pipeline_mode = #tpu.pipeline_mode<synchronous>, transform_indices = @transform_7, window_bounds = array<i64: 1, 128>}, {pipeline_mode = #tpu.pipeline_mode<synchronous>, transform_indices = @transform_8, window_bounds = array<i64: 128, 128>}, {pipeline_mode = #tpu.pipeline_mode<synchronous>, transform_indices = @transform_9, window_bounds = array<i64: 128, 1536>}, {pipeline_mode = #tpu.pipeline_mode<synchronous>, transform_indices = @transform_10, window_bounds = array<i64: 1, 128>}, {pipeline_mode = #tpu.pipeline_mode<synchronous>, transform_indices = @transform_11, window_bounds = array<i64: 2, 128>}, {pipeline_mode = #tpu.pipeline_mode<synchronous>, transform_indices = @transform_12, window_bounds = array<i64: 1, 1>}, {pipeline_mode = #tpu.pipeline_mode<synchronous>, transform_indices = @transform_13, window_bounds = array<i64: 1, 1>}]} {
    %c0_i32 = arith.constant 0 : i32
    %0 = arith.cmpi eq, %arg0, %c0_i32 : i32
    %1 = arith.extui %0 : i1 to i32
    %c0_i32_0 = arith.constant 0 : i32
    %2 = arith.cmpi ne, %1, %c0_i32_0 : i32
    scf.if %2 {
      %cst_9 = arith.constant 0.000000e+00 : f32
      %14 = vector.broadcast %cst_9 : f32 to vector<2x512xf32>
      %c0_10 = arith.constant 0 : index
      %c0_11 = arith.constant 0 : index
      %15 = vector.load %arg15[%c0_10, %c0_11] : memref<2x512xf32, #tpu.memory_space<vmem>>, vector<2x512xf32>
      tpu.vector_store %arg15[%c0_10, %c0_11], %14 {strides = array<i32>} : memref<2x512xf32, #tpu.memory_space<vmem>>, vector<2x512xf32>,
    } else {
    }
    %c0 = arith.constant 0 : index
    %c0_1 = arith.constant 0 : index
    %3 = vector.load %arg2[%c0, %c0_1] : memref<1280x512xi8, #tpu.memory_space<vmem>>, vector<1280x512xi8>
    %4 = arith.sitofp %3 : vector<1280x512xi8> to vector<1280x512xf32>
    %5 = arith.truncf %4 : vector<1280x512xf32> to vector<1280x512xbf16>
    %c0_2 = arith.constant 0 : index
    %c0_3 = arith.constant 0 : index
    %6 = vector.load %arg15[%c0_2, %c0_3] : memref<2x512xf32, #tpu.memory_space<vmem>>, vector<2x512xf32>
    %c0_4 = arith.constant 0 : index
    %c0_5 = arith.constant 0 : index
    %7 = vector.load %arg1[%c0_4, %c0_5] : memref<2x1280xbf16, #tpu.memory_space<vmem>>, vector<2x1280xbf16>
    %cst = arith.constant dense<0.000000e+00> : vector<2x512xf32>
    %8 = tpu.matmul %7, %5, %cst {dimension_numbers = #tpu.dot_dimension_numbers<[1], [0], [0], [1], [0, 0, 1, 1], [], []>} : vector<2x1280xbf16>, vector<1280x512xbf16>, vector<2x512xf32> -> vector<2x512xf32>
    %9 = arith.addf %6, %8 : vector<2x512xf32>
    %c0_6 = arith.constant 0 : index
    %c0_7 = arith.constant 0 : index
    %10 = vector.load %arg15[%c0_6, %c0_7] : memref<2x512xf32, #tpu.memory_space<vmem>>, vector<2x512xf32>
    tpu.vector_store %arg15[%c0_6, %c0_7], %9 {strides = array<i32>} : memref<2x512xf32, #tpu.memory_space<vmem>>, vector<2x512xf32>,
    %c2_i32 = arith.constant 2 : i32
    %11 = arith.cmpi eq, %arg0, %c2_i32 : i32
    %12 = arith.extui %11 : i1 to i32
    %c0_i32_8 = arith.constant 0 : i32
    %13 = arith.cmpi ne, %12, %c0_i32_8 : i32
    scf.if %13 {
      %c0_9 = arith.constant 0 : index
      %c0_10 = arith.constant 0 : index
      %14 = vector.load %arg15[%c0_9, %c0_10] : memref<2x512xf32, #tpu.memory_space<vmem>>, vector<2x512xf32>
      %c0_11 = arith.constant 0 : index
      %c0_12 = arith.constant 0 : index
      %15 = vector.load %arg3[%c0_11, %c0_12] : memref<1x512xf32, #tpu.memory_space<vmem>>, vector<1x512xf32>
      %16 = vector.broadcast %15 : vector<1x512xf32> to vector<2x512xf32>
      %17 = arith.mulf %14, %16 : vector<2x512xf32>
      %c0_13 = arith.constant 0 : index
      %c0_14 = arith.constant 0 : index
      %18 = vector.load %arg4[%c0_13, %c0_14] : memref<1x512xf32, #tpu.memory_space<vmem>>, vector<1x512xf32>
      %19 = vector.broadcast %18 : vector<1x512xf32> to vector<2x512xf32>
      %20 = arith.addf %17, %19 : vector<2x512xf32>
      %cst_15 = arith.constant 0.000000e+00 : f32
      %21 = vector.broadcast %cst_15 : f32 to vector<2x512xf32>
      %22 = arith.maximumf %20, %21 : vector<2x512xf32>
      %23 = arith.truncf %22 : vector<2x512xf32> to vector<2x512xbf16>
      %c0_16 = arith.constant 0 : index
      %c0_17 = arith.constant 0 : index
      %24 = vector.load %arg5[%c0_16, %c0_17] : memref<512x256xbf16, #tpu.memory_space<vmem>>, vector<512x256xbf16>
      %cst_18 = arith.constant dense<0.000000e+00> : vector<2x256xf32>
      %25 = tpu.matmul %23, %24, %cst_18 {dimension_numbers = #tpu.dot_dimension_numbers<[1], [0], [0], [1], [0, 0, 1, 1], [], []>} : vector<2x512xbf16>, vector<512x256xbf16>, vector<2x256xf32> -> vector<2x256xf32>
      %c0_19 = arith.constant 0 : index
      %c0_20 = arith.constant 0 : index
      %26 = vector.load %arg6[%c0_19, %c0_20] : memref<1x256xf32, #tpu.memory_space<vmem>>, vector<1x256xf32>
      %27 = vector.broadcast %26 : vector<1x256xf32> to vector<2x256xf32>
      %28 = arith.addf %25, %27 : vector<2x256xf32>
      %29 = vector.extract_strided_slice %28 {offsets = [0, 0], sizes = [2, 128], strides = [1, 1]} : vector<2x256xf32> to vector<2x128xf32>
      %30 = vector.extract_strided_slice %28 {offsets = [0, 128], sizes = [2, 128], strides = [1, 1]} : vector<2x256xf32> to vector<2x128xf32>
      %31 = math.tanh %30 : vector<2x128xf32>
      %c0_21 = arith.constant 0 : index
      %c0_22 = arith.constant 0 : index
      %32 = vector.load %arg7[%c0_21, %c0_22] : memref<1x128xf32, #tpu.memory_space<vmem>>, vector<1x128xf32>
      %33 = vector.broadcast %32 : vector<1x128xf32> to vector<2x128xf32>
      %34 = arith.addf %33, %29 : vector<2x128xf32>
      %35 = arith.negf %34 : vector<2x128xf32>
      %36 = math.exp %35 : vector<2x128xf32>
      %cst_23 = arith.constant 1.000000e+00 : f32
      %37 = vector.broadcast %cst_23 : f32 to vector<2x128xf32>
      %38 = arith.addf %37, %36 : vector<2x128xf32>
      %39 = arith.divf %37, %38 : vector<2x128xf32>
      %c0_24 = arith.constant 0 : index
      %c0_25 = arith.constant 0 : index
      %40 = vector.load %arg8[%c0_24, %c0_25] : memref<1x128xf32, #tpu.memory_space<vmem>>, vector<1x128xf32>
      %41 = vector.broadcast %40 : vector<1x128xf32> to vector<2x128xf32>
      %42 = arith.mulf %39, %41 : vector<2x128xf32>
      %cst_26 = arith.constant 0.000000e+00 : f32
      %43 = vector.broadcast %cst_26 : f32 to vector<2x128xf32>
      %44 = arith.maximumf %42, %43 : vector<2x128xf32>
      %cst_27 = arith.constant 1.000000e+00 : f32
      %45 = vector.broadcast %cst_27 : f32 to vector<2x128xf32>
      %46 = arith.subf %45, %31 : vector<2x128xf32>
      %47 = arith.mulf %44, %46 : vector<2x128xf32>
      %cst_28 = arith.constant 0.000000e+00 : f32
      %48 = vector.broadcast %cst_28 : f32 to vector<2x128xf32>
      %49 = arith.subf %48, %42 : vector<2x128xf32>
      %cst_29 = arith.constant 0.000000e+00 : f32
      %50 = vector.broadcast %cst_29 : f32 to vector<2x128xf32>
      %51 = arith.maximumf %49, %50 : vector<2x128xf32>
      %cst_30 = arith.constant 1.000000e+00 : f32
      %52 = vector.broadcast %cst_30 : f32 to vector<2x128xf32>
      %53 = arith.addf %31, %52 : vector<2x128xf32>
      %54 = arith.mulf %51, %53 : vector<2x128xf32>
      %55 = arith.subf %47, %54 : vector<2x128xf32>
      %56 = arith.addf %55, %31 : vector<2x128xf32>
      %c0_31 = arith.constant 0 : index
      %c0_32 = arith.constant 0 : index
      %57 = vector.load %arg12[%c0_31, %c0_32] : memref<2x128xf32, #tpu.memory_space<vmem>>, vector<2x128xf32>
      tpu.vector_store %arg12[%c0_31, %c0_32], %56 {strides = array<i32>} : memref<2x128xf32, #tpu.memory_space<vmem>>, vector<2x128xf32>,
      %c0_33 = arith.constant 0 : index
      %c0_34 = arith.constant 0 : index
      %58 = vector.load %arg9[%c0_33, %c0_34] : memref<128x128xf32, #tpu.memory_space<vmem>>, vector<128x128xf32>
      %cst_35 = arith.constant dense<0.000000e+00> : vector<2x128xf32>
      %59 = tpu.matmul %56, %58, %cst_35 {dimension_numbers = #tpu.dot_dimension_numbers<[1], [0], [0], [1], [0, 0, 1, 1], [], []>, precision = #tpu.contract_precision<fp32>} : vector<2x128xf32>, vector<128x128xf32>, vector<2x128xf32> -> vector<2x128xf32>
      %60 = arith.mulf %59, %59 : vector<2x128xf32>
      %61 = vector.shape_cast %60 : vector<2x128xf32> to vector<1x2x128xf32>
      %cst_36 = arith.constant dense<0.000000e+00> : vector<1xf32>
      %62 = vector.multi_reduction <add>, %61, %cst_36 [1, 2] : vector<1x2x128xf32> to vector<1xf32>
      %63 = vector.shape_cast %62 : vector<1xf32> to vector<1x1x1xf32>
      %64 = vector.extract %63[0, 0, 0] : f32 from vector<1x1x1xf32>
      %65 = vector.broadcast %64 : f32 to vector<1x1xf32>
      %cst_37 = arith.constant 2.000000e+00 : f32
      %66 = vector.broadcast %cst_37 : f32 to vector<1x1xf32>
      %67 = arith.divf %65, %66 : vector<1x1xf32>
      %c0_38 = arith.constant 0 : index
      %c0_39 = arith.constant 0 : index
      %68 = vector.load %arg13[%c0_38, %c0_39] : memref<1x1xf32, #tpu.memory_space<vmem>>, vector<1x1xf32>
      tpu.vector_store %arg13[%c0_38, %c0_39], %67 {strides = array<i32>} : memref<1x1xf32, #tpu.memory_space<vmem>>, vector<1x1xf32>,
      %c0_40 = arith.constant 0 : index
      %c0_41 = arith.constant 0 : index
      %69 = vector.load %arg10[%c0_40, %c0_41] : memref<128x1536xi8, #tpu.memory_space<vmem>>, vector<128x1536xi8>
      %70 = arith.sitofp %69 : vector<128x1536xi8> to vector<128x1536xf32>
      %cst_42 = arith.constant dense<0.000000e+00> : vector<2x1536xf32>
      %71 = tpu.matmul %56, %70, %cst_42 {dimension_numbers = #tpu.dot_dimension_numbers<[1], [0], [0], [1], [0, 0, 1, 1], [], []>, precision = #tpu.contract_precision<fp32>} : vector<2x128xf32>, vector<128x1536xf32>, vector<2x1536xf32> -> vector<2x1536xf32>
      %72 = vector.extract_strided_slice %71 {offsets = [0, 0], sizes = [2, 128], strides = [1, 1]} : vector<2x1536xf32> to vector<2x128xf32>
      %73 = vector.extract_strided_slice %71 {offsets = [0, 128], sizes = [2, 128], strides = [1, 1]} : vector<2x1536xf32> to vector<2x128xf32>
      %74 = vector.extract_strided_slice %71 {offsets = [0, 256], sizes = [2, 128], strides = [1, 1]} : vector<2x1536xf32> to vector<2x128xf32>
      %75 = vector.extract_strided_slice %71 {offsets = [0, 384], sizes = [2, 128], strides = [1, 1]} : vector<2x1536xf32> to vector<2x128xf32>
      %76 = vector.extract_strided_slice %71 {offsets = [0, 512], sizes = [2, 128], strides = [1, 1]} : vector<2x1536xf32> to vector<2x128xf32>
      %77 = vector.extract_strided_slice %71 {offsets = [0, 640], sizes = [2, 128], strides = [1, 1]} : vector<2x1536xf32> to vector<2x128xf32>
      %78 = vector.extract_strided_slice %71 {offsets = [0, 768], sizes = [2, 128], strides = [1, 1]} : vector<2x1536xf32> to vector<2x128xf32>
      %79 = vector.extract_strided_slice %71 {offsets = [0, 896], sizes = [2, 128], strides = [1, 1]} : vector<2x1536xf32> to vector<2x128xf32>
      %80 = vector.extract_strided_slice %71 {offsets = [0, 1024], sizes = [2, 128], strides = [1, 1]} : vector<2x1536xf32> to vector<2x128xf32>
      %81 = vector.extract_strided_slice %71 {offsets = [0, 1152], sizes = [2, 128], strides = [1, 1]} : vector<2x1536xf32> to vector<2x128xf32>
      %82 = vector.extract_strided_slice %71 {offsets = [0, 1280], sizes = [2, 128], strides = [1, 1]} : vector<2x1536xf32> to vector<2x128xf32>
      %83 = vector.extract_strided_slice %71 {offsets = [0, 1408], sizes = [2, 128], strides = [1, 1]} : vector<2x1536xf32> to vector<2x128xf32>
      %84 = arith.subf %75, %72 : vector<2x128xf32>
      %85 = arith.subf %76, %73 : vector<2x128xf32>
      %86 = arith.subf %77, %74 : vector<2x128xf32>
      %87 = arith.subf %78, %72 : vector<2x128xf32>
      %88 = arith.subf %79, %73 : vector<2x128xf32>
      %89 = arith.subf %80, %74 : vector<2x128xf32>
      %90 = arith.subf %81, %72 : vector<2x128xf32>
      %91 = arith.subf %82, %73 : vector<2x128xf32>
      %92 = arith.subf %83, %74 : vector<2x128xf32>
      %93 = arith.mulf %84, %84 : vector<2x128xf32>
      %94 = arith.mulf %85, %85 : vector<2x128xf32>
      %95 = arith.addf %93, %94 : vector<2x128xf32>
      %96 = arith.mulf %86, %86 : vector<2x128xf32>
      %97 = arith.addf %95, %96 : vector<2x128xf32>
      %98 = arith.mulf %87, %87 : vector<2x128xf32>
      %99 = arith.mulf %88, %88 : vector<2x128xf32>
      %100 = arith.addf %98, %99 : vector<2x128xf32>
      %101 = arith.mulf %89, %89 : vector<2x128xf32>
      %102 = arith.addf %100, %101 : vector<2x128xf32>
      %103 = arith.mulf %90, %90 : vector<2x128xf32>
      %104 = arith.mulf %91, %91 : vector<2x128xf32>
      %105 = arith.addf %103, %104 : vector<2x128xf32>
      %106 = arith.mulf %92, %92 : vector<2x128xf32>
      %107 = arith.addf %105, %106 : vector<2x128xf32>
      %cst_43 = arith.constant 9.99999997E-7 : f32
      %108 = vector.broadcast %cst_43 : f32 to vector<2x128xf32>
      %109 = arith.addf %97, %108 : vector<2x128xf32>
      %110 = math.sqrt %109 : vector<2x128xf32>
      %cst_44 = arith.constant 9.99999997E-7 : f32
      %111 = vector.broadcast %cst_44 : f32 to vector<2x128xf32>
      %112 = arith.addf %102, %111 : vector<2x128xf32>
      %113 = math.sqrt %112 : vector<2x128xf32>
      %cst_45 = arith.constant 9.99999997E-7 : f32
      %114 = vector.broadcast %cst_45 : f32 to vector<2x128xf32>
      %115 = arith.addf %107, %114 : vector<2x128xf32>
      %116 = math.sqrt %115 : vector<2x128xf32>
      %117 = arith.mulf %84, %87 : vector<2x128xf32>
      %118 = arith.mulf %85, %88 : vector<2x128xf32>
      %119 = arith.addf %117, %118 : vector<2x128xf32>
      %120 = arith.mulf %86, %89 : vector<2x128xf32>
      %121 = arith.addf %119, %120 : vector<2x128xf32>
      %122 = arith.mulf %84, %90 : vector<2x128xf32>
      %123 = arith.mulf %85, %91 : vector<2x128xf32>
      %124 = arith.addf %122, %123 : vector<2x128xf32>
      %125 = arith.mulf %86, %92 : vector<2x128xf32>
      %126 = arith.addf %124, %125 : vector<2x128xf32>
      %127 = arith.mulf %110, %113 : vector<2x128xf32>
      %cst_46 = arith.constant 9.99999997E-7 : f32
      %128 = vector.broadcast %cst_46 : f32 to vector<2x128xf32>
      %129 = arith.addf %127, %128 : vector<2x128xf32>
      %130 = arith.divf %121, %129 : vector<2x128xf32>
      %131 = arith.mulf %110, %116 : vector<2x128xf32>
      %cst_47 = arith.constant 9.99999997E-7 : f32
      %132 = vector.broadcast %cst_47 : f32 to vector<2x128xf32>
      %133 = arith.addf %131, %132 : vector<2x128xf32>
      %134 = arith.divf %126, %133 : vector<2x128xf32>
      %135 = arith.mulf %130, %130 : vector<2x128xf32>
      %cst_48 = arith.constant 1.000000e+00 : f32
      %136 = vector.broadcast %cst_48 : f32 to vector<2x128xf32>
      %137 = arith.subf %136, %135 : vector<2x128xf32>
      %cst_49 = arith.constant 9.99999997E-7 : f32
      %138 = vector.broadcast %cst_49 : f32 to vector<2x128xf32>
      %139 = arith.addf %137, %138 : vector<2x128xf32>
      %140 = math.sqrt %139 : vector<2x128xf32>
      %141 = arith.mulf %134, %134 : vector<2x128xf32>
      %cst_50 = arith.constant 1.000000e+00 : f32
      %142 = vector.broadcast %cst_50 : f32 to vector<2x128xf32>
      %143 = arith.subf %142, %141 : vector<2x128xf32>
      %cst_51 = arith.constant 9.99999997E-7 : f32
      %144 = vector.broadcast %cst_51 : f32 to vector<2x128xf32>
      %145 = arith.addf %143, %144 : vector<2x128xf32>
      %146 = math.sqrt %145 : vector<2x128xf32>
      %cst_52 = arith.constant 9.99999997E-7 : f32
      %147 = vector.broadcast %cst_52 : f32 to vector<2x128xf32>
      %148 = arith.addf %97, %147 : vector<2x128xf32>
      %149 = arith.divf %121, %148 : vector<2x128xf32>
      %cst_53 = arith.constant 9.99999997E-7 : f32
      %150 = vector.broadcast %cst_53 : f32 to vector<2x128xf32>
      %151 = arith.addf %97, %150 : vector<2x128xf32>
      %152 = arith.divf %126, %151 : vector<2x128xf32>
      %153 = arith.mulf %84, %149 : vector<2x128xf32>
      %154 = arith.subf %87, %153 : vector<2x128xf32>
      %155 = arith.mulf %85, %149 : vector<2x128xf32>
      %156 = arith.subf %88, %155 : vector<2x128xf32>
      %157 = arith.mulf %86, %149 : vector<2x128xf32>
      %158 = arith.subf %89, %157 : vector<2x128xf32>
      %159 = arith.mulf %84, %152 : vector<2x128xf32>
      %160 = arith.subf %90, %159 : vector<2x128xf32>
      %161 = arith.mulf %85, %152 : vector<2x128xf32>
      %162 = arith.subf %91, %161 : vector<2x128xf32>
      %163 = arith.mulf %86, %152 : vector<2x128xf32>
      %164 = arith.subf %92, %163 : vector<2x128xf32>
      %165 = arith.mulf %113, %140 : vector<2x128xf32>
      %166 = arith.mulf %116, %146 : vector<2x128xf32>
      %167 = arith.mulf %154, %160 : vector<2x128xf32>
      %168 = arith.mulf %156, %162 : vector<2x128xf32>
      %169 = arith.addf %167, %168 : vector<2x128xf32>
      %170 = arith.mulf %158, %164 : vector<2x128xf32>
      %171 = arith.addf %169, %170 : vector<2x128xf32>
      %172 = arith.mulf %165, %166 : vector<2x128xf32>
      %cst_54 = arith.constant 9.99999997E-7 : f32
      %173 = vector.broadcast %cst_54 : f32 to vector<2x128xf32>
      %174 = arith.addf %172, %173 : vector<2x128xf32>
      %175 = arith.divf %171, %174 : vector<2x128xf32>
      %cst_55 = arith.constant 1.000000e+00 : f32
      %176 = vector.broadcast %cst_55 : f32 to vector<2x128xf32>
      %177 = arith.addf %175, %176 : vector<2x128xf32>
      %178 = arith.mulf %177, %177 : vector<2x128xf32>
      %c0_56 = arith.constant 0 : index
      %c0_57 = arith.constant 0 : index
      %179 = vector.load %arg11[%c0_56, %c0_57] : memref<1x128xf32, #tpu.memory_space<vmem>>, vector<1x128xf32>
      %180 = vector.broadcast %179 : vector<1x128xf32> to vector<2x128xf32>
      %181 = arith.mulf %178, %180 : vector<2x128xf32>
      %182 = vector.shape_cast %181 : vector<2x128xf32> to vector<1x2x128xf32>
      %cst_58 = arith.constant dense<0.000000e+00> : vector<1xf32>
      %183 = vector.multi_reduction <add>, %182, %cst_58 [1, 2] : vector<1x2x128xf32> to vector<1xf32>
      %184 = vector.shape_cast %183 : vector<1xf32> to vector<1x1x1xf32>
      %185 = vector.extract %184[0, 0, 0] : f32 from vector<1x1x1xf32>
      %186 = vector.broadcast %185 : f32 to vector<1x1xf32>
      %cst_59 = arith.constant 2.000000e+00 : f32
      %187 = vector.broadcast %cst_59 : f32 to vector<1x1xf32>
      %188 = arith.divf %186, %187 : vector<1x1xf32>
      %c0_60 = arith.constant 0 : index
      %c0_61 = arith.constant 0 : index
      %189 = vector.load %arg14[%c0_60, %c0_61] : memref<1x1xf32, #tpu.memory_space<vmem>>, vector<1x1xf32>
      tpu.vector_store %arg14[%c0_60, %c0_61], %188 {strides = array<i32>} : memref<1x1xf32, #tpu.memory_space<vmem>>, vector<1x1xf32>,
    } else {
    }
    return
  }
  func.func @transform_0(%arg0: i32) -> (i32, i32) {
    %c0_i32 = arith.constant 0 : i32
    %c0_i32_0 = arith.constant 0 : i32
    return %c0_i32, %arg0 : i32, i32
  }
  func.func @transform_1(%arg0: i32) -> (i32, i32) {
    %c0_i32 = arith.constant 0 : i32
    %c0_i32_0 = arith.constant 0 : i32
    return %arg0, %c0_i32 : i32, i32
  }
  func.func @transform_2(%arg0: i32) -> (i32, i32) {
    %c0_i32 = arith.constant 0 : i32
    %c0_i32_0 = arith.constant 0 : i32
    %c0_i32_1 = arith.constant 0 : i32
    return %c0_i32, %c0_i32_0 : i32, i32
  }
  func.func @transform_3(%arg0: i32) -> (i32, i32) {
    %c0_i32 = arith.constant 0 : i32
    %c0_i32_0 = arith.constant 0 : i32
    %c0_i32_1 = arith.constant 0 : i32
    return %c0_i32, %c0_i32_0 : i32, i32
  }
  func.func @transform_4(%arg0: i32) -> (i32, i32) {
    %c0_i32 = arith.constant 0 : i32
    %c0_i32_0 = arith.constant 0 : i32
    %c0_i32_1 = arith.constant 0 : i32
    return %c0_i32, %c0_i32_0 : i32, i32
  }
  func.func @transform_5(%arg0: i32) -> (i32, i32) {
    %c0_i32 = arith.constant 0 : i32
    %c0_i32_0 = arith.constant 0 : i32
    %c0_i32_1 = arith.constant 0 : i32
    return %c0_i32, %c0_i32_0 : i32, i32
  }
  func.func @transform_6(%arg0: i32) -> (i32, i32) {
    %c0_i32 = arith.constant 0 : i32
    %c0_i32_0 = arith.constant 0 : i32
    %c0_i32_1 = arith.constant 0 : i32
    return %c0_i32, %c0_i32_0 : i32, i32
  }
  func.func @transform_7(%arg0: i32) -> (i32, i32) {
    %c0_i32 = arith.constant 0 : i32
    %c0_i32_0 = arith.constant 0 : i32
    %c0_i32_1 = arith.constant 0 : i32
    return %c0_i32, %c0_i32_0 : i32, i32
  }
  func.func @transform_8(%arg0: i32) -> (i32, i32) {
    %c0_i32 = arith.constant 0 : i32
    %c0_i32_0 = arith.constant 0 : i32
    %c0_i32_1 = arith.constant 0 : i32
    return %c0_i32, %c0_i32_0 : i32, i32
  }
  func.func @transform_9(%arg0: i32) -> (i32, i32) {
    %c0_i32 = arith.constant 0 : i32
    %c0_i32_0 = arith.constant 0 : i32
    %c0_i32_1 = arith.constant 0 : i32
    return %c0_i32, %c0_i32_0 : i32, i32
  }
  func.func @transform_10(%arg0: i32) -> (i32, i32) {
    %c0_i32 = arith.constant 0 : i32
    %c0_i32_0 = arith.constant 0 : i32
    %c0_i32_1 = arith.constant 0 : i32
    return %c0_i32, %c0_i32_0 : i32, i32
  }
  func.func @transform_11(%arg0: i32) -> (i32, i32) {
    %c0_i32 = arith.constant 0 : i32
    %c0_i32_0 = arith.constant 0 : i32
    %c0_i32_1 = arith.constant 0 : i32
    return %c0_i32, %c0_i32_0 : i32, i32
  }
  func.func @transform_12(%arg0: i32) -> (i32, i32) {
    %c0_i32 = arith.constant 0 : i32
    %c0_i32_0 = arith.constant 0 : i32
    %c0_i32_1 = arith.constant 0 : i32
    return %c0_i32, %c0_i32_0 : i32, i32
  }
  func.func @transform_13(%arg0: i32) -> (i32, i32) {
    %c0_i32 = arith.constant 0 : i32
    %c0_i32_0 = arith.constant 0 : i32
    %c0_i32_1 = arith.constant 0 : i32
    return %c0_i32, %c0_i32_0 : i32, i32
  }
}

</mosaic_0001>

<bundles_post_ra>
// kernel: tpu_custom_call.1
= control target key start
LH: loop header
LB: loop body
LE: loop exit
PB: predicated region body
PF: predicated region fallthrough
CT: control target
= control target key end

     0   :  { %s15476_s0 = inlined_call_operand.hbm [shape: bf16[2,3840], index: 0, kind: input, shape index: {}]   ;;  %s15477_s1 = inlined_call_operand.hbm [shape: s8[3840,512], index: 1, kind: input, shape index: {}]   ;;  %s15478_s2 = inlined_call_operand.hbm [shape: f32[1,512], index: 2, kind: input, shape index: {}]   ;;  %s15479_s3 = inlined_call_operand.hbm [shape: f32[1,512], index: 3, kind: input, shape index: {}]   ;;  %s15480_s4 = inlined_call_operand.hbm [shape: bf16[512,256], index: 4, kind: input, shape index: {}]   ;;  %s15481_s5 = inlined_call_operand.hbm [shape: f32[1,256], index: 5, kind: input, shape index: {}]   ;;  %s15482_s6 = inlined_call_operand.hbm [shape: f32[1,128], index: 6, kind: input, shape index: {}]   ;;  %s15483_s7 = inlined_call_operand.hbm [shape: f32[1,128], index: 7, kind: input, shape index: {}]   ;;  %s15484_s8 = inlined_call_operand.hbm [shape: f32[128,128], index: 8, kind: input, shape index: {}]   ;;  %s15485_s9 = inlined_call_operand.hbm [shape: s8[128,1536], index: 9, kind: input, shape index: {}]   ;;  %s15486_s10 = inlined_call_operand.hbm [shape: f32[1,128], index: 10, kind: input, shape index: {}]   ;;  %s15487_s11 = inlined_call_operand.hbm [shape: f32[2,128], index: 11, kind: output, shape index: {0}]   ;;  %s15488_s12 = inlined_call_operand.hbm [shape: f32[1,1], index: 12, kind: output, shape index: {1}]   ;;  %s15489_s13 = inlined_call_operand.hbm [shape: f32[1,1], index: 13, kind: output, shape index: {2}]  }
   0x1   :  { %15910 = sst [smem:[#allocation108_spill]] %s15476_s0 }
   0x2   :  { %15911 = sst [smem:[#allocation109_spill]] %s15478_s2 }
   0x3   :  { %15912 = sst [smem:[#allocation110_spill]] %s15487_s11 }
   0x4   :  { %15913 = sst [smem:[#allocation111_spill]] %s15488_s12 }
   0x5   :  { %15914 = sst [smem:[#allocation112_spill]] %s15489_s13 }
   0x6   :  { %19 = vsyncpa [#allocation4], 0 }
   0x7   :  { %21 = vsyncpa [#allocation4 + $0x1], 0 }
   0x8   :  { %22 = vsyncpa [#allocation7], 0 }
   0x9   :  { %24 = vsyncpa [#allocation7 + $0x1], 0 }
   0xa   :  { %25 = vsyncpa [#allocation10], 0 }
   0xb   :  { %26 = vsyncpa [#allocation13], 0 }
   0xc   :  { %27 = vsyncpa [#allocation16], 0 }
   0xd   :  { %28 = vsyncpa [#allocation19], 0 }
   0xe   :  { %29 = vsyncpa [#allocation5], 0 }
   0xf   :  { %30 = vsyncpa [#allocation23], 0  ;;  %s11471_s25 = smov 0   ;;  %s11473_s26 = smov 0  }
  0x10   :  { %s11475_s27 = smov 0   ;;  %s11477_s28 = smov 0  }
  0x11 LB: > { %s11375_s29 = smov [#allocation8]   ;;  %s11492_s14 = sadd.s32 4294967295, %s11373_s28   ;;  %s11373_s28 = sphi %s11477_s28, %s16869_s28   ;;  %s11369_s27 = sphi %s11475_s27, %s16868_s27   ;;  %s11365_s26 = sphi %s11473_s26, %s16867_s26   ;;  %s11361_s25 = sphi %s11471_s25, %s16866_s25  }
  0x12   : > { %s358_s30 = sshll.u32 %s11375_s29, 4  ;;  %p8804_p0 = scmp.ge.s32.totalorder %s11373_s28, 1  ;;  %s11498_s30 = int_to_ptr.vmem [resolvable:$true] %s358_s30 }
  0x13   : > { %p15494_p1 = scmp.eq.s32.totalorder %s11492_s14, 0  ;;  %p345_p2 = scmp.lt.s32.totalorder %s11373_s28, 4 }
  0x14   : > { %s11376_s16 = smov [#allocation9]   ;;  %s11377_s18 = smov [#allocation12]  }
  0x15   : > { %p11500_p4 = pnand %p8804_p0, %p345_p2  ;;  %s369_s17 = sshll.u32 %s11376_s16, 4  ;;  %s11506_s17 = int_to_ptr.vmem [resolvable:$true] %s369_s17 }
  0x16   : > { %s393_s19 = sshll.u32 %s11377_s18, 4  ;;  %s11378_s21 = smov [#allocation15]   ;;  %s11514_s19 = int_to_ptr.vmem [resolvable:$true] %s393_s19 }
  0x17   : > { %s15915_s15 = scalar_select %p11500_p4, 1, 0 }
  0x18   : > { %p10680_p5 = pneg %p11500_p4  ;;  %s11516_s22 = sshll.u32 %s11378_s21, 4  ;;  %s416_s22 = int_to_ptr.vmem [resolvable:$true] %s11516_s22 }
  0x19   : > { %15916 = sst [smem:[#allocation34_spill]] %s15915_s15  ;;  %s15918_s2 = sld [smem:[#allocation109_spill]] }
  0x1a   : > { %p11510_p6 = pnand %p10680_p5, %p15494_p1 }
  0x1c   : > { %p11526_p8 = pneg %p11510_p6 }
  0x1f   : > { %s10917_s29 = scalar_lea.hbm %s15918_s2, 64 }
  0x20   : > { %p10918_p7 = scmp.ne.s32.totalorder %s15918_s2, %s10917_s29  ;;  %p10924_p11 = scmp.lt.u32.totalorder %s10917_s29, %s15918_s2 }
  0x22   : > { %p10920_p9 = pnand %p11526_p8, %p10918_p7 }
  0x24   : > { %p10921_p10 = pneg %p10920_p9 }
  0x26   : > { %p10926_p12 = pnand %p10924_p11, %p10921_p10 }
  0x28   : > { %10929 = shalt.err (!%p10926_p12)
}
  0x29   : > { %s10930_s13 = scalar_lea.vmem %s11498_s30, 64  ;;  %p10938_p5 = scmp.lt.s32.totalorder %s11498_s30, %s11498_s30 }
  0x2a   : > { %p10931_p13 = scmp.ne.s32.totalorder %s11498_s30, %s10930_s13  ;;  %p10939_p3 = scmp.lt.s32.totalorder %s10930_s13, %s10930_s13 }
  0x2c   : > { %p10933_p0 = pnand %p10931_p13, %p11526_p8  ;;  %p10940_p7 = por %p10939_p3, %p10938_p5 }
  0x2e   : > { %p10934_p2 = pneg %p10933_p0 }
  0x30   : > { %p10941_p9 = pnand %p10940_p7, %p10934_p2 }
  0x32   : > { %10944 = shalt.err (!%p10941_p9)
}
  0x33   : > { %10683 = dma.hbm_to_vmem [thread:$0]  (!%p11510_p6), %s15918_s2, 64, %s11498_s30, [#allocation7]  }
  0x34   : > { %s10945_s16 = scalar_lea.hbm %s15479_s3, 64 }
  0x35   : > { %p10946_p10 = scmp.ne.s32.totalorder %s15479_s3, %s10945_s16  ;;  %p10952_p12 = scmp.lt.u32.totalorder %s10945_s16, %s15479_s3 }
  0x37   : > { %p10948_p3 = pnand %p10946_p10, %p11526_p8 }
  0x39   : > { %p10949_p11 = pneg %p10948_p3 }
  0x3b   : > { %p10954_p13 = pnand %p10952_p12, %p10949_p11 }
  0x3d   : > { %10957 = shalt.err (!%p10954_p13)
}
  0x3e   : > { %s10958_s30 = scalar_lea.vmem %s11506_s17, 64  ;;  %p10966_p7 = scmp.lt.s32.totalorder %s11506_s17, %s11506_s17 }
  0x3f   : > { %p10959_p0 = scmp.ne.s32.totalorder %s11506_s17, %s10958_s30  ;;  %p10967_p9 = scmp.lt.s32.totalorder %s10958_s30, %s10958_s30 }
  0x41   : > { %p10961_p2 = pnand %p10959_p0, %p11526_p8  ;;  %p10968_p10 = por %p10967_p9, %p10966_p7 }
  0x43   : > { %p10962_p5 = pneg %p10961_p2 }
  0x45   : > { %p10969_p3 = pnand %p10968_p10, %p10962_p5 }
  0x47   : > { %10972 = shalt.err (!%p10969_p3)
}
  0x48   : > { %10686 = dma.hbm_to_vmem [thread:$0]  (!%p11510_p6), %s15479_s3, 64, %s11506_s17, [#allocation10]  }
  0x49   : > { %s10973_s24 = scalar_lea.hbm %s15481_s5, 32 }
  0x4a   : > { %p10974_p11 = scmp.ne.s32.totalorder %s15481_s5, %s10973_s24  ;;  %p10980_p0 = scmp.lt.u32.totalorder %s10973_s24, %s15481_s5 }
  0x4c   : > { %p10976_p12 = pnand %p10974_p11, %p11526_p8 }
  0x4e   : > { %p10977_p13 = pneg %p10976_p12 }
  0x50   : > { %p10982_p2 = pnand %p10980_p0, %p10977_p13 }
  0x52   : > { %10985 = shalt.err (!%p10982_p2)
}
  0x53   : > { %s10986_s17 = scalar_lea.vmem %s11514_s19, 32  ;;  %p10994_p10 = scmp.lt.s32.totalorder %s11514_s19, %s11514_s19 }
  0x54   : > { %p10987_p5 = scmp.ne.s32.totalorder %s11514_s19, %s10986_s17  ;;  %p10995_p3 = scmp.lt.s32.totalorder %s10986_s17, %s10986_s17 }
  0x56   : > { %p10989_p7 = pnand %p10987_p5, %p11526_p8  ;;  %p10996_p11 = por %p10995_p3, %p10994_p10 }
  0x58   : > { %p10990_p9 = pneg %p10989_p7 }
  0x5a   : > { %p10997_p12 = pnand %p10996_p11, %p10990_p9 }
  0x5c   : > { %11000 = shalt.err (!%p10997_p12)
}
  0x5d   : > { %10692 = dma.hbm_to_vmem [thread:$0]  (!%p11510_p6), %s15481_s5, 32, %s11514_s19, [#allocation13]  }
  0x5e   : > { %s11379_s15 = smov [#allocation18]   ;;  %s11001_s29 = scalar_lea.hbm %s15483_s7, 16 }
  0x5f   : > { %s438_s11 = sshll.u32 %s11379_s15, 4  ;;  %p11002_p13 = scmp.ne.s32.totalorder %s15483_s7, %s11001_s29  ;;  %s439_s11 = int_to_ptr.vmem [resolvable:$true] %s438_s11 }
  0x60   : > { %p11008_p5 = scmp.lt.u32.totalorder %s11001_s29, %s15483_s7 }
  0x61   : > { %p11004_p0 = pnand %p11002_p13, %p11526_p8 }
  0x63   : > { %p11005_p2 = pneg %p11004_p0 }
  0x65   : > { %p11010_p7 = pnand %p11008_p5, %p11005_p2 }
  0x67   : > { %11013 = shalt.err (!%p11010_p7)
}
  0x68   : > { %s11014_s19 = scalar_lea.vmem %s416_s22, 16  ;;  %s11021_s30 = scalar_lea.vmem %s416_s22, 32 }
  0x69   : > { %p11015_p9 = scmp.ne.s32.totalorder %s416_s22, %s11014_s19  ;;  %p11022_p11 = scmp.lt.s32.totalorder %s416_s22, %s416_s22 }
  0x6a   : > { %p11023_p12 = scmp.lt.s32.totalorder %s11021_s30, %s11014_s19 }
  0x6b   : > { %p11017_p10 = pnand %p11015_p9, %p11526_p8 }
  0x6c   : > { %p11024_p1 = por %p11023_p12, %p11022_p11 }
  0x6d   : > { %p11018_p3 = pneg %p11017_p10 }
  0x6f   : > { %p11025_p4 = pnand %p11024_p1, %p11018_p3 }
  0x71   : > { %11028 = shalt.err (!%p11025_p4)
}
  0x72   : > { %10698 = dma.hbm_to_vmem [thread:$0]  (!%p11510_p6), %s15483_s7, 16, %s416_s22, [#allocation16]  }
  0x73   : > { %s11029_s29 = scalar_lea.hbm %s15485_s9, 6144 }
  0x74   : > { %p11030_p13 = scmp.ne.s32.totalorder %s15485_s9, %s11029_s29  ;;  %p11036_p4 = scmp.lt.u32.totalorder %s11029_s29, %s15485_s9 }
  0x76   : > { %p11032_p0 = pnand %p11030_p13, %p11526_p8 }
  0x78   : > { %p11033_p1 = pneg %p11032_p0 }
  0x7a   : > { %p11038_p2 = pnand %p11036_p4, %p11033_p1 }
  0x7c   : > { %11041 = shalt.err (!%p11038_p2)
}
  0x7d   : > { %s11042_s19 = scalar_lea.vmem %s439_s11, 6144  ;;  %p11050_p10 = scmp.lt.s32.totalorder %s439_s11, %s439_s11 }
  0x7e   : > { %p11043_p5 = scmp.ne.s32.totalorder %s439_s11, %s11042_s19  ;;  %p11051_p3 = scmp.lt.s32.totalorder %s11042_s19, %s11042_s19 }
  0x80   : > { %p11045_p7 = pnand %p11043_p5, %p11526_p8  ;;  %p11052_p11 = por %p11051_p3, %p11050_p10 }
  0x82   : > { %p11046_p9 = pneg %p11045_p7 }
  0x84   : > { %p11053_p12 = pnand %p11052_p11, %p11046_p9 }
  0x86   : > { %11056 = shalt.err (!%p11053_p12)
}
  0x87   : > { %s11380_s22 = smov 1536   ;;  %s11381_s30 = smov 96  }
  0x88   : > { %10704 = dma.hbm_to_vmem [thread:$0]  (!%p11510_p6), %s15485_s9, 6144, %s439_s11, [#allocation19], %s11380_s22, %s11380_s22, %s11381_s30  }
  0x89   : > { %s11382_s23 = smov [#allocation11]   ;;  %s11057_s21 = scalar_lea.hbm %s15480_s4, 8192 }
  0x8a   : > { %s379_s24 = sshll.u32 %s11382_s23, 4  ;;  %p11058_p13 = scmp.ne.s32.totalorder %s15480_s4, %s11057_s21  ;;  %s380_s24 = int_to_ptr.vmem [resolvable:$true] %s379_s24 }
  0x8b   : > { %p11064_p4 = scmp.lt.u32.totalorder %s11057_s21, %s15480_s4 }
  0x8c   : > { %p11060_p0 = pnand %p11058_p13, %p11526_p8 }
  0x8e   : > { %p11061_p1 = pneg %p11060_p0 }
  0x90   : > { %p11066_p2 = pnand %p11064_p4, %p11061_p1 }
  0x92   : > { %11069 = shalt.err (!%p11066_p2)
}
  0x93   : > { %s11070_s11 = scalar_lea.vmem %s380_s24, 8192  ;;  %p11078_p10 = scmp.lt.s32.totalorder %s380_s24, %s380_s24 }
  0x94   : > { %p11071_p5 = scmp.ne.s32.totalorder %s380_s24, %s11070_s11  ;;  %p11079_p3 = scmp.lt.s32.totalorder %s11070_s11, %s11070_s11 }
  0x96   : > { %p11073_p7 = pnand %p11071_p5, %p11526_p8  ;;  %p11080_p11 = por %p11079_p3, %p11078_p10 }
  0x98   : > { %p11074_p9 = pneg %p11073_p7 }
  0x9a   : > { %p11081_p12 = pnand %p11080_p11, %p11074_p9 }
  0x9c   : > { %11084 = shalt.err (!%p11081_p12)
}
  0x9d   : > { %s11383_s22 = smov 128   ;;  %s11384_s30 = smov 8  }
  0x9e   : > { %10689 = dma.hbm_to_vmem [thread:$0]  (!%p11510_p6), %s15480_s4, 8192, %s380_s24, [#allocation10], %s11383_s22, %s11383_s22, %s11384_s30  }
  0x9f   : > { %s11385_s15 = smov [#allocation14]   ;;  %s11386_s29 = smov [#allocation17]  }
  0xa0   : > { %s404_s23 = sshll.u32 %s11385_s15, 4  ;;  %s425_s16 = sshll.u32 %s11386_s29, 4  ;;  %s405_s23 = int_to_ptr.vmem [resolvable:$true] %s404_s23  ;;  %s11651_s16 = int_to_ptr.vmem [resolvable:$true] %s425_s16 }
  0xa1   : > { %s11085_s17 = scalar_lea.hbm %s15482_s6, 16 }
  0xa2   : > { %p11086_p13 = scmp.ne.s32.totalorder %s15482_s6, %s11085_s17  ;;  %p11092_p4 = scmp.lt.u32.totalorder %s11085_s17, %s15482_s6 }
  0xa4   : > { %p11088_p0 = pnand %p11086_p13, %p11526_p8 }
  0xa6   : > { %p11089_p1 = pneg %p11088_p0 }
  0xa8   : > { %p11094_p2 = pnand %p11092_p4, %p11089_p1 }
  0xaa   : > { %11097 = shalt.err (!%p11094_p2)
}
  0xab   : > { %s11098_s12 = scalar_lea.vmem %s405_s23, 16  ;;  %s11105_s15 = scalar_lea.vmem %s405_s23, 32 }
  0xac   : > { %p11099_p5 = scmp.ne.s32.totalorder %s405_s23, %s11098_s12  ;;  %p11106_p10 = scmp.lt.s32.totalorder %s405_s23, %s405_s23 }
  0xad   : > { %p11107_p3 = scmp.lt.s32.totalorder %s11105_s15, %s11098_s12 }
  0xae   : > { %p11101_p7 = pnand %p11099_p5, %p11526_p8 }
  0xaf   : > { %p11108_p11 = por %p11107_p3, %p11106_p10 }
  0xb0   : > { %p11102_p9 = pneg %p11101_p7 }
  0xb2   : > { %p11109_p12 = pnand %p11108_p11, %p11102_p9 }
  0xb4   : > { %11112 = shalt.err (!%p11109_p12)
}
  0xb5   : > { %10695 = dma.hbm_to_vmem [thread:$0]  (!%p11510_p6), %s15482_s6, 16, %s405_s23, [#allocation13]  }
  0xb6   : > { %s11113_s19 = scalar_lea.hbm %s15484_s8, 2048 }
  0xb7   : > { %p11114_p13 = scmp.ne.s32.totalorder %s15484_s8, %s11113_s19  ;;  %p11120_p4 = scmp.lt.u32.totalorder %s11113_s19, %s15484_s8 }
  0xb9   : > { %p11116_p0 = pnand %p11114_p13, %p11526_p8 }
  0xbb   : > { %p11117_p1 = pneg %p11116_p0 }
  0xbd   : > { %p11122_p2 = pnand %p11120_p4, %p11117_p1 }
  0xbf   : > { %11125 = shalt.err (!%p11122_p2)
}
  0xc0   : > { %s11126_s23 = scalar_lea.vmem %s11651_s16, 2048  ;;  %p11134_p10 = scmp.lt.s32.totalorder %s11651_s16, %s11651_s16 }
  0xc1   : > { %p11127_p5 = scmp.ne.s32.totalorder %s11651_s16, %s11126_s23  ;;  %p11135_p3 = scmp.lt.s32.totalorder %s11126_s23, %s11126_s23 }
  0xc3   : > { %p11129_p7 = pnand %p11127_p5, %p11526_p8  ;;  %p11136_p11 = por %p11135_p3, %p11134_p10 }
  0xc5   : > { %p11130_p9 = pneg %p11129_p7 }
  0xc7   : > { %p11137_p12 = pnand %p11136_p11, %p11130_p9 }
  0xc9   : > { %11140 = shalt.err (!%p11137_p12)
}
  0xca   : > { %10701 = dma.hbm_to_vmem [thread:$0]  (!%p11510_p6), %s15484_s8, 2048, %s11651_s16, [#allocation16], %s11383_s22, %s11383_s22, %s11384_s30  }
  0xcb   : > { %s11387_s21 = smov [#allocation20]   ;;  %s11141_s11 = scalar_lea.hbm %s15486_s10, 16 }
  0xcc   : > { %s452_s13 = sshll.u32 %s11387_s21, 4  ;;  %p11142_p13 = scmp.ne.s32.totalorder %s15486_s10, %s11141_s11  ;;  %s453_s13 = int_to_ptr.vmem [resolvable:$true] %s452_s13 }
  0xcd   : > { %p11148_p4 = scmp.lt.u32.totalorder %s11141_s11, %s15486_s10 }
  0xce   : > { %p11144_p0 = pnand %p11142_p13, %p11526_p8 }
  0xd0   : > { %p11145_p1 = pneg %p11144_p0 }
  0xd2   : > { %p11150_p2 = pnand %p11148_p4, %p11145_p1 }
  0xd4   : > { %11153 = shalt.err (!%p11150_p2)
}
  0xd5   : > { %s11154_s22 = scalar_lea.vmem %s453_s13, 16  ;;  %s11161_s30 = scalar_lea.vmem %s453_s13, 32 }
  0xd6   : > { %p11155_p5 = scmp.ne.s32.totalorder %s453_s13, %s11154_s22  ;;  %p11162_p10 = scmp.lt.s32.totalorder %s453_s13, %s453_s13 }
  0xd7   : > { %p11163_p3 = scmp.lt.s32.totalorder %s11161_s30, %s11154_s22 }
  0xd8   : > { %p11157_p7 = pnand %p11155_p5, %p11526_p8 }
  0xd9   : > { %p11164_p11 = por %p11163_p3, %p11162_p10 }
  0xda   : > { %p11158_p9 = pneg %p11157_p7 }
  0xdc   : > { %p11165_p12 = pnand %p11164_p11, %p11158_p9 }
  0xde   : > { %11168 = shalt.err (!%p11165_p12)
}
  0xdf   : > { %10707 = dma.hbm_to_vmem [thread:$0]  (!%p11510_p6), %s15486_s10, 16, %s453_s13, [#allocation19]  }
  0xe0   : > { %s11716_s18 = sadd.s32 1, %s11373_s28   ;;  %s43_s29 = sadd.s32 1, %s11369_s27 }
  0xe1   : > { %s40_s20 = ssub.s32 %s11373_s28, %s11716_s18  ;;  %p50_p13 = scmp.ne.s32.totalorder %s11369_s27, %s11365_s26 }
  0xe2   : > { %p41_p8 = scmp.eq.s32.totalorder %s40_s20, 0  ;;  %p51_p0 = scmp.eq.s32.totalorder %s11373_s28, 0 }
  0xe3   : > { %p56_p1 = scmp.ne.s32.totalorder %s11365_s26, %s11361_s25  ;;  %p15920_p2 = scmp.eq.s32.totalorder %s11492_s14, 0 }
  0xe4   : > { %s11727_s21 = scalar_select %p41_p8, %s11369_s27, %s43_s29  }
  0xe5   : > { %p52_p4 = por %p51_p0, %p50_p13  ;;  %p11731_p5 = por %p15920_p2, %p56_p1 }
  0xe6   : > { %p10724_p7 = scmp.lt.s32.totalorder %s11373_s28, 3  ;;  %s11737_s19 = sand.u32 1, %s11369_s27  }
  0xe7   : > { %s10620_s13 = smul.u32 10, %s11737_s19  ;;  %s15923_s0 = sld [smem:[#allocation108_spill]] }
  0xe8   : > { %s8907_s11 = smul.u32 160, %s11373_s28  ;;  %p11741_p6 = pnand %p10724_p7, %p52_p4 }
  0xe9   : > { %s10621_s25 = smul.u32 1280, %s11737_s19  ;;  %s467_s22 = scalar_lea.vmem [#allocation3], %s10620_s13 }
  0xea   : > { %s475_s30 = sshll.u32 %s467_s22, 4  ;;  %s464_s16 = scalar_lea.sflag [#allocation4], %s11737_s19  ;;  %s11751_s30 = int_to_ptr.vmem [resolvable:$true] %s475_s30 }
  0xeb   : > { %p11171_p10 = pneg %p11741_p6 }
  0xed   : > { %s11749_s23 = scalar_lea.hbm %s15923_s0, %s8907_s11  ;;  %s11174_s11 = scalar_lea.hbm %s15923_s0, 480 }
  0xee   : > { %s11169_s15 = scalar_lea.hbm %s11749_s23, 160  ;;  %p11175_p12 = scmp.lt.u32.totalorder %s11749_s23, %s15923_s0 }
  0xef   : > { %p11170_p9 = scmp.ne.s32.totalorder %s11749_s23, %s11169_s15  ;;  %p11176_p8 = scmp.lt.u32.totalorder %s11174_s11, %s11169_s15 }
  0xf0   : > { %p11178_p0 = scmp.lt.u32.totalorder %s11169_s15, %s11749_s23 }
  0xf1   : > { %p11172_p3 = pnand %p11171_p10, %p11170_p9  ;;  %p11177_p13 = por %p11176_p8, %p11175_p12 }
  0xf3   : > { %p11173_p11 = pneg %p11172_p3  ;;  %p11179_p1 = por %p11178_p0, %p11177_p13 }
  0xf5   : > { %p11180_p4 = pnand %p11179_p1, %p11173_p11 }
  0xf7   : > { %11183 = shalt.err (!%p11180_p4)
}
  0xf8   : > { %s11184_s13 = scalar_lea.vmem %s11751_s30, 160  ;;  %s11388_s22 = smov [#allocation3]  }
  0xf9   : > { %p11185_p2 = scmp.ne.s32.totalorder %s11751_s30, %s11184_s13  ;;  %s11189_s20 = sshll.u32 %s11388_s22, 4  ;;  %s11190_s20 = int_to_ptr.vmem [resolvable:$false] %s11189_s20 }
  0xfa   : > { %s11191_s29 = scalar_lea.vmem %s11190_s20, 320  ;;  %p11192_p3 = scmp.lt.s32.totalorder %s11751_s30, %s11190_s20 }
  0xfb   : > { %p11187_p7 = pnand %p11185_p2, %p11171_p10  ;;  %p11193_p12 = scmp.lt.s32.totalorder %s11191_s29, %s11184_s13 }
  0xfd   : > { %p11188_p9 = pneg %p11187_p7  ;;  %p11194_p8 = por %p11193_p12, %p11192_p3 }
  0xff   : > { %p11195_p13 = pnand %p11194_p8, %p11188_p9 }
 0x101   : > { %11198 = shalt.err (!%p11195_p13)
}
 0x102   : > { %10711 = dma.hbm_to_vmem [thread:$0]  (!%p11741_p6), %s11749_s23, 160, %s11751_s30, %s464_s16  }
 0x103   : > { %s482_s15 = sand.u32 1, %s11373_s28   ;;  %s486_s11 = scalar_lea.vmem [#allocation6], %s10621_s25 }
 0x104   : > { %s494_s24 = sshll.u32 %s486_s11, 4  ;;  %s8910_s12 = smul.u32 20480, %s11373_s28  ;;  %s11782_s24 = int_to_ptr.vmem [resolvable:$true] %s494_s24 }
 0x105   : > { %s11790_s29 = scalar_lea.sflag [#allocation7], %s482_s15  ;;  %s11204_s28 = scalar_lea.hbm %s15477_s1, 61440 }
 0x106   : > { %s11788_s20 = scalar_lea.hbm %s15477_s1, %s8910_s12 }
 0x107   : > { %s11199_s0 = scalar_lea.hbm %s11788_s20, 20480  ;;  %p11205_p4 = scmp.lt.u32.totalorder %s11788_s20, %s15477_s1 }
 0x108   : > { %p11200_p11 = scmp.ne.s32.totalorder %s11788_s20, %s11199_s0  ;;  %p11206_p2 = scmp.lt.u32.totalorder %s11204_s28, %s11199_s0 }
 0x109   : > { %p11208_p9 = scmp.lt.u32.totalorder %s11199_s0, %s11788_s20 }
 0x10a   : > { %p11202_p0 = pnand %p11200_p11, %p11171_p10  ;;  %p11207_p7 = por %p11206_p2, %p11205_p4 }
 0x10c   : > { %p11203_p1 = pneg %p11202_p0  ;;  %p11209_p3 = por %p11208_p9, %p11207_p7 }
 0x10e   : > { %p11210_p12 = pnand %p11209_p3, %p11203_p1 }
 0x110   : > { %11213 = shalt.err (!%p11210_p12)
}
 0x111   : > { %s11214_s16 = scalar_lea.vmem %s11782_s24, 20480  ;;  %s11389_s15 = smov [#allocation6]  }
 0x112   : > { %p11215_p8 = scmp.ne.s32.totalorder %s11782_s24, %s11214_s16  ;;  %s11219_s11 = sshll.u32 %s11389_s15, 4  ;;  %s11220_s11 = int_to_ptr.vmem [resolvable:$false] %s11219_s11 }
 0x113   : > { %s11221_s12 = scalar_lea.vmem %s11220_s11, 40960  ;;  %p11222_p0 = scmp.lt.s32.totalorder %s11782_s24, %s11220_s11 }
 0x114   : > { %p11217_p13 = pnand %p11215_p8, %p11171_p10  ;;  %p11223_p4 = scmp.lt.s32.totalorder %s11221_s12, %s11214_s16 }
 0x116   : > { %p11218_p11 = pneg %p11217_p13  ;;  %p11224_p2 = por %p11223_p4, %p11222_p0 }
 0x118   : > { %p11225_p7 = pnand %p11224_p2, %p11218_p11 }
 0x11a   : > { %11228 = shalt.err (!%p11225_p7)
}
 0x11b   : > { %s11390_s0 = smov 512   ;;  %s11391_s13 = smov 32  }
 0x11c   : > { %10714 = dma.hbm_to_vmem [thread:$0]  (!%p11741_p6), %s11788_s20, 20480, %s11782_s24, %s11790_s29, %s11390_s0, %s11390_s0, %s11391_s13  }
 0x11d   : > { %s15924_s22 = sld [smem:[#allocation34_spill]] }
 0x123   : > { %p15925_p10 = scmp.ne.s32.totalorder %s15924_s22, 0 }
 0x124   : > { %s508_s19 = sand.u32 (!%p15925_p10), 1, %s11365_s26  }
 0x125   : > { %506 = sbr.rel (%p15925_p10) target bundleno = 2565 (0xa05), region = 64  ;;  %s509_s28 = scalar_lea.sflag (!%p15925_p10), [#allocation4], %s508_s19 }
 0x126   : > { %s10622_s25 = smul.u32 (!%p15925_p10), 10, %s508_s19 }
 0x128   : > { %s11819_s23 = scalar_lea.vmem (!%p15925_p10), [#allocation3], %s10622_s25 }
 0x12c   : > { %11324 = dma.done.wait (%p11731_p5), %s509_s28, 160  }
 0x12d   : > { %11326 = vsyncadd (%p11731_p5), %s509_s28, 4294967136  ;;  %s517_s30 = sand.u32 1, %s11492_s14   ;;  %s10623_s2 = smul.u32 1280, %s508_s19 }
 0x12e   : > { %s518_s24 = scalar_lea.sflag [#allocation7], %s517_s30 }
 0x12f   : > { %s11826_s20 = scalar_lea.vmem [#allocation6], %s10623_s2 }
 0x130   : > { %11328 = dma.done.wait (%p11731_p5), %s518_s24, 20480  }
 0x131   : > { %11330 = vsyncadd (%p11731_p5), %s518_s24, 4294946816  ;;  %p15926_p6 = scmp.eq.s32.totalorder %s11492_s14, 0 }
 0x133   : > { %11332 = dma.done.wait (%p15926_p6), [#allocation7], 64   ;;  %p15927_p1 = pmov %p15926_p6 }
 0x135   : > { %11334 = vsyncadd (%p15927_p1), [#allocation7], 4294967232  ;;  %p15928_p9 = pmov %p15927_p1 }
 0x136   : > { %p15929_p3 = pmov %p15927_p1 }
 0x137   : > { %11336 = dma.done.wait (%p15928_p9), [#allocation10], 8256  }
 0x138   : > { %11338 = vsyncadd (%p15929_p3), [#allocation10], 4294959040  ;;  %p15930_p12 = pmov %p15927_p1 }
 0x139   : > { %p15931_p8 = pmov %p15927_p1 }
 0x13a   : > { %11340 = dma.done.wait (%p15930_p12), [#allocation13], 48  }
 0x13b   : > { %11342 = vsyncadd (%p15931_p8), [#allocation13], 4294967248  ;;  %p15932_p5 = pmov %p15927_p1 }
 0x13c   : > { %p15933_p13 = pmov %p15927_p1 }
 0x13d   : > { %11344 = dma.done.wait (%p15932_p5), [#allocation16], 2064  }
 0x13e   : > { %11346 = vsyncadd (%p15933_p13), [#allocation16], 4294965232  ;;  %p15934_p11 = pmov %p15927_p1 }
 0x13f   : > { %p15935_p0 = pmov %p15927_p1 }
 0x140   : > { %11348 = dma.done.wait (%p15934_p11), [#allocation19], 6160  }
 0x141   : > { %11350 = vsyncadd (%p15935_p0), [#allocation19], 4294961136  ;;  %p15936_p4 = scmp.ne.s32.totalorder %s11492_s14, 0 }
 0x142   : > { %v11392_v0 = vmov (!%p15936_p4), 0.0  }
 0x143   : > { %605 = sbr.rel (%p15936_p4) target bundleno = 330 (0x14a), region = 112  ;;  %606 = vst [vmem:[#allocation2] sm:$0xff] (!%p15936_p4), %v11392_v0 }
 0x14a PF: > { %v608_v1 = vld [vmem:[%s11826_s20 + $0x8] sm:$0xff]  ;;  %v610_v2 = vld [vmem:[%s11826_s20 + $0x18] sm:$0xff]  ;;  %v607_v3 = vld [vmem:[%s11826_s20] sm:$0xff]  ;;  %v1096_v31 = vlaneseq  ;;  %v11393_v36 = vmov 1966171168   ;;  %p8830_p2 = scmp.ne.s32.totalorder %s11492_s14, 2 }
 0x14b   : > { %v768_v4 = vunpack.c.l.s8.bf16 %v608_v1  ;;  %v772_v5 = vunpack.c.h.s8.bf16 %v608_v1  ;;  %v770_v6 = vunpack.c.l.s8.bf16 %v610_v2  ;;  %v774_v7 = vunpack.c.h.s8.bf16 %v610_v2  ;;  %v609_v8 = vld [vmem:[%s11826_s20 + $0x10] sm:$0xff]  ;;  %v612_v11 = vld [vmem:[%s11826_s20 + $0x28] sm:$0xff]  ;;  %v614_v12 = vld [vmem:[%s11826_s20 + $0x38] sm:$0xff] }
 0x14c   : > { %v767_v9 = vunpack.c.l.s8.bf16 %v607_v3  ;;  %v769_v10 = vunpack.c.l.s8.bf16 %v609_v8  ;;  %v771_v13 = vunpack.c.h.s8.bf16 %v607_v3  ;;  %v773_v14 = vunpack.c.h.s8.bf16 %v609_v8  ;;  %v611_v17 = vld [vmem:[%s11826_s20 + $0x20] sm:$0xff]  ;;  %v613_v18 = vld [vmem:[%s11826_s20 + $0x30] sm:$0xff]  ;;  %v616_v23 = vld [vmem:[%s11826_s20 + $0x48] sm:$0xff] }
 0x14d   : > { %1173 = vmatprep.subr.bf16.mxu0 %v768_v4  ;;  %1378 = vmatprep.subr.bf16.mxu1 %v770_v6  ;;  %v776_v15 = vunpack.c.l.s8.bf16 %v612_v11  ;;  %v778_v16 = vunpack.c.l.s8.bf16 %v614_v12  ;;  %v775_v19 = vunpack.c.l.s8.bf16 %v611_v17  ;;  %v777_v20 = vunpack.c.l.s8.bf16 %v613_v18  ;;  %v618_v24 = vld [vmem:[%s11826_s20 + $0x58] sm:$0xff]  ;;  %v615_v29 = vld [vmem:[%s11826_s20 + $0x40] sm:$0xff]  ;;  %v617_v30 = vld [vmem:[%s11826_s20 + $0x50] sm:$0xff] }
 0x14e   : > { %1174 = vmatpush1.bf16.msra.mxu0 %v767_v9  ;;  %1379 = vmatpush1.bf16.msra.mxu1 %v769_v10  ;;  %v780_v21 = vunpack.c.h.s8.bf16 %v612_v11  ;;  %v782_v22 = vunpack.c.h.s8.bf16 %v614_v12  ;;  %v779_v25 = vunpack.c.h.s8.bf16 %v611_v17  ;;  %v781_v26 = vunpack.c.h.s8.bf16 %v613_v18  ;;  %v620_v39 = vld [vmem:[%s11826_s20 + $0x68] sm:$0xff]  ;;  %v622_v40 = vld [vmem:[%s11826_s20 + $0x78] sm:$0xff]  ;;  %v619_v47 = vld [vmem:[%s11826_s20 + $0x60] sm:$0xff] }
 0x14f   : > { %1175 = vmatprep.subr.bf16.mxu0 %v772_v5  ;;  %1380 = vmatprep.subr.bf16.mxu1 %v774_v7  ;;  %v784_v27 = vunpack.c.l.s8.bf16 %v616_v23  ;;  %v786_v28 = vunpack.c.l.s8.bf16 %v618_v24  ;;  %v783_v32 = vunpack.c.l.s8.bf16 %v615_v29  ;;  %v785_v33 = vunpack.c.l.s8.bf16 %v617_v30  ;;  %v11871_v44 = vld [vmem:[%s11819_s23] sm:$0xff]  ;;  %v623_v63 = vld [vmem:[%s11826_s20 + $0x80] sm:$0xff] }
 0x150   : > { %v788_v34 = vunpack.c.h.s8.bf16 %v616_v23  ;;  %v790_v35 = vunpack.c.h.s8.bf16 %v618_v24  ;;  %v1094_v37 = vunpack.c.l.s4 %v11393_v36  ;;  %v11866_v38 = vshrl.u32 %v1096_v31, 7  ;;  %v621_v48 = vld [vmem:[%s11826_s20 + $0x70] sm:$0xff]  ;;  %v624_v56 = vld [vmem:[%s11826_s20 + $0x88] sm:$0xff]  ;;  %v626_v57 = vld [vmem:[%s11826_s20 + $0x98] sm:$0xff] }
 0x151   : > { %v787_v42 = vunpack.c.h.s8.bf16 %v615_v29  ;;  %v789_v43 = vunpack.c.h.s8.bf16 %v617_v30  ;;  %v792_v45 = vunpack.c.l.s8.bf16 %v620_v39  ;;  %v794_v46 = vunpack.c.l.s8.bf16 %v622_v40  ;;  %v625_v0 = vld [vmem:[%s11826_s20 + $0x90] sm:$0xff]  ;;  %v628_v5 = vld [vmem:[%s11826_s20 + $0xa8] sm:$0xff]  ;;  %v630_v6 = vld [vmem:[%s11826_s20 + $0xb8] sm:$0xff] }
 0x152   : > { %1176 = vmatpush1.bf16.msra.mxu0 %v771_v13  ;;  %1381 = vmatpush1.bf16.msra.mxu1 %v773_v14  ;;  %v1095_v41 = vunpack.c.0.s8 %v1094_v37  ;;  %v791_v51 = vunpack.c.l.s8.bf16 %v619_v47  ;;  %v793_v52 = vunpack.c.l.s8.bf16 %v621_v48  ;;  %v796_v53 = vunpack.c.h.s8.bf16 %v620_v39  ;;  %v627_v11 = vld [vmem:[%s11826_s20 + $0xa0] sm:$0xff]  ;;  %v629_v12 = vld [vmem:[%s11826_s20 + $0xb0] sm:$0xff]  ;;  %v632_v17 = vld [vmem:[%s11826_s20 + $0xc8] sm:$0xff] }
 0x153   : > { %1177 = vmatprep.subr.bf16.mxu0 %v776_v15  ;;  %1382 = vmatprep.subr.bf16.mxu1 %v778_v16  ;;  %v798_v54 = vunpack.c.h.s8.bf16 %v622_v40  ;;  %v795_v59 = vunpack.c.h.s8.bf16 %v619_v47  ;;  %v797_v60 = vunpack.c.h.s8.bf16 %v621_v48  ;;  %v800_v61 = vunpack.c.l.s8.bf16 %v624_v56  ;;  %v634_v18 = vld [vmem:[%s11826_s20 + $0xd8] sm:$0xff]  ;;  %v631_v23 = vld [vmem:[%s11826_s20 + $0xc0] sm:$0xff]  ;;  %v633_v24 = vld [vmem:[%s11826_s20 + $0xd0] sm:$0xff] }
 0x154   : > { %v11876_v49 = vsub.s32 %v1095_v41, %v11866_v38  ;;  %v802_v62 = vunpack.c.l.s8.bf16 %v626_v57  ;;  %v799_v1 = vunpack.c.l.s8.bf16 %v623_v63  ;;  %v801_v2 = vunpack.c.l.s8.bf16 %v625_v0  ;;  %v636_v29 = vld [vmem:[%s11826_s20 + $0xe8] sm:$0xff]  ;;  %v638_v30 = vld [vmem:[%s11826_s20 + $0xf8] sm:$0xff]  ;;  %v637_v36 = vld [vmem:[%s11826_s20 + $0xf0] sm:$0xff] }
 0x155   : > { %v804_v3 = vunpack.c.h.s8.bf16 %v624_v56  ;;  %v806_v4 = vunpack.c.h.s8.bf16 %v626_v57  ;;  %v803_v7 = vunpack.c.h.s8.bf16 %v623_v63  ;;  %v805_v8 = vunpack.c.h.s8.bf16 %v625_v0 }
 0x156   : > { %1178 = vmatpush1.bf16.msra.mxu0 %v775_v19  ;;  %1383 = vmatpush1.bf16.msra.mxu1 %v777_v20  ;;  %v11880_v50 = vrot.slane %v11871_v44, %v11876_v49  ;;  %v808_v9 = vunpack.c.l.s8.bf16 %v628_v5  ;;  %v810_v10 = vunpack.c.l.s8.bf16 %v630_v6  ;;  %v807_v13 = vunpack.c.l.s8.bf16 %v627_v11 }
 0x157   : > { %1179 = vmatprep.subr.bf16.mxu0 %v780_v21  ;;  %1384 = vmatprep.subr.bf16.mxu1 %v782_v22  ;;  %v809_v14 = vunpack.c.l.s8.bf16 %v629_v12  ;;  %v812_v15 = vunpack.c.h.s8.bf16 %v628_v5  ;;  %v814_v16 = vunpack.c.h.s8.bf16 %v630_v6  ;;  %v811_v19 = vunpack.c.h.s8.bf16 %v627_v11  ;;  %v648_v6 = vld [vmem:[%s11826_s20 + $0x148] sm:$0xff] }
 0x158   : > { %v1107_v55 = vcombine.high %v11880_v50, %v11880_v50  ;;  %v813_v20 = vunpack.c.h.s8.bf16 %v629_v12  ;;  %v816_v21 = vunpack.c.l.s8.bf16 %v632_v17  ;;  %v818_v22 = vunpack.c.l.s8.bf16 %v634_v18  ;;  %v647_v12 = vld [vmem:[%s11826_s20 + $0x140] sm:$0xff] }
 0x159   : > { %v819_v31 = vunpack.c.h.s8.bf16 %v631_v23  ;;  %v825_v39 = vunpack.c.l.s8.bf16 %v637_v36  ;;  %v828_v40 = vunpack.c.h.s8.bf16 %v636_v29  ;;  %v830_v41 = vunpack.c.h.s8.bf16 %v638_v30 }
 0x15a   : > { %1180 = vmatpush1.bf16.msra.mxu0 %v779_v25  ;;  %1385 = vmatpush1.bf16.msra.mxu1 %v781_v26  ;;  %v11887_v58 = vrot.slane %v1107_v55, %v11876_v49  ;;  %v815_v25 = vunpack.c.l.s8.bf16 %v631_v23  ;;  %v817_v26 = vunpack.c.l.s8.bf16 %v633_v24 }
 0x15b   : > { %1181 = vmatprep.subr.bf16.mxu0 %v784_v27  ;;  %1386 = vmatprep.subr.bf16.mxu1 %v786_v28  ;;  %v820_v27 = vunpack.c.h.s8.bf16 %v632_v17  ;;  %v822_v28 = vunpack.c.h.s8.bf16 %v634_v18  ;;  %v652_v18 = vld [vmem:[%s11826_s20 + $0x168] sm:$0xff] }
 0x15c   : > { %1205 = vmatprep.mubr.bf16.mxu0 %v11887_v58  ;;  %1410 = vmatprep.mubr.bf16.mxu1 %v11887_v58 }
 0x15e   : > { %1182 = vmatpush1.bf16.msra.mxu0 %v783_v32  ;;  %1387 = vmatpush1.bf16.msra.mxu1 %v785_v33  ;;  %v821_v32 = vunpack.c.h.s8.bf16 %v633_v24  ;;  %v824_v33 = vunpack.c.l.s8.bf16 %v636_v29  ;;  %v651_v24 = vld [vmem:[%s11826_s20 + $0x160] sm:$0xff] }
 0x15f   : > { %1183 = vmatprep.subr.bf16.mxu0 %v788_v34  ;;  %1388 = vmatprep.subr.bf16.mxu1 %v790_v35  ;;  %v826_v34 = vunpack.c.l.s8.bf16 %v638_v30  ;;  %v635_v35 = vld [vmem:[%s11826_s20 + $0xe0] sm:$0xff]  ;;  %v656_v30 = vld [vmem:[%s11826_s20 + $0x188] sm:$0xff] }
 0x160   : > { %v823_v37 = vunpack.c.l.s8.bf16 %v635_v35 }
 0x162   : > { %1184 = vmatpush1.bf16.msra.mxu0 %v787_v42  ;;  %1389 = vmatpush1.bf16.msra.mxu1 %v789_v43  ;;  %v640_v42 = vld [vmem:[%s11826_s20 + $0x108] sm:$0xff]  ;;  %v642_v43 = vld [vmem:[%s11826_s20 + $0x118] sm:$0xff] }
 0x163   : > { %1185 = vmatprep.subr.bf16.mxu0 %v792_v45  ;;  %1390 = vmatprep.subr.bf16.mxu1 %v794_v46  ;;  %v827_v45 = vunpack.c.h.s8.bf16 %v635_v35  ;;  %v829_v46 = vunpack.c.h.s8.bf16 %v637_v36  ;;  %v832_v47 = vunpack.c.l.s8.bf16 %v640_v42  ;;  %v834_v48 = vunpack.c.l.s8.bf16 %v642_v43  ;;  %v655_v36 = vld [vmem:[%s11826_s20 + $0x180] sm:$0xff] }
 0x164   : > { %v836_v56 = vunpack.c.h.s8.bf16 %v640_v42  ;;  %v838_v57 = vunpack.c.h.s8.bf16 %v642_v43  ;;  %v660_v43 = vld [vmem:[%s11826_s20 + $0x1a8] sm:$0xff] }
 0x166   : > { %1186 = vmatpush1.bf16.msra.mxu0 %v791_v51  ;;  %1391 = vmatpush1.bf16.msra.mxu1 %v793_v52  ;;  %v639_v51 = vld [vmem:[%s11826_s20 + $0x100] sm:$0xff]  ;;  %v641_v52 = vld [vmem:[%s11826_s20 + $0x110] sm:$0xff] }
 0x167   : > { %1187 = vmatprep.subr.bf16.mxu0 %v796_v53  ;;  %1392 = vmatprep.subr.bf16.mxu1 %v798_v54  ;;  %v11911_v53 = vrot.slane %v11880_v50, %v11876_v49  ;;  %v831_v54 = vunpack.c.l.s8.bf16 %v639_v51  ;;  %v833_v55 = vunpack.c.l.s8.bf16 %v641_v52  ;;  %v835_v50 = vunpack.c.h.s8.bf16 %v639_v51 }
 0x16a   : > { %1188 = vmatpush1.bf16.msra.mxu0 %v795_v59  ;;  %1393 = vmatpush1.bf16.msra.mxu1 %v797_v60  ;;  %v644_v59 = vld [vmem:[%s11826_s20 + $0x128] sm:$0xff]  ;;  %v646_v60 = vld [vmem:[%s11826_s20 + $0x138] sm:$0xff] }
 0x16b   : > { %1189 = vmatprep.subr.bf16.mxu0 %v800_v61  ;;  %1394 = vmatprep.subr.bf16.mxu1 %v802_v62  ;;  %v1139_v61 = vcombine.high %v11887_v58, %v11887_v58  ;;  %v837_v62 = vunpack.c.h.s8.bf16 %v641_v52  ;;  %v840_v63 = vunpack.c.l.s8.bf16 %v644_v59  ;;  %v842_v0 = vunpack.c.l.s8.bf16 %v646_v60  ;;  %v659_v52 = vld [vmem:[%s11826_s20 + $0x1a0] sm:$0xff] }
 0x16c   : > { %v846_v5 = vunpack.c.h.s8.bf16 %v646_v60  ;;  %v664_v60 = vld [vmem:[%s11826_s20 + $0x1c8] sm:$0xff] }
 0x16e   : > { %1190 = vmatpush1.bf16.msra.mxu0 %v799_v1  ;;  %1395 = vmatpush1.bf16.msra.mxu1 %v801_v2  ;;  %v643_v1 = vld [vmem:[%s11826_s20 + $0x120] sm:$0xff]  ;;  %v645_v2 = vld [vmem:[%s11826_s20 + $0x130] sm:$0xff] }
 0x16f   : > { %1191 = vmatprep.subr.bf16.mxu0 %v804_v3  ;;  %1396 = vmatprep.subr.bf16.mxu1 %v806_v4  ;;  %v839_v58 = vunpack.c.l.s8.bf16 %v643_v1  ;;  %v841_v3 = vunpack.c.l.s8.bf16 %v645_v2  ;;  %v844_v4 = vunpack.c.h.s8.bf16 %v644_v59 }
 0x172   : > { %1192 = vmatpush1.bf16.msra.mxu0 %v803_v7  ;;  %1397 = vmatpush1.bf16.msra.mxu1 %v805_v8  ;;  %v650_v7 = vld [vmem:[%s11826_s20 + $0x158] sm:$0xff]  ;;  %v843_v8 = vunpack.c.h.s8.bf16 %v643_v1  ;;  %v663_v1 = vld [vmem:[%s11826_s20 + $0x1c0] sm:$0xff] }
 0x173   : > { %1193 = vmatprep.subr.bf16.mxu0 %v808_v9  ;;  %1398 = vmatprep.subr.bf16.mxu1 %v810_v10  ;;  %v845_v9 = vunpack.c.h.s8.bf16 %v645_v2  ;;  %v848_v10 = vunpack.c.l.s8.bf16 %v648_v6  ;;  %v850_v11 = vunpack.c.l.s8.bf16 %v650_v7  ;;  %v854_v17 = vunpack.c.h.s8.bf16 %v650_v7  ;;  %v665_v2 = vld [vmem:[%s11826_s20 + $0x1d0] sm:$0xff]  ;;  %v670_v7 = vld [vmem:[%s11826_s20 + $0x1f8] sm:$0xff] }
 0x176   : > { %1194 = vmatpush1.bf16.msra.mxu0 %v807_v13  ;;  %1399 = vmatpush1.bf16.msra.mxu1 %v809_v14  ;;  %v649_v13 = vld [vmem:[%s11826_s20 + $0x150] sm:$0xff]  ;;  %v847_v14 = vunpack.c.l.s8.bf16 %v647_v12 }
 0x177   : > { %1195 = vmatprep.subr.bf16.mxu0 %v812_v15  ;;  %1400 = vmatprep.subr.bf16.mxu1 %v814_v16  ;;  %v849_v15 = vunpack.c.l.s8.bf16 %v649_v13  ;;  %v852_v16 = vunpack.c.h.s8.bf16 %v648_v6  ;;  %v668_v6 = vld [vmem:[%s11826_s20 + $0x1e8] sm:$0xff] }
 0x17a   : > { %1196 = vmatpush1.bf16.msra.mxu0 %v811_v19  ;;  %1401 = vmatpush1.bf16.msra.mxu1 %v813_v20  ;;  %v654_v19 = vld [vmem:[%s11826_s20 + $0x178] sm:$0xff]  ;;  %v851_v20 = vunpack.c.h.s8.bf16 %v647_v12  ;;  %v667_v12 = vld [vmem:[%s11826_s20 + $0x1e0] sm:$0xff] }
 0x17b   : > { %1197 = vmatprep.subr.bf16.mxu0 %v816_v21  ;;  %1402 = vmatprep.subr.bf16.mxu1 %v818_v22  ;;  %v853_v21 = vunpack.c.h.s8.bf16 %v649_v13  ;;  %v856_v22 = vunpack.c.l.s8.bf16 %v652_v18  ;;  %v858_v23 = vunpack.c.l.s8.bf16 %v654_v19  ;;  %v862_v29 = vunpack.c.h.s8.bf16 %v654_v19  ;;  %v669_v13 = vld [vmem:[%s11826_s20 + $0x1f0] sm:$0xff]  ;;  %v672_v19 = vld [vmem:[%s11826_s20 + $0x208] sm:$0xff] }
 0x17e   : > { %1198 = vmatpush1.bf16.msra.mxu0 %v815_v25  ;;  %1403 = vmatpush1.bf16.msra.mxu1 %v817_v26  ;;  %v653_v25 = vld [vmem:[%s11826_s20 + $0x170] sm:$0xff]  ;;  %v855_v26 = vunpack.c.l.s8.bf16 %v651_v24 }
 0x17f   : > { %1199 = vmatprep.subr.bf16.mxu0 %v820_v27  ;;  %1404 = vmatprep.subr.bf16.mxu1 %v822_v28  ;;  %v857_v27 = vunpack.c.l.s8.bf16 %v653_v25  ;;  %v860_v28 = vunpack.c.h.s8.bf16 %v652_v18  ;;  %v894_v18 = vunpack.c.h.s8.bf16 %v670_v7 }
 0x182   : > { %1200 = vmatpush1.bf16.msra.mxu0 %v819_v31  ;;  %1405 = vmatpush1.bf16.msra.mxu1 %v821_v32  ;;  %v658_v31 = vld [vmem:[%s11826_s20 + $0x198] sm:$0xff]  ;;  %v859_v32 = vunpack.c.h.s8.bf16 %v651_v24 }
 0x183   : > { %1201 = vmatprep.subr.bf16.mxu0 %v824_v33  ;;  %1406 = vmatprep.subr.bf16.mxu1 %v826_v34  ;;  %v861_v33 = vunpack.c.h.s8.bf16 %v653_v25  ;;  %v864_v34 = vunpack.c.l.s8.bf16 %v656_v30  ;;  %v866_v35 = vunpack.c.l.s8.bf16 %v658_v31  ;;  %v870_v42 = vunpack.c.h.s8.bf16 %v658_v31  ;;  %v671_v25 = vld [vmem:[%s11826_s20 + $0x200] sm:$0xff] }
 0x184   : > { %v900_v31 = vunpack.c.h.s8.bf16 %v672_v19 }
 0x186   : > { %1202 = vmatpush1.bf16.msra.mxu0 %v823_v37  ;;  %1407 = vmatpush1.bf16.msra.mxu1 %v825_v39  ;;  %v657_v37 = vld [vmem:[%s11826_s20 + $0x190] sm:$0xff]  ;;  %v863_v39 = vunpack.c.l.s8.bf16 %v655_v36 }
 0x187   : > { %1203 = vmatprep.subr.bf16.mxu0 %v828_v40  ;;  %1408 = vmatprep.subr.bf16.mxu1 %v830_v41  ;;  %v865_v40 = vunpack.c.l.s8.bf16 %v657_v37  ;;  %v868_v41 = vunpack.c.h.s8.bf16 %v656_v30 }
 0x18a   : > { %1204 = vmatpush1.bf16.msra.mxu0 %v827_v45  ;;  %1409 = vmatpush1.bf16.msra.mxu1 %v829_v46  ;;  %v662_v45 = vld [vmem:[%s11826_s20 + $0x1b8] sm:$0xff]  ;;  %v867_v46 = vunpack.c.h.s8.bf16 %v655_v36 }
 0x18b   : > { %1214 = vmatprep.subr.bf16.mxu0 %v832_v47  ;;  %1419 = vmatprep.subr.bf16.mxu1 %v834_v48  ;;  %v869_v47 = vunpack.c.h.s8.bf16 %v657_v37  ;;  %v872_v48 = vunpack.c.l.s8.bf16 %v660_v43  ;;  %v874_v51 = vunpack.c.l.s8.bf16 %v662_v45  ;;  %v878_v59 = vunpack.c.h.s8.bf16 %v662_v45 }
 0x18d   : > { %1206 = vmatmul.mubr.bf16.vlgmr.msra.gmra.mrb[0].mxu0 %v11911_v53  ;;  %1411 = vmatmul.mubr.bf16.vlgmr.msra.gmra.mrb[0].mxu1 %v11911_v53 }
 0x18e   : > { %1215 = vmatpush1.bf16.msra.mxu0 %v831_v54  ;;  %1420 = vmatpush1.bf16.msra.mxu1 %v833_v55  ;;  %v661_v54 = vld [vmem:[%s11826_s20 + $0x1b0] sm:$0xff]  ;;  %v871_v55 = vunpack.c.l.s8.bf16 %v659_v52 }
 0x18f   : > { %1216 = vmatprep.subr.bf16.mxu0 %v836_v56  ;;  %1421 = vmatprep.subr.bf16.mxu1 %v838_v57  ;;  %v873_v56 = vunpack.c.l.s8.bf16 %v661_v54  ;;  %v876_v57 = vunpack.c.h.s8.bf16 %v660_v43 }
 0x190   : > { %1246 = vmatprep.mubr.bf16.mxu0 %v1139_v61  ;;  %1451 = vmatprep.mubr.bf16.mxu1 %v1139_v61  ;;  %v666_v61 = vld [vmem:[%s11826_s20 + $0x1d8] sm:$0xff] }
 0x192   : > { %1217 = vmatpush1.bf16.msra.mxu0 %v835_v50  ;;  %1422 = vmatpush1.bf16.msra.mxu1 %v837_v62  ;;  %v875_v50 = vunpack.c.h.s8.bf16 %v659_v52  ;;  %v877_v62 = vunpack.c.h.s8.bf16 %v661_v54 }
 0x193   : > { %1218 = vmatprep.subr.bf16.mxu0 %v840_v63  ;;  %1423 = vmatprep.subr.bf16.mxu1 %v842_v0  ;;  %v880_v63 = vunpack.c.l.s8.bf16 %v664_v60  ;;  %v882_v0 = vunpack.c.l.s8.bf16 %v666_v61 }
 0x196   : > { %1219 = vmatpush1.bf16.msra.mxu0 %v839_v58  ;;  %1424 = vmatpush1.bf16.msra.mxu1 %v841_v3  ;;  %v879_v58 = vunpack.c.l.s8.bf16 %v663_v1  ;;  %v881_v3 = vunpack.c.l.s8.bf16 %v665_v2 }
 0x197   : > { %1220 = vmatprep.subr.bf16.mxu0 %v844_v4  ;;  %1425 = vmatprep.subr.bf16.mxu1 %v846_v5  ;;  %v884_v4 = vunpack.c.h.s8.bf16 %v664_v60  ;;  %v886_v5 = vunpack.c.h.s8.bf16 %v666_v61 }
 0x19a   : > { %1221 = vmatpush1.bf16.msra.mxu0 %v843_v8  ;;  %1426 = vmatpush1.bf16.msra.mxu1 %v845_v9  ;;  %v883_v8 = vunpack.c.h.s8.bf16 %v663_v1  ;;  %v885_v9 = vunpack.c.h.s8.bf16 %v665_v2 }
 0x19b   : > { %1222 = vmatprep.subr.bf16.mxu0 %v848_v10  ;;  %1427 = vmatprep.subr.bf16.mxu1 %v850_v11  ;;  %v888_v10 = vunpack.c.l.s8.bf16 %v668_v6  ;;  %v890_v11 = vunpack.c.l.s8.bf16 %v670_v7 }
 0x19e   : > { %1223 = vmatpush1.bf16.msra.mxu0 %v847_v14  ;;  %1428 = vmatpush1.bf16.msra.mxu1 %v849_v15  ;;  %v1092_v14 = vcombine.high %v11871_v44, %v11871_v44  ;;  %v887_v15 = vunpack.c.l.s8.bf16 %v667_v12  ;;  %v896_v44 = vunpack.c.l.s8.bf16 %v672_v19 }
 0x19f   : > { %1224 = vmatprep.subr.bf16.mxu0 %v852_v16  ;;  %1429 = vmatprep.subr.bf16.mxu1 %v854_v17  ;;  %v889_v16 = vunpack.c.l.s8.bf16 %v669_v13  ;;  %v892_v17 = vunpack.c.h.s8.bf16 %v668_v6 }
 0x1a2   : > { %1225 = vmatpush1.bf16.msra.mxu0 %v851_v20  ;;  %1430 = vmatpush1.bf16.msra.mxu1 %v853_v21  ;;  %v674_v20 = vld [vmem:[%s11826_s20 + $0x218] sm:$0xff]  ;;  %v11950_v21 = vrot.slane %v1092_v14, %v11876_v49 }
 0x1a3   : > { %1226 = vmatprep.subr.bf16.mxu0 %v856_v22  ;;  %1431 = vmatprep.subr.bf16.mxu1 %v858_v23  ;;  %v891_v22 = vunpack.c.h.s8.bf16 %v667_v12  ;;  %v893_v23 = vunpack.c.h.s8.bf16 %v669_v13  ;;  %v898_v24 = vunpack.c.l.s8.bf16 %v674_v20 }
 0x1a6   : > { %1227 = vmatpush1.bf16.msra.mxu0 %v855_v26  ;;  %1432 = vmatpush1.bf16.msra.mxu1 %v857_v27  ;;  %v673_v26 = vld [vmem:[%s11826_s20 + $0x210] sm:$0xff]  ;;  %v1108_v27 = vcombine.high %v11950_v21, %v11950_v21 }
 0x1a7   : > { %1228 = vmatprep.subr.bf16.mxu0 %v860_v28  ;;  %1433 = vmatprep.subr.bf16.mxu1 %v862_v29  ;;  %v1137_v28 = vcombine.high %v11911_v53, %v11911_v53  ;;  %v895_v29 = vunpack.c.l.s8.bf16 %v671_v25  ;;  %v897_v30 = vunpack.c.l.s8.bf16 %v673_v26  ;;  %v899_v53 = vunpack.c.h.s8.bf16 %v671_v25 }
 0x1a8   : > { %v901_v36 = vunpack.c.h.s8.bf16 %v673_v26 }
 0x1aa   : > { %1229 = vmatpush1.bf16.msra.mxu0 %v859_v32  ;;  %1434 = vmatpush1.bf16.msra.mxu1 %v861_v33  ;;  %v902_v32 = vunpack.c.h.s8.bf16 %v674_v20  ;;  %v676_v33 = vld [vmem:[%s11826_s20 + $0x228] sm:$0xff] }
 0x1ab   : > { %1230 = vmatprep.subr.bf16.mxu0 %v864_v34  ;;  %1435 = vmatprep.subr.bf16.mxu1 %v866_v35  ;;  %v678_v34 = vld [vmem:[%s11826_s20 + $0x238] sm:$0xff]  ;;  %v11961_v35 = vrot.slane %v1108_v27, %v11876_v49  ;;  %v904_v37 = vunpack.c.l.s8.bf16 %v676_v33  ;;  %v908_v45 = vunpack.c.h.s8.bf16 %v676_v33  ;;  %v691_v27 = vld [vmem:[%s11826_s20 + $0x2a0] sm:$0xff]  ;;  %v696_v33 = vld [vmem:[%s11826_s20 + $0x2c8] sm:$0xff] }
 0x1ae   : > { %1231 = vmatpush1.bf16.msra.mxu0 %v863_v39  ;;  %1436 = vmatpush1.bf16.msra.mxu1 %v865_v40  ;;  %v906_v39 = vunpack.c.l.s8.bf16 %v678_v34  ;;  %v675_v40 = vld [vmem:[%s11826_s20 + $0x220] sm:$0xff] }
 0x1af   : > { %1232 = vmatprep.subr.bf16.mxu0 %v868_v41  ;;  %1437 = vmatprep.subr.bf16.mxu1 %v870_v42  ;;  %v677_v41 = vld [vmem:[%s11826_s20 + $0x230] sm:$0xff]  ;;  %v903_v42 = vunpack.c.l.s8.bf16 %v675_v40 }
 0x1b0   : > { %v905_v43 = vunpack.c.l.s8.bf16 %v677_v41  ;;  %v909_v52 = vunpack.c.h.s8.bf16 %v677_v41  ;;  %v697_v41 = vld [vmem:[%s11826_s20 + $0x2d0] sm:$0xff] }
 0x1b2   : > { %1233 = vmatpush1.bf16.msra.mxu0 %v867_v46  ;;  %1438 = vmatpush1.bf16.msra.mxu1 %v869_v47  ;;  %v910_v46 = vunpack.c.h.s8.bf16 %v678_v34  ;;  %v680_v47 = vld [vmem:[%s11826_s20 + $0x248] sm:$0xff]  ;;  %v698_v34 = vld [vmem:[%s11826_s20 + $0x2d8] sm:$0xff] }
 0x1b3   : > { %1234 = vmatprep.subr.bf16.mxu0 %v872_v48  ;;  %1439 = vmatprep.subr.bf16.mxu1 %v874_v51  ;;  %v682_v48 = vld [vmem:[%s11826_s20 + $0x258] sm:$0xff]  ;;  %v907_v51 = vunpack.c.h.s8.bf16 %v675_v40  ;;  %v912_v54 = vunpack.c.l.s8.bf16 %v680_v47  ;;  %v916_v61 = vunpack.c.h.s8.bf16 %v680_v47  ;;  %v695_v40 = vld [vmem:[%s11826_s20 + $0x2c0] sm:$0xff]  ;;  %v700_v47 = vld [vmem:[%s11826_s20 + $0x2e8] sm:$0xff] }
 0x1b6   : > { %1235 = vmatpush1.bf16.msra.mxu0 %v871_v55  ;;  %1440 = vmatpush1.bf16.msra.mxu1 %v873_v56  ;;  %v914_v55 = vunpack.c.l.s8.bf16 %v682_v48  ;;  %v679_v56 = vld [vmem:[%s11826_s20 + $0x240] sm:$0xff] }
 0x1b7   : > { %1236 = vmatprep.subr.bf16.mxu0 %v876_v57  ;;  %1441 = vmatprep.subr.bf16.mxu1 %v878_v59  ;;  %v681_v57 = vld [vmem:[%s11826_s20 + $0x250] sm:$0xff]  ;;  %v911_v59 = vunpack.c.l.s8.bf16 %v679_v56 }
 0x1b8   : > { %v913_v60 = vunpack.c.l.s8.bf16 %v681_v57  ;;  %v917_v1 = vunpack.c.h.s8.bf16 %v681_v57  ;;  %v701_v57 = vld [vmem:[%s11826_s20 + $0x2f0] sm:$0xff] }
 0x1ba   : > { %1237 = vmatpush1.bf16.msra.mxu0 %v875_v50  ;;  %1442 = vmatpush1.bf16.msra.mxu1 %v877_v62  ;;  %v918_v50 = vunpack.c.h.s8.bf16 %v682_v48  ;;  %v684_v62 = vld [vmem:[%s11826_s20 + $0x268] sm:$0xff]  ;;  %v702_v48 = vld [vmem:[%s11826_s20 + $0x2f8] sm:$0xff] }
 0x1bb   : > { %1238 = vmatprep.subr.bf16.mxu0 %v880_v63  ;;  %1443 = vmatprep.subr.bf16.mxu1 %v882_v0  ;;  %v686_v63 = vld [vmem:[%s11826_s20 + $0x278] sm:$0xff]  ;;  %v915_v0 = vunpack.c.h.s8.bf16 %v679_v56  ;;  %v920_v2 = vunpack.c.l.s8.bf16 %v684_v62  ;;  %v924_v7 = vunpack.c.h.s8.bf16 %v684_v62  ;;  %v699_v56 = vld [vmem:[%s11826_s20 + $0x2e0] sm:$0xff]  ;;  %v704_v62 = vld [vmem:[%s11826_s20 + $0x308] sm:$0xff] }
 0x1be   : > { %1239 = vmatpush1.bf16.msra.mxu0 %v879_v58  ;;  %1444 = vmatpush1.bf16.msra.mxu1 %v881_v3  ;;  %v922_v58 = vunpack.c.l.s8.bf16 %v686_v63  ;;  %v683_v3 = vld [vmem:[%s11826_s20 + $0x260] sm:$0xff] }
 0x1bf   : > { %1240 = vmatprep.subr.bf16.mxu0 %v884_v4  ;;  %1445 = vmatprep.subr.bf16.mxu1 %v886_v5  ;;  %v685_v4 = vld [vmem:[%s11826_s20 + $0x270] sm:$0xff]  ;;  %v919_v5 = vunpack.c.l.s8.bf16 %v683_v3 }
 0x1c0   : > { %v921_v6 = vunpack.c.l.s8.bf16 %v685_v4  ;;  %v925_v12 = vunpack.c.h.s8.bf16 %v685_v4  ;;  %v705_v4 = vld [vmem:[%s11826_s20 + $0x310] sm:$0xff] }
 0x1c2   : > { %1241 = vmatpush1.bf16.msra.mxu0 %v883_v8  ;;  %1446 = vmatpush1.bf16.msra.mxu1 %v885_v9  ;;  %v926_v8 = vunpack.c.h.s8.bf16 %v686_v63  ;;  %v688_v9 = vld [vmem:[%s11826_s20 + $0x288] sm:$0xff]  ;;  %v706_v63 = vld [vmem:[%s11826_s20 + $0x318] sm:$0xff] }
 0x1c3   : > { %1242 = vmatprep.subr.bf16.mxu0 %v888_v10  ;;  %1447 = vmatprep.subr.bf16.mxu1 %v890_v11  ;;  %v690_v10 = vld [vmem:[%s11826_s20 + $0x298] sm:$0xff]  ;;  %v923_v11 = vunpack.c.h.s8.bf16 %v683_v3  ;;  %v928_v13 = vunpack.c.l.s8.bf16 %v688_v9  ;;  %v932_v19 = vunpack.c.h.s8.bf16 %v688_v9  ;;  %v703_v3 = vld [vmem:[%s11826_s20 + $0x300] sm:$0xff]  ;;  %v966_v9 = vunpack.c.h.s8.bf16 %v706_v63 }
 0x1c4   : > { %v930_v14 = vunpack.c.l.s8.bf16 %v690_v10  ;;  %v934_v20 = vunpack.c.h.s8.bf16 %v690_v10  ;;  %v708_v10 = vld [vmem:[%s11826_s20 + $0x328] sm:$0xff] }
 0x1c6   : > { %1243 = vmatpush1.bf16.msra.mxu0 %v887_v15  ;;  %1448 = vmatpush1.bf16.msra.mxu1 %v889_v16  ;;  %v687_v15 = vld [vmem:[%s11826_s20 + $0x280] sm:$0xff]  ;;  %v689_v16 = vld [vmem:[%s11826_s20 + $0x290] sm:$0xff] }
 0x1c7   : > { %1244 = vmatprep.subr.bf16.mxu0 %v892_v17  ;;  %1449 = vmatprep.subr.bf16.mxu1 %v894_v18  ;;  %v927_v17 = vunpack.c.l.s8.bf16 %v687_v15  ;;  %v929_v18 = vunpack.c.l.s8.bf16 %v689_v16 }
 0x1ca   : > { %1245 = vmatpush1.bf16.msra.mxu0 %v891_v22  ;;  %1450 = vmatpush1.bf16.msra.mxu1 %v893_v23  ;;  %v692_v22 = vld [vmem:[%s11826_s20 + $0x2a8] sm:$0xff]  ;;  %v694_v23 = vld [vmem:[%s11826_s20 + $0x2b8] sm:$0xff] }
 0x1cb   : > { %1255 = vmatprep.subr.bf16.mxu0 %v896_v44  ;;  %1460 = vmatprep.subr.bf16.mxu1 %v898_v24  ;;  %v931_v44 = vunpack.c.h.s8.bf16 %v687_v15  ;;  %v933_v24 = vunpack.c.h.s8.bf16 %v689_v16  ;;  %v936_v25 = vunpack.c.l.s8.bf16 %v692_v22  ;;  %v938_v26 = vunpack.c.l.s8.bf16 %v694_v23  ;;  %v707_v16 = vld [vmem:[%s11826_s20 + $0x320] sm:$0xff] }
 0x1cd   : > { %1247 = vmatmul.mubr.bf16.vlgmr.msra.gmra.mrb[0].mxu0 %v1137_v28  ;;  %1452 = vmatmul.mubr.bf16.vlgmr.msra.gmra.mrb[0].mxu1 %v1137_v28  ;;  %v693_v28 = vld [vmem:[%s11826_s20 + $0x2b0] sm:$0xff] }
 0x1ce   : > { %1256 = vmatpush1.bf16.msra.mxu0 %v895_v29  ;;  %1461 = vmatpush1.bf16.msra.mxu1 %v897_v30  ;;  %v935_v29 = vunpack.c.l.s8.bf16 %v691_v27  ;;  %v937_v30 = vunpack.c.l.s8.bf16 %v693_v28 }
 0x1cf   : > { %1257 = vmatprep.subr.bf16.mxu0 %v900_v31  ;;  %1462 = vmatprep.subr.bf16.mxu1 %v902_v32  ;;  %v940_v31 = vunpack.c.h.s8.bf16 %v692_v22  ;;  %v942_v32 = vunpack.c.h.s8.bf16 %v694_v23  ;;  %v712_v22 = vld [vmem:[%s11826_s20 + $0x348] sm:$0xff]  ;;  %v714_v23 = vld [vmem:[%s11826_s20 + $0x358] sm:$0xff] }
 0x1d0   : > { %1287 = vmatprep.mubr.bf16.mxu0 %v11961_v35  ;;  %1492 = vmatprep.mubr.bf16.mxu1 %v11961_v35 }
 0x1d2   : > { %1258 = vmatpush1.bf16.msra.mxu0 %v899_v53  ;;  %1463 = vmatpush1.bf16.msra.mxu1 %v901_v36  ;;  %v939_v53 = vunpack.c.h.s8.bf16 %v691_v27  ;;  %v941_v36 = vunpack.c.h.s8.bf16 %v693_v28  ;;  %v711_v27 = vld [vmem:[%s11826_s20 + $0x340] sm:$0xff]  ;;  %v713_v28 = vld [vmem:[%s11826_s20 + $0x350] sm:$0xff] }
 0x1d3   : > { %1259 = vmatprep.subr.bf16.mxu0 %v904_v37  ;;  %1464 = vmatprep.subr.bf16.mxu1 %v906_v39  ;;  %v944_v37 = vunpack.c.l.s8.bf16 %v696_v33  ;;  %v946_v39 = vunpack.c.l.s8.bf16 %v698_v34 }
 0x1d6   : > { %1260 = vmatpush1.bf16.msra.mxu0 %v903_v42  ;;  %1465 = vmatpush1.bf16.msra.mxu1 %v905_v43  ;;  %v943_v42 = vunpack.c.l.s8.bf16 %v695_v40  ;;  %v945_v43 = vunpack.c.l.s8.bf16 %v697_v41 }
 0x1d7   : > { %1261 = vmatprep.subr.bf16.mxu0 %v908_v45  ;;  %1466 = vmatprep.subr.bf16.mxu1 %v910_v46  ;;  %v948_v45 = vunpack.c.h.s8.bf16 %v696_v33  ;;  %v950_v46 = vunpack.c.h.s8.bf16 %v698_v34  ;;  %v716_v33 = vld [vmem:[%s11826_s20 + $0x368] sm:$0xff]  ;;  %v718_v34 = vld [vmem:[%s11826_s20 + $0x378] sm:$0xff] }
 0x1da   : > { %1262 = vmatpush1.bf16.msra.mxu0 %v907_v51  ;;  %1467 = vmatpush1.bf16.msra.mxu1 %v909_v52  ;;  %v947_v51 = vunpack.c.h.s8.bf16 %v695_v40  ;;  %v949_v52 = vunpack.c.h.s8.bf16 %v697_v41  ;;  %v715_v40 = vld [vmem:[%s11826_s20 + $0x360] sm:$0xff]  ;;  %v717_v41 = vld [vmem:[%s11826_s20 + $0x370] sm:$0xff] }
 0x1db   : > { %1263 = vmatprep.subr.bf16.mxu0 %v912_v54  ;;  %1468 = vmatprep.subr.bf16.mxu1 %v914_v55  ;;  %v952_v54 = vunpack.c.l.s8.bf16 %v700_v47  ;;  %v954_v55 = vunpack.c.l.s8.bf16 %v702_v48 }
 0x1de   : > { %1264 = vmatpush1.bf16.msra.mxu0 %v911_v59  ;;  %1469 = vmatpush1.bf16.msra.mxu1 %v913_v60  ;;  %v951_v59 = vunpack.c.l.s8.bf16 %v699_v56  ;;  %v953_v60 = vunpack.c.l.s8.bf16 %v701_v57 }
 0x1df   : > { %1265 = vmatprep.subr.bf16.mxu0 %v916_v61  ;;  %1470 = vmatprep.subr.bf16.mxu1 %v918_v50  ;;  %v956_v61 = vunpack.c.h.s8.bf16 %v700_v47  ;;  %v958_v50 = vunpack.c.h.s8.bf16 %v702_v48  ;;  %v720_v47 = vld [vmem:[%s11826_s20 + $0x388] sm:$0xff]  ;;  %v722_v48 = vld [vmem:[%s11826_s20 + $0x398] sm:$0xff] }
 0x1e2   : > { %1266 = vmatpush1.bf16.msra.mxu0 %v915_v0  ;;  %1471 = vmatpush1.bf16.msra.mxu1 %v917_v1  ;;  %v955_v0 = vunpack.c.h.s8.bf16 %v699_v56  ;;  %v957_v1 = vunpack.c.h.s8.bf16 %v701_v57  ;;  %v719_v56 = vld [vmem:[%s11826_s20 + $0x380] sm:$0xff]  ;;  %v721_v57 = vld [vmem:[%s11826_s20 + $0x390] sm:$0xff] }
 0x1e3   : > { %1267 = vmatprep.subr.bf16.mxu0 %v920_v2  ;;  %1472 = vmatprep.subr.bf16.mxu1 %v922_v58  ;;  %v960_v2 = vunpack.c.l.s8.bf16 %v704_v62  ;;  %v962_v58 = vunpack.c.l.s8.bf16 %v706_v63  ;;  %v726_v63 = vld [vmem:[%s11826_s20 + $0x3b8] sm:$0xff] }
 0x1e6   : > { %1268 = vmatpush1.bf16.msra.mxu0 %v919_v5  ;;  %1473 = vmatpush1.bf16.msra.mxu1 %v921_v6  ;;  %v11997_v5 = vrot.slane %v11950_v21, %v11876_v49  ;;  %v959_v6 = vunpack.c.l.s8.bf16 %v703_v3  ;;  %v963_v21 = vunpack.c.h.s8.bf16 %v703_v3  ;;  %v723_v3 = vld [vmem:[%s11826_s20 + $0x3a0] sm:$0xff] }
 0x1e7   : > { %1269 = vmatprep.subr.bf16.mxu0 %v924_v7  ;;  %1474 = vmatprep.subr.bf16.mxu1 %v926_v8  ;;  %v961_v7 = vunpack.c.l.s8.bf16 %v705_v4  ;;  %v964_v8 = vunpack.c.h.s8.bf16 %v704_v62  ;;  %v724_v62 = vld [vmem:[%s11826_s20 + $0x3a8] sm:$0xff] }
 0x1ea   : > { %1270 = vmatpush1.bf16.msra.mxu0 %v923_v11  ;;  %1475 = vmatpush1.bf16.msra.mxu1 %v925_v12  ;;  %v710_v11 = vld [vmem:[%s11826_s20 + $0x338] sm:$0xff]  ;;  %v1140_v12 = vcombine.high %v11961_v35, %v11961_v35  ;;  %v967_v35 = vunpack.c.l.s8.bf16 %v707_v16 }
 0x1eb   : > { %1271 = vmatprep.subr.bf16.mxu0 %v928_v13  ;;  %1476 = vmatprep.subr.bf16.mxu1 %v930_v14  ;;  %v965_v13 = vunpack.c.h.s8.bf16 %v705_v4  ;;  %v968_v14 = vunpack.c.l.s8.bf16 %v708_v10  ;;  %v970_v15 = vunpack.c.l.s8.bf16 %v710_v11  ;;  %v725_v4 = vld [vmem:[%s11826_s20 + $0x3b0] sm:$0xff] }
 0x1ee   : > { %1272 = vmatpush1.bf16.msra.mxu0 %v927_v17  ;;  %1477 = vmatpush1.bf16.msra.mxu1 %v929_v18  ;;  %v709_v17 = vld [vmem:[%s11826_s20 + $0x330] sm:$0xff] }
 0x1ef   : > { %1273 = vmatprep.subr.bf16.mxu0 %v932_v19  ;;  %1478 = vmatprep.subr.bf16.mxu1 %v934_v20  ;;  %v969_v18 = vunpack.c.l.s8.bf16 %v709_v17  ;;  %v972_v19 = vunpack.c.h.s8.bf16 %v708_v10  ;;  %v974_v20 = vunpack.c.h.s8.bf16 %v710_v11  ;;  %v728_v10 = vld [vmem:[%s11826_s20 + $0x3c8] sm:$0xff]  ;;  %v730_v11 = vld [vmem:[%s11826_s20 + $0x3d8] sm:$0xff] }
 0x1f2   : > { %1274 = vmatpush1.bf16.msra.mxu0 %v931_v44  ;;  %1479 = vmatpush1.bf16.msra.mxu1 %v933_v24  ;;  %v971_v44 = vunpack.c.h.s8.bf16 %v707_v16  ;;  %v973_v24 = vunpack.c.h.s8.bf16 %v709_v17  ;;  %v729_v16 = vld [vmem:[%s11826_s20 + $0x3d0] sm:$0xff] }
 0x1f3   : > { %1275 = vmatprep.subr.bf16.mxu0 %v936_v25  ;;  %1480 = vmatprep.subr.bf16.mxu1 %v938_v26  ;;  %v976_v25 = vunpack.c.l.s8.bf16 %v712_v22  ;;  %v978_v26 = vunpack.c.l.s8.bf16 %v714_v23 }
 0x1f6   : > { %1276 = vmatpush1.bf16.msra.mxu0 %v935_v29  ;;  %1481 = vmatpush1.bf16.msra.mxu1 %v937_v30  ;;  %v975_v29 = vunpack.c.l.s8.bf16 %v711_v27  ;;  %v977_v30 = vunpack.c.l.s8.bf16 %v713_v28 }
 0x1f7   : > { %1277 = vmatprep.subr.bf16.mxu0 %v940_v31  ;;  %1482 = vmatprep.subr.bf16.mxu1 %v942_v32  ;;  %v980_v31 = vunpack.c.h.s8.bf16 %v712_v22  ;;  %v982_v32 = vunpack.c.h.s8.bf16 %v714_v23  ;;  %v734_v22 = vld [vmem:[%s11826_s20 + $0x3f8] sm:$0xff] }
 0x1fa   : > { %1278 = vmatpush1.bf16.msra.mxu0 %v939_v53  ;;  %1483 = vmatpush1.bf16.msra.mxu1 %v941_v36  ;;  %v979_v53 = vunpack.c.h.s8.bf16 %v711_v27  ;;  %v981_v36 = vunpack.c.h.s8.bf16 %v713_v28  ;;  %v733_v27 = vld [vmem:[%s11826_s20 + $0x3f0] sm:$0xff] }
 0x1fb   : > { %1279 = vmatprep.subr.bf16.mxu0 %v944_v37  ;;  %1484 = vmatprep.subr.bf16.mxu1 %v946_v39  ;;  %v984_v37 = vunpack.c.l.s8.bf16 %v716_v33  ;;  %v986_v39 = vunpack.c.l.s8.bf16 %v718_v34 }
 0x1fe   : > { %1280 = vmatpush1.bf16.msra.mxu0 %v943_v42  ;;  %1485 = vmatpush1.bf16.msra.mxu1 %v945_v43  ;;  %v983_v42 = vunpack.c.l.s8.bf16 %v715_v40  ;;  %v985_v43 = vunpack.c.l.s8.bf16 %v717_v41 }
 0x1ff   : > { %1281 = vmatprep.subr.bf16.mxu0 %v948_v45  ;;  %1486 = vmatprep.subr.bf16.mxu1 %v950_v46  ;;  %v988_v45 = vunpack.c.h.s8.bf16 %v716_v33  ;;  %v990_v46 = vunpack.c.h.s8.bf16 %v718_v34  ;;  %v738_v33 = vld [vmem:[%s11826_s20 + $0x418] sm:$0xff] }
 0x200   : > { %v12034_v34 = vld.sshfl [vmem:[%s11819_s23 + $0x8] sm:$0x11 pattern:$0x75316420] }
 0x202   : > { %1282 = vmatpush1.bf16.msra.mxu0 %v947_v51  ;;  %1487 = vmatpush1.bf16.msra.mxu1 %v949_v52  ;;  %v987_v51 = vunpack.c.h.s8.bf16 %v715_v40  ;;  %v989_v52 = vunpack.c.h.s8.bf16 %v717_v41  ;;  %v735_v40 = vld [vmem:[%s11826_s20 + $0x400] sm:$0xff]  ;;  %v737_v41 = vld [vmem:[%s11826_s20 + $0x410] sm:$0xff] }
 0x203   : > { %1283 = vmatprep.subr.bf16.mxu0 %v952_v54  ;;  %1488 = vmatprep.subr.bf16.mxu1 %v954_v55  ;;  %v992_v54 = vunpack.c.l.s8.bf16 %v720_v47  ;;  %v994_v55 = vunpack.c.l.s8.bf16 %v722_v48 }
 0x206   : > { %1284 = vmatpush1.bf16.msra.mxu0 %v951_v59  ;;  %1489 = vmatpush1.bf16.msra.mxu1 %v953_v60  ;;  %v991_v59 = vunpack.c.l.s8.bf16 %v719_v56  ;;  %v993_v60 = vunpack.c.l.s8.bf16 %v721_v57 }
 0x207   : > { %1285 = vmatprep.subr.bf16.mxu0 %v956_v61  ;;  %1490 = vmatprep.subr.bf16.mxu1 %v958_v50  ;;  %v996_v61 = vunpack.c.h.s8.bf16 %v720_v47  ;;  %v998_v50 = vunpack.c.h.s8.bf16 %v722_v48  ;;  %v1030_v48 = vunpack.c.h.s8.bf16 %v738_v33 }
 0x20a   : > { %1286 = vmatpush1.bf16.msra.mxu0 %v955_v0  ;;  %1491 = vmatpush1.bf16.msra.mxu1 %v957_v1  ;;  %v995_v0 = vunpack.c.h.s8.bf16 %v719_v56  ;;  %v997_v1 = vunpack.c.h.s8.bf16 %v721_v57 }
 0x20b   : > { %1296 = vmatprep.subr.bf16.mxu0 %v960_v2  ;;  %1501 = vmatprep.subr.bf16.mxu1 %v962_v58  ;;  %v1000_v2 = vunpack.c.l.s8.bf16 %v724_v62  ;;  %v1002_v58 = vunpack.c.l.s8.bf16 %v726_v63 }
 0x20d   : > { %1288 = vmatmul.mubr.bf16.vlgmr.msra.gmra.mrb[0].mxu0 %v11997_v5  ;;  %1493 = vmatmul.mubr.bf16.vlgmr.msra.gmra.mrb[0].mxu1 %v11997_v5 }
 0x20e   : > { %1297 = vmatpush1.bf16.msra.mxu0 %v959_v6  ;;  %1502 = vmatpush1.bf16.msra.mxu1 %v961_v7  ;;  %v999_v6 = vunpack.c.l.s8.bf16 %v723_v3  ;;  %v1001_v7 = vunpack.c.l.s8.bf16 %v725_v4 }
 0x20f   : > { %1298 = vmatprep.subr.bf16.mxu0 %v964_v8  ;;  %1503 = vmatprep.subr.bf16.mxu1 %v966_v9  ;;  %v1004_v8 = vunpack.c.h.s8.bf16 %v724_v62  ;;  %v1006_v9 = vunpack.c.h.s8.bf16 %v726_v63 }
 0x210   : > { %1328 = vmatprep.mubr.bf16.mxu0 %v1140_v12  ;;  %1533 = vmatprep.mubr.bf16.mxu1 %v1140_v12  ;;  %v1003_v12 = vunpack.c.h.s8.bf16 %v723_v3 }
 0x212   : > { %1299 = vmatpush1.bf16.msra.mxu0 %v963_v21  ;;  %1504 = vmatpush1.bf16.msra.mxu1 %v965_v13  ;;  %v1005_v21 = vunpack.c.h.s8.bf16 %v725_v4  ;;  %v1008_v13 = vunpack.c.l.s8.bf16 %v728_v10 }
 0x213   : > { %1300 = vmatprep.subr.bf16.mxu0 %v968_v14  ;;  %1505 = vmatprep.subr.bf16.mxu1 %v970_v15  ;;  %v1010_v14 = vunpack.c.l.s8.bf16 %v730_v11  ;;  %v727_v15 = vld [vmem:[%s11826_s20 + $0x3c0] sm:$0xff] }
 0x214   : > { %v1007_v17 = vunpack.c.l.s8.bf16 %v727_v15  ;;  %v1011_v23 = vunpack.c.h.s8.bf16 %v727_v15 }
 0x216   : > { %1301 = vmatpush1.bf16.msra.mxu0 %v967_v35  ;;  %1506 = vmatpush1.bf16.msra.mxu1 %v969_v18  ;;  %v1009_v35 = vunpack.c.l.s8.bf16 %v729_v16  ;;  %v1012_v18 = vunpack.c.h.s8.bf16 %v728_v10 }
 0x217   : > { %1302 = vmatprep.subr.bf16.mxu0 %v972_v19  ;;  %1507 = vmatprep.subr.bf16.mxu1 %v974_v20  ;;  %v1014_v19 = vunpack.c.h.s8.bf16 %v730_v11  ;;  %v732_v20 = vld [vmem:[%s11826_s20 + $0x3e8] sm:$0xff] }
 0x21a   : > { %1303 = vmatpush1.bf16.msra.mxu0 %v971_v44  ;;  %1508 = vmatpush1.bf16.msra.mxu1 %v973_v24  ;;  %v1013_v44 = vunpack.c.h.s8.bf16 %v729_v16  ;;  %v1016_v24 = vunpack.c.l.s8.bf16 %v732_v20 }
 0x21b   : > { %1304 = vmatprep.subr.bf16.mxu0 %v976_v25  ;;  %1509 = vmatprep.subr.bf16.mxu1 %v978_v26  ;;  %v1018_v25 = vunpack.c.l.s8.bf16 %v734_v22  ;;  %v731_v26 = vld [vmem:[%s11826_s20 + $0x3e0] sm:$0xff] }
 0x21c   : > { %v1015_v28 = vunpack.c.l.s8.bf16 %v731_v26 }
 0x21e   : > { %1305 = vmatpush1.bf16.msra.mxu0 %v975_v29  ;;  %1510 = vmatpush1.bf16.msra.mxu1 %v977_v30  ;;  %v1017_v29 = vunpack.c.l.s8.bf16 %v733_v27  ;;  %v1020_v30 = vunpack.c.h.s8.bf16 %v732_v20 }
 0x21f   : > { %1306 = vmatprep.subr.bf16.mxu0 %v980_v31  ;;  %1511 = vmatprep.subr.bf16.mxu1 %v982_v32  ;;  %v1022_v31 = vunpack.c.h.s8.bf16 %v734_v22  ;;  %v736_v32 = vld [vmem:[%s11826_s20 + $0x408] sm:$0xff] }
 0x220   : > { %v1028_v47 = vunpack.c.h.s8.bf16 %v736_v32 }
 0x222   : > { %1307 = vmatpush1.bf16.msra.mxu0 %v979_v53  ;;  %1512 = vmatpush1.bf16.msra.mxu1 %v981_v36  ;;  %v1019_v53 = vunpack.c.h.s8.bf16 %v731_v26  ;;  %v1021_v36 = vunpack.c.h.s8.bf16 %v733_v27 }
 0x223   : > { %1308 = vmatprep.subr.bf16.mxu0 %v984_v37  ;;  %1513 = vmatprep.subr.bf16.mxu1 %v986_v39  ;;  %v1024_v37 = vunpack.c.l.s8.bf16 %v736_v32  ;;  %v1026_v39 = vunpack.c.l.s8.bf16 %v738_v33 }
 0x226   : > { %1309 = vmatpush1.bf16.msra.mxu0 %v983_v42  ;;  %1514 = vmatpush1.bf16.msra.mxu1 %v985_v43  ;;  %v1148_v42 = vcombine.high %v12034_v34, %v12034_v34  ;;  %v1138_v43 = vcombine.high %v11997_v5, %v11997_v5  ;;  %v1029_v5 = vunpack.c.h.s8.bf16 %v737_v41 }
 0x227   : > { %1310 = vmatprep.subr.bf16.mxu0 %v988_v45  ;;  %1515 = vmatprep.subr.bf16.mxu1 %v990_v46  ;;  %v1023_v45 = vunpack.c.l.s8.bf16 %v735_v40  ;;  %v1025_v46 = vunpack.c.l.s8.bf16 %v737_v41 }
 0x22a   : > { %1311 = vmatpush1.bf16.msra.mxu0 %v987_v51  ;;  %1516 = vmatpush1.bf16.msra.mxu1 %v989_v52  ;;  %v740_v51 = vld [vmem:[%s11826_s20 + $0x428] sm:$0xff]  ;;  %v742_v52 = vld [vmem:[%s11826_s20 + $0x438] sm:$0xff] }
 0x22b   : > { %1312 = vmatprep.subr.bf16.mxu0 %v992_v54  ;;  %1517 = vmatprep.subr.bf16.mxu1 %v994_v55  ;;  %v1162_v54 = vrot.slane %v1148_v42, %v11876_v49  ;;  %v1027_v55 = vunpack.c.h.s8.bf16 %v735_v40  ;;  %v1032_v56 = vunpack.c.l.s8.bf16 %v740_v51  ;;  %v1034_v57 = vunpack.c.l.s8.bf16 %v742_v52  ;;  %v755_v42 = vld [vmem:[%s11826_s20 + $0x4a0] sm:$0xff] }
 0x22c   : > { %v1036_v62 = vunpack.c.h.s8.bf16 %v740_v51  ;;  %v1038_v63 = vunpack.c.h.s8.bf16 %v742_v52  ;;  %v760_v51 = vld [vmem:[%s11826_s20 + $0x4c8] sm:$0xff]  ;;  %v762_v52 = vld [vmem:[%s11826_s20 + $0x4d8] sm:$0xff] }
 0x22e   : > { %1313 = vmatpush1.bf16.msra.mxu0 %v991_v59  ;;  %1518 = vmatpush1.bf16.msra.mxu1 %v993_v60  ;;  %v739_v59 = vld [vmem:[%s11826_s20 + $0x420] sm:$0xff]  ;;  %v741_v60 = vld [vmem:[%s11826_s20 + $0x430] sm:$0xff] }
 0x22f   : > { %1314 = vmatprep.subr.bf16.mxu0 %v996_v61  ;;  %1519 = vmatprep.subr.bf16.mxu1 %v998_v50  ;;  %v1031_v61 = vunpack.c.l.s8.bf16 %v739_v59  ;;  %v1033_v50 = vunpack.c.l.s8.bf16 %v741_v60 }
 0x232   : > { %1315 = vmatpush1.bf16.msra.mxu0 %v995_v0  ;;  %1520 = vmatpush1.bf16.msra.mxu1 %v997_v1  ;;  %v744_v0 = vld [vmem:[%s11826_s20 + $0x448] sm:$0xff]  ;;  %v746_v1 = vld [vmem:[%s11826_s20 + $0x458] sm:$0xff] }
 0x233   : > { %1316 = vmatprep.subr.bf16.mxu0 %v1000_v2  ;;  %1521 = vmatprep.subr.bf16.mxu1 %v1002_v58  ;;  %v1035_v2 = vunpack.c.h.s8.bf16 %v739_v59  ;;  %v1037_v58 = vunpack.c.h.s8.bf16 %v741_v60  ;;  %v1040_v3 = vunpack.c.l.s8.bf16 %v744_v0  ;;  %v1042_v4 = vunpack.c.l.s8.bf16 %v746_v1  ;;  %v761_v59 = vld [vmem:[%s11826_s20 + $0x4d0] sm:$0xff] }
 0x234   : > { %v1044_v10 = vunpack.c.h.s8.bf16 %v744_v0  ;;  %v1046_v11 = vunpack.c.h.s8.bf16 %v746_v1  ;;  %v766_v0 = vld [vmem:[%s11826_s20 + $0x4f8] sm:$0xff] }
 0x236   : > { %1317 = vmatpush1.bf16.msra.mxu0 %v999_v6  ;;  %1522 = vmatpush1.bf16.msra.mxu1 %v1001_v7  ;;  %v743_v6 = vld [vmem:[%s11826_s20 + $0x440] sm:$0xff]  ;;  %v745_v7 = vld [vmem:[%s11826_s20 + $0x450] sm:$0xff] }
 0x237   : > { %1318 = vmatprep.subr.bf16.mxu0 %v1004_v8  ;;  %1523 = vmatprep.subr.bf16.mxu1 %v1006_v9  ;;  %v1039_v8 = vunpack.c.l.s8.bf16 %v743_v6  ;;  %v1041_v9 = vunpack.c.l.s8.bf16 %v745_v7 }
 0x23a   : > { %1319 = vmatpush1.bf16.msra.mxu0 %v1003_v12  ;;  %1524 = vmatpush1.bf16.msra.mxu1 %v1005_v21  ;;  %v748_v12 = vld [vmem:[%s11826_s20 + $0x468] sm:$0xff]  ;;  %v750_v21 = vld [vmem:[%s11826_s20 + $0x478] sm:$0xff] }
 0x23b   : > { %1320 = vmatprep.subr.bf16.mxu0 %v1008_v13  ;;  %1525 = vmatprep.subr.bf16.mxu1 %v1010_v14  ;;  %v1043_v13 = vunpack.c.h.s8.bf16 %v743_v6  ;;  %v1045_v14 = vunpack.c.h.s8.bf16 %v745_v7  ;;  %v1048_v15 = vunpack.c.l.s8.bf16 %v748_v12  ;;  %v1050_v16 = vunpack.c.l.s8.bf16 %v750_v21  ;;  %v765_v6 = vld [vmem:[%s11826_s20 + $0x4f0] sm:$0xff] }
 0x23c   : > { %v1052_v20 = vunpack.c.h.s8.bf16 %v748_v12  ;;  %v1054_v22 = vunpack.c.h.s8.bf16 %v750_v21  ;;  %v1085_v12 = vunpack.c.h.s8.bf16 %v765_v6  ;;  %v1155_v21 = vrot.slane %v12034_v34, %v11876_v49 }
 0x23e   : > { %1321 = vmatpush1.bf16.msra.mxu0 %v1007_v17  ;;  %1526 = vmatpush1.bf16.msra.mxu1 %v1009_v35  ;;  %v747_v17 = vld [vmem:[%s11826_s20 + $0x460] sm:$0xff]  ;;  %v749_v35 = vld [vmem:[%s11826_s20 + $0x470] sm:$0xff] }
 0x23f   : > { %1322 = vmatprep.subr.bf16.mxu0 %v1012_v18  ;;  %1527 = vmatprep.subr.bf16.mxu1 %v1014_v19  ;;  %v1047_v18 = vunpack.c.l.s8.bf16 %v747_v17  ;;  %v1049_v19 = vunpack.c.l.s8.bf16 %v749_v35 }
 0x242   : > { %1323 = vmatpush1.bf16.msra.mxu0 %v1011_v23  ;;  %1528 = vmatpush1.bf16.msra.mxu1 %v1013_v44  ;;  %v752_v23 = vld [vmem:[%s11826_s20 + $0x488] sm:$0xff]  ;;  %v754_v44 = vld [vmem:[%s11826_s20 + $0x498] sm:$0xff] }
 0x243   : > { %1324 = vmatprep.subr.bf16.mxu0 %v1016_v24  ;;  %1529 = vmatprep.subr.bf16.mxu1 %v1018_v25  ;;  %v1051_v24 = vunpack.c.h.s8.bf16 %v747_v17  ;;  %v1053_v25 = vunpack.c.h.s8.bf16 %v749_v35  ;;  %v1056_v26 = vunpack.c.l.s8.bf16 %v752_v23  ;;  %v1058_v27 = vunpack.c.l.s8.bf16 %v754_v44 }
 0x244   : > { %v1060_v32 = vunpack.c.h.s8.bf16 %v752_v23  ;;  %v1062_v33 = vunpack.c.h.s8.bf16 %v754_v44 }
 0x246   : > { %1325 = vmatpush1.bf16.msra.mxu0 %v1015_v28  ;;  %1530 = vmatpush1.bf16.msra.mxu1 %v1017_v29  ;;  %v751_v28 = vld [vmem:[%s11826_s20 + $0x480] sm:$0xff]  ;;  %v753_v29 = vld [vmem:[%s11826_s20 + $0x490] sm:$0xff] }
 0x247   : > { %1326 = vmatprep.subr.bf16.mxu0 %v1020_v30  ;;  %1531 = vmatprep.subr.bf16.mxu1 %v1022_v31  ;;  %v1055_v30 = vunpack.c.l.s8.bf16 %v751_v28  ;;  %v1057_v31 = vunpack.c.l.s8.bf16 %v753_v29 }
 0x24a   : > { %1327 = vmatpush1.bf16.msra.mxu0 %v1019_v53  ;;  %1532 = vmatpush1.bf16.msra.mxu1 %v1021_v36  ;;  %v756_v53 = vld [vmem:[%s11826_s20 + $0x4a8] sm:$0xff]  ;;  %v758_v36 = vld [vmem:[%s11826_s20 + $0x4b8] sm:$0xff] }
 0x24b   : > { %1337 = vmatprep.subr.bf16.mxu0 %v1024_v37  ;;  %1542 = vmatprep.subr.bf16.mxu1 %v1026_v39  ;;  %v1059_v37 = vunpack.c.h.s8.bf16 %v751_v28  ;;  %v1061_v39 = vunpack.c.h.s8.bf16 %v753_v29  ;;  %v1064_v40 = vunpack.c.l.s8.bf16 %v756_v53  ;;  %v1066_v41 = vunpack.c.l.s8.bf16 %v758_v36 }
 0x24d   : > { %1329 = vmatmul.mubr.bf16.vlgmr.msra.gmra.mrb[0].mxu0 %v1138_v43  ;;  %1534 = vmatmul.mubr.bf16.vlgmr.msra.gmra.mrb[0].mxu1 %v1138_v43  ;;  %v757_v43 = vld [vmem:[%s11826_s20 + $0x4b0] sm:$0xff] }
 0x24e   : > { %1338 = vmatpush1.bf16.msra.mxu0 %v1023_v45  ;;  %1543 = vmatpush1.bf16.msra.mxu1 %v1025_v46  ;;  %v1063_v45 = vunpack.c.l.s8.bf16 %v755_v42  ;;  %v1065_v46 = vunpack.c.l.s8.bf16 %v757_v43 }
 0x24f   : > { %1339 = vmatprep.subr.bf16.mxu0 %v1028_v47  ;;  %1544 = vmatprep.subr.bf16.mxu1 %v1030_v48  ;;  %v1068_v47 = vunpack.c.h.s8.bf16 %v756_v53  ;;  %v1070_v48 = vunpack.c.h.s8.bf16 %v758_v36 }
 0x250   : > { %1369 = vmatprep.mubr.bf16.mxu0 %v1162_v54  ;;  %1574 = vmatprep.mubr.bf16.mxu1 %v1162_v54  ;;  %v1067_v54 = vunpack.c.h.s8.bf16 %v755_v42 }
 0x252   : > { %1340 = vmatpush1.bf16.msra.mxu0 %v1027_v55  ;;  %1545 = vmatpush1.bf16.msra.mxu1 %v1029_v5  ;;  %v1069_v55 = vunpack.c.h.s8.bf16 %v757_v43  ;;  %v1072_v5 = vunpack.c.l.s8.bf16 %v760_v51 }
 0x253   : > { %1341 = vmatprep.subr.bf16.mxu0 %v1032_v56  ;;  %1546 = vmatprep.subr.bf16.mxu1 %v1034_v57  ;;  %v1074_v56 = vunpack.c.l.s8.bf16 %v762_v52  ;;  %v759_v57 = vld [vmem:[%s11826_s20 + $0x4c0] sm:$0xff] }
 0x254   : > { %v1071_v60 = vunpack.c.l.s8.bf16 %v759_v57  ;;  %v1075_v1 = vunpack.c.h.s8.bf16 %v759_v57 }
 0x256   : > { %1342 = vmatpush1.bf16.msra.mxu0 %v1031_v61  ;;  %1547 = vmatpush1.bf16.msra.mxu1 %v1033_v50  ;;  %v1073_v61 = vunpack.c.l.s8.bf16 %v761_v59  ;;  %v1076_v50 = vunpack.c.h.s8.bf16 %v760_v51 }
 0x257   : > { %1343 = vmatprep.subr.bf16.mxu0 %v1036_v62  ;;  %1548 = vmatprep.subr.bf16.mxu1 %v1038_v63  ;;  %v1078_v62 = vunpack.c.h.s8.bf16 %v762_v52  ;;  %v764_v63 = vld [vmem:[%s11826_s20 + $0x4e8] sm:$0xff] }
 0x25a   : > { %1344 = vmatpush1.bf16.msra.mxu0 %v1035_v2  ;;  %1549 = vmatpush1.bf16.msra.mxu1 %v1037_v58  ;;  %v1077_v2 = vunpack.c.h.s8.bf16 %v761_v59  ;;  %v1080_v58 = vunpack.c.l.s8.bf16 %v764_v63 }
 0x25b   : > { %1345 = vmatprep.subr.bf16.mxu0 %v1040_v3  ;;  %1550 = vmatprep.subr.bf16.mxu1 %v1042_v4  ;;  %v1082_v3 = vunpack.c.l.s8.bf16 %v766_v0  ;;  %v763_v4 = vld [vmem:[%s11826_s20 + $0x4e0] sm:$0xff] }
 0x25c   : > { %v1079_v7 = vunpack.c.l.s8.bf16 %v763_v4 }
 0x25e   : > { %1346 = vmatpush1.bf16.msra.mxu0 %v1039_v8  ;;  %1551 = vmatpush1.bf16.msra.mxu1 %v1041_v9  ;;  %v1081_v8 = vunpack.c.l.s8.bf16 %v765_v6  ;;  %v1084_v9 = vunpack.c.h.s8.bf16 %v764_v63 }
 0x25f   : > { %1347 = vmatprep.subr.bf16.mxu0 %v1044_v10  ;;  %1552 = vmatprep.subr.bf16.mxu1 %v1046_v11  ;;  %v1086_v10 = vunpack.c.h.s8.bf16 %v766_v0  ;;  %v1083_v11 = vunpack.c.h.s8.bf16 %v763_v4 }
 0x262   : > { %1348 = vmatpush1.bf16.msra.mxu0 %v1043_v13  ;;  %1553 = vmatpush1.bf16.msra.mxu1 %v1045_v14  ;;  %v11394_v13 = vmov 1983009808  }
 0x263   : > { %1349 = vmatprep.subr.bf16.mxu0 %v1048_v15  ;;  %1554 = vmatprep.subr.bf16.mxu1 %v1050_v16  ;;  %v1590_v14 = vunpack.c.l.s4 %v11394_v13 }
 0x265   : > { %v1591_v15 = vunpack.c.0.s8 %v1590_v14 }
 0x266   : > { %1350 = vmatpush1.bf16.msra.mxu0 %v1047_v18  ;;  %1555 = vmatpush1.bf16.msra.mxu1 %v1049_v19 }
 0x267   : > { %1351 = vmatprep.subr.bf16.mxu0 %v1052_v20  ;;  %1556 = vmatprep.subr.bf16.mxu1 %v1054_v22  ;;  %v12074_v35 = vsub.s32 %v1591_v15, %v11866_v38 }
 0x26a   : > { %1352 = vmatpush1.bf16.msra.mxu0 %v1051_v24  ;;  %1557 = vmatpush1.bf16.msra.mxu1 %v1053_v25 }
 0x26b   : > { %1353 = vmatprep.subr.bf16.mxu0 %v1056_v26  ;;  %1558 = vmatprep.subr.bf16.mxu1 %v1058_v27  ;;  %v1087_v26 = vld [vmem:[#allocation2] sm:$0xff] }
 0x26e   : > { %1354 = vmatpush1.bf16.msra.mxu0 %v1055_v30  ;;  %1559 = vmatpush1.bf16.msra.mxu1 %v1057_v31 }
 0x26f   : > { %1355 = vmatprep.subr.bf16.mxu0 %v1060_v32  ;;  %1560 = vmatprep.subr.bf16.mxu1 %v1062_v33 }
 0x272   : > { %1356 = vmatpush1.bf16.msra.mxu0 %v1059_v37  ;;  %1561 = vmatpush1.bf16.msra.mxu1 %v1061_v39 }
 0x273   : > { %1357 = vmatprep.subr.bf16.mxu0 %v1064_v40  ;;  %1562 = vmatprep.subr.bf16.mxu1 %v1066_v41 }
 0x276   : > { %1358 = vmatpush1.bf16.msra.mxu0 %v1063_v45  ;;  %1563 = vmatpush1.bf16.msra.mxu1 %v1065_v46 }
 0x277   : > { %1359 = vmatprep.subr.bf16.mxu0 %v1068_v47  ;;  %1564 = vmatprep.subr.bf16.mxu1 %v1070_v48 }
 0x27a   : > { %1360 = vmatpush1.bf16.msra.mxu0 %v1067_v54  ;;  %1565 = vmatpush1.bf16.msra.mxu1 %v1069_v55 }
 0x27b   : > { %1361 = vmatprep.subr.bf16.mxu0 %v1072_v5  ;;  %1566 = vmatprep.subr.bf16.mxu1 %v1074_v56 }
 0x27e   : > { %1362 = vmatpush1.bf16.msra.mxu0 %v1071_v60  ;;  %1567 = vmatpush1.bf16.msra.mxu1 %v1073_v61 }
 0x27f   : > { %1363 = vmatprep.subr.bf16.mxu0 %v1076_v50  ;;  %1568 = vmatprep.subr.bf16.mxu1 %v1078_v62 }
 0x282   : > { %1364 = vmatpush1.bf16.msra.mxu0 %v1075_v1  ;;  %1569 = vmatpush1.bf16.msra.mxu1 %v1077_v2 }
 0x283   : > { %1365 = vmatprep.subr.bf16.mxu0 %v1080_v58  ;;  %1570 = vmatprep.subr.bf16.mxu1 %v1082_v3 }
 0x286   : > { %1366 = vmatpush1.bf16.msra.mxu0 %v1079_v7  ;;  %1571 = vmatpush1.bf16.msra.mxu1 %v1081_v8 }
 0x287   : > { %1367 = vmatprep.subr.bf16.mxu0 %v1084_v9  ;;  %1572 = vmatprep.subr.bf16.mxu1 %v1086_v10 }
 0x28a   : > { %1368 = vmatpush1.bf16.msra.mxu0 %v1083_v11  ;;  %1573 = vmatpush1.bf16.msra.mxu1 %v1085_v12 }
 0x28d   : > { %1370 = vmatmul.mubr.bf16.vlgmr.msra.gmra.mrb[0].mxu0 %v1155_v21  ;;  %1575 = vmatmul.mubr.bf16.vlgmr.msra.gmra.mrb[0].mxu1 %v1155_v21 }
 0x360   : > { %v1371_v16 = vpop.f32.mrb[0].mxu0  ;;  %v1576_v17 = vpop.f32.mrb[0].mxu1 }
 0x361   : > { %v1373_v18 = vpop.f32.mrb[1].mxu0  ;;  %v1578_v19 = vpop.f32.mrb[1].mxu1 }
 0x362   : > { %v1587_v20 = vcombine.low %v1371_v16, %v1373_v18  ;;  %v1588_v22 = vcombine.low %v1576_v17, %v1578_v19  ;;  %v1375_v23 = vpop.f32.mrb[2].mxu0  ;;  %v1580_v44 = vpop.f32.mrb[2].mxu1 }
 0x363   : > { %v1376_v24 = vpop.f32.mrb[3].mxu0  ;;  %v1581_v49 = vpop.f32.mrb[3].mxu1 }
 0x364   : > { %v1595_v34 = vrot.slane %v1587_v20, %v12074_v35  ;;  %v1602_v25 = vrot.slane %v1588_v22, %v12074_v35  ;;  %1610 = sbr.rel (%p8830_p2) target bundleno = 2476 (0x9ac), region = 116 }
 0x366   : > { %v1603_v27 = vcombine.low %v1595_v34, %v1602_v25 }
 0x368   : > { %v1605_v28 = vadd.f32 %v1603_v27, %v1087_v26 }
 0x36a   : > { %1606 = vst [vmem:[#allocation2] sm:$0xff] %v1605_v28 }
 0x36b   : > { %v10797_v29 = vld [vmem:[#allocation11 + $0x4] ss:$8 sps:$4 sm:$0xff]   ;;  %v10799_v30 = vld [vmem:[#allocation11] ss:$8 sps:$4 sm:$0xff]   ;;  %v10800_v31 = vld [vmem:[#allocation11 + $0x14] ss:$8 sps:$4 sm:$0xff]  }
 0x36c   : > { %2109 = vmatprep.subr.bf16.mxu1 %v10797_v29  ;;  %v10802_v32 = vld [vmem:[#allocation11 + $0x10] ss:$8 sps:$4 sm:$0xff]   ;;  %v10803_v33 = vld [vmem:[#allocation11 + $0x24] ss:$8 sps:$4 sm:$0xff]   ;;  %v10805_v53 = vld [vmem:[#allocation11 + $0x20] ss:$8 sps:$4 sm:$0xff]  }
 0x36d   : > { %2110 = vmatpush1.bf16.msra.mxu1 %v10799_v30  ;;  %v10806_v36 = vld [vmem:[#allocation11 + $0x34] ss:$8 sps:$4 sm:$0xff]   ;;  %v10808_v37 = vld [vmem:[#allocation11 + $0x30] ss:$8 sps:$4 sm:$0xff]   ;;  %v10809_v39 = vld [vmem:[#allocation11 + $0x44] ss:$8 sps:$4 sm:$0xff]  }
 0x36e   : > { %2111 = vmatprep.subr.bf16.mxu1 %v10800_v31  ;;  %v10811_v40 = vld [vmem:[#allocation11 + $0x40] ss:$8 sps:$4 sm:$0xff]   ;;  %v10812_v41 = vld [vmem:[#allocation11 + $0x54] ss:$8 sps:$4 sm:$0xff]   ;;  %v12080_v42 = vsub.s32 0, %v11866_v38  ;;  %v12083_v43 = vsub.s32 1, %v11866_v38 }
 0x36f   : > { %v1624_v45 = vsub.s32 2, %v11866_v38  ;;  %v1628_v46 = vsub.s32 3, %v11866_v38  ;;  %v10814_v47 = vld [vmem:[#allocation11 + $0x50] ss:$8 sps:$4 sm:$0xff]   ;;  %v10815_v48 = vld [vmem:[#allocation11 + $0x64] ss:$8 sps:$4 sm:$0xff]  }
 0x370   : > { %v1612_v51 = vld [vmem:[#allocation8] sm:$0xf]  ;;  %v1649_v56 = vld [vmem:[#allocation9] sm:$0xf]  ;;  %v10817_v57 = vld [vmem:[#allocation11 + $0x60] ss:$8 sps:$4 sm:$0xff]  }
 0x371   : > { %2112 = vmatpush1.bf16.msra.mxu1 %v10802_v32  ;;  %v1617_v52 = vrot.slane %v1612_v51, %v12080_v42  ;;  %v1621_v54 = vrot.slane %v1612_v51, %v12083_v43  ;;  %v1625_v55 = vrot.slane %v1612_v51, %v1624_v45  ;;  %v1629_v5 = vrot.slane %v1612_v51, %v1628_v46  ;;  %v10818_v50 = vld [vmem:[#allocation11 + $0x74] ss:$8 sps:$4 sm:$0xff]   ;;  %v10820_v3 = vld [vmem:[#allocation11 + $0x70] ss:$8 sps:$4 sm:$0xff]   ;;  %v10821_v8 = vld [vmem:[#allocation11 + $0x84] ss:$8 sps:$4 sm:$0xff]  }
 0x372   : > { %2113 = vmatprep.subr.bf16.mxu1 %v10803_v33  ;;  %v1654_v59 = vrot.slane %v1649_v56, %v12080_v42  ;;  %v1658_v60 = vrot.slane %v1649_v56, %v12083_v43  ;;  %v1662_v61 = vrot.slane %v1649_v56, %v1624_v45  ;;  %v1666_v38 = vrot.slane %v1649_v56, %v1628_v46  ;;  %v1611_v4 = vld [vmem:[#allocation2] sm:$0xff]  ;;  %v10826_v15 = vld [vmem:[#allocation11 + $0x90] ss:$8 sps:$4 sm:$0xff]   ;;  %v10827_v16 = vld [vmem:[#allocation11 + $0xa4] ss:$8 sps:$4 sm:$0xff]  }
 0x373   : > { %v1630_v62 = vcombine.low %v1617_v52, %v1621_v54  ;;  %v1631_v63 = vcombine.low %v1625_v55, %v1629_v5  ;;  %v10823_v12 = vld [vmem:[#allocation11 + $0x80] ss:$8 sps:$4 sm:$0xff]   ;;  %v10824_v21 = vld [vmem:[#allocation11 + $0x94] ss:$8 sps:$4 sm:$0xff]   ;;  %v10832_v23 = vld [vmem:[#allocation11 + $0xb0] ss:$8 sps:$4 sm:$0xff]  }
 0x374   : > { %v1667_v0 = vcombine.low %v1654_v59, %v1658_v60  ;;  %v1668_v1 = vcombine.low %v1662_v61, %v1666_v38  ;;  %v10829_v19 = vld [vmem:[#allocation11 + $0xa0] ss:$8 sps:$4 sm:$0xff]   ;;  %v10830_v20 = vld [vmem:[#allocation11 + $0xb4] ss:$8 sps:$4 sm:$0xff]   ;;  %v10833_v44 = vld [vmem:[#allocation11 + $0xc4] ss:$8 sps:$4 sm:$0xff]  }
 0x375   : > { %2114 = vmatpush1.bf16.msra.mxu1 %v10805_v53  ;;  %v1638_v2 = vrot.slane %v1630_v62, %v12074_v35  ;;  %v1645_v58 = vrot.slane %v1631_v63, %v12074_v35  ;;  %v10835_v24 = vld [vmem:[#allocation11 + $0xc0] ss:$8 sps:$4 sm:$0xff]   ;;  %v10836_v49 = vld [vmem:[#allocation11 + $0xd4] ss:$8 sps:$4 sm:$0xff]   ;;  %v10838_v34 = vld [vmem:[#allocation11 + $0xd0] ss:$8 sps:$4 sm:$0xff]  }
 0x376   : > { %2115 = vmatprep.subr.bf16.mxu1 %v10806_v36  ;;  %v1675_v6 = vrot.slane %v1667_v0, %v12074_v35  ;;  %v1682_v7 = vrot.slane %v1668_v1, %v12074_v35  ;;  %v10839_v26 = vld [vmem:[#allocation11 + $0xe4] ss:$8 sps:$4 sm:$0xff]   ;;  %v10841_v27 = vld [vmem:[#allocation11 + $0xe0] ss:$8 sps:$4 sm:$0xff]   ;;  %v10842_v29 = vld [vmem:[#allocation11 + $0xf4] ss:$8 sps:$4 sm:$0xff]  }
 0x377   : > { %v1646_v9 = vcombine.low %v1638_v2, %v1645_v58  ;;  %v10844_v30 = vld [vmem:[#allocation11 + $0xf0] ss:$8 sps:$4 sm:$0xff]   ;;  %v10847_v32 = vld [vmem:[#allocation11 + $0x104] ss:$8 sps:$4 sm:$0xff]   ;;  %v10845_v53 = vld [vmem:[#allocation11 + $0x100] ss:$8 sps:$4 sm:$0xff]  }
 0x378   : > { %v1683_v10 = vcombine.low %v1675_v6, %v1682_v7  ;;  %v10854_v45 = vld [vmem:[#allocation11 + $0x130] ss:$8 sps:$4 sm:$0xff]   ;;  %v10859_v46 = vld [vmem:[#allocation11 + $0x144] ss:$8 sps:$4 sm:$0xff]   ;;  %v10863_v54 = vld [vmem:[#allocation11 + $0x160] ss:$8 sps:$4 sm:$0xff]  }
 0x379   : > { %2116 = vmatpush1.bf16.msra.mxu1 %v10808_v37  ;;  %v1648_v11 = vmul.f32 %v1646_v9, %v1611_v4  ;;  %v10850_v37 = vld [vmem:[#allocation11 + $0x114] ss:$8 sps:$4 sm:$0xff]   ;;  %v10860_v51 = vld [vmem:[#allocation11 + $0x150] ss:$8 sps:$4 sm:$0xff]   ;;  %v10865_v52 = vld [vmem:[#allocation11 + $0x164] ss:$8 sps:$4 sm:$0xff]  }
 0x37a   : > { %2117 = vmatprep.subr.bf16.mxu1 %v10809_v39  ;;  %v10848_v39 = vld [vmem:[#allocation11 + $0x110] ss:$8 sps:$4 sm:$0xff]   ;;  %v10868_v55 = vld [vmem:[#allocation11 + $0x174] ss:$8 sps:$4 sm:$0xff]   ;;  %v10871_v56 = vld [vmem:[#allocation11 + $0x184] ss:$8 sps:$4 sm:$0xff]  }
 0x37b   : > { %v1685_v13 = vadd.f32 %v1683_v10, %v1648_v11  ;;  %v10866_v5 = vld [vmem:[#allocation11 + $0x170] ss:$8 sps:$4 sm:$0xff]   ;;  %v10874_v59 = vld [vmem:[#allocation11 + $0x194] ss:$8 sps:$4 sm:$0xff]   ;;  %v10877_v61 = vld [vmem:[#allocation11 + $0x1a4] ss:$8 sps:$4 sm:$0xff]  }
 0x37c   : > { %v10872_v60 = vld [vmem:[#allocation11 + $0x190] ss:$8 sps:$4 sm:$0xff]   ;;  %v10875_v38 = vld [vmem:[#allocation11 + $0x1a0] ss:$8 sps:$4 sm:$0xff]   ;;  %v10883_v63 = vld [vmem:[#allocation11 + $0x1c4] ss:$8 sps:$4 sm:$0xff]  }
 0x37d   : > { %2118 = vmatpush1.bf16.msra.mxu1 %v10811_v40  ;;  %v1686_v14 = vmax.f32 %v1685_v13, 0.0  ;;  %v10851_v40 = vld [vmem:[#allocation11 + $0x120] ss:$8 sps:$4 sm:$0xff]   ;;  %v10878_v62 = vld [vmem:[#allocation11 + $0x1b0] ss:$8 sps:$4 sm:$0xff]   ;;  %vm11396_vm0 = vmmov 0  }
 0x37e   : > { %2119 = vmatprep.subr.bf16.mxu1 %v10812_v41  ;;  %v10856_v41 = vld [vmem:[#allocation11 + $0x134] ss:$8 sps:$4 sm:$0xff]   ;;  %v10881_v0 = vld [vmem:[#allocation11 + $0x1c0] ss:$8 sps:$4 sm:$0xff]   ;;  %v10884_v2 = vld [vmem:[#allocation11 + $0x1d0] ss:$8 sps:$4 sm:$0xff]  }
 0x37f   : > { %v1695_v17 = vrot.slane %v1686_v14, %v12074_v35  ;;  %v1688_v25 = vcombine.high %v1686_v14, %v1686_v14  ;;  %v10886_v1 = vld [vmem:[#allocation11 + $0x1d4] ss:$8 sps:$4 sm:$0xff]   ;;  %v10889_v58 = vld [vmem:[#allocation11 + $0x1e4] ss:$8 sps:$4 sm:$0xff]   ;;  %v10890_v6 = vld [vmem:[#allocation11 + $0x1f0] ss:$8 sps:$4 sm:$0xff]  }
 0x380   : > { %v10892_v4 = vld [vmem:[#allocation11 + $0x1f4] ss:$8 sps:$4 sm:$0xff]   ;;  %vm2882_vm1 = vcmask 1041408   ;;  %vm2896_vm2 = vcmask 0  }
 0x381   : > { %2120 = vmatpush1.bf16.msra.mxu1 %v10814_v47  ;;  %v1703_v18 = vcombine.high %v1695_v17, %v1695_v17  ;;  %v12097_v28 = vrot.slane %v1688_v25, %v12074_v35  ;;  %v1709_v33 = vpack.c.bf16 %v1695_v17, %v1695_v17  ;;  %v10853_v35 = vld [vmem:[#allocation11 + $0x124] ss:$8 sps:$4 sm:$0xff]   ;;  %v10857_v47 = vld [vmem:[#allocation11 + $0x140] ss:$8 sps:$4 sm:$0xff]   ;;  %v12107_v13 = vld [vmem:[#allocation17 + $0x10] sm:$0xff] }
 0x382   : > { %2121 = vmatprep.subr.bf16.mxu1 %v10815_v48  ;;  %v10862_v48 = vld [vmem:[#allocation11 + $0x154] ss:$8 sps:$4 sm:$0xff]   ;;  %v2247_v17 = vand.u32 4294901760, %v12107_v13 }
 0x383   : > { %v1710_v22 = vpack.c.bf16 %v1703_v18, %v1703_v18  ;;  %v1704_v31 = vcombine.high %v12097_v28, %v12097_v28  ;;  %v1711_v7 = vpack.c.bf16 %v12097_v28, %v12097_v28  ;;  %v2225_v9 = vld [vmem:[#allocation17 + $0x8] sm:$0xff]  ;;  %v12109_v14 = vld [vmem:[#allocation17 + $0x18] sm:$0xff] }
 0x384   : > { %v2244_v11 = vand.u32 4294901760, %v2225_v9  ;;  %v2250_v18 = vand.u32 4294901760, %v12109_v14 }
 0x385   : > { %2122 = vmatpush1.bf16.msra.mxu1 %v10817_v57  ;;  %2141 = vmatprep.mubr.bf16.mxu1 %v1710_v22  ;;  %v1712_v36 = vpack.c.bf16 %v1704_v31, %v1704_v31  ;;  %v10869_v57 = vld [vmem:[#allocation11 + $0x180] ss:$8 sps:$4 sm:$0xff]   ;;  %v12124_v22 = vsub.f32 %v12107_v13, %v2247_v17 }
 0x386   : > { %2123 = vmatprep.subr.bf16.mxu1 %v10818_v50  ;;  %v10880_v50 = vld [vmem:[#allocation11 + $0x1b4] ss:$8 sps:$4 sm:$0xff]  }
 0x387   : > { %15939 = vst [vmem:[#allocation37_spill] sm:$0xff] %v12124_v22  ;;  %v15511_v25 = vand.u32 4294901760, %v12124_v22 }
 0x389   : > { %2124 = vmatpush1.bf16.msra.mxu1 %v10820_v3  ;;  %v10887_v3 = vld [vmem:[#allocation11 + $0x1e0] ss:$8 sps:$4 sm:$0xff]  }
 0x38a   : > { %2125 = vmatprep.subr.bf16.mxu1 %v10821_v8  ;;  %v2224_v8 = vld [vmem:[#allocation17] sm:$0xff] }
 0x38b   : > { %v2241_v10 = vand.u32 4294901760, %v2224_v8 }
 0x38d   : > { %2126 = vmatpush1.bf16.msra.mxu1 %v10823_v12  ;;  %v12103_v12 = vsub.f32 %v2224_v8, %v2241_v10 }
 0x38e   : > { %2127 = vmatprep.subr.bf16.mxu1 %v10824_v21  ;;  %v12105_v21 = vsub.f32 %v2225_v9, %v2244_v11 }
 0x38f   : > { %15937 = vst [vmem:[#allocation35_spill] sm:$0xff] %v12103_v12 }
 0x390   : > { %15938 = vst [vmem:[#allocation36_spill] sm:$0xff] %v12105_v21 }
 0x391   : > { %2128 = vmatpush1.bf16.msra.mxu1 %v10826_v15  ;;  %v15513_v15 = vand.u32 4294901760, %v12103_v12 }
 0x392   : > { %2129 = vmatprep.subr.bf16.mxu1 %v10827_v16  ;;  %v15512_v16 = vand.u32 4294901760, %v12105_v21 }
 0x395   : > { %2130 = vmatpush1.bf16.msra.mxu1 %v10829_v19  ;;  %v2335_v19 = vsub.f32 %v12103_v12, %v15513_v15 }
 0x396   : > { %2131 = vmatprep.subr.bf16.mxu1 %v10830_v20  ;;  %v2342_v20 = vsub.f32 %v12105_v21, %v15512_v16 }
 0x399   : > { %2132 = vmatpush1.bf16.msra.mxu1 %v10832_v23  ;;  %v12129_v23 = vsub.f32 %v12109_v14, %v2250_v18  ;;  %v2236_v14 = vld [vmem:[#allocation17 + $0x60] sm:$0xff] }
 0x39a   : > { %2133 = vmatprep.subr.bf16.mxu1 %v10833_v44  ;;  %v12131_v44 = vld [vmem:[#allocation17 + $0x20] sm:$0xff] }
 0x39b   : > { %15940 = vst [vmem:[#allocation38_spill] sm:$0xff] %v12129_v23 }
 0x39d   : > { %2134 = vmatpush1.bf16.msra.mxu1 %v10835_v24  ;;  %v12133_v24 = vld [vmem:[#allocation17 + $0x28] sm:$0xff] }
 0x39e   : > { %2135 = vmatprep.subr.bf16.mxu1 %v10836_v49  ;;  %v2336_v49 = vand.u32 4294901760, %v2335_v19  ;;  %v2256_v28 = vand.u32 4294901760, %v12133_v24 }
 0x3a1   : > { %2136 = vmatpush1.bf16.msra.mxu1 %v10838_v34  ;;  %v2343_v34 = vand.u32 4294901760, %v2342_v20 }
 0x3a2   : > { %2137 = vmatprep.subr.bf16.mxu1 %v10839_v26  ;;  %v15510_v26 = vand.u32 4294901760, %v12129_v23 }
 0x3a4   : > { %v2356_v31 = vsub.f32 %v12129_v23, %v15510_v26 }
 0x3a5   : > { %2138 = vmatpush1.bf16.msra.mxu1 %v10841_v27  ;;  %v2253_v27 = vand.u32 4294901760, %v12131_v44 }
 0x3a6   : > { %2139 = vmatprep.subr.bf16.mxu1 %v10842_v29  ;;  %v9248_v29 = vpack.c.bf16 %v2343_v34, %v2336_v49 }
 0x3a9   : > { %2140 = vmatpush1.bf16.msra.mxu1 %v10844_v30  ;;  %v2349_v30 = vsub.f32 %v12124_v22, %v15511_v25 }
 0x3aa   : > { %2150 = vmatprep.subr.bf16.mxu1 %v10847_v32  ;;  %v15522_v32 = vmov 0.0|0.0  }
 0x3ab   : > { %9247 = vmatprep.subr.bf16.mxu0 %v15522_v32 }
 0x3ac   : > { %2142 = vmatmul.mubr.bf16.vlgmr.msra.gmra.mrb[0].mxu1 %v1709_v33  ;;  %v12150_v33 = vsub.f32 %v12131_v44, %v2253_v27  ;;  %9249 = vmatpush3.bf16.msra.mxu0 %v9248_v29 }
 0x3ad   : > { %2151 = vmatpush1.bf16.msra.mxu1 %v10845_v53  ;;  %2182 = vmatprep.mubr.bf16.mxu1 %v1712_v36  ;;  %v12155_v53 = vsub.f32 %v12133_v24, %v2256_v28  ;;  %v12157_v36 = vld [vmem:[#allocation17 + $0x30] sm:$0xff] }
 0x3ae   : > { %2152 = vmatprep.subr.bf16.mxu1 %v10850_v37  ;;  %15941 = vst [vmem:[#allocation39_spill] sm:$0xff] %v12150_v33  ;;  %v12159_v37 = vld [vmem:[#allocation17 + $0x38] sm:$0xff]  ;;  %9250 = vmatprep.subr.bf16.mxu0 %v15522_v32 }
 0x3af   : > { %15942 = vst [vmem:[#allocation40_spill] sm:$0xff] %v12155_v53 }
 0x3b1   : > { %2153 = vmatpush1.bf16.msra.mxu1 %v10848_v39  ;;  %v2350_v39 = vand.u32 4294901760, %v2349_v30  ;;  %v2277_v30 = vand.u32 4294901760, %v2236_v14 }
 0x3b2   : > { %2154 = vmatprep.subr.bf16.mxu1 %v10853_v35  ;;  %v2357_v35 = vand.u32 4294901760, %v2356_v31 }
 0x3b5   : > { %2155 = vmatpush1.bf16.msra.mxu1 %v10851_v40  ;;  %v2259_v40 = vand.u32 4294901760, %v12157_v36 }
 0x3b6   : > { %2156 = vmatprep.subr.bf16.mxu1 %v10856_v41  ;;  %v2262_v41 = vand.u32 4294901760, %v12159_v37 }
 0x3b9   : > { %2157 = vmatpush1.bf16.msra.mxu1 %v10854_v45  ;;  %v15508_v45 = vand.u32 4294901760, %v12150_v33 }
 0x3ba   : > { %2158 = vmatprep.subr.bf16.mxu1 %v10859_v46  ;;  %v15507_v46 = vand.u32 4294901760, %v12155_v53 }
 0x3bd   : > { %2159 = vmatpush1.bf16.msra.mxu1 %v10857_v47  ;;  %v9251_v47 = vpack.c.bf16 %v2357_v35, %v2350_v39 }
 0x3be   : > { %2160 = vmatprep.subr.bf16.mxu1 %v10862_v48  ;;  %v12169_v48 = vsub.f32 %v12157_v36, %v2259_v40 }
 0x3bf   : > { %9252 = vmatpush3.bf16.msra.mxu0 %v9251_v47  ;;  %v12249_v47 = vpack.c.bf16 %v2256_v28, %v2253_v27 }
 0x3c0   : > { %15943 = vst [vmem:[#allocation41_spill] sm:$0xff] %v12169_v48  ;;  %9253 = vmatprep.subr.bf16.mxu0 %v15522_v32 }
 0x3c1   : > { %2161 = vmatpush1.bf16.msra.mxu1 %v10860_v51  ;;  %v12174_v51 = vsub.f32 %v12159_v37, %v2262_v41  ;;  %15948 = vst [vmem:[#allocation46_spill] sm:$0xff] %v12249_v47 }
 0x3c2   : > { %2162 = vmatprep.subr.bf16.mxu1 %v10865_v52  ;;  %v2363_v52 = vsub.f32 %v12150_v33, %v15508_v45 }
 0x3c3   : > { %15944 = vst [vmem:[#allocation42_spill] sm:$0xff] %v12174_v51 }
 0x3c5   : > { %2163 = vmatpush1.bf16.msra.mxu1 %v10863_v54  ;;  %v2370_v54 = vsub.f32 %v12155_v53, %v15507_v46 }
 0x3c6   : > { %2164 = vmatprep.subr.bf16.mxu1 %v10868_v55  ;;  %v12182_v55 = vld [vmem:[#allocation17 + $0x40] sm:$0xff] }
 0x3c9   : > { %2165 = vmatpush1.bf16.msra.mxu1 %v10866_v5  ;;  %v12184_v5 = vld [vmem:[#allocation17 + $0x48] sm:$0xff] }
 0x3ca   : > { %2166 = vmatprep.subr.bf16.mxu1 %v10871_v56  ;;  %v15506_v56 = vand.u32 4294901760, %v12169_v48 }
 0x3cd   : > { %2167 = vmatpush1.bf16.msra.mxu1 %v10869_v57  ;;  %v15504_v57 = vand.u32 4294901760, %v12174_v51 }
 0x3ce   : > { %2168 = vmatprep.subr.bf16.mxu1 %v10874_v59  ;;  %v2265_v59 = vand.u32 4294901760, %v12182_v55 }
 0x3d1   : > { %2169 = vmatpush1.bf16.msra.mxu1 %v10872_v60  ;;  %v2268_v60 = vand.u32 4294901760, %v12184_v5 }
 0x3d2   : > { %2170 = vmatprep.subr.bf16.mxu1 %v10877_v61  ;;  %v2364_v61 = vand.u32 4294901760, %v2363_v52 }
 0x3d5   : > { %2171 = vmatpush1.bf16.msra.mxu1 %v10875_v38  ;;  %v2371_v38 = vand.u32 4294901760, %v2370_v54  ;;  %v12254_v54 = vsub.f32 %v2236_v14, %v2277_v30 }
 0x3d6   : > { %2172 = vmatprep.subr.bf16.mxu1 %v10880_v50  ;;  %v12191_v50 = vpack.c.bf16 %v2244_v11, %v2241_v10  ;;  %v12224_v11 = vpack.c.bf16 %v2250_v18, %v2247_v17  ;;  %v2237_v17 = vld [vmem:[#allocation17 + $0x68] sm:$0xff] }
 0x3d7   : > { %v2280_v31 = vand.u32 4294901760, %v2237_v17  ;;  %v15499_v24 = vand.u32 4294901760, %v12254_v54 }
 0x3d9   : > { %2173 = vmatpush1.bf16.msra.mxu1 %v10878_v62  ;;  %v2377_v62 = vsub.f32 %v12169_v48, %v15506_v56 }
 0x3da   : > { %2174 = vmatprep.subr.bf16.mxu1 %v10883_v63  ;;  %v2384_v63 = vsub.f32 %v12174_v51, %v15504_v57 }
 0x3dd   : > { %2175 = vmatpush1.bf16.msra.mxu1 %v10881_v0  ;;  %v12202_v0 = vsub.f32 %v12182_v55, %v2265_v59 }
 0x3de   : > { %2176 = vmatprep.subr.bf16.mxu1 %v10886_v1  ;;  %v9254_v1 = vpack.c.bf16 %v2371_v38, %v2364_v61  ;;  %v12256_v61 = vsub.f32 %v2237_v17, %v2280_v31 }
 0x3df   : > { %15945 = vst [vmem:[#allocation43_spill] sm:$0xff] %v12202_v0 }
 0x3e0   : > { %9255 = vmatpush3.bf16.msra.mxu0 %v9254_v1  ;;  %v2239_v1 = vld [vmem:[#allocation17 + $0x78] sm:$0xff]  ;;  %v15498_v27 = vand.u32 4294901760, %v12256_v61 }
 0x3e1   : > { %2177 = vmatpush1.bf16.msra.mxu1 %v10884_v2  ;;  %v12207_v2 = vsub.f32 %v12184_v5, %v2268_v60  ;;  %9256 = vmatprep.subr.bf16.mxu0 %v15522_v32 }
 0x3e2   : > { %2178 = vmatprep.subr.bf16.mxu1 %v10889_v58  ;;  %v12209_v58 = vld [vmem:[#allocation17 + $0x50] sm:$0xff] }
 0x3e3   : > { %15946 = vst [vmem:[#allocation44_spill] sm:$0xff] %v12207_v2  ;;  %v2271_v8 = vand.u32 4294901760, %v12209_v58  ;;  %v15502_v9 = vand.u32 4294901760, %v12207_v2 }
 0x3e5   : > { %2179 = vmatpush1.bf16.msra.mxu1 %v10887_v3  ;;  %v12211_v3 = vld [vmem:[#allocation17 + $0x58] sm:$0xff]  ;;  %v12232_v49 = vsub.f32 %v12209_v58, %v2271_v8  ;;  %v2398_v34 = vsub.f32 %v12207_v2, %v15502_v9  ;;  %v12317_v58 = vld [vmem:[#allocation18 + $0x8] sm:$0xff] }
 0x3e6   : > { %2180 = vmatprep.subr.bf16.mxu1 %v10892_v4  ;;  %v2378_v4 = vand.u32 4294901760, %v2377_v62  ;;  %v2274_v10 = vand.u32 4294901760, %v12211_v3 }
 0x3e7   : > { %v15501_v29 = vand.u32 4294901760, %v12232_v49  ;;  %v2399_v39 = vand.u32 4294901760, %v2398_v34 }
 0x3e8   : > { %v12238_v13 = vsub.f32 %v12211_v3, %v2274_v10  ;;  %v12304_v5 = vpack.c.bf16 %v2274_v10, %v2271_v8  ;;  %v2947_v8 = vunpack.c.0.s8 %v12317_v58  ;;  %v2959_v10 = vunpack.c.1.s8 %v12317_v58 }
 0x3e9   : > { %2181 = vmatpush1.bf16.msra.mxu1 %v10890_v6  ;;  %v2385_v6 = vand.u32 4294901760, %v2384_v63  ;;  %v2405_v52 = vsub.f32 %v12232_v49, %v15501_v29  ;;  %v2238_v63 = vld [vmem:[#allocation17 + $0x70] sm:$0xff]  ;;  %v8895_v29 = vld [vmem:[#allocation14] ss:$0 sm:$0xff] }
 0x3ea   : > { %9223 = vmatprep.subr.bf16.mxu1 %v15522_v32  ;;  %15947 = vst [vmem:[#allocation45_spill] sm:$0xff] %v12238_v13  ;;  %v15500_v35 = vand.u32 4294901760, %v12238_v13  ;;  %v2283_v28 = vand.u32 4294901760, %v2238_v63  ;;  %15951 = vst [vmem:[#allocation49_spill] sm:$0xff] %v12304_v5 }
 0x3eb   : > { %v9257_v19 = vpack.c.bf16 %v2385_v6, %v2378_v4  ;;  %v2406_v44 = vand.u32 4294901760, %v2405_v52  ;;  %v2286_v4 = vand.u32 4294901760, %v2239_v1  ;;  %v12270_v6 = vpack.c.bf16 %v2262_v41, %v2259_v40 }
 0x3ec   : > { %2183 = vmatmul.mubr.bf16.vlgmr.msra.gmra.mrb[4].mxu1 %v1711_v7  ;;  %v15503_v7 = vand.u32 4294901760, %v12202_v0  ;;  %v2412_v62 = vsub.f32 %v12238_v13, %v15500_v35  ;;  %v12278_v34 = vsub.f32 %v2238_v63, %v2283_v28  ;;  %v12291_v41 = vpack.c.bf16 %v2268_v60, %v2265_v59 }
 0x3ed   : > { %9225 = vmatpush3.bf16.msra.mxu1 %v12191_v50  ;;  %9258 = vmatpush3.bf16.msra.mxu0 %v9257_v19  ;;  %15949 = vst [vmem:[#allocation47_spill] sm:$0xff] %v12270_v6  ;;  %v2419_v19 = vsub.f32 %v12254_v54, %v15499_v24  ;;  %v12280_v17 = vsub.f32 %v2239_v1, %v2286_v4  ;;  %v15514_v1 = vmov 0.0  }
 0x3ee   : > { %9226 = vmatprep.subr.bf16.mxu1 %v15522_v32  ;;  %v2391_v20 = vsub.f32 %v12202_v0, %v15503_v7  ;;  %9259 = vmatprep.subr.bf16.mxu0 %v15522_v32  ;;  %v2413_v3 = vand.u32 4294901760, %v2412_v62  ;;  %v15497_v37 = vand.u32 4294901760, %v12278_v34  ;;  %15950 = vst [vmem:[#allocation48_spill] sm:$0xff] %v12291_v41  ;;  %v12309_v60 = vpack.c.bf16 %v2280_v31, %v2277_v30 }
 0x3ef   : > { %v2420_v36 = vand.u32 4294901760, %v2419_v19  ;;  %v15496_v40 = vand.u32 4294901760, %v12280_v17  ;;  %v9272_v63 = vpack.c.bf16 %v12105_v21, %v12103_v12  ;;  %9080 = vmatprep.mubr.msk.f32.mxu0 %vm11396_vm0, %v15514_v1  ;;  %9045 = vmatprep.mubr.msk.f32.mxu1 %vm11396_vm0, %v15514_v1  ;;  %v12323_v30 = vpack.c.bf16 %v2286_v4, %v2283_v28  ;;  %v1777_v4 = vld [vmem:[#allocation12] sm:$0x3] }
 0x3f0   : > { %v2392_v18 = vand.u32 4294901760, %v2391_v20  ;;  %v2426_v20 = vsub.f32 %v12256_v61, %v15498_v27  ;;  %v9263_v14 = vpack.c.bf16 %v2413_v3, %v2406_v44  ;;  %v2433_v52 = vsub.f32 %v12278_v34, %v15497_v37  ;;  %15952 = vst [vmem:[#allocation50_spill] sm:$0xff] %v12309_v60 }
 0x3f1   : > { %9228 = vmatpush3.bf16.msra.mxu1 %v12224_v11  ;;  %15953 = vst [vmem:[#allocation51_spill] sm:$0xff] %v12323_v30  ;;  %v9275_v31 = vpack.c.bf16 %v12129_v23, %v12124_v22  ;;  %v3139_v44 = vcvt.s32.f32 %v2947_v8  ;;  %v3151_v3 = vcvt.s32.f32 %v2959_v10  ;;  %v1786_v27 = vrot.slane %v1777_v4, %v12083_v43 }
 0x3f2   : > { %9229 = vmatprep.subr.bf16.mxu1 %v15522_v32  ;;  %v9260_v38 = vpack.c.bf16 %v2399_v39, %v2392_v18  ;;  %v2427_v18 = vand.u32 4294901760, %v2426_v20  ;;  %v2434_v62 = vand.u32 4294901760, %v2433_v52  ;;  %v15971_v21 = vpack.c.bf16 %v12174_v51, %v12169_v48 }
 0x3f3   : > { %v3330_v19 = vand.u32 4294901760, %v3139_v44  ;;  %v3334_v20 = vand.u32 4294901760, %v3151_v3 }
 0x3f4   : > { %9261 = vmatpush3.bf16.msra.mxu0 %v9260_v38  ;;  %v9266_v39 = vpack.c.bf16 %v2427_v18, %v2420_v36  ;;  %v2440_v38 = vsub.f32 %v12280_v17, %v15496_v40 }
 0x3f5   : > { %9231 = vmatpush3.bf16.msra.mxu1 %v12249_v47  ;;  %9262 = vmatprep.subr.bf16.mxu0 %v15522_v32  ;;  %v12330_v36 = vsub.f32 %v3139_v44, %v3330_v19  ;;  %v12332_v18 = vsub.f32 %v3151_v3, %v3334_v20 }
 0x3f6   : > { %9232 = vmatprep.subr.bf16.mxu1 %v15522_v32  ;;  %v2441_v55 = vand.u32 4294901760, %v2440_v38  ;;  %v1782_v38 = vrot.slane %v1777_v4, %v12080_v42 }
 0x3f7   : > { %15955 = vst [vmem:[#allocation53_spill] sm:$0xff] %v12330_v36  ;;  %15956 = vst [vmem:[#allocation54_spill] sm:$0xff] %v12332_v18  ;;  %v15509_v40 = vand.u32 4294901760, %v12332_v18 }
 0x3f8   : > { %9264 = vmatpush3.bf16.msra.mxu0 %v9263_v14  ;;  %v9269_v59 = vpack.c.bf16 %v2441_v55, %v2434_v62  ;;  %v12328_v14 = vpack.c.bf16 %v3334_v20, %v3330_v19  ;;  %v15505_v20 = vand.u32 4294901760, %v12330_v36 }
 0x3f9   : > { %9234 = vmatpush3.bf16.msra.mxu1 %v12270_v6  ;;  %9265 = vmatprep.subr.bf16.mxu0 %v15522_v32 }
 0x3fa   : > { %9235 = vmatprep.subr.bf16.mxu1 %v15522_v32  ;;  %15954 = vst [vmem:[#allocation52_spill] sm:$0xff] %v12328_v14  ;;  %v3441_v42 = vsub.f32 %v12330_v36, %v15505_v20  ;;  %v2922_v36 = vld [vmem:[#allocation18 + $0xc0] sm:$0xff] }
 0x3fc   : > { %9267 = vmatpush3.bf16.msra.mxu0 %v9266_v39 }
 0x3fd   : > { %9237 = vmatpush3.bf16.msra.mxu1 %v12291_v41  ;;  %9268 = vmatprep.subr.bf16.mxu0 %v15522_v32 }
 0x3fe   : > { %9238 = vmatprep.subr.bf16.mxu1 %v15522_v32 }
 0x400   : > { %9270 = vmatpush3.bf16.msra.mxu0 %v9269_v59 }
 0x401   : > { %9240 = vmatpush3.bf16.msra.mxu1 %v12304_v5  ;;  %9271 = vmatprep.subr.bf16.mxu0 %v15522_v32 }
 0x402   : > { %9241 = vmatprep.subr.bf16.mxu1 %v15522_v32 }
 0x405   : > { %9243 = vmatpush3.bf16.msra.mxu1 %v12309_v60 }
 0x406   : > { %9244 = vmatprep.subr.bf16.mxu1 %v15522_v32 }
 0x409   : > { %9246 = vmatpush3.bf16.msra.mxu1 %v12323_v30 }
 0x40a   : > { %9368 = vmatprep.subr.bf16.mxu1 %v12328_v14 }
 0x47f   : > { %v2143_v55 = vpop.f32.mrb[0].mxu1 }
 0x480   : > { %v2144_v59 = vadd.f32 %v2143_v55, %v1782_v38  ;;  %v2145_v8 = vpop.f32.mrb[1].mxu1  ;;  %v3453_v38 = vsub.f32 %v12332_v18, %v15509_v40  ;;  %v3442_v55 = vand.u32 4294901760, %v3441_v42  ;;  %v2898_v40 = vld [vmem:[#allocation18] sm:$0xff] }
 0x481   : > { %v2147_v10 = vpop.f32.mrb[2].mxu1  ;;  %v2146_v24 = vadd.f32 %v2145_v8, %v1786_v27  ;;  %v2946_v27 = vunpack.c.0.s8 %v2898_v40  ;;  %v2982_v25 = vunpack.c.3.s8 %v2898_v40 }
 0x482   : > { %v2148_v44 = vpop.f32.mrb[3].mxu1  ;;  %v3454_v10 = vand.u32 4294901760, %v3453_v38 }
 0x484   : > { %v12356_v44 = vpack.c.bf16 %v3454_v10, %v3442_v55  ;;  %v8897_v55 = vld [vmem:[#allocation15] ss:$0 sm:$0xff] }
 0x4bf   : > { %v2184_v35 = vpop.f32.mrb[4].mxu1 }
 0x4c0   : > { %v2185_v9 = vadd.f32 %v2184_v35, %v2144_v59  ;;  %v2186_v7 = vpop.f32.mrb[5].mxu1  ;;  %v2958_v59 = vunpack.c.1.s8 %v2898_v40 }
 0x4c1   : > { %v2187_v57 = vadd.f32 %v2186_v7, %v2146_v24  ;;  %v2188_v20 = vpop.f32.mrb[6].mxu1 }
 0x4c2   : > { %v2199_v56 = vadd.f32 %v8895_v29, %v2185_v9  ;;  %v2189_v46 = vpop.f32.mrb[7].mxu1  ;;  %v2971_v29 = vunpack.c.2.s8 %v12317_v58  ;;  %v2970_v20 = vunpack.c.2.s8 %v2898_v40  ;;  %v12373_v40 = vcvt.s32.f32 %v2982_v25 }
 0x4c4   : > { %v8896_v45 = vmul.f32 -1.442695, %v2199_v56  ;;  %v3138_v56 = vcvt.s32.f32 %v2946_v27  ;;  %v3163_v16 = vcvt.s32.f32 %v2971_v29  ;;  %v3344_v52 = vand.u32 4294901760, %v12373_v40 }
 0x4c6   : > { %10893 = vpow2.f32 %v8896_v45  ;;  %v3150_v45 = vcvt.s32.f32 %v2958_v59  ;;  %v12476_v22 = vsub.f32 %v12373_v40, %v3344_v52 }
 0x4c7   : > { %10895 = vtanh.f32 %v2187_v57  ;;  %v2983_v57 = vunpack.c.3.s8 %v12317_v58 }
 0x4c9   : > { %v3175_v15 = vcvt.s32.f32 %v2983_v57  ;;  %v12381_v57 = vld [vmem:[#allocation18 + $0xc8] sm:$0xff] }
 0x4ca   : > { %v3043_v28 = vunpack.c.0.s8 %v12381_v57 }
 0x4d0   : > { %v10894_v42 = vpop.eup %10893 }
 0x4d1   : > { %v2203_v38 = vadd.f32 1.0, %v10894_v42  ;;  %v10896_v10 = vpop.eup %10895 }
 0x4d2   : > { %v2215_v35 = vsub.f32 1.0, %v10896_v10  ;;  %v2219_v9 = vadd.f32 1.0, %v10896_v10 }
 0x4d3   : > { %10897 = vrcp.f32 %v2203_v38  ;;  %v2911_v38 = vld [vmem:[#allocation18 + $0x68] sm:$0xff] }
 0x4dd   : > { %v10898_v37 = vpop.eup %10897 }
 0x4de   : > { %v2213_v43 = vmul.f32 %v10898_v37, %v8897_v55  ;;  %v3332_v37 = vand.u32 4294901760, %v3138_v56  ;;  %v3336_v55 = vand.u32 4294901760, %v3150_v45 }
 0x4e0   : > { %v2214_v4 = vmax.f32 %v2213_v43, 0.0  ;;  %v2217_v8 = vsub.f32 0.0, %v2213_v43  ;;  %v2910_v43 = vld [vmem:[#allocation18 + $0x60] sm:$0xff] }
 0x4e1   : > { %v2994_v59 = vunpack.c.0.s8 %v2910_v43  ;;  %v3030_v3 = vunpack.c.3.s8 %v2910_v43 }
 0x4e2   : > { %v2218_v7 = vmax.f32 %v2217_v8, 0.0  ;;  %v2216_v24 = vmul.f32 %v2215_v35, %v2214_v4  ;;  %v12363_v8 = vcvt.s32.f32 %v2970_v20  ;;  %v2995_v4 = vunpack.c.0.s8 %v2911_v38 }
 0x4e3   : > { %v3007_v35 = vunpack.c.1.s8 %v2911_v38  ;;  %v3019_v20 = vunpack.c.2.s8 %v2911_v38 }
 0x4e4   : > { %v2220_v46 = vmul.f32 %v2219_v9, %v2218_v7  ;;  %v3006_v7 = vunpack.c.1.s8 %v2910_v43  ;;  %v3342_v9 = vand.u32 4294901760, %v3175_v15  ;;  %v12379_v29 = vcvt.s32.f32 %v2995_v4 }
 0x4e5   : > { %v3018_v4 = vunpack.c.2.s8 %v2910_v43  ;;  %v12414_v14 = vcvt.s32.f32 %v3019_v20 }
 0x4e6   : > { %v2221_v42 = vsub.f32 %v2216_v24, %v2220_v46  ;;  %v3338_v24 = vand.u32 4294901760, %v3163_v16  ;;  %v3340_v46 = vand.u32 4294901760, %v12363_v8  ;;  %v12393_v19 = vcvt.s32.f32 %v3006_v7 }
 0x4e7   : > { %v3346_v43 = vand.u32 4294901760, %v12379_v29 }
 0x4e8   : > { %v2222_v26 = vadd.f32 %v10896_v10, %v2221_v42  ;;  %v12371_v10 = vpack.c.bf16 %v3336_v55, %v3332_v37  ;;  %v12391_v42 = vcvt.s32.f32 %v2994_v59  ;;  %v12407_v59 = vpack.c.bf16 %v3342_v9, %v3338_v24 }
 0x4ea   : > { %2223 = vst [vmem:[#allocation21] sm:$0x3] %v2222_v26  ;;  %v12365_v27 = vand.u32 4294901760, %v2222_v26  ;;  %15959 = vst [vmem:[#allocation57_spill] sm:$0xff] %v12371_v10  ;;  %v15967_v18 = vand.u32 4294901760, %v12391_v42 }
 0x4eb   : > { %15961 = vst [vmem:[#allocation59_spill] sm:$0xff] %v12407_v59 }
 0x4ec   : > { %15957 = vst [vmem:[#allocation55_spill] sm:$0xff] %v12365_v27  ;;  %v12368_v58 = vsub.f32 %v2222_v26, %v12365_v27  ;;  %9081 = vmatmul.mubr.f32.vlgmr.msra.gmra.mrb[0].mxu0 %v12365_v27  ;;  %v12389_v26 = vcvt.s32.f32 %v3007_v35  ;;  %v12405_v35 = vsub.f32 %v3150_v45, %v3336_v55  ;;  %v12420_v45 = vcvt.s32.f32 %v3018_v4 }
 0x4ed   : > { %9273 = vmatpush3.bf16.msra.mxu0 %v9272_v63  ;;  %9115 = vmatprep.mubr.msk.f32.mxu0 %vm11396_vm0, %v15514_v1  ;;  %v3031_v63 = vunpack.c.3.s8 %v2911_v38  ;;  %v3055_v1 = vunpack.c.1.s8 %v12381_v57  ;;  %v12403_v38 = vsub.f32 %v3138_v56, %v3332_v37  ;;  %v12422_v37 = vcvt.s32.f32 %v3030_v3 }
 0x4ee   : > { %15958 = vst [vmem:[#allocation56_spill] sm:$0xff] %v12368_v58  ;;  %9274 = vmatprep.subr.bf16.mxu0 %v15522_v32  ;;  %v12387_v25 = vand.u32 4294901760, %v12368_v58  ;;  %v3350_v39 = vand.u32 4294901760, %v12389_v26  ;;  %v12425_v55 = vsub.f32 %v3163_v16, %v3338_v24  ;;  %v3042_v4 = vunpack.c.0.s8 %v2922_v36 }
 0x4ef   : > { %v12416_v27 = vcvt.s32.f32 %v3031_v63  ;;  %v12431_v20 = vcvt.s32.f32 %v3055_v1  ;;  %v15964_v63 = vpack.c.bf16 %v12155_v53, %v12150_v33  ;;  %v3054_v56 = vunpack.c.1.s8 %v2922_v36 }
 0x4f0   : > { %15960 = vst [vmem:[#allocation58_spill] sm:$0xff] %v12387_v25  ;;  %v2324_v62 = vsub.f32 %v12368_v58, %v12387_v25  ;;  %v3067_v3 = vunpack.c.2.s8 %v12381_v57  ;;  %v15965_v16 = vmov 0.0|0.0   ;;  %v12443_v1 = vpack.c.bf16 %v3350_v39, %v3346_v43 }
 0x4f1   : > { %9276 = vmatpush3.bf16.msra.mxu0 %v9275_v31  ;;  %v3079_v31 = vunpack.c.3.s8 %v12381_v57  ;;  %v3354_v24 = vand.u32 4294901760, %v12414_v14  ;;  %v15968_v53 = vand.u32 4294901760, %v12393_v19  ;;  %v3356_v33 = vand.u32 4294901760, %v12420_v45 }
 0x4f2   : > { %9277 = vmatprep.subr.bf16.mxu0 %v15522_v32  ;;  %v12411_v7 = vand.u32 4294901760, %v2324_v62  ;;  %v12427_v62 = vpack.c.bf16 %v3344_v52, %v3340_v46  ;;  %v12429_v32 = vcvt.s32.f32 %v3043_v28  ;;  %v12441_v28 = vsub.f32 %v3175_v15, %v3342_v9  ;;  %15966 = vst [vmem:[#allocation62_spill] sm:$0xff] %v12443_v1  ;;  %v2935_v9 = vld [vmem:[#allocation18 + $0x128] sm:$0xff] }
 0x4f3   : > { %v12454_v57 = vpack.c.bf16 %v15968_v53, %v15967_v18  ;;  %v3360_v15 = vand.u32 4294901760, %v12422_v37  ;;  %v3066_v25 = vunpack.c.2.s8 %v2922_v36  ;;  %v12467_v53 = vcvt.s32.f32 %v3042_v4 }
 0x4f4   : > { %15962 = vst [vmem:[#allocation60_spill] sm:$0xff] %v12411_v7  ;;  %9046 = vmatmul.mubr.f32.vlgmr.msra.gmra.mrb[8].mxu1 %v12411_v7  ;;  %15963 = vst [vmem:[#allocation61_spill] sm:$0xff] %v12427_v62  ;;  %v3362_v23 = vand.u32 4294901760, %v12429_v32  ;;  %v12469_v18 = vcvt.s32.f32 %v3054_v56  ;;  %v12471_v12 = vcvt.s32.f32 %v3067_v3  ;;  %v12473_v30 = vcvt.s32.f32 %v3079_v31 }
 0x4f5   : > { %9279 = vmatpush3.bf16.msra.mxu0 %v15964_v63  ;;  %9370 = vmatpush1.bf16.msra.mxu1 %v12371_v10  ;;  %v3358_v63 = vand.u32 4294901760, %v12416_v27  ;;  %v12448_v10 = vsub.f32 %v12363_v8, %v3340_v46  ;;  %15969 = vst [vmem:[#allocation63_spill] sm:$0xff] %v12454_v57  ;;  %v3078_v8 = vunpack.c.3.s8 %v2922_v36  ;;  %v12461_v46 = vld [vmem:[#allocation18 + $0x120] sm:$0xff]  ;;  %v3103_v51 = vunpack.c.1.s8 %v2935_v9 }
 0x4f6   : > { %9280 = vmatprep.subr.bf16.mxu0 %v15965_v16  ;;  %9372 = vmatprep.subr.bf16.mxu1 %v12407_v59  ;;  %v15970_v59 = vmov 0.0   ;;  %v12483_v4 = vsub.f32 %v12379_v29, %v3346_v43  ;;  %v12486_v56 = vsub.f32 %v12389_v26, %v3350_v39  ;;  %v3090_v31 = vunpack.c.0.s8 %v12461_v46 }
 0x4f7   : > { %3426 = vmatprep.mubr.f32.mxu1 %v15970_v59  ;;  %v12480_v36 = vpack.c.bf16 %v3358_v63, %v3354_v24  ;;  %v3102_v3 = vunpack.c.1.s8 %v12461_v46  ;;  %v12490_v52 = vpack.c.bf16 %v3360_v15, %v3356_v33  ;;  %v15974_v40 = vand.u32 4294901760, %v12431_v20 }
 0x4f8   : > { %v12498_v48 = vcvt.s32.f32 %v3078_v8  ;;  %v15976_v29 = vpack.c.bf16 %v12207_v2, %v12202_v0  ;;  %v3364_v39 = vand.u32 4294901760, %v12467_v53  ;;  %v3368_v26 = vand.u32 4294901760, %v12469_v18 }
 0x4f9   : > { %9282 = vmatpush3.bf16.msra.mxu0 %v15971_v21  ;;  %9374 = vmatpush1.bf16.msra.mxu1 %v12427_v62  ;;  %15972 = vst [vmem:[#allocation64_spill] sm:$0xff] %v12480_v36  ;;  %v3091_v21 = vunpack.c.0.s8 %v2935_v9  ;;  %15973 = vst [vmem:[#allocation65_spill] sm:$0xff] %v12490_v52  ;;  %v12494_v62 = vpack.c.bf16 %v15974_v40, %v3362_v23  ;;  %v3370_v43 = vand.u32 4294901760, %v12471_v12  ;;  %v3374_v60 = vand.u32 4294901760, %v12473_v30 }
 0x4fa   : > { %9283 = vmatprep.subr.bf16.mxu0 %v15965_v16  ;;  %9376 = vmatprep.subr.bf16.mxu1 %v12443_v1  ;;  %v12496_v1 = vcvt.s32.f32 %v3066_v25  ;;  %v12512_v8 = vcvt.s32.f32 %v3103_v51  ;;  %v3115_v40 = vunpack.c.2.s8 %v2935_v9  ;;  %v15978_v0 = vand.u32 4294901760, %v12393_v19 }
 0x4fb   : > { %15975 = vst [vmem:[#allocation66_spill] sm:$0xff] %v12494_v62  ;;  %v12510_v25 = vcvt.s32.f32 %v3091_v21  ;;  %v12524_v41 = vcvt.s32.f32 %v3090_v31  ;;  %v12526_v6 = vcvt.s32.f32 %v3102_v3  ;;  %v12529_v21 = vsub.f32 %v12414_v14, %v3354_v24 }
 0x4fc   : > { %v12522_v5 = vsub.f32 %v12393_v19, %v15978_v0  ;;  %v12532_v51 = vsub.f32 %v12416_v27, %v3358_v63  ;;  %v12540_v0 = vpack.c.bf16 %v3368_v26, %v3364_v39  ;;  %v12542_v19 = vpack.c.bf16 %v3374_v60, %v3370_v43 }
 0x4fd   : > { %9285 = vmatpush3.bf16.msra.mxu0 %v15976_v29  ;;  %9378 = vmatpush1.bf16.msra.mxu1 %v12454_v57  ;;  %v3127_v29 = vunpack.c.3.s8 %v2935_v9  ;;  %v15977_v57 = vand.u32 4294901760, %v12391_v42  ;;  %v3372_v9 = vand.u32 4294901760, %v12496_v1  ;;  %v3114_v14 = vunpack.c.2.s8 %v12461_v46 }
 0x4fe   : > { %9286 = vmatprep.subr.bf16.mxu0 %v15965_v16  ;;  %9380 = vmatprep.subr.bf16.mxu1 %v12480_v36  ;;  %15980 = vst [vmem:[#allocation67_spill] sm:$0xff] %v12540_v0  ;;  %15981 = vst [vmem:[#allocation68_spill] sm:$0xff] %v12542_v19  ;;  %v3126_v24 = vunpack.c.3.s8 %v12461_v46  ;;  %v3378_v27 = vand.u32 4294901760, %v12510_v25  ;;  %v15565_v63 = vand.u32 4294901760, %v12512_v8  ;;  %v12550_v31 = vcvt.s32.f32 %v3115_v40 }
 0x4ff   : > { %v12517_v2 = vsub.f32 %v12391_v42, %v15977_v57  ;;  %v3376_v42 = vand.u32 4294901760, %v12498_v48  ;;  %v15979_v57 = vpack.c.bf16 %v12238_v13, %v12232_v49  ;;  %v12552_v3 = vcvt.s32.f32 %v3127_v29 }
 0x500   : > { %v3380_v46 = vand.u32 4294901760, %v12524_v41  ;;  %v15566_v36 = vand.u32 4294901760, %v12526_v6 }
 0x501   : > { %9288 = vmatpush3.bf16.msra.mxu0 %v15979_v57  ;;  %9382 = vmatpush1.bf16.msra.mxu1 %v12490_v52  ;;  %v12555_v57 = vsub.f32 %v12420_v45, %v3356_v33  ;;  %v12558_v52 = vsub.f32 %v12422_v37, %v3360_v15  ;;  %v12565_v13 = vpack.c.bf16 %v3376_v42, %v3372_v9  ;;  %v12573_v45 = vcvt.s32.f32 %v3114_v14 }
 0x502   : > { %9289 = vmatprep.subr.bf16.mxu0 %v15965_v16  ;;  %9384 = vmatprep.subr.bf16.mxu1 %v12494_v62  ;;  %v12563_v62 = vsub.f32 %v12429_v32, %v3362_v23  ;;  %v15983_v33 = vpack.c.bf16 %v12256_v61, %v12254_v54  ;;  %v12575_v37 = vcvt.s32.f32 %v3126_v24  ;;  %v15984_v32 = vand.u32 4294901760, %v12431_v20 }
 0x503   : > { %15982 = vst [vmem:[#allocation69_spill] sm:$0xff] %v12565_v13  ;;  %v12593_v15 = vsub.f32 %v12467_v53, %v3364_v39  ;;  %v12596_v23 = vsub.f32 %v12469_v18, %v3368_v26  ;;  %v15988_v14 = vand.u32 4294901760, %v12405_v35  ;;  %v12626_v18 = vsub.f32 %v12473_v30, %v3374_v60 }
 0x504   : > { %v12582_v40 = vsub.f32 %v12431_v20, %v15984_v32  ;;  %v12599_v20 = vsub.f32 %v12471_v12, %v3370_v43  ;;  %v12603_v32 = vpack.c.bf16 %v15566_v36, %v3380_v46  ;;  %v15989_v12 = vpack.c.bf16 %v12280_v17, %v12278_v34 }
 0x505   : > { %9291 = vmatpush3.bf16.msra.mxu0 %v15983_v33  ;;  %9386 = vmatpush1.bf16.msra.mxu1 %v12540_v0  ;;  %v12588_v33 = vpack.c.bf16 %v15565_v63, %v3378_v27  ;;  %v15987_v63 = vand.u32 4294901760, %v12403_v38  ;;  %v3459_v24 = vsub.f32 %v12405_v35, %v15988_v14  ;;  %v15990_v43 = vand.u32 4294901760, %v12425_v55 }
 0x506   : > { %9292 = vmatprep.subr.bf16.mxu0 %v15965_v16  ;;  %9388 = vmatprep.subr.bf16.mxu1 %v12542_v19  ;;  %15986 = vst [vmem:[#allocation71_spill] sm:$0xff] %v12603_v32  ;;  %v15991_v14 = vand.u32 4294901760, %v12441_v28  ;;  %v15993_v39 = vand.u32 4294901760, %v12552_v3  ;;  %v15573_v53 = vand.u32 4294901760, %v12483_v4  ;;  %v12642_v60 = vsub.f32 %v12498_v48, %v3376_v42 }
 0x507   : > { %15985 = vst [vmem:[#allocation70_spill] sm:$0xff] %v12588_v33  ;;  %v3447_v29 = vsub.f32 %v12403_v38, %v15987_v63  ;;  %v3465_v63 = vsub.f32 %v12425_v55, %v15990_v43  ;;  %v3460_v19 = vand.u32 4294901760, %v3459_v24  ;;  %v15998_v43 = vand.u32 4294901760, %v12476_v22 }
 0x508   : > { %v3477_v36 = vsub.f32 %v12441_v28, %v15991_v14  ;;  %15996 = vst [vmem:[#allocation74_spill] sm:$0xff] %v12642_v60  ;;  %v16000_v48 = vand.u32 4294901760, %v12573_v45  ;;  %v16001_v42 = vand.u32 4294901760, %v12575_v37  ;;  %v16020_v0 = vand.u32 4294901760, %v12596_v23 }
 0x509   : > { %9294 = vmatpush3.bf16.msra.mxu0 %v15989_v12  ;;  %9390 = vmatpush1.bf16.msra.mxu1 %v12565_v13  ;;  %v15992_v12 = vand.u32 4294901760, %v12550_v31  ;;  %v12639_v13 = vsub.f32 %v12496_v1, %v3372_v9  ;;  %v3483_v1 = vsub.f32 %v12476_v22, %v15998_v43  ;;  %v12654_v9 = vsub.f32 %v12510_v25, %v3378_v27 }
 0x50a   : > { %9295 = vmatprep.subr.bf16.mxu0 %v15965_v16  ;;  %9392 = vmatprep.subr.bf16.mxu1 %v12588_v33  ;;  %v3448_v33 = vand.u32 4294901760, %v3447_v29  ;;  %v12662_v29 = vpack.c.bf16 %v16001_v42, %v16000_v48  ;;  %v3466_v24 = vand.u32 4294901760, %v3465_v63  ;;  %v3478_v14 = vand.u32 4294901760, %v3477_v36 }
 0x50b   : > { %v12634_v26 = vpack.c.bf16 %v15993_v39, %v15992_v12  ;;  %15995 = vst [vmem:[#allocation73_spill] sm:$0xff] %v12639_v13  ;;  %v15997_v39 = vand.u32 4294901760, %v12448_v10  ;;  %15999 = vst [vmem:[#allocation75_spill] sm:$0xff] %v12654_v9  ;;  %v3489_v25 = vsub.f32 %v12483_v4, %v15573_v53  ;;  %v16003_v27 = vand.u32 4294901760, %v12486_v56 }
 0x50c   : > { %9116 = vmatmul.mubr.f32.vlgmr.msra.gmra.mrb[0].mxu0 %v12368_v58  ;;  %16002 = vst [vmem:[#allocation76_spill] sm:$0xff] %v12662_v29  ;;  %v16004_v48 = vand.u32 4294901760, %v12512_v8  ;;  %v12680_v63 = vsub.f32 %v12524_v41, %v3380_v46  ;;  %v16007_v42 = vand.u32 4294901760, %v12517_v2  ;;  %v9401_v30 = vpack.c.bf16 %v3460_v19, %v3448_v33 }
 0x50d   : > { %15994 = vst [vmem:[#allocation72_spill] sm:$0xff] %v12634_v26  ;;  %v3471_v12 = vsub.f32 %v12448_v10, %v15997_v39  ;;  %9297 = vmatpush3.bf16.msra.mxu0 %v12191_v50  ;;  %9394 = vmatpush1.bf16.msra.mxu1 %v12603_v32  ;;  %v3501_v43 = vsub.f32 %v12486_v56, %v16003_v27  ;;  %v3484_v32 = vand.u32 4294901760, %v3483_v1  ;;  %v3490_v19 = vand.u32 4294901760, %v3489_v25 }
 0x50e   : > { %9298 = vmatprep.subr.bf16.mxu0 %v15965_v16  ;;  %9396 = vmatprep.subr.bf16.mxu1 %v12634_v26  ;;  %v12677_v36 = vsub.f32 %v12512_v8, %v16004_v48  ;;  %16006 = vst [vmem:[#allocation78_spill] sm:$0xff] %v12680_v63  ;;  %v3495_v53 = vsub.f32 %v12517_v2, %v16007_v42  ;;  %v16008_v26 = vand.u32 4294901760, %v12522_v5  ;;  %v16010_v1 = vand.u32 4294901760, %v12532_v51 }
 0x50f   : > { %9150 = vmatprep.mubr.msk.f32.mxu0 %vm11396_vm0, %v15970_v59  ;;  %v3472_v39 = vand.u32 4294901760, %v3471_v12  ;;  %v9403_v41 = vpack.c.bf16 %v3478_v14, %v3466_v24  ;;  %v3502_v33 = vand.u32 4294901760, %v3501_v43 }
 0x510   : > { %16005 = vst [vmem:[#allocation77_spill] sm:$0xff] %v12677_v36  ;;  %v3507_v27 = vsub.f32 %v12522_v5, %v16008_v26  ;;  %v16009_v26 = vand.u32 4294901760, %v12529_v21  ;;  %v3525_v14 = vsub.f32 %v12532_v51, %v16010_v1  ;;  %v3496_v24 = vand.u32 4294901760, %v3495_v53 }
 0x511   : > { %9300 = vmatpush3.bf16.msra.mxu0 %v12224_v11  ;;  %9398 = vmatpush1.bf16.msra.mxu1 %v12662_v29  ;;  %v9405_v8 = vpack.c.bf16 %v3484_v32, %v3472_v39  ;;  %v16012_v53 = vand.u32 4294901760, %v12558_v52  ;;  %v16013_v1 = vand.u32 4294901760, %v12563_v62  ;;  %v16014_v32 = vand.u32 4294901760, %v12582_v40 }
 0x512   : > { %9301 = vmatprep.subr.bf16.mxu0 %v15965_v16  ;;  %9400 = vmatprep.subr.bf16.mxu1 %v12356_v44  ;;  %v3513_v12 = vsub.f32 %v12529_v21, %v16009_v26  ;;  %v3508_v46 = vand.u32 4294901760, %v3507_v27  ;;  %v16011_v44 = vand.u32 4294901760, %v12555_v57  ;;  %v3526_v48 = vand.u32 4294901760, %v3525_v14  ;;  %v16023_v14 = vld [vmem:[#allocation47_spill] sm:$0xff] }
 0x513   : > { %v3531_v27 = vsub.f32 %v12558_v52, %v16012_v53  ;;  %v3537_v42 = vsub.f32 %v12563_v62, %v16013_v1  ;;  %v3549_v39 = vsub.f32 %v12582_v40, %v16014_v32  ;;  %v16017_v53 = vand.u32 4294901760, %v12550_v31 }
 0x514   : > { %3432 = vmatmul.mubr.f32.vlgmr.msra.gmra.mrb[10].mxu1 %v12411_v7  ;;  %v3519_v25 = vsub.f32 %v12555_v57, %v16011_v44  ;;  %v16015_v44 = vand.u32 4294901760, %v12526_v6  ;;  %v3514_v26 = vand.u32 4294901760, %v3513_v12  ;;  %v9409_v1 = vpack.c.bf16 %v3508_v46, %v3496_v24 }
 0x515   : > { %9303 = vmatpush3.bf16.msra.mxu0 %v12249_v47  ;;  %9402 = vmatpush1.bf16.msra.mxu1 %v9401_v30  ;;  %v9407_v30 = vpack.c.bf16 %v3502_v33, %v3490_v19  ;;  %v12731_v7 = vsub.f32 %v12550_v31, %v16017_v53  ;;  %v16019_v29 = vand.u32 4294901760, %v12593_v15  ;;  %v16022_v33 = vand.u32 4294901760, %v12626_v18 }
 0x516   : > { %v12725_v43 = vsub.f32 %v12526_v6, %v16015_v44  ;;  %9304 = vmatprep.subr.bf16.mxu0 %v15965_v16  ;;  %9404 = vmatprep.subr.bf16.mxu1 %v9403_v41  ;;  %v3555_v6 = vsub.f32 %v12596_v23, %v16020_v0  ;;  %v16021_v41 = vand.u32 4294901760, %v12599_v20  ;;  %v3532_v24 = vand.u32 4294901760, %v3531_v27 }
 0x517   : > { %16018 = vst [vmem:[#allocation80_spill] sm:$0xff] %v12731_v7  ;;  %v3543_v32 = vsub.f32 %v12593_v15, %v16019_v29  ;;  %3662 = vmatprep.mubr.f32.mxu1 %v15970_v59  ;;  %v3573_v31 = vsub.f32 %v12626_v18, %v16022_v33  ;;  %v3520_v29 = vand.u32 4294901760, %v3519_v25  ;;  %v3538_v0 = vand.u32 4294901760, %v3537_v42  ;;  %v16032_v33 = vld [vmem:[#allocation48_spill] sm:$0xff] }
 0x518   : > { %16016 = vst [vmem:[#allocation79_spill] sm:$0xff] %v12725_v43  ;;  %v3561_v19 = vsub.f32 %v12599_v20, %v16021_v41  ;;  %v3550_v44 = vand.u32 4294901760, %v3549_v39  ;;  %v16024_v53 = vand.u32 4294901760, %v12552_v3  ;;  %v9411_v41 = vpack.c.bf16 %v3526_v48, %v3514_v26 }
 0x519   : > { %9306 = vmatpush3.bf16.msra.mxu0 %v16023_v14  ;;  %9406 = vmatpush1.bf16.msra.mxu1 %v9405_v8  ;;  %v16026_v46 = vand.u32 4294901760, %v12573_v45  ;;  %v16028_v42 = vand.u32 4294901760, %v12575_v37  ;;  %v3556_v27 = vand.u32 4294901760, %v3555_v6  ;;  %v16030_v48 = vand.u32 4294901760, %v12639_v13  ;;  %v16043_v14 = vld [vmem:[#allocation58_spill] sm:$0xff] }
 0x51a   : > { %v12752_v47 = vsub.f32 %v12552_v3, %v16024_v53  ;;  %9307 = vmatprep.subr.bf16.mxu0 %v15965_v16  ;;  %9408 = vmatprep.subr.bf16.mxu1 %v9407_v30  ;;  %v3544_v3 = vand.u32 4294901760, %v3543_v32  ;;  %v3562_v39 = vand.u32 4294901760, %v3561_v19  ;;  %v3574_v53 = vand.u32 4294901760, %v3573_v31 }
 0x51b   : > { %v12760_v8 = vsub.f32 %v12573_v45, %v16026_v46  ;;  %v12765_v25 = vsub.f32 %v12575_v37, %v16028_v42  ;;  %v3567_v26 = vsub.f32 %v12639_v13, %v16030_v48  ;;  %v16031_v30 = vand.u32 4294901760, %v12642_v60 }
 0x51c   : > { %16025 = vst [vmem:[#allocation81_spill] sm:$0xff] %v12752_v47  ;;  %v9413_v45 = vpack.c.bf16 %v3532_v24, %v3520_v29  ;;  %v9415_v46 = vpack.c.bf16 %v3550_v44, %v3538_v0  ;;  %v15586_v37 = vand.u32 4294901760, %v12680_v63  ;;  %v15585_v32 = vand.u32 4294901760, %v12725_v43 }
 0x51d   : > { %16027 = vst [vmem:[#allocation82_spill] sm:$0xff] %v12760_v8  ;;  %16029 = vst [vmem:[#allocation83_spill] sm:$0xff] %v12765_v25  ;;  %v3579_v12 = vsub.f32 %v12642_v60, %v16031_v30  ;;  %9309 = vmatpush3.bf16.msra.mxu0 %v16032_v33  ;;  %9410 = vmatpush1.bf16.msra.mxu1 %v9409_v1  ;;  %v16033_v6 = vand.u32 4294901760, %v12654_v9  ;;  %v16034_v31 = vand.u32 4294901760, %v12677_v36  ;;  %v15587_v1 = vand.u32 4294901760, %v12752_v47  ;;  %v16035_v30 = vld [vmem:[#allocation49_spill] sm:$0xff] }
 0x51e   : > { %9310 = vmatprep.subr.bf16.mxu0 %v15965_v16  ;;  %9412 = vmatprep.subr.bf16.mxu1 %v9411_v41  ;;  %v9417_v29 = vpack.c.bf16 %v3556_v27, %v3544_v3  ;;  %v9419_v24 = vpack.c.bf16 %v3574_v53, %v3562_v39  ;;  %v3568_v0 = vand.u32 4294901760, %v3567_v26  ;;  %v3591_v41 = vsub.f32 %v12680_v63, %v15586_v37 }
 0x51f   : > { %v3585_v19 = vsub.f32 %v12654_v9, %v16033_v6  ;;  %v3597_v42 = vsub.f32 %v12677_v36, %v16034_v31  ;;  %v3580_v44 = vand.u32 4294901760, %v3579_v12  ;;  %v3603_v6 = vsub.f32 %v12725_v43, %v15585_v32 }
 0x520   : > { %v15588_v31 = vand.u32 4294901760, %v12760_v8  ;;  %v15589_v48 = vand.u32 4294901760, %v12765_v25  ;;  %v16036_v27 = vand.u32 4294901760, %v12731_v7  ;;  %v3621_v53 = vsub.f32 %v12752_v47, %v15587_v1 }
 0x521   : > { %9312 = vmatpush3.bf16.msra.mxu0 %v16035_v30  ;;  %9414 = vmatpush1.bf16.msra.mxu1 %v9413_v45  ;;  %v3586_v3 = vand.u32 4294901760, %v3585_v19  ;;  %v3598_v12 = vand.u32 4294901760, %v3597_v42  ;;  %v9421_v26 = vpack.c.bf16 %v3580_v44, %v3568_v0  ;;  %v16037_v45 = vld [vmem:[#allocation50_spill] sm:$0xff]  ;;  %v3592_v32 = vand.u32 4294901760, %v3591_v41  ;;  %v16038_v0 = vld [vmem:[#allocation51_spill] sm:$0xff]  ;;  %v16041_v41 = vld [vmem:[#allocation36_spill] sm:$0xff] }
 0x522   : > { %9313 = vmatprep.subr.bf16.mxu0 %v15965_v16  ;;  %9416 = vmatprep.subr.bf16.mxu1 %v9415_v46  ;;  %v3609_v39 = vsub.f32 %v12731_v7, %v16036_v27  ;;  %v3604_v37 = vand.u32 4294901760, %v3603_v6  ;;  %v3615_v46 = vsub.f32 %v12760_v8, %v15588_v31  ;;  %v3627_v19 = vsub.f32 %v12765_v25, %v15589_v48 }
 0x523   : > { %v9423_v42 = vpack.c.bf16 %v3598_v12, %v3586_v3  ;;  %v3622_v1 = vand.u32 4294901760, %v3621_v53  ;;  %v16042_v6 = vand.u32 4294901760, %v16041_v41  ;;  %v16046_v12 = vld [vmem:[#allocation38_spill] sm:$0xff] }
 0x524   : > { %v3610_v27 = vand.u32 4294901760, %v3609_v39  ;;  %v9425_v30 = vpack.c.bf16 %v3604_v37, %v3592_v32  ;;  %v3616_v31 = vand.u32 4294901760, %v3615_v46  ;;  %v3628_v33 = vand.u32 4294901760, %v3627_v19  ;;  %v16048_v37 = vld [vmem:[#allocation39_spill] sm:$0xff]  ;;  %v16052_v19 = vld [vmem:[#allocation54_spill] sm:$0xff] }
 0x525   : > { %9315 = vmatpush3.bf16.msra.mxu0 %v16037_v45  ;;  %9418 = vmatpush1.bf16.msra.mxu1 %v9417_v29  ;;  %v16039_v29 = vld [vmem:[#allocation35_spill] sm:$0xff]  ;;  %v16047_v39 = vand.u32 4294901760, %v16046_v12  ;;  %v16049_v32 = vand.u32 4294901760, %v16048_v37 }
 0x526   : > { %9316 = vmatprep.subr.bf16.mxu0 %v15965_v16  ;;  %9420 = vmatprep.subr.bf16.mxu1 %v9419_v24  ;;  %v16040_v44 = vand.u32 4294901760, %v16039_v29  ;;  %v9427_v48 = vpack.c.bf16 %v3622_v1, %v3610_v27  ;;  %v16044_v24 = vld [vmem:[#allocation37_spill] sm:$0xff]  ;;  %v16050_v1 = vld [vmem:[#allocation40_spill] sm:$0xff]  ;;  %v16060_v12 = vld [vmem:[#allocation43_spill] sm:$0xff] }
 0x527   : > { %v16045_v3 = vand.u32 4294901760, %v16044_v24  ;;  %v16051_v46 = vand.u32 4294901760, %v16050_v1  ;;  %v16056_v27 = vld [vmem:[#allocation41_spill] sm:$0xff]  ;;  %v9437_v24 = vpack.c.bf16 %v12476_v22, %v12448_v10  ;;  %v9443_v1 = vpack.c.bf16 %v12532_v51, %v12529_v21 }
 0x528   : > { %v9320_v45 = vpack.c.bf16 %v16042_v6, %v16040_v44  ;;  %v16057_v29 = vand.u32 4294901760, %v16056_v27  ;;  %v16058_v44 = vld [vmem:[#allocation42_spill] sm:$0xff]  ;;  %v9447_v27 = vpack.c.bf16 %v12582_v40, %v12563_v62 }
 0x529   : > { %9318 = vmatpush3.bf16.msra.mxu0 %v16038_v0  ;;  %9422 = vmatpush1.bf16.msra.mxu1 %v9421_v26  ;;  %v9323_v53 = vpack.c.bf16 %v16047_v39, %v16045_v3  ;;  %v9429_v26 = vpack.c.bf16 %v3628_v33, %v3616_v31  ;;  %v16053_v33 = vld [vmem:[#allocation53_spill] sm:$0xff]  ;;  %v16059_v41 = vand.u32 4294901760, %v16058_v44  ;;  %v9439_v3 = vpack.c.bf16 %v12486_v56, %v12483_v4 }
 0x52a   : > { %9319 = vmatprep.subr.bf16.mxu0 %v15965_v16  ;;  %9424 = vmatprep.subr.bf16.mxu1 %v9423_v42  ;;  %v16054_v31 = vpack.c.bf16 %v16052_v19, %v16053_v33  ;;  %v16055_v42 = vld [vmem:[#allocation55_spill] sm:$0xff]  ;;  %v16061_v39 = vand.u32 4294901760, %v16060_v12  ;;  %v16068_v44 = vand.u32 4294901760, %v12256_v61  ;;  %v9455_v61 = vpack.c.bf16 %v12677_v36, %v12654_v9 }
 0x52b   : > { %v9329_v6 = vpack.c.bf16 %v16059_v41, %v16057_v29  ;;  %v16067_v29 = vand.u32 4294901760, %v12254_v54  ;;  %v9453_v54 = vpack.c.bf16 %v12642_v60, %v12639_v13  ;;  %v16091_v13 = vld [vmem:[#allocation50_spill] sm:$0xff] }
 0x52c   : > { %9151 = vmatmul.mubr.f32.vlgmr.msra.gmra.mrb[0].mxu0 %v16043_v14 }
 0x52d   : > { %9321 = vmatpush3.bf16.msra.mxu0 %v9320_v45  ;;  %9426 = vmatpush1.bf16.msra.mxu1 %v9425_v30  ;;  %v9326_v45 = vpack.c.bf16 %v16051_v46, %v16049_v32  ;;  %v9433_v30 = vpack.c.bf16 %v12405_v35, %v12403_v38  ;;  %v9441_v32 = vpack.c.bf16 %v12522_v5, %v12517_v2  ;;  %v16064_v46 = vand.u32 4294901760, %v12232_v49 }
 0x52e   : > { %9322 = vmatprep.subr.bf16.mxu0 %v15965_v16  ;;  %9428 = vmatprep.subr.bf16.mxu1 %v9427_v48  ;;  %v9435_v48 = vpack.c.bf16 %v12441_v28, %v12425_v55  ;;  %v9338_v41 = vpack.c.bf16 %v16068_v44, %v16067_v29  ;;  %v9449_v49 = vpack.c.bf16 %v12596_v23, %v12593_v15 }
 0x52f   : > { %9185 = vmatprep.mubr.msk.f32.mxu0 %vm11396_vm0, %v15970_v59 }
 0x531   : > { %9324 = vmatpush3.bf16.msra.mxu0 %v9323_v53  ;;  %9430 = vmatpush1.bf16.msra.mxu1 %v9429_v26  ;;  %v16062_v53 = vld [vmem:[#allocation44_spill] sm:$0xff] }
 0x532   : > { %9325 = vmatprep.subr.bf16.mxu0 %v15965_v16  ;;  %9432 = vmatprep.subr.bf16.mxu1 %v16054_v31  ;;  %v16063_v26 = vand.u32 4294901760, %v16062_v53  ;;  %v2901_v53 = vld [vmem:[#allocation18 + $0x18] sm:$0xff] }
 0x533   : > { %v2973_v44 = vunpack.c.2.s8 %v2901_v53 }
 0x534   : > { %3664 = vmatmul.mubr.f32.vlgmr.msra.gmra.mrb[10].mxu1 %v16055_v42  ;;  %v9332_v37 = vpack.c.bf16 %v16063_v26, %v16061_v39  ;;  %v9457_v39 = vpack.c.bf16 %v12725_v43, %v12680_v63  ;;  %v2900_v26 = vld [vmem:[#allocation18 + $0x10] sm:$0xff]  ;;  %v16085_v63 = vld [vmem:[#allocation66_spill] sm:$0xff] }
 0x535   : > { %9327 = vmatpush3.bf16.msra.mxu0 %v9326_v45  ;;  %9434 = vmatpush1.bf16.msra.mxu1 %v9433_v30  ;;  %v16065_v45 = vld [vmem:[#allocation45_spill] sm:$0xff] }
 0x536   : > { %9328 = vmatprep.subr.bf16.mxu0 %v15965_v16  ;;  %9436 = vmatprep.subr.bf16.mxu1 %v9435_v48  ;;  %v16066_v30 = vand.u32 4294901760, %v16065_v45  ;;  %v9445_v48 = vpack.c.bf16 %v12558_v52, %v12555_v57  ;;  %v16072_v45 = vld [vmem:[#allocation46_spill] sm:$0xff] }
 0x537   : > { %3798 = vmatprep.mubr.f32.mxu1 %v15970_v59 }
 0x538   : > { %v9335_v31 = vpack.c.bf16 %v16066_v30, %v16064_v46  ;;  %v2960_v46 = vunpack.c.1.s8 %v2900_v26  ;;  %v16073_v30 = vld [vmem:[#allocation57_spill] sm:$0xff] }
 0x539   : > { %9330 = vmatpush3.bf16.msra.mxu0 %v9329_v6  ;;  %9438 = vmatpush1.bf16.msra.mxu1 %v9437_v24  ;;  %v9451_v6 = vpack.c.bf16 %v12626_v18, %v12599_v20  ;;  %v16069_v24 = vand.u32 4294901760, %v12278_v34  ;;  %v9459_v34 = vpack.c.bf16 %v12752_v47, %v12731_v7 }
 0x53a   : > { %9331 = vmatprep.subr.bf16.mxu0 %v15965_v16  ;;  %9440 = vmatprep.subr.bf16.mxu1 %v9439_v3  ;;  %v16070_v3 = vand.u32 4294901760, %v12280_v17  ;;  %v9461_v17 = vpack.c.bf16 %v12765_v25, %v12760_v8  ;;  %v3152_v29 = vcvt.s32.f32 %v2960_v46  ;;  %v2912_v46 = vld [vmem:[#allocation18 + $0x70] sm:$0xff] }
 0x53b   : > { %v3032_v60 = vunpack.c.3.s8 %v2912_v46 }
 0x53c   : > { %v9341_v12 = vpack.c.bf16 %v16070_v3, %v16069_v24  ;;  %v2972_v24 = vunpack.c.2.s8 %v2900_v26  ;;  %v2984_v3 = vunpack.c.3.s8 %v2900_v26 }
 0x53d   : > { %9333 = vmatpush3.bf16.msra.mxu0 %v9332_v37  ;;  %9442 = vmatpush1.bf16.msra.mxu1 %v9441_v32  ;;  %v16071_v37 = vld [vmem:[#allocation52_spill] sm:$0xff]  ;;  %v2961_v32 = vunpack.c.1.s8 %v2901_v53 }
 0x53e   : > { %9334 = vmatprep.subr.bf16.mxu0 %v15965_v16  ;;  %9444 = vmatprep.subr.bf16.mxu1 %v9443_v1  ;;  %v2948_v1 = vunpack.c.0.s8 %v2900_v26  ;;  %v3176_v26 = vcvt.s32.f32 %v2984_v3  ;;  %v16084_v3 = vld [vmem:[#allocation65_spill] sm:$0xff] }
 0x541   : > { %9336 = vmatpush3.bf16.msra.mxu0 %v9335_v31  ;;  %9446 = vmatpush1.bf16.msra.mxu1 %v9445_v48  ;;  %v16074_v31 = vld [vmem:[#allocation59_spill] sm:$0xff]  ;;  %v3153_v48 = vcvt.s32.f32 %v2961_v32 }
 0x542   : > { %9337 = vmatprep.subr.bf16.mxu0 %v15965_v16  ;;  %9448 = vmatprep.subr.bf16.mxu1 %v9447_v27  ;;  %v3140_v27 = vcvt.s32.f32 %v2948_v1 }
 0x545   : > { %9339 = vmatpush3.bf16.msra.mxu0 %v9338_v41  ;;  %9450 = vmatpush1.bf16.msra.mxu1 %v9449_v49  ;;  %v2985_v41 = vunpack.c.3.s8 %v2901_v53  ;;  %v16075_v49 = vld [vmem:[#allocation47_spill] sm:$0xff] }
 0x546   : > { %9340 = vmatprep.subr.bf16.mxu0 %v15965_v16  ;;  %9452 = vmatprep.subr.bf16.mxu1 %v9451_v6  ;;  %v16076_v6 = vld [vmem:[#allocation61_spill] sm:$0xff] }
 0x547   : > { %v3177_v32 = vcvt.s32.f32 %v2985_v41  ;;  %v2996_v41 = vunpack.c.0.s8 %v2912_v46 }
 0x549   : > { %9342 = vmatpush3.bf16.msra.mxu0 %v9341_v12  ;;  %9454 = vmatpush1.bf16.msra.mxu1 %v9453_v54  ;;  %v2913_v12 = vld [vmem:[#allocation18 + $0x78] sm:$0xff]  ;;  %v16077_v54 = vld [vmem:[#allocation62_spill] sm:$0xff] }
 0x54a   : > { %9343 = vmatprep.subr.bf16.mxu0 %v15965_v16  ;;  %9456 = vmatprep.subr.bf16.mxu1 %v9455_v61  ;;  %v3009_v1 = vunpack.c.1.s8 %v2913_v12  ;;  %v3021_v7 = vunpack.c.2.s8 %v2913_v12  ;;  %v3033_v43 = vunpack.c.3.s8 %v2913_v12 }
 0x54c   : > { %9186 = vmatmul.mubr.f32.vlgmr.msra.gmra.mrb[0].mxu0 %v16055_v42 }
 0x54d   : > { %9345 = vmatpush3.bf16.msra.mxu0 %v12191_v50  ;;  %9458 = vmatpush1.bf16.msra.mxu1 %v9457_v39  ;;  %v2949_v50 = vunpack.c.0.s8 %v2901_v53  ;;  %v4189_v39 = vand.u32 4294901760, %v3153_v48  ;;  %v2997_v53 = vunpack.c.0.s8 %v2913_v12  ;;  %v3020_v12 = vunpack.c.2.s8 %v2912_v46 }
 0x54e   : > { %9346 = vmatprep.subr.bf16.mxu0 %v15965_v16  ;;  %9460 = vmatprep.subr.bf16.mxu1 %v9459_v34  ;;  %v4187_v34 = vand.u32 4294901760, %v3140_v27 }
 0x54f   : > { %9220 = vmatprep.mubr.msk.f32.mxu0 %vm11396_vm0, %v15970_v59  ;;  %v12917_v8 = vsub.f32 %v3153_v48, %v4189_v39 }
 0x550   : > { %v12923_v36 = vsub.f32 %v3140_v27, %v4187_v34 }
 0x551   : > { %9348 = vmatpush3.bf16.msra.mxu0 %v12224_v11  ;;  %9462 = vmatpush1.bf16.msra.mxu1 %v9461_v17  ;;  %v3141_v11 = vcvt.s32.f32 %v2949_v50  ;;  %v4191_v17 = vand.u32 4294901760, %v3152_v29  ;;  %v3165_v50 = vcvt.s32.f32 %v2973_v44  ;;  %v4197_v44 = vand.u32 4294901760, %v3177_v32 }
 0x552   : > { %9349 = vmatprep.subr.bf16.mxu0 %v15965_v16  ;;  %9464 = vmatprep.subr.bf16.mxu1 %v16071_v37  ;;  %v3008_v37 = vunpack.c.1.s8 %v2912_v46  ;;  %16086 = vst [vmem:[#allocation36_spill] sm:$0xff] %v12923_v36 }
 0x553   : > { %v4185_v61 = vand.u32 4294901760, %v3141_v11 }
 0x554   : > { %3801 = vmatmul.mubr.f32.vlgmr.msra.gmra.mrb[10].mxu1 %v12368_v58  ;;  %v3164_v58 = vcvt.s32.f32 %v2972_v24  ;;  %v16083_v24 = vld [vmem:[#allocation49_spill] sm:$0xff] }
 0x555   : > { %9351 = vmatpush3.bf16.msra.mxu0 %v16072_v45  ;;  %9466 = vmatpush1.bf16.msra.mxu1 %v16073_v30  ;;  %v16078_v45 = vld [vmem:[#allocation48_spill] sm:$0xff]  ;;  %v4193_v30 = vand.u32 4294901760, %v3165_v50  ;;  %v12915_v25 = vsub.f32 %v3141_v11, %v4185_v61  ;;  %v12925_v11 = vsub.f32 %v3152_v29, %v4191_v17 }
 0x556   : > { %9352 = vmatprep.subr.bf16.mxu0 %v15965_v16  ;;  %9468 = vmatprep.subr.bf16.mxu1 %v16074_v31  ;;  %v12913_v31 = vpack.c.bf16 %v4191_v17, %v4187_v34  ;;  %v4195_v47 = vand.u32 4294901760, %v3164_v58  ;;  %v3213_v34 = vcvt.s32.f32 %v3021_v7  ;;  %v16095_v17 = vld [vmem:[#allocation68_spill] sm:$0xff] }
 0x557   : > { %3903 = vmatprep.mubr.f32.mxu1 %v15970_v59  ;;  %16087 = vst [vmem:[#allocation37_spill] sm:$0xff] %v12925_v11  ;;  %v12927_v48 = vsub.f32 %v3165_v50, %v4193_v30  ;;  %v16097_v50 = vand.u32 4294901760, %v16053_v33 }
 0x558   : > { %16082 = vst [vmem:[#allocation35_spill] sm:$0xff] %v12913_v31  ;;  %v12937_v29 = vsub.f32 %v3164_v58, %v4195_v47  ;;  %v16101_v58 = vand.u32 4294901760, %v12405_v35 }
 0x559   : > { %9354 = vmatpush3.bf16.msra.mxu0 %v16075_v49  ;;  %9470 = vmatpush1.bf16.msra.mxu1 %v16076_v6  ;;  %v16079_v49 = vld [vmem:[#allocation63_spill] sm:$0xff]  ;;  %v16080_v6 = vld [vmem:[#allocation64_spill] sm:$0xff]  ;;  %16088 = vst [vmem:[#allocation38_spill] sm:$0xff] %v12927_v48 }
 0x55a   : > { %9355 = vmatprep.subr.bf16.mxu0 %v15965_v16  ;;  %9472 = vmatprep.subr.bf16.mxu1 %v16077_v54  ;;  %v12911_v54 = vpack.c.bf16 %v4189_v39, %v4185_v61  ;;  %v12929_v61 = vpack.c.bf16 %v4197_v44, %v4193_v30  ;;  %v12931_v39 = vsub.f32 %v3177_v32, %v4197_v44  ;;  %v3225_v30 = vcvt.s32.f32 %v3033_v43 }
 0x55b   : > { %16094 = vst [vmem:[#allocation53_spill] sm:$0xff] %v12937_v29  ;;  %v16098_v32 = vand.u32 4294901760, %v16052_v19  ;;  %v3212_v19 = vcvt.s32.f32 %v3020_v12 }
 0x55c   : > { %16081 = vst [vmem:[#allocation51_spill] sm:$0xff] %v12911_v54  ;;  %16089 = vst [vmem:[#allocation39_spill] sm:$0xff] %v12929_v61 }
 0x55d   : > { %9357 = vmatpush3.bf16.msra.mxu0 %v16078_v45  ;;  %9474 = vmatpush1.bf16.msra.mxu1 %v16079_v49  ;;  %v3189_v45 = vcvt.s32.f32 %v2997_v53  ;;  %v3201_v49 = vcvt.s32.f32 %v3009_v1  ;;  %16090 = vst [vmem:[#allocation40_spill] sm:$0xff] %v12931_v39  ;;  %v3188_v53 = vcvt.s32.f32 %v2996_v41  ;;  %v3200_v1 = vcvt.s32.f32 %v3008_v37  ;;  %v12947_v41 = vld [vmem:[#allocation18 + $0xd0] sm:$0xff] }
 0x55e   : > { %9358 = vmatprep.subr.bf16.mxu0 %v15965_v16  ;;  %9476 = vmatprep.subr.bf16.mxu1 %v16080_v6  ;;  %v4199_v6 = vand.u32 4294901760, %v3176_v26  ;;  %v9495_v46 = vpack.c.bf16 %v16098_v32, %v16097_v50  ;;  %v16104_v50 = vld [vmem:[#allocation69_spill] sm:$0xff]  ;;  %v4213_v32 = vand.u32 4294901760, %v3225_v30  ;;  %v3056_v35 = vunpack.c.1.s8 %v12947_v41 }
 0x55f   : > { %v4205_v9 = vand.u32 4294901760, %v3201_v49  ;;  %v4207_v43 = vand.u32 4294901760, %v3200_v1 }
 0x560   : > { %v12935_v27 = vpack.c.bf16 %v4199_v6, %v4195_v47  ;;  %v12941_v37 = vsub.f32 %v3176_v26, %v4199_v6  ;;  %v16100_v47 = vand.u32 4294901760, %v12403_v38  ;;  %v3224_v26 = vcvt.s32.f32 %v3032_v60 }
 0x561   : > { %9360 = vmatpush3.bf16.msra.mxu0 %v16083_v24  ;;  %9478 = vmatpush1.bf16.msra.mxu1 %v16084_v3  ;;  %v2925_v24 = vld [vmem:[#allocation18 + $0xd8] sm:$0xff]  ;;  %v4201_v3 = vand.u32 4294901760, %v3189_v45  ;;  %v12959_v33 = vsub.f32 %v3201_v49, %v4205_v9  ;;  %v3044_v38 = vunpack.c.0.s8 %v12947_v41 }
 0x562   : > { %9361 = vmatprep.subr.bf16.mxu0 %v15965_v16  ;;  %9480 = vmatprep.subr.bf16.mxu1 %v16085_v63  ;;  %v16092_v63 = vld [vmem:[#allocation67_spill] sm:$0xff]  ;;  %16093 = vst [vmem:[#allocation54_spill] sm:$0xff] %v12935_v27  ;;  %16096 = vst [vmem:[#allocation41_spill] sm:$0xff] %v12941_v37  ;;  %v3057_v44 = vunpack.c.1.s8 %v2925_v24  ;;  %v12955_v7 = vpack.c.bf16 %v16101_v58, %v16100_v47  ;;  %v16105_v47 = vld [vmem:[#allocation70_spill] sm:$0xff]  ;;  %v3081_v49 = vunpack.c.3.s8 %v2925_v24 }
 0x563   : > { %v12957_v6 = vpack.c.bf16 %v4205_v9, %v4201_v3  ;;  %16103 = vst [vmem:[#allocation44_spill] sm:$0xff] %v12959_v33  ;;  %v3069_v9 = vunpack.c.2.s8 %v2925_v24  ;;  %v16109_v33 = vand.u32 4294901760, %v12448_v10 }
 0x564   : > { %v3249_v58 = vcvt.s32.f32 %v3057_v44  ;;  %v4215_v44 = vand.u32 4294901760, %v3224_v26 }
 0x565   : > { %9363 = vmatpush3.bf16.msra.mxu0 %v16091_v13  ;;  %9482 = vmatpush1.bf16.msra.mxu1 %v16092_v63  ;;  %v3045_v13 = vunpack.c.0.s8 %v2925_v24  ;;  %v12949_v63 = vsub.f32 %v3189_v45, %v4201_v3  ;;  %16102 = vst [vmem:[#allocation43_spill] sm:$0xff] %v12957_v6  ;;  %v4209_v45 = vand.u32 4294901760, %v3213_v34  ;;  %v4211_v24 = vand.u32 4294901760, %v3212_v19 }
 0x566   : > { %9364 = vmatprep.subr.bf16.mxu0 %v15965_v16  ;;  %9484 = vmatprep.subr.bf16.mxu1 %v16095_v17  ;;  %v4203_v16 = vand.u32 4294901760, %v3188_v53 }
 0x567   : > { %16099 = vst [vmem:[#allocation42_spill] sm:$0xff] %v12949_v63  ;;  %v3237_v3 = vcvt.s32.f32 %v3045_v13  ;;  %v16110_v63 = vand.u32 4294901760, %v12476_v22  ;;  %v12982_v13 = vsub.f32 %v3200_v1, %v4207_v43  ;;  %v12992_v10 = vpack.c.bf16 %v4213_v32, %v4209_v45  ;;  %v16116_v1 = vld [vmem:[#allocation72_spill] sm:$0xff] }
 0x568   : > { %v12967_v12 = vpack.c.bf16 %v4207_v43, %v4203_v16  ;;  %v12969_v60 = vsub.f32 %v3188_v53, %v4203_v16  ;;  %v16112_v53 = vand.u32 4294901760, %v12483_v4  ;;  %v16113_v16 = vand.u32 4294901760, %v12486_v56 }
 0x569   : > { %9366 = vmatpush3.bf16.msra.mxu0 %v16038_v0  ;;  %9486 = vmatpush1.bf16.msra.mxu1 %v16104_v50  ;;  %v16107_v0 = vand.u32 4294901760, %v12425_v55  ;;  %v16108_v50 = vand.u32 4294901760, %v12441_v28  ;;  %16111 = vst [vmem:[#allocation46_spill] sm:$0xff] %v12982_v13  ;;  %v16114_v28 = vld [vmem:[#allocation71_spill] sm:$0xff]  ;;  %16115 = vst [vmem:[#allocation47_spill] sm:$0xff] %v12992_v10  ;;  %v12994_v22 = vsub.f32 %v3213_v34, %v4209_v45  ;;  %v4217_v43 = vand.u32 4294901760, %v3237_v3 }
 0x56a   : > { %9488 = vmatprep.subr.bf16.mxu1 %v16105_v47  ;;  %9560 = vmatprep.subr.bf16.mxu0 %v12911_v54  ;;  %16106 = vst [vmem:[#allocation45_spill] sm:$0xff] %v12967_v12  ;;  %v12979_v47 = vpack.c.bf16 %v16110_v63, %v16109_v33  ;;  %v12988_v55 = vpack.c.bf16 %v16113_v16, %v16112_v53  ;;  %v3236_v63 = vcvt.s32.f32 %v3044_v38  ;;  %v3248_v33 = vcvt.s32.f32 %v3056_v35 }
 0x56b   : > { %v9499_v17 = vpack.c.bf16 %v16108_v50, %v16107_v0  ;;  %v4221_v4 = vand.u32 4294901760, %v3249_v58  ;;  %v3261_v50 = vcvt.s32.f32 %v3069_v9  ;;  %v3273_v56 = vcvt.s32.f32 %v3081_v49  ;;  %v12998_v0 = vld [vmem:[#allocation18 + $0x138] sm:$0xff] }
 0x56c   : > { %9221 = vmatmul.mubr.f32.vlgmr.msra.gmra.mrb[0].mxu0 %v16055_v42  ;;  %v13000_v53 = vsub.f32 %v3225_v30, %v4213_v32  ;;  %v13002_v16 = vsub.f32 %v3212_v19, %v4211_v24  ;;  %v3080_v34 = vunpack.c.3.s8 %v12947_v41  ;;  %v13007_v45 = vpack.c.bf16 %v4215_v44, %v4211_v24 }
 0x56d   : > { %9490 = vmatpush1.bf16.msra.mxu1 %v16114_v28  ;;  %9562 = vmatpush1.bf16.msra.mxu0 %v12913_v31  ;;  %v3068_v31 = vunpack.c.2.s8 %v12947_v41  ;;  %v13009_v38 = vsub.f32 %v3224_v26, %v4215_v44  ;;  %v16118_v35 = vand.u32 4294901760, %v12517_v2  ;;  %v16119_v9 = vand.u32 4294901760, %v12522_v5  ;;  %v2936_v44 = vld [vmem:[#allocation18 + $0x130] sm:$0xff] }
 0x56e   : > { %9492 = vmatprep.subr.bf16.mxu1 %v16116_v1  ;;  %9564 = vmatprep.subr.bf16.mxu0 %v12929_v61  ;;  %16117 = vst [vmem:[#allocation48_spill] sm:$0xff] %v13007_v45  ;;  %v16120_v30 = vand.u32 4294901760, %v12529_v21  ;;  %v16121_v19 = vand.u32 4294901760, %v12532_v51  ;;  %v16122_v61 = vld [vmem:[#allocation76_spill] sm:$0xff]  ;;  %v13025_v41 = vsub.f32 %v3237_v3, %v4217_v43  ;;  %v4219_v26 = vand.u32 4294901760, %v3236_v63 }
 0x56f   : > { %4281 = vmatprep.mubr.f32.mxu0 %v15970_v59  ;;  %v13015_v49 = vpack.c.bf16 %v16119_v9, %v16118_v35  ;;  %v4223_v24 = vand.u32 4294901760, %v3248_v33  ;;  %v3093_v2 = vunpack.c.0.s8 %v12998_v0  ;;  %v13029_v5 = vpack.c.bf16 %v4221_v4, %v4217_v43 }
 0x570   : > { %v13021_v32 = vpack.c.bf16 %v16121_v19, %v16120_v30  ;;  %v4225_v21 = vand.u32 4294901760, %v3261_v50  ;;  %v4229_v51 = vand.u32 4294901760, %v3273_v56  ;;  %v3105_v35 = vunpack.c.1.s8 %v12998_v0 }
 0x571   : > { %9494 = vmatpush1.bf16.msra.mxu1 %v16122_v61  ;;  %9566 = vmatpush1.bf16.msra.mxu0 %v12935_v27  ;;  %16123 = vst [vmem:[#allocation49_spill] sm:$0xff] %v13029_v5  ;;  %v13032_v9 = vsub.f32 %v3249_v58, %v4221_v4  ;;  %v16125_v30 = vand.u32 4294901760, %v12555_v57  ;;  %v16126_v3 = vand.u32 4294901760, %v12558_v52  ;;  %v3260_v27 = vcvt.s32.f32 %v3068_v31 }
 0x572   : > { %9496 = vmatprep.subr.bf16.mxu1 %v9495_v46  ;;  %9568 = vmatprep.subr.bf16.mxu0 %v12957_v6  ;;  %v3272_v54 = vcvt.s32.f32 %v3080_v34  ;;  %v13041_v46 = vsub.f32 %v3236_v63, %v4219_v26  ;;  %v16128_v43 = vand.u32 4294901760, %v12563_v62  ;;  %v16129_v6 = vand.u32 4294901760, %v12582_v40 }
 0x573   : > { %16124 = vst [vmem:[#allocation50_spill] sm:$0xff] %v13032_v9  ;;  %v13038_v19 = vpack.c.bf16 %v16126_v3, %v16125_v30  ;;  %v3092_v58 = vunpack.c.0.s8 %v2936_v44  ;;  %v3104_v4 = vunpack.c.1.s8 %v2936_v44  ;;  %v13051_v52 = vpack.c.bf16 %v4223_v24, %v4219_v26 }
 0x574   : > { %3907 = vmatmul.mubr.f32.vlgmr.msra.gmra.mrb[10].mxu1 %v16043_v14  ;;  %16127 = vst [vmem:[#allocation71_spill] sm:$0xff] %v13041_v46  ;;  %v13047_v61 = vpack.c.bf16 %v16129_v6, %v16128_v43  ;;  %v13053_v57 = vsub.f32 %v3248_v33, %v4223_v24  ;;  %v13055_v31 = vsub.f32 %v3261_v50, %v4225_v21  ;;  %v3285_v63 = vcvt.s32.f32 %v3093_v2  ;;  %v16168_v14 = vld [vmem:[#allocation78_spill] sm:$0xff] }
 0x575   : > { %9498 = vmatpush1.bf16.msra.mxu1 %v12955_v7  ;;  %9570 = vmatpush1.bf16.msra.mxu0 %v12967_v12  ;;  %16130 = vst [vmem:[#allocation72_spill] sm:$0xff] %v13051_v52  ;;  %v13058_v62 = vpack.c.bf16 %v4229_v51, %v4225_v21  ;;  %v3297_v40 = vcvt.s32.f32 %v3105_v35  ;;  %v3117_v6 = vunpack.c.2.s8 %v12998_v0  ;;  %v3129_v34 = vunpack.c.3.s8 %v12998_v0 }
 0x576   : > { %16131 = vst [vmem:[#allocation84_spill] sm:$0xff] %v13053_v57  ;;  %16132 = vst [vmem:[#allocation85_spill] sm:$0xff] %v13055_v31  ;;  %9500 = vmatprep.subr.bf16.mxu1 %v9499_v17  ;;  %9572 = vmatprep.subr.bf16.mxu0 %v12992_v10  ;;  %v4227_v7 = vand.u32 4294901760, %v3260_v27  ;;  %v4231_v30 = vand.u32 4294901760, %v3272_v54  ;;  %v3116_v3 = vunpack.c.2.s8 %v2936_v44  ;;  %v3128_v26 = vunpack.c.3.s8 %v2936_v44 }
 0x577   : > { %16133 = vst [vmem:[#allocation86_spill] sm:$0xff] %v13058_v62  ;;  %4073 = vmatprep.mubr.f32.mxu1 %v15970_v59  ;;  %v13063_v33 = vsub.f32 %v3273_v56, %v4229_v51  ;;  %v3284_v50 = vcvt.s32.f32 %v3092_v58  ;;  %v13065_v24 = vcvt.s32.f32 %v3104_v4  ;;  %v15614_v17 = vand.u32 4294901760, %v12915_v25 }
 0x578   : > { %v13070_v2 = vsub.f32 %v3260_v27, %v4227_v7  ;;  %v4233_v0 = vand.u32 4294901760, %v3285_v63  ;;  %v16136_v21 = vand.u32 4294901760, %v12593_v15  ;;  %v16137_v44 = vand.u32 4294901760, %v12596_v23 }
 0x579   : > { %16134 = vst [vmem:[#allocation87_spill] sm:$0xff] %v13063_v33  ;;  %9502 = vmatpush1.bf16.msra.mxu1 %v12979_v47  ;;  %9574 = vmatpush1.bf16.msra.mxu0 %v13007_v45  ;;  %v4237_v51 = vand.u32 4294901760, %v3297_v40  ;;  %v16138_v43 = vand.u32 4294901760, %v12599_v20  ;;  %v16139_v47 = vand.u32 4294901760, %v12626_v18  ;;  %v13083_v27 = vcvt.s32.f32 %v3117_v6 }
 0x57a   : > { %16135 = vst [vmem:[#allocation88_spill] sm:$0xff] %v13070_v2  ;;  %v9513_v35 = vpack.c.bf16 %v16137_v44, %v16136_v21  ;;  %9504 = vmatprep.subr.bf16.mxu1 %v12988_v55  ;;  %9576 = vmatprep.subr.bf16.mxu0 %v13029_v5  ;;  %v13085_v4 = vcvt.s32.f32 %v3129_v34  ;;  %v13087_v15 = vpack.c.bf16 %v4231_v30, %v4227_v7  ;;  %v13091_v21 = vcvt.s32.f32 %v3116_v3  ;;  %v16160_v5 = vld [vmem:[#allocation75_spill] sm:$0xff] }
 0x57b   : > { %v9515_v58 = vpack.c.bf16 %v16139_v47, %v16138_v43  ;;  %v13089_v23 = vsub.f32 %v3272_v54, %v4231_v30  ;;  %v13093_v44 = vcvt.s32.f32 %v3128_v26  ;;  %v4235_v55 = vand.u32 4294901760, %v3284_v50 }
 0x57c   : > { %16140 = vst [vmem:[#allocation89_spill] sm:$0xff] %v13087_v15  ;;  %v15615_v56 = vand.u32 4294901760, %v13065_v24  ;;  %v4296_v20 = vsub.f32 %v12915_v25, %v15614_v17  ;;  %v15617_v18 = vand.u32 4294901760, %v12923_v36  ;;  %v16142_v54 = vand.u32 4294901760, %v12917_v8 }
 0x57d   : > { %16141 = vst [vmem:[#allocation90_spill] sm:$0xff] %v13089_v23  ;;  %9506 = vmatpush1.bf16.msra.mxu1 %v13015_v49  ;;  %9578 = vmatpush1.bf16.msra.mxu0 %v13051_v52  ;;  %v15616_v34 = vand.u32 4294901760, %v12925_v11  ;;  %v13110_v3 = vpack.c.bf16 %v4237_v51, %v4233_v0  ;;  %v13112_v26 = vsub.f32 %v3285_v63, %v4233_v0  ;;  %v15630_v49 = vand.u32 4294901760, %v13083_v27 }
 0x57e   : > { %v4308_v6 = vsub.f32 %v12917_v8, %v16142_v54  ;;  %9508 = vmatprep.subr.bf16.mxu1 %v13021_v32  ;;  %9580 = vmatprep.subr.bf16.mxu0 %v13058_v62  ;;  %v15629_v43 = vand.u32 4294901760, %v13085_v4  ;;  %v13116_v47 = vsub.f32 %v3297_v40, %v4237_v51  ;;  %v13123_v32 = vpack.c.bf16 %v15615_v56, %v4235_v55 }
 0x57f   : > { %16143 = vst [vmem:[#allocation91_spill] sm:$0xff] %v13110_v3  ;;  %16144 = vst [vmem:[#allocation92_spill] sm:$0xff] %v13112_v26  ;;  %v4297_v7 = vand.u32 4294901760, %v4296_v20  ;;  %v4302_v63 = vsub.f32 %v12923_v36, %v15617_v18  ;;  %v4314_v51 = vsub.f32 %v12925_v11, %v15616_v34  ;;  %v16147_v30 = vand.u32 4294901760, %v12927_v48  ;;  %v16152_v18 = vld [vmem:[#allocation74_spill] sm:$0xff] }
 0x580   : > { %16145 = vst [vmem:[#allocation93_spill] sm:$0xff] %v13116_v47  ;;  %16146 = vst [vmem:[#allocation94_spill] sm:$0xff] %v13123_v32  ;;  %v4309_v40 = vand.u32 4294901760, %v4308_v6  ;;  %v16148_v20 = vand.u32 4294901760, %v12931_v39  ;;  %v16150_v6 = vld [vmem:[#allocation73_spill] sm:$0xff]  ;;  %v16153_v0 = vand.u32 4294901760, %v16152_v18 }
 0x581   : > { %9510 = vmatpush1.bf16.msra.mxu1 %v13038_v19  ;;  %9582 = vmatpush1.bf16.msra.mxu0 %v13087_v15  ;;  %v4320_v56 = vsub.f32 %v12927_v48, %v16147_v30  ;;  %v13146_v19 = vpack.c.bf16 %v15629_v43, %v15630_v49  ;;  %v16151_v34 = vand.u32 4294901760, %v16150_v6  ;;  %v16154_v30 = vld [vmem:[#allocation42_spill] sm:$0xff]  ;;  %v16155_v15 = vld [vmem:[#allocation44_spill] sm:$0xff]  ;;  %v16161_v43 = vand.u32 4294901760, %v16160_v5  ;;  %v16162_v49 = vld [vmem:[#allocation77_spill] sm:$0xff] }
 0x582   : > { %v4332_v17 = vsub.f32 %v12931_v39, %v16148_v20  ;;  %9512 = vmatprep.subr.bf16.mxu1 %v13047_v61  ;;  %9584 = vmatprep.subr.bf16.mxu0 %v13110_v3  ;;  %v13154_v20 = vsub.f32 %v3284_v50, %v4235_v55  ;;  %v16157_v61 = vand.u32 4294901760, %v13091_v21  ;;  %v16158_v3 = vand.u32 4294901760, %v13093_v44 }
 0x583   : > { %16149 = vst [vmem:[#allocation95_spill] sm:$0xff] %v13146_v19  ;;  %v9517_v54 = vpack.c.bf16 %v16153_v0, %v16151_v34  ;;  %v16163_v45 = vand.u32 4294901760, %v16162_v49  ;;  %v16164_v18 = vand.u32 4294901760, %v12937_v29  ;;  %v4303_v0 = vand.u32 4294901760, %v4302_v63 }
 0x584   : > { %16156 = vst [vmem:[#allocation73_spill] sm:$0xff] %v13154_v20  ;;  %v13160_v52 = vpack.c.bf16 %v16158_v3, %v16157_v61  ;;  %v16165_v62 = vand.u32 4294901760, %v12941_v37  ;;  %v9591_v5 = vpack.c.bf16 %v4309_v40, %v4297_v7  ;;  %v4315_v3 = vand.u32 4294901760, %v4314_v51  ;;  %v16170_v40 = vld [vmem:[#allocation79_spill] sm:$0xff] }
 0x585   : > { %v9519_v6 = vpack.c.bf16 %v16163_v45, %v16161_v43  ;;  %v4326_v34 = vsub.f32 %v12937_v29, %v16164_v18  ;;  %9514 = vmatpush1.bf16.msra.mxu1 %v9513_v35  ;;  %9586 = vmatpush1.bf16.msra.mxu0 %v13123_v32  ;;  %v4321_v49 = vand.u32 4294901760, %v4320_v56  ;;  %v4333_v45 = vand.u32 4294901760, %v4332_v17 }
 0x586   : > { %16159 = vst [vmem:[#allocation74_spill] sm:$0xff] %v13160_v52  ;;  %v4338_v50 = vsub.f32 %v12941_v37, %v16165_v62  ;;  %9516 = vmatprep.subr.bf16.mxu1 %v9515_v58  ;;  %9588 = vmatprep.subr.bf16.mxu0 %v13146_v19  ;;  %v16166_v43 = vand.u32 4294901760, %v16154_v30  ;;  %v16167_v62 = vand.u32 4294901760, %v16155_v15  ;;  %v16169_v7 = vand.u32 4294901760, %v16168_v14 }
 0x587   : > { %v16171_v56 = vand.u32 4294901760, %v16170_v40  ;;  %v4327_v58 = vand.u32 4294901760, %v4326_v34  ;;  %v9593_v14 = vpack.c.bf16 %v4315_v3, %v4303_v0  ;;  %v16174_v34 = vld [vmem:[#allocation80_spill] sm:$0xff]  ;;  %v16176_v40 = vld [vmem:[#allocation81_spill] sm:$0xff]  ;;  %v15641_v51 = vand.u32 4294901760, %v13032_v9  ;;  %v16180_v3 = vld [vmem:[#allocation82_spill] sm:$0xff] }
 0x588   : > { %v4344_v63 = vsub.f32 %v16154_v30, %v16166_v43  ;;  %v4356_v61 = vsub.f32 %v16155_v15, %v16167_v62  ;;  %v4339_v19 = vand.u32 4294901760, %v4338_v50  ;;  %v16172_v43 = vand.u32 4294901760, %v12969_v60 }
 0x589   : > { %v9521_v17 = vpack.c.bf16 %v16171_v56, %v16169_v7  ;;  %v16173_v62 = vand.u32 4294901760, %v12982_v13  ;;  %9518 = vmatpush1.bf16.msra.mxu1 %v9517_v54  ;;  %9590 = vmatpush1.bf16.msra.mxu0 %v13160_v52  ;;  %v16175_v7 = vand.u32 4294901760, %v16174_v34  ;;  %v16177_v56 = vand.u32 4294901760, %v16176_v40  ;;  %v16182_v52 = vld [vmem:[#allocation83_spill] sm:$0xff] }
 0x58a   : > { %v4350_v32 = vsub.f32 %v12969_v60, %v16172_v43  ;;  %v9595_v50 = vpack.c.bf16 %v4333_v45, %v4321_v49  ;;  %9520 = vmatprep.subr.bf16.mxu1 %v9519_v6  ;;  %9592 = vmatprep.subr.bf16.mxu0 %v9591_v5  ;;  %v4345_v43 = vand.u32 4294901760, %v4344_v63  ;;  %v4357_v10 = vand.u32 4294901760, %v4356_v61  ;;  %v16186_v61 = vld [vmem:[#allocation60_spill] sm:$0xff] }
 0x58b   : > { %v4362_v18 = vsub.f32 %v12982_v13, %v16173_v62  ;;  %v9523_v55 = vpack.c.bf16 %v16177_v56, %v16175_v7  ;;  %v16178_v62 = vand.u32 4294901760, %v12994_v22  ;;  %v16179_v54 = vand.u32 4294901760, %v13000_v53 }
 0x58c   : > { %v16181_v34 = vand.u32 4294901760, %v16180_v3  ;;  %v16183_v40 = vand.u32 4294901760, %v16182_v52  ;;  %v16184_v49 = vand.u32 4294901760, %v13002_v16  ;;  %v16185_v5 = vand.u32 4294901760, %v13009_v38  ;;  %4287 = vmatmul.mubr.f32.vlgmr.msra.gmra.mrb[2].mxu0 %v16186_v61  ;;  %v16207_v61 = vld [vmem:[#allocation65_spill] sm:$0xff] }
 0x58d   : > { %v4368_v35 = vsub.f32 %v12994_v22, %v16178_v62  ;;  %v4380_v0 = vsub.f32 %v13000_v53, %v16179_v54  ;;  %v15649_v63 = vand.u32 4294901760, %v13041_v46  ;;  %v9597_v56 = vpack.c.bf16 %v4339_v19, %v4327_v58  ;;  %9522 = vmatpush1.bf16.msra.mxu1 %v9521_v17  ;;  %9594 = vmatpush1.bf16.msra.mxu0 %v9593_v14 }
 0x58e   : > { %v9525_v7 = vpack.c.bf16 %v16183_v40, %v16181_v34  ;;  %v4374_v6 = vsub.f32 %v13002_v16, %v16184_v49  ;;  %v4386_v45 = vsub.f32 %v13009_v38, %v16185_v5  ;;  %v4351_v62 = vand.u32 4294901760, %v4350_v32  ;;  %9524 = vmatprep.subr.bf16.mxu1 %v9523_v55  ;;  %9596 = vmatprep.subr.bf16.mxu0 %v9595_v50 }
 0x58f   : > { %v4363_v54 = vand.u32 4294901760, %v4362_v18  ;;  %v16187_v3 = vand.u32 4294901760, %v13025_v41  ;;  %v4404_v34 = vsub.f32 %v13032_v9, %v15641_v51  ;;  %v15646_v49 = vand.u32 4294901760, %v13055_v31  ;;  %4517 = vmatprep.mubr.f32.mxu0 %v15970_v59 }
 0x590   : > { %v16188_v19 = vand.u32 4294901760, %v13065_v24  ;;  %v9599_v18 = vpack.c.bf16 %v4357_v10, %v4345_v43  ;;  %v4369_v17 = vand.u32 4294901760, %v4368_v35  ;;  %v4381_v58 = vand.u32 4294901760, %v4380_v0 }
 0x591   : > { %v4392_v52 = vsub.f32 %v13025_v41, %v16187_v3  ;;  %v16190_v14 = vand.u32 4294901760, %v13083_v27  ;;  %v4375_v51 = vand.u32 4294901760, %v4374_v6  ;;  %v4387_v40 = vand.u32 4294901760, %v4386_v45  ;;  %9526 = vmatpush1.bf16.msra.mxu1 %v9525_v7  ;;  %9598 = vmatpush1.bf16.msra.mxu0 %v9597_v56  ;;  %v16196_v7 = vld [vmem:[#allocation52_spill] sm:$0xff] }
 0x592   : > { %v13233_v32 = vsub.f32 %v13065_v24, %v16188_v19  ;;  %v4398_v5 = vsub.f32 %v13041_v46, %v15649_v63  ;;  %v9601_v24 = vpack.c.bf16 %v4363_v54, %v4351_v62  ;;  %v15643_v55 = vand.u32 4294901760, %v13070_v2  ;;  %9528 = vmatprep.subr.bf16.mxu1 %v16196_v7  ;;  %9600 = vmatprep.subr.bf16.mxu0 %v9599_v18  ;;  %v16201_v7 = vld [vmem:[#allocation57_spill] sm:$0xff]  ;;  %v16205_v63 = vld [vmem:[#allocation63_spill] sm:$0xff] }
 0x593   : > { %v13238_v3 = vsub.f32 %v13083_v27, %v16190_v14  ;;  %v4393_v19 = vand.u32 4294901760, %v4392_v52  ;;  %v15642_v10 = vand.u32 4294901760, %v13089_v23  ;;  %v4405_v35 = vand.u32 4294901760, %v4404_v34 }
 0x594   : > { %16189 = vst [vmem:[#allocation75_spill] sm:$0xff] %v13233_v32  ;;  %v16192_v27 = vand.u32 4294901760, %v13053_v57  ;;  %v4416_v43 = vsub.f32 %v13055_v31, %v15646_v49  ;;  %v16193_v0 = vand.u32 4294901760, %v13063_v33  ;;  %v16194_v45 = vand.u32 4294901760, %v13085_v4  ;;  %4075 = vmatmul.mubr.f32.vlgmr.msra.gmra.mrb[10].mxu1 %v16055_v42 }
 0x595   : > { %16191 = vst [vmem:[#allocation77_spill] sm:$0xff] %v13238_v3  ;;  %v9603_v56 = vpack.c.bf16 %v4381_v58, %v4369_v17  ;;  %v15645_v54 = vand.u32 4294901760, %v13112_v26  ;;  %v15644_v52 = vand.u32 4294901760, %v13116_v47  ;;  %v16197_v34 = vand.u32 4294901760, %v13091_v21  ;;  %9530 = vmatpush1.bf16.msra.mxu1 %v16201_v7  ;;  %9602 = vmatpush1.bf16.msra.mxu0 %v9601_v24 }
 0x596   : > { %v4410_v50 = vsub.f32 %v13053_v57, %v16192_v27  ;;  %v4428_v6 = vsub.f32 %v13063_v33, %v16193_v0  ;;  %v13258_v62 = vsub.f32 %v13085_v4, %v16194_v45  ;;  %v16199_v27 = vand.u32 4294901760, %v13093_v44  ;;  %4177 = vmatprep.mubr.f32.mxu1 %v15970_v59 }
 0x597   : > { %v13266_v14 = vsub.f32 %v13091_v21, %v16197_v34  ;;  %v9605_v4 = vpack.c.bf16 %v4387_v40, %v4375_v51  ;;  %v4399_v45 = vand.u32 4294901760, %v4398_v5  ;;  %v4422_v18 = vsub.f32 %v13070_v2, %v15643_v55  ;;  %v16202_v34 = vld [vmem:[#allocation59_spill] sm:$0xff]  ;;  %9604 = vmatprep.subr.bf16.mxu0 %v9603_v56 }
 0x598   : > { %16195 = vst [vmem:[#allocation78_spill] sm:$0xff] %v13258_v62  ;;  %v13271_v0 = vsub.f32 %v13093_v44, %v16199_v27  ;;  %v4434_v17 = vsub.f32 %v13089_v23, %v15642_v10  ;;  %v15647_v21 = vand.u32 4294901760, %v13154_v20  ;;  %v15648_v58 = vand.u32 4294901760, %v13233_v32  ;;  %9532 = vmatprep.subr.bf16.mxu1 %v16202_v34 }
 0x599   : > { %16198 = vst [vmem:[#allocation79_spill] sm:$0xff] %v13266_v14  ;;  %v9607_v44 = vpack.c.bf16 %v4405_v35, %v4393_v19  ;;  %v4411_v51 = vand.u32 4294901760, %v4410_v50  ;;  %v4417_v40 = vand.u32 4294901760, %v4416_v43  ;;  %v4429_v5 = vand.u32 4294901760, %v4428_v6  ;;  %v2903_v43 = vld [vmem:[#allocation18 + $0x28] sm:$0xff]  ;;  %v16203_v6 = vld [vmem:[#allocation61_spill] sm:$0xff]  ;;  %9606 = vmatpush1.bf16.msra.mxu0 %v9605_v4 }
 0x59a   : > { %16200 = vst [vmem:[#allocation80_spill] sm:$0xff] %v13271_v0  ;;  %v4440_v27 = vsub.f32 %v13112_v26, %v15645_v54  ;;  %v4452_v10 = vsub.f32 %v13116_v47, %v15644_v52  ;;  %v15651_v55 = vand.u32 4294901760, %v13238_v3  ;;  %v15650_v7 = vand.u32 4294901760, %v13258_v62  ;;  %9534 = vmatpush1.bf16.msra.mxu1 %v16203_v6  ;;  %v2902_v4 = vld [vmem:[#allocation18 + $0x20] sm:$0xff] }
 0x59b   : > { %v4423_v24 = vand.u32 4294901760, %v4422_v18  ;;  %v4435_v19 = vand.u32 4294901760, %v4434_v17  ;;  %v4446_v35 = vsub.f32 %v13154_v20, %v15647_v21  ;;  %v4458_v50 = vsub.f32 %v13233_v32, %v15648_v58  ;;  %v16204_v18 = vld [vmem:[#allocation62_spill] sm:$0xff]  ;;  %9608 = vmatprep.subr.bf16.mxu0 %v9607_v44 }
 0x59c   : > { %v9609_v56 = vpack.c.bf16 %v4411_v51, %v4399_v45  ;;  %v9611_v34 = vpack.c.bf16 %v4429_v5, %v4417_v40  ;;  %v15654_v52 = vand.u32 4294901760, %v13266_v14  ;;  %v15659_v54 = vand.u32 4294901760, %v13271_v0  ;;  %9536 = vmatprep.subr.bf16.mxu1 %v16204_v18 }
 0x59d   : > { %v4441_v17 = vand.u32 4294901760, %v4440_v27  ;;  %v4453_v49 = vand.u32 4294901760, %v4452_v10  ;;  %v4464_v21 = vsub.f32 %v13238_v3, %v15651_v55  ;;  %v4476_v6 = vsub.f32 %v13258_v62, %v15650_v7  ;;  %v16206_v7 = vld [vmem:[#allocation64_spill] sm:$0xff] }
 0x59e   : > { %v2951_v45 = vunpack.c.0.s8 %v2903_v43  ;;  %v2963_v51 = vunpack.c.1.s8 %v2903_v43  ;;  %v9613_v40 = vpack.c.bf16 %v4435_v19, %v4423_v24  ;;  %v4447_v5 = vand.u32 4294901760, %v4446_v35  ;;  %9538 = vmatpush1.bf16.msra.mxu1 %v16205_v63  ;;  %9610 = vmatpush1.bf16.msra.mxu0 %v9609_v56 }
 0x59f   : > { %v4459_v58 = vand.u32 4294901760, %v4458_v50  ;;  %v4470_v10 = vsub.f32 %v13266_v14, %v15654_v52  ;;  %v4482_v44 = vsub.f32 %v13271_v0, %v15659_v54  ;;  %v2950_v27 = vunpack.c.0.s8 %v2902_v4  ;;  %9540 = vmatprep.subr.bf16.mxu1 %v16206_v7  ;;  %9612 = vmatprep.subr.bf16.mxu0 %v9611_v34  ;;  %v16208_v0 = vld [vmem:[#allocation66_spill] sm:$0xff] }
 0x5a0   : > { %v2962_v18 = vunpack.c.1.s8 %v2902_v4  ;;  %v9615_v55 = vpack.c.bf16 %v4453_v49, %v4441_v17  ;;  %v4465_v24 = vand.u32 4294901760, %v4464_v21  ;;  %v4477_v19 = vand.u32 4294901760, %v4476_v6 }
 0x5a1   : > { %v3143_v35 = vcvt.s32.f32 %v2951_v45  ;;  %v3155_v50 = vcvt.s32.f32 %v2963_v51  ;;  %v9617_v63 = vpack.c.bf16 %v4459_v58, %v4447_v5  ;;  %v2975_v56 = vunpack.c.2.s8 %v2903_v43  ;;  %v2915_v45 = vld [vmem:[#allocation18 + $0x88] sm:$0xff]  ;;  %v13324_v5 = vld [vmem:[#allocation18 + $0x80] sm:$0xff] }
 0x5a2   : > { %v2987_v12 = vunpack.c.3.s8 %v2903_v43  ;;  %9542 = vmatpush1.bf16.msra.mxu1 %v16207_v61  ;;  %9614 = vmatpush1.bf16.msra.mxu0 %v9613_v40  ;;  %v4471_v52 = vand.u32 4294901760, %v4470_v10  ;;  %v4483_v14 = vand.u32 4294901760, %v4482_v44  ;;  %v3142_v62 = vcvt.s32.f32 %v2950_v27  ;;  %v16209_v61 = vld [vmem:[#allocation67_spill] sm:$0xff] }
 0x5a3   : > { %v3154_v54 = vcvt.s32.f32 %v2962_v18  ;;  %9544 = vmatprep.subr.bf16.mxu1 %v16208_v0  ;;  %9616 = vmatprep.subr.bf16.mxu0 %v9615_v55  ;;  %v9619_v7 = vpack.c.bf16 %v4477_v19, %v4465_v24  ;;  %v2974_v34 = vunpack.c.2.s8 %v2902_v4  ;;  %v2986_v49 = vunpack.c.3.s8 %v2902_v4  ;;  %v16210_v4 = vld [vmem:[#allocation68_spill] sm:$0xff] }
 0x5a4   : > { %v5040_v21 = vand.u32 4294901760, %v3143_v35  ;;  %v5044_v17 = vand.u32 4294901760, %v3155_v50  ;;  %v9623_v58 = vpack.c.bf16 %v12917_v8, %v12915_v25  ;;  %v3167_v6 = vcvt.s32.f32 %v2975_v56 }
 0x5a5   : > { %v3179_v43 = vcvt.s32.f32 %v2987_v12  ;;  %v9621_v51 = vpack.c.bf16 %v4483_v14, %v4471_v52  ;;  %v9625_v40 = vpack.c.bf16 %v12925_v11, %v12923_v36  ;;  %v5042_v0 = vand.u32 4294901760, %v3142_v62 }
 0x5a6   : > { %9546 = vmatpush1.bf16.msra.mxu1 %v16209_v61  ;;  %9618 = vmatpush1.bf16.msra.mxu0 %v9617_v63  ;;  %v5046_v55 = vand.u32 4294901760, %v3154_v54  ;;  %v9627_v10 = vpack.c.bf16 %v12931_v39, %v12927_v48  ;;  %v9629_v12 = vpack.c.bf16 %v12941_v37, %v12937_v29  ;;  %v3166_v44 = vcvt.s32.f32 %v2974_v34  ;;  %v16212_v61 = vld [vmem:[#allocation69_spill] sm:$0xff] }
 0x5a7   : > { %9548 = vmatprep.subr.bf16.mxu1 %v16210_v4  ;;  %9620 = vmatprep.subr.bf16.mxu0 %v9619_v7  ;;  %v3178_v27 = vcvt.s32.f32 %v2986_v49  ;;  %v9631_v52 = vpack.c.bf16 %v16155_v15, %v16154_v30  ;;  %v13333_v14 = vpack.c.bf16 %v5044_v17, %v5040_v21  ;;  %v2999_v18 = vunpack.c.0.s8 %v2915_v45  ;;  %v16214_v30 = vld [vmem:[#allocation70_spill] sm:$0xff] }
 0x5a8   : > { %v3011_v24 = vunpack.c.1.s8 %v2915_v45  ;;  %v5048_v19 = vand.u32 4294901760, %v3167_v6  ;;  %v5052_v63 = vand.u32 4294901760, %v3179_v43  ;;  %v2998_v56 = vunpack.c.0.s8 %v13324_v5 }
 0x5a9   : > { %16211 = vst [vmem:[#allocation81_spill] sm:$0xff] %v13333_v14  ;;  %v3010_v7 = vunpack.c.1.s8 %v13324_v5  ;;  %v9633_v34 = vpack.c.bf16 %v12982_v13, %v12969_v60  ;;  %v13340_v49 = vpack.c.bf16 %v5046_v55, %v5042_v0  ;;  %v3023_v4 = vunpack.c.2.s8 %v2915_v45 }
 0x5aa   : > { %9550 = vmatpush1.bf16.msra.mxu1 %v16212_v61  ;;  %9622 = vmatpush1.bf16.msra.mxu0 %v9621_v51  ;;  %v3035_v15 = vunpack.c.3.s8 %v2915_v45  ;;  %v13343_v37 = vsub.f32 %v3143_v35, %v5040_v21  ;;  %v13345_v29 = vsub.f32 %v3155_v50, %v5044_v17  ;;  %v5050_v39 = vand.u32 4294901760, %v3166_v44  ;;  %v13361_v17 = vld [vmem:[#allocation18 + $0xe8] sm:$0xff] }
 0x5ab   : > { %16213 = vst [vmem:[#allocation82_spill] sm:$0xff] %v13340_v49  ;;  %9552 = vmatprep.subr.bf16.mxu1 %v16214_v30  ;;  %9624 = vmatprep.subr.bf16.mxu0 %v9623_v58  ;;  %v5054_v48 = vand.u32 4294901760, %v3178_v27  ;;  %v13347_v11 = vsub.f32 %v3142_v62, %v5042_v0  ;;  %v13349_v61 = vsub.f32 %v3154_v54, %v5046_v55  ;;  %v3191_v51 = vcvt.s32.f32 %v2999_v18 }
 0x5ac   : > { %v3203_v36 = vcvt.s32.f32 %v3011_v24  ;;  %v9635_v45 = vpack.c.bf16 %v13000_v53, %v12994_v22  ;;  %v13354_v13 = vpack.c.bf16 %v5052_v63, %v5048_v19  ;;  %v3190_v30 = vcvt.s32.f32 %v2998_v56 }
 0x5ad   : > { %4519 = vmatmul.mubr.f32.vlgmr.msra.gmra.mrb[2].mxu0 %v16055_v42  ;;  %v3202_v35 = vcvt.s32.f32 %v3010_v7  ;;  %v13357_v50 = vsub.f32 %v3167_v6, %v5048_v19  ;;  %v13359_v62 = vsub.f32 %v3179_v43, %v5052_v63  ;;  %v3215_v54 = vcvt.s32.f32 %v3023_v4  ;;  %v13377_v19 = vld [vmem:[#allocation18 + $0xe0] sm:$0xff]  ;;  %v16217_v63 = vld [vmem:[#allocation76_spill] sm:$0xff] }
 0x5ae   : > { %16215 = vst [vmem:[#allocation83_spill] sm:$0xff] %v13354_v13  ;;  %9554 = vmatpush1.bf16.msra.mxu1 %v16114_v28  ;;  %9626 = vmatpush1.bf16.msra.mxu0 %v9625_v40  ;;  %v3227_v21 = vcvt.s32.f32 %v3035_v15  ;;  %v9637_v58 = vpack.c.bf16 %v13009_v38, %v13002_v16  ;;  %v13366_v0 = vpack.c.bf16 %v5054_v48, %v5050_v39  ;;  %v3022_v55 = vunpack.c.2.s8 %v13324_v5 }
 0x5af   : > { %9556 = vmatprep.subr.bf16.mxu1 %v16116_v1  ;;  %9628 = vmatprep.subr.bf16.mxu0 %v9627_v10  ;;  %v3034_v28 = vunpack.c.3.s8 %v13324_v5  ;;  %v13370_v6 = vsub.f32 %v3166_v44, %v5050_v39  ;;  %v13372_v43 = vsub.f32 %v3178_v27, %v5054_v48  ;;  %v5056_v40 = vand.u32 4294901760, %v3191_v51 }
 0x5b0   : > { %16216 = vst [vmem:[#allocation52_spill] sm:$0xff] %v13366_v0  ;;  %v5060_v15 = vand.u32 4294901760, %v3203_v36  ;;  %4653 = vmatprep.mubr.f32.mxu0 %v15970_v59  ;;  %v5058_v18 = vand.u32 4294901760, %v3190_v30  ;;  %v5062_v1 = vand.u32 4294901760, %v3202_v35  ;;  %v3047_v10 = vunpack.c.0.s8 %v13361_v17 }
 0x5b1   : > { %v3059_v24 = vunpack.c.1.s8 %v13361_v17  ;;  %v9639_v39 = vpack.c.bf16 %v13032_v9, %v13025_v41  ;;  %v9641_v48 = vpack.c.bf16 %v13053_v57, %v13041_v46  ;;  %v5064_v5 = vand.u32 4294901760, %v3215_v54 }
 0x5b2   : > { %9558 = vmatpush1.bf16.msra.mxu1 %v16217_v63  ;;  %9630 = vmatpush1.bf16.msra.mxu0 %v9629_v12  ;;  %v5068_v44 = vand.u32 4294901760, %v3227_v21  ;;  %v13385_v27 = vsub.f32 %v3191_v51, %v5056_v40  ;;  %v9643_v56 = vpack.c.bf16 %v13063_v33, %v13055_v31  ;;  %v3214_v7 = vcvt.s32.f32 %v3022_v55  ;;  %v16270_v31 = vld [vmem:[#allocation60_spill] sm:$0xff] }
 0x5b3   : > { %9632 = vmatprep.subr.bf16.mxu0 %v9631_v52  ;;  %9752 = vmatprep.subr.bf16.mxu1 %v13333_v14  ;;  %v3226_v4 = vcvt.s32.f32 %v3034_v28  ;;  %v13389_v63 = vpack.c.bf16 %v5060_v15, %v5056_v40  ;;  %v13391_v12 = vsub.f32 %v3203_v36, %v5060_v15  ;;  %v3046_v9 = vunpack.c.0.s8 %v13377_v19 }
 0x5b4   : > { %v3058_v57 = vunpack.c.1.s8 %v13377_v19  ;;  %v13396_v52 = vpack.c.bf16 %v5062_v1, %v5058_v18  ;;  %v13398_v14 = vsub.f32 %v3190_v30, %v5058_v18  ;;  %v3239_v51 = vcvt.s32.f32 %v3047_v10 }
 0x5b5   : > { %16218 = vst [vmem:[#allocation57_spill] sm:$0xff] %v13389_v63  ;;  %4179 = vmatmul.mubr.f32.vlgmr.msra.gmra.mrb[10].mxu1 %v16055_v42  ;;  %v3251_v46 = vcvt.s32.f32 %v3059_v24  ;;  %v13401_v55 = vsub.f32 %v3202_v35, %v5062_v1  ;;  %v13403_v28 = vpack.c.bf16 %v5068_v44, %v5064_v5  ;;  %v3071_v36 = vunpack.c.2.s8 %v13361_v17 }
 0x5b6   : > { %16219 = vst [vmem:[#allocation59_spill] sm:$0xff] %v13396_v52  ;;  %16220 = vst [vmem:[#allocation61_spill] sm:$0xff] %v13398_v14  ;;  %9634 = vmatpush1.bf16.msra.mxu0 %v9633_v34  ;;  %9754 = vmatpush1.bf16.msra.mxu1 %v13340_v49  ;;  %v3083_v40 = vunpack.c.3.s8 %v13361_v17  ;;  %v13408_v15 = vsub.f32 %v3215_v54, %v5064_v5  ;;  %v13410_v30 = vsub.f32 %v3227_v21, %v5068_v44  ;;  %v2939_v49 = vld [vmem:[#allocation18 + $0x148] sm:$0xff]  ;;  %v2938_v5 = vld [vmem:[#allocation18 + $0x140] sm:$0xff] }
 0x5b7   : > { %16221 = vst [vmem:[#allocation62_spill] sm:$0xff] %v13403_v28  ;;  %9636 = vmatprep.subr.bf16.mxu0 %v9635_v45  ;;  %9756 = vmatprep.subr.bf16.mxu1 %v13354_v13  ;;  %v5066_v18 = vand.u32 4294901760, %v3214_v7  ;;  %v5070_v10 = vand.u32 4294901760, %v3226_v4  ;;  %v9645_v34 = vpack.c.bf16 %v13089_v23, %v13070_v2  ;;  %v9647_v35 = vpack.c.bf16 %v13116_v47, %v13112_v26 }
 0x5b8   : > { %v3238_v1 = vcvt.s32.f32 %v3046_v9  ;;  %v3250_v24 = vcvt.s32.f32 %v3058_v57  ;;  %5136 = vmatprep.mubr.f32.mxu1 %v15970_v59  ;;  %v5072_v45 = vand.u32 4294901760, %v3239_v51  ;;  %v5076_v17 = vand.u32 4294901760, %v3251_v46 }
 0x5b9   : > { %v3070_v54 = vunpack.c.2.s8 %v13377_v19  ;;  %v3082_v21 = vunpack.c.3.s8 %v13377_v19  ;;  %v13420_v44 = vsub.f32 %v3214_v7, %v5066_v18  ;;  %v9649_v13 = vpack.c.bf16 %v13233_v32, %v13154_v20 }
 0x5ba   : > { %9638 = vmatpush1.bf16.msra.mxu0 %v9637_v58  ;;  %9758 = vmatpush1.bf16.msra.mxu1 %v13366_v0  ;;  %v13424_v9 = vcvt.s32.f32 %v3071_v36  ;;  %v13426_v57 = vcvt.s32.f32 %v3083_v40  ;;  %v13429_v47 = vpack.c.bf16 %v5070_v10, %v5066_v18  ;;  %v13431_v26 = vsub.f32 %v3226_v4, %v5070_v10  ;;  %v16224_v36 = vld [vmem:[#allocation78_spill] sm:$0xff] }
 0x5bb   : > { %9640 = vmatprep.subr.bf16.mxu0 %v9639_v39  ;;  %9760 = vmatprep.subr.bf16.mxu1 %v13389_v63  ;;  %v3095_v19 = vunpack.c.0.s8 %v2939_v49  ;;  %v3107_v58 = vunpack.c.1.s8 %v2939_v49  ;;  %v5074_v23 = vand.u32 4294901760, %v3238_v1  ;;  %v5078_v0 = vand.u32 4294901760, %v3250_v24 }
 0x5bc   : > { %16222 = vst [vmem:[#allocation63_spill] sm:$0xff] %v13429_v47  ;;  %v3094_v7 = vunpack.c.0.s8 %v2938_v5  ;;  %v3106_v2 = vunpack.c.1.s8 %v2938_v5  ;;  %v13433_v33 = vpack.c.bf16 %v5076_v17, %v5072_v45  ;;  %v9651_v32 = vpack.c.bf16 %v16224_v36, %v13238_v3 }
 0x5bd   : > { %v13437_v40 = vcvt.s32.f32 %v3070_v54  ;;  %v13439_v39 = vcvt.s32.f32 %v3082_v21  ;;  %v13442_v4 = vsub.f32 %v3239_v51, %v5072_v45  ;;  %v13444_v18 = vsub.f32 %v3251_v46, %v5076_v17 }
 0x5be   : > { %16223 = vst [vmem:[#allocation64_spill] sm:$0xff] %v13433_v33  ;;  %9642 = vmatpush1.bf16.msra.mxu0 %v9641_v48  ;;  %9762 = vmatpush1.bf16.msra.mxu1 %v13396_v52  ;;  %v5080_v10 = vand.u32 4294901760, %v13424_v9  ;;  %v5084_v63 = vand.u32 4294901760, %v13426_v57  ;;  %v13449_v20 = vcvt.s32.f32 %v3095_v19  ;;  %v13451_v54 = vcvt.s32.f32 %v3107_v58  ;;  %v16228_v58 = vld [vmem:[#allocation79_spill] sm:$0xff] }
 0x5bf   : > { %16225 = vst [vmem:[#allocation65_spill] sm:$0xff] %v13444_v18  ;;  %9644 = vmatprep.subr.bf16.mxu0 %v9643_v56  ;;  %9764 = vmatprep.subr.bf16.mxu1 %v13403_v28  ;;  %v3119_v21 = vunpack.c.2.s8 %v2939_v49  ;;  %v3131_v36 = vunpack.c.3.s8 %v2939_v49  ;;  %v13453_v48 = vcvt.s32.f32 %v3094_v7  ;;  %v13455_v52 = vcvt.s32.f32 %v3106_v2 }
 0x5c0   : > { %v3118_v51 = vunpack.c.2.s8 %v2938_v5  ;;  %v3130_v46 = vunpack.c.3.s8 %v2938_v5  ;;  %v13457_v45 = vpack.c.bf16 %v5078_v0, %v5074_v23  ;;  %v13459_v17 = vsub.f32 %v3238_v1, %v5074_v23 }
 0x5c1   : > { %v5082_v56 = vand.u32 4294901760, %v13437_v40  ;;  %v5086_v28 = vand.u32 4294901760, %v13439_v39  ;;  %v13464_v19 = vsub.f32 %v3250_v24, %v5078_v0  ;;  %v13466_v49 = vpack.c.bf16 %v5084_v63, %v5080_v10 }
 0x5c2   : > { %16226 = vst [vmem:[#allocation66_spill] sm:$0xff] %v13457_v45  ;;  %9646 = vmatpush1.bf16.msra.mxu0 %v9645_v34  ;;  %9766 = vmatpush1.bf16.msra.mxu1 %v13429_v47  ;;  %v5088_v23 = vand.u32 4294901760, %v13449_v20  ;;  %v13473_v5 = vcvt.s32.f32 %v3119_v21  ;;  %v13475_v34 = vcvt.s32.f32 %v3131_v36  ;;  %v13479_v7 = vcvt.s32.f32 %v3118_v51 }
 0x5c3   : > { %16227 = vst [vmem:[#allocation67_spill] sm:$0xff] %v13466_v49  ;;  %9648 = vmatprep.subr.bf16.mxu0 %v9647_v35  ;;  %9768 = vmatprep.subr.bf16.mxu1 %v13433_v33  ;;  %v13481_v2 = vcvt.s32.f32 %v3130_v46  ;;  %v16229_v35 = vld [vmem:[#allocation80_spill] sm:$0xff]  ;;  %v13485_v33 = vpack.c.bf16 %v5086_v28, %v5082_v56  ;;  %v16231_v36 = vand.u32 4294901760, %v13343_v37  ;;  %v16232_v51 = vand.u32 4294901760, %v13345_v29 }
 0x5c4   : > { %v9653_v47 = vpack.c.bf16 %v16229_v35, %v16228_v58  ;;  %v13500_v21 = vsub.f32 %v13424_v9, %v5080_v10  ;;  %v16237_v1 = vand.u32 4294901760, %v13455_v52  ;;  %v16241_v10 = vand.u32 4294901760, %v13357_v50 }
 0x5c5   : > { %16230 = vst [vmem:[#allocation68_spill] sm:$0xff] %v13485_v33  ;;  %v5151_v24 = vsub.f32 %v13343_v37, %v16231_v36  ;;  %v5163_v46 = vsub.f32 %v13345_v29, %v16232_v51  ;;  %v13511_v51 = vsub.f32 %v13426_v57, %v5084_v63  ;;  %v16239_v36 = vand.u32 4294901760, %v13347_v11 }
 0x5c6   : > { %9650 = vmatpush1.bf16.msra.mxu0 %v9649_v13  ;;  %9770 = vmatpush1.bf16.msra.mxu1 %v13457_v45  ;;  %v16233_v13 = vand.u32 4294901760, %v13451_v54  ;;  %v16242_v9 = vand.u32 4294901760, %v13359_v62  ;;  %v13537_v58 = vsub.f32 %v13437_v40, %v5082_v56  ;;  %v13550_v57 = vsub.f32 %v13439_v39, %v5086_v28  ;;  %v16253_v39 = vld [vmem:[#allocation35_spill] sm:$0xff] }
 0x5c7   : > { %9652 = vmatprep.subr.bf16.mxu0 %v9651_v32  ;;  %9772 = vmatprep.subr.bf16.mxu1 %v13466_v49  ;;  %v13508_v35 = vpop.f32.mrb[8].mxu1  ;;  %v16236_v32 = vand.u32 4294901760, %v13453_v48  ;;  %v5157_v45 = vsub.f32 %v13347_v11, %v16239_v36  ;;  %v13553_v40 = vsub.f32 %v13449_v20, %v5088_v23  ;;  %v16254_v20 = vand.u32 4294901760, %v13479_v7  ;;  %v16257_v49 = vld [vmem:[#allocation39_spill] sm:$0xff] }
 0x5c8   : > { %v13504_v3 = vpack.c.bf16 %v16233_v13, %v5088_v23  ;;  %16235 = vst [vmem:[#allocation70_spill] sm:$0xff] %v13508_v35  ;;  %v9047_v13 = vpop.f32.mrb[9].mxu1  ;;  %v16240_v35 = vand.u32 4294901760, %v13349_v61  ;;  %v5187_v36 = vsub.f32 %v13359_v62, %v16242_v9  ;;  %16243 = vst [vmem:[#allocation96_spill] sm:$0xff] %v13537_v58  ;;  %v16255_v23 = vand.u32 4294901760, %v13481_v2 }
 0x5c9   : > { %v13517_v0 = vpack.c.bf16 %v16237_v1, %v16236_v32  ;;  %v5152_v1 = vand.u32 4294901760, %v5151_v24  ;;  %v5164_v32 = vand.u32 4294901760, %v5163_v46  ;;  %v5175_v13 = vsub.f32 %v13357_v50, %v16241_v10  ;;  %16248 = vst [vmem:[#allocation98_spill] sm:$0xff] %v13550_v57  ;;  %16249 = vst [vmem:[#allocation99_spill] sm:$0xff] %v13553_v40 }
 0x5ca   : > { %16234 = vst [vmem:[#allocation69_spill] sm:$0xff] %v13504_v3  ;;  %v5169_v63 = vsub.f32 %v13349_v61, %v16240_v35  ;;  %9654 = vmatpush1.bf16.msra.mxu0 %v9653_v47  ;;  %9774 = vmatpush1.bf16.msra.mxu1 %v13485_v33  ;;  %v16244_v35 = vld [vmem:[#allocation51_spill] sm:$0xff]  ;;  %v16245_v47 = vand.u32 4294901760, %v13473_v5  ;;  %v16246_v24 = vand.u32 4294901760, %v13475_v34  ;;  %v5158_v33 = vand.u32 4294901760, %v5157_v45 }
 0x5cb   : > { %16238 = vst [vmem:[#allocation76_spill] sm:$0xff] %v13517_v0  ;;  %9656 = vmatprep.subr.bf16.mxu0 %v16244_v35  ;;  %9776 = vmatprep.subr.bf16.mxu1 %v13504_v3  ;;  %v16250_v3 = vld [vmem:[#allocation56_spill] sm:$0xff]  ;;  %v16252_v10 = vand.u32 4294901760, %v13372_v43  ;;  %v13570_v9 = vpack.c.bf16 %v16255_v23, %v16254_v20  ;;  %v9783_v45 = vpack.c.bf16 %v5164_v32, %v5152_v1  ;;  %v5188_v56 = vand.u32 4294901760, %v5187_v36 }
 0x5cc   : > { %v13545_v46 = vpack.c.bf16 %v16246_v24, %v16245_v47  ;;  %v5170_v35 = vand.u32 4294901760, %v5169_v63  ;;  %v16251_v47 = vand.u32 4294901760, %v13370_v6  ;;  %v5176_v63 = vand.u32 4294901760, %v5175_v13 }
 0x5cd   : > { %4656 = vmatmul.mubr.f32.vlgmr.msra.gmra.mrb[2].mxu0 %v16250_v3  ;;  %v5193_v28 = vsub.f32 %v13372_v43, %v16252_v10  ;;  %16256 = vst [vmem:[#allocation100_spill] sm:$0xff] %v13570_v9  ;;  %v16259_v3 = vand.u32 4294901760, %v13391_v12  ;;  %v16260_v1 = vand.u32 4294901760, %v13451_v54  ;;  %v16262_v13 = vand.u32 4294901760, %v13453_v48 }
 0x5ce   : > { %16247 = vst [vmem:[#allocation97_spill] sm:$0xff] %v13545_v46  ;;  %v5181_v24 = vsub.f32 %v13370_v6, %v16251_v47  ;;  %9658 = vmatpush1.bf16.msra.mxu0 %v16253_v39  ;;  %9778 = vmatpush1.bf16.msra.mxu1 %v13517_v0  ;;  %v16258_v47 = vand.u32 4294901760, %v13385_v27  ;;  %v16264_v23 = vand.u32 4294901760, %v13398_v14  ;;  %v9785_v20 = vpack.c.bf16 %v5170_v35, %v5158_v33 }
 0x5cf   : > { %9660 = vmatprep.subr.bf16.mxu0 %v16257_v49  ;;  %9780 = vmatprep.subr.bf16.mxu1 %v13545_v46  ;;  %v5211_v0 = vsub.f32 %v13391_v12, %v16259_v3  ;;  %v13585_v32 = vsub.f32 %v13451_v54, %v16260_v1  ;;  %v13590_v36 = vsub.f32 %v13453_v48, %v16262_v13  ;;  %v16265_v3 = vand.u32 4294901760, %v13401_v55  ;;  %v16266_v1 = vld [vmem:[#allocation54_spill] sm:$0xff] }
 0x5d0   : > { %v5199_v10 = vsub.f32 %v13385_v27, %v16258_v47  ;;  %v5205_v47 = vsub.f32 %v13398_v14, %v16264_v23  ;;  %4758 = vmatprep.mubr.f32.mxu0 %v15970_v59  ;;  %v5182_v46 = vand.u32 4294901760, %v5181_v24  ;;  %v5194_v49 = vand.u32 4294901760, %v5193_v28  ;;  %v16267_v14 = vld [vmem:[#allocation43_spill] sm:$0xff] }
 0x5d1   : > { %16261 = vst [vmem:[#allocation101_spill] sm:$0xff] %v13585_v32  ;;  %16263 = vst [vmem:[#allocation102_spill] sm:$0xff] %v13590_v36  ;;  %v5217_v39 = vsub.f32 %v13401_v55, %v16265_v3  ;;  %v9787_v48 = vpack.c.bf16 %v5188_v56, %v5176_v63  ;;  %v5212_v33 = vand.u32 4294901760, %v5211_v0  ;;  %v16268_v35 = vand.u32 4294901760, %v13408_v15 }
 0x5d2   : > { %9662 = vmatpush1.bf16.msra.mxu0 %v16266_v1  ;;  %9782 = vmatpush1.bf16.msra.mxu1 %v13570_v9  ;;  %v5200_v3 = vand.u32 4294901760, %v5199_v10  ;;  %v16269_v28 = vand.u32 4294901760, %v13410_v30  ;;  %v5206_v56 = vand.u32 4294901760, %v5205_v47  ;;  %v9789_v9 = vpack.c.bf16 %v5194_v49, %v5182_v46 }
 0x5d3   : > { %9664 = vmatprep.subr.bf16.mxu0 %v16267_v14  ;;  %9784 = vmatprep.subr.bf16.mxu1 %v9783_v45  ;;  %v5223_v24 = vsub.f32 %v13408_v15, %v16268_v35  ;;  %v5218_v63 = vand.u32 4294901760, %v5217_v39  ;;  %v16271_v45 = vand.u32 4294901760, %v13420_v44  ;;  %v16272_v14 = vld [vmem:[#allocation45_spill] sm:$0xff]  ;;  %v16273_v39 = vand.u32 4294901760, %v13431_v26  ;;  %v16278_v35 = vld [vmem:[#allocation47_spill] sm:$0xff] }
 0x5d4   : > { %v5235_v54 = vsub.f32 %v13410_v30, %v16269_v28  ;;  %v16274_v28 = vand.u32 4294901760, %v13442_v4  ;;  %v16275_v49 = vand.u32 4294901760, %v13444_v18  ;;  %v16281_v1 = vand.u32 4294901760, %v13459_v17 }
 0x5d5   : > { %5142 = vmatmul.mubr.f32.vlgmr.msra.gmra.mrb[12].mxu1 %v16270_v31  ;;  %v5229_v0 = vsub.f32 %v13420_v44, %v16271_v45  ;;  %v5241_v47 = vsub.f32 %v13431_v26, %v16273_v39  ;;  %v16276_v45 = vand.u32 4294901760, %v13455_v52  ;;  %v5224_v13 = vand.u32 4294901760, %v5223_v24 }
 0x5d6   : > { %9666 = vmatpush1.bf16.msra.mxu0 %v16272_v14  ;;  %9786 = vmatpush1.bf16.msra.mxu1 %v9785_v20  ;;  %v5247_v23 = vsub.f32 %v13442_v4, %v16274_v28  ;;  %v5259_v46 = vsub.f32 %v13444_v18, %v16275_v49  ;;  %v9791_v20 = vpack.c.bf16 %v5212_v33, %v5200_v3  ;;  %v5236_v31 = vand.u32 4294901760, %v5235_v54  ;;  %v16295_v33 = vld [vmem:[#allocation72_spill] sm:$0xff] }
 0x5d7   : > { %v13633_v10 = vsub.f32 %v13455_v52, %v16276_v45  ;;  %9668 = vmatprep.subr.bf16.mxu0 %v16278_v35  ;;  %9788 = vmatprep.subr.bf16.mxu1 %v9787_v48  ;;  %v16279_v39 = vand.u32 4294901760, %v13473_v5  ;;  %v9793_v28 = vpack.c.bf16 %v5218_v63, %v5206_v56  ;;  %v5253_v49 = vsub.f32 %v13459_v17, %v16281_v1  ;;  %v16285_v56 = vld [vmem:[#allocation48_spill] sm:$0xff] }
 0x5d8   : > { %v16282_v18 = vand.u32 4294901760, %v13464_v19  ;;  %5372 = vmatprep.mubr.f32.mxu1 %v15970_v59  ;;  %v16283_v48 = vand.u32 4294901760, %v13500_v21  ;;  %v16284_v3 = vand.u32 4294901760, %v13511_v51  ;;  %v5230_v1 = vand.u32 4294901760, %v5229_v0 }
 0x5d9   : > { %16277 = vst [vmem:[#allocation103_spill] sm:$0xff] %v13633_v10  ;;  %v13639_v14 = vsub.f32 %v13473_v5, %v16279_v39  ;;  %v5242_v63 = vand.u32 4294901760, %v5241_v47  ;;  %v5260_v45 = vand.u32 4294901760, %v5259_v46  ;;  %v16286_v39 = vand.u32 4294901760, %v13475_v34 }
 0x5da   : > { %v5265_v52 = vsub.f32 %v13464_v19, %v16282_v18  ;;  %v5271_v54 = vsub.f32 %v13500_v21, %v16283_v48  ;;  %v5283_v5 = vsub.f32 %v13511_v51, %v16284_v3  ;;  %9670 = vmatpush1.bf16.msra.mxu0 %v16285_v56  ;;  %9790 = vmatpush1.bf16.msra.mxu1 %v9789_v9  ;;  %v5248_v18 = vand.u32 4294901760, %v5247_v23  ;;  %v16288_v48 = vld [vmem:[#allocation49_spill] sm:$0xff] }
 0x5db   : > { %16280 = vst [vmem:[#allocation104_spill] sm:$0xff] %v13639_v14  ;;  %v13660_v35 = vsub.f32 %v13475_v34, %v16286_v39  ;;  %9672 = vmatprep.subr.bf16.mxu0 %v16288_v48  ;;  %9792 = vmatprep.subr.bf16.mxu1 %v9791_v20  ;;  %v9795_v3 = vpack.c.bf16 %v5236_v31, %v5224_v13  ;;  %v16289_v56 = vand.u32 4294901760, %v13479_v7  ;;  %v16291_v23 = vand.u32 4294901760, %v13481_v2 }
 0x5dc   : > { %v5254_v34 = vand.u32 4294901760, %v5253_v49  ;;  %v5266_v47 = vand.u32 4294901760, %v5265_v52  ;;  %v5272_v46 = vand.u32 4294901760, %v5271_v54  ;;  %v5284_v39 = vand.u32 4294901760, %v5283_v5  ;;  %v16296_v52 = vld [vmem:[#allocation86_spill] sm:$0xff]  ;;  %v16299_v49 = vld [vmem:[#allocation89_spill] sm:$0xff] }
 0x5dd   : > { %16287 = vst [vmem:[#allocation105_spill] sm:$0xff] %v13660_v35  ;;  %v13668_v9 = vsub.f32 %v13479_v7, %v16289_v56  ;;  %v13673_v0 = vsub.f32 %v13481_v2, %v16291_v23  ;;  %v16293_v31 = vand.u32 4294901760, %v13537_v58  ;;  %v16294_v20 = vand.u32 4294901760, %v13550_v57 }
 0x5de   : > { %9674 = vmatpush1.bf16.msra.mxu0 %v16295_v33  ;;  %9794 = vmatpush1.bf16.msra.mxu1 %v9793_v28  ;;  %v9797_v7 = vpack.c.bf16 %v5242_v63, %v5230_v1  ;;  %v9799_v56 = vpack.c.bf16 %v5260_v45, %v5248_v18  ;;  %v15719_v2 = vand.u32 4294901760, %v13590_v36  ;;  %v16297_v54 = vand.u32 4294901760, %v13553_v40  ;;  %v16301_v28 = vld [vmem:[#allocation91_spill] sm:$0xff] }
 0x5df   : > { %16290 = vst [vmem:[#allocation106_spill] sm:$0xff] %v13668_v9  ;;  %16292 = vst [vmem:[#allocation107_spill] sm:$0xff] %v13673_v0  ;;  %v5277_v13 = vsub.f32 %v13537_v58, %v16293_v31  ;;  %v5289_v24 = vsub.f32 %v13550_v57, %v16294_v20  ;;  %9676 = vmatprep.subr.bf16.mxu0 %v16296_v52  ;;  %9796 = vmatprep.subr.bf16.mxu1 %v9795_v3  ;;  %v16298_v23 = vand.u32 4294901760, %v13585_v32 }
 0x5e0   : > { %v5295_v5 = vsub.f32 %v13553_v40, %v16297_v54  ;;  %v9801_v1 = vpack.c.bf16 %v5266_v47, %v5254_v34  ;;  %v9803_v63 = vpack.c.bf16 %v5284_v39, %v5272_v46  ;;  %v5301_v3 = vsub.f32 %v13590_v36, %v15719_v2  ;;  %v16304_v2 = vld [vmem:[#allocation94_spill] sm:$0xff] }
 0x5e1   : > { %v5307_v31 = vsub.f32 %v13585_v32, %v16298_v23  ;;  %v5278_v18 = vand.u32 4294901760, %v5277_v13  ;;  %v5290_v45 = vand.u32 4294901760, %v5289_v24  ;;  %v16300_v54 = vand.u32 4294901760, %v13633_v10 }
 0x5e2   : > { %9678 = vmatpush1.bf16.msra.mxu0 %v16299_v49  ;;  %9798 = vmatpush1.bf16.msra.mxu1 %v9797_v7  ;;  %v5296_v34 = vand.u32 4294901760, %v5295_v5  ;;  %v16302_v47 = vand.u32 4294901760, %v13639_v14  ;;  %v16303_v39 = vand.u32 4294901760, %v13660_v35  ;;  %v16305_v20 = vand.u32 4294901760, %v13668_v9  ;;  %v16313_v49 = vld [vmem:[#allocation37_spill] sm:$0xff] }
 0x5e3   : > { %v5313_v52 = vsub.f32 %v13633_v10, %v16300_v54  ;;  %9680 = vmatprep.subr.bf16.mxu0 %v16301_v28  ;;  %9800 = vmatprep.subr.bf16.mxu1 %v9799_v56  ;;  %v5308_v24 = vand.u32 4294901760, %v5307_v31  ;;  %v9805_v7 = vpack.c.bf16 %v5290_v45, %v5278_v18  ;;  %v5302_v54 = vand.u32 4294901760, %v5301_v3  ;;  %v16307_v28 = vld [vmem:[#allocation95_spill] sm:$0xff] }
 0x5e4   : > { %v5319_v46 = vsub.f32 %v13639_v14, %v16302_v47  ;;  %v5331_v13 = vsub.f32 %v13660_v35, %v16303_v39  ;;  %v5325_v56 = vsub.f32 %v13668_v9, %v16305_v20  ;;  %v16306_v5 = vand.u32 4294901760, %v13673_v0 }
 0x5e5   : > { %v5314_v23 = vand.u32 4294901760, %v5313_v52  ;;  %v16308_v47 = vand.u32 4294901760, %v12915_v25  ;;  %v16309_v18 = vand.u32 4294901760, %v12917_v8  ;;  %v9807_v39 = vpack.c.bf16 %v5308_v24, %v5296_v34  ;;  %v16310_v52 = vld [vmem:[#allocation74_spill] sm:$0xff]  ;;  %v16317_v8 = vld [vmem:[#allocation40_spill] sm:$0xff] }
 0x5e6   : > { %9682 = vmatpush1.bf16.msra.mxu0 %v16304_v2  ;;  %9802 = vmatpush1.bf16.msra.mxu1 %v9801_v1  ;;  %v5337_v31 = vsub.f32 %v13673_v0, %v16306_v5  ;;  %v5320_v1 = vand.u32 4294901760, %v5319_v46  ;;  %v5332_v3 = vand.u32 4294901760, %v5331_v13  ;;  %v16311_v2 = vld [vmem:[#allocation36_spill] sm:$0xff]  ;;  %v16314_v33 = vand.u32 4294901760, %v16313_v49  ;;  %v16315_v25 = vld [vmem:[#allocation38_spill] sm:$0xff]  ;;  %v16320_v13 = vld [vmem:[#allocation53_spill] sm:$0xff] }
 0x5e7   : > { %9684 = vmatprep.subr.bf16.mxu0 %v16307_v28  ;;  %9804 = vmatprep.subr.bf16.mxu1 %v9803_v63  ;;  %v9687_v45 = vpack.c.bf16 %v16309_v18, %v16308_v47  ;;  %v16312_v20 = vand.u32 4294901760, %v16311_v2  ;;  %v9809_v5 = vpack.c.bf16 %v5314_v23, %v5302_v54  ;;  %v5326_v0 = vand.u32 4294901760, %v5325_v56  ;;  %v16319_v46 = vld [vmem:[#allocation58_spill] sm:$0xff] }
 0x5e8   : > { %v5338_v28 = vand.u32 4294901760, %v5337_v31  ;;  %v16316_v63 = vand.u32 4294901760, %v16315_v25  ;;  %v16318_v47 = vand.u32 4294901760, %v16317_v8  ;;  %v9811_v24 = vpack.c.bf16 %v5332_v3, %v5320_v1  ;;  %v16324_v54 = vld [vmem:[#allocation42_spill] sm:$0xff]  ;;  %v16326_v31 = vld [vmem:[#allocation44_spill] sm:$0xff] }
 0x5e9   : > { %v9689_v48 = vpack.c.bf16 %v16314_v33, %v16312_v20  ;;  %v16321_v2 = vand.u32 4294901760, %v16320_v13  ;;  %v16325_v56 = vand.u32 4294901760, %v16324_v54  ;;  %v16327_v18 = vand.u32 4294901760, %v16326_v31  ;;  %v16329_v1 = vld [vmem:[#allocation46_spill] sm:$0xff]  ;;  %v16345_v31 = vld [vmem:[#allocation87_spill] sm:$0xff] }
 0x5ea   : > { %9686 = vmatpush1.bf16.msra.mxu0 %v16310_v52  ;;  %9806 = vmatpush1.bf16.msra.mxu1 %v9805_v7  ;;  %v9691_v34 = vpack.c.bf16 %v16318_v47, %v16316_v63  ;;  %v16322_v7 = vld [vmem:[#allocation41_spill] sm:$0xff]  ;;  %v9813_v23 = vpack.c.bf16 %v5338_v28, %v5326_v0  ;;  %v16330_v3 = vand.u32 4294901760, %v16329_v1  ;;  %v9817_v0 = vpack.c.bf16 %v13349_v61, %v13347_v11 }
 0x5eb   : > { %9688 = vmatprep.subr.bf16.mxu0 %v9687_v45  ;;  %9808 = vmatprep.subr.bf16.mxu1 %v9807_v39  ;;  %v16323_v49 = vand.u32 4294901760, %v16322_v7  ;;  %v9695_v45 = vpack.c.bf16 %v16327_v18, %v16325_v56  ;;  %v9815_v39 = vpack.c.bf16 %v13345_v29, %v13343_v37  ;;  %v16331_v28 = vand.u32 4294901760, %v12994_v22  ;;  %v16340_v7 = vld [vmem:[#allocation84_spill] sm:$0xff] }
 0x5ec   : > { %v9819_v63 = vpack.c.bf16 %v13359_v62, %v13357_v50  ;;  %v16334_v8 = vand.u32 4294901760, %v13009_v38  ;;  %v16335_v22 = vand.u32 4294901760, %v13025_v41  ;;  %v16343_v41 = vld [vmem:[#allocation85_spill] sm:$0xff]  ;;  %v16346_v18 = vand.u32 4294901760, %v16345_v31 }
 0x5ed   : > { %4762 = vmatmul.mubr.f32.vlgmr.msra.gmra.mrb[2].mxu0 %v16319_v46  ;;  %v9693_v33 = vpack.c.bf16 %v16323_v49, %v16321_v2  ;;  %v9823_v2 = vpack.c.bf16 %v13391_v12, %v13385_v27  ;;  %v16341_v49 = vand.u32 4294901760, %v16340_v7  ;;  %v16344_v56 = vand.u32 4294901760, %v16343_v41 }
 0x5ee   : > { %9690 = vmatpush1.bf16.msra.mxu0 %v9689_v48  ;;  %9810 = vmatpush1.bf16.msra.mxu1 %v9809_v5  ;;  %v16328_v48 = vand.u32 4294901760, %v12969_v60  ;;  %v16332_v5 = vand.u32 4294901760, %v13000_v53  ;;  %v16333_v60 = vand.u32 4294901760, %v13002_v16  ;;  %v16336_v53 = vld [vmem:[#allocation50_spill] sm:$0xff]  ;;  %v16338_v16 = vld [vmem:[#allocation71_spill] sm:$0xff]  ;;  %v9835_v41 = vpack.c.bf16 %v13511_v51, %v13500_v21 }
 0x5ef   : > { %9692 = vmatprep.subr.bf16.mxu0 %v9691_v34  ;;  %9812 = vmatprep.subr.bf16.mxu1 %v9811_v24  ;;  %v9821_v34 = vpack.c.bf16 %v13372_v43, %v13370_v6  ;;  %v16337_v24 = vand.u32 4294901760, %v16336_v53  ;;  %v16339_v38 = vand.u32 4294901760, %v16338_v16  ;;  %v9833_v16 = vpack.c.bf16 %v13464_v19, %v13459_v17 }
 0x5f0   : > { %4928 = vmatprep.mubr.f32.mxu0 %v15970_v59  ;;  %v9697_v20 = vpack.c.bf16 %v16330_v3, %v16328_v48  ;;  %v9699_v25 = vpack.c.bf16 %v16332_v5, %v16331_v28  ;;  %v9701_v47 = vpack.c.bf16 %v16334_v8, %v16333_v60  ;;  %v16347_v48 = vld [vmem:[#allocation88_spill] sm:$0xff]  ;;  %v16349_v3 = vld [vmem:[#allocation90_spill] sm:$0xff]  ;;  %v9829_v28 = vpack.c.bf16 %v13431_v26, %v13420_v44 }
 0x5f1   : > { %v9703_v13 = vpack.c.bf16 %v16337_v24, %v16335_v22  ;;  %v16348_v1 = vand.u32 4294901760, %v16347_v48  ;;  %v16351_v5 = vld [vmem:[#allocation92_spill] sm:$0xff]  ;;  %v16356_v22 = vld [vmem:[#allocation73_spill] sm:$0xff]  ;;  %v16358_v24 = vld [vmem:[#allocation75_spill] sm:$0xff]  ;;  %v9837_v48 = vpack.c.bf16 %v13550_v57, %v13537_v58 }
 0x5f2   : > { %9694 = vmatpush1.bf16.msra.mxu0 %v9693_v33  ;;  %9814 = vmatpush1.bf16.msra.mxu1 %v9813_v23  ;;  %v9705_v33 = vpack.c.bf16 %v16341_v49, %v16339_v38  ;;  %v16342_v23 = vld [vmem:[#allocation61_spill] sm:$0xff]  ;;  %v16357_v53 = vand.u32 4294901760, %v16356_v22  ;;  %v16362_v49 = vld [vmem:[#allocation78_spill] sm:$0xff] }
 0x5f3   : > { %9696 = vmatprep.subr.bf16.mxu0 %v9695_v45  ;;  %9816 = vmatprep.subr.bf16.mxu1 %v9815_v39  ;;  %v9825_v54 = vpack.c.bf16 %v13401_v55, %v16342_v23  ;;  %v9707_v45 = vpack.c.bf16 %v16346_v18, %v16344_v56  ;;  %v9827_v39 = vpack.c.bf16 %v13410_v30, %v13408_v15  ;;  %v16360_v38 = vld [vmem:[#allocation77_spill] sm:$0xff]  ;;  %v16364_v56 = vld [vmem:[#allocation79_spill] sm:$0xff]  ;;  %v16366_v18 = vld [vmem:[#allocation80_spill] sm:$0xff] }
 0x5f4   : > { %v16361_v7 = vand.u32 4294901760, %v16360_v38  ;;  %v16365_v31 = vand.u32 4294901760, %v16364_v56  ;;  %v16375_v38 = vld [vmem:[#allocation56_spill] sm:$0xff]  ;;  %v16414_v58 = vld [vmem:[#allocation69_spill] sm:$0xff] }
 0x5f5   : > { %5374 = vmatmul.mubr.f32.vlgmr.msra.gmra.mrb[12].mxu1 %v16055_v42 }
 0x5f6   : > { %9698 = vmatpush1.bf16.msra.mxu0 %v9697_v20  ;;  %9818 = vmatpush1.bf16.msra.mxu1 %v9817_v0  ;;  %v16350_v20 = vand.u32 4294901760, %v16349_v3  ;;  %v9841_v3 = vpack.c.bf16 %v13633_v10, %v13590_v36 }
 0x5f7   : > { %9700 = vmatprep.subr.bf16.mxu0 %v9699_v25  ;;  %9820 = vmatprep.subr.bf16.mxu1 %v9819_v63  ;;  %v16352_v25 = vand.u32 4294901760, %v16351_v5  ;;  %v16353_v63 = vld [vmem:[#allocation93_spill] sm:$0xff]  ;;  %v16370_v5 = vld [vmem:[#allocation107_spill] sm:$0xff] }
 0x5f8   : > { %5508 = vmatprep.mubr.f32.mxu1 %v15970_v59  ;;  %v9709_v0 = vpack.c.bf16 %v16350_v20, %v16348_v1  ;;  %v16354_v60 = vand.u32 4294901760, %v16353_v63  ;;  %v9839_v1 = vpack.c.bf16 %v13585_v32, %v13553_v40  ;;  %v16368_v20 = vld [vmem:[#allocation51_spill] sm:$0xff]  ;;  %v16392_v32 = vld [vmem:[#allocation89_spill] sm:$0xff] }
 0x5f9   : > { %v16371_v63 = vld [vmem:[#allocation39_spill] sm:$0xff] }
 0x5fa   : > { %9702 = vmatpush1.bf16.msra.mxu0 %v9701_v47  ;;  %9822 = vmatpush1.bf16.msra.mxu1 %v9821_v34  ;;  %v9711_v8 = vpack.c.bf16 %v16354_v60, %v16352_v25  ;;  %v16355_v47 = vld [vmem:[#allocation65_spill] sm:$0xff]  ;;  %v9845_v25 = vpack.c.bf16 %v16370_v5, %v13668_v9 }
 0x5fb   : > { %9704 = vmatprep.subr.bf16.mxu0 %v9703_v13  ;;  %9824 = vmatprep.subr.bf16.mxu1 %v9823_v2  ;;  %v9831_v34 = vpack.c.bf16 %v16355_v47, %v13442_v4  ;;  %v16359_v13 = vand.u32 4294901760, %v16358_v24  ;;  %v2905_v60 = vld [vmem:[#allocation18 + $0x38] sm:$0xff]  ;;  %v16373_v24 = vld [vmem:[#allocation43_spill] sm:$0xff] }
 0x5fc   : > { %v2953_v22 = vunpack.c.0.s8 %v2905_v60 }
 0x5fd   : > { %v9713_v2 = vpack.c.bf16 %v16359_v13, %v16357_v53  ;;  %v2965_v53 = vunpack.c.1.s8 %v2905_v60  ;;  %v16374_v13 = vld [vmem:[#allocation81_spill] sm:$0xff] }
 0x5fe   : > { %9706 = vmatpush1.bf16.msra.mxu0 %v9705_v33  ;;  %9826 = vmatpush1.bf16.msra.mxu1 %v9825_v54  ;;  %v16363_v33 = vand.u32 4294901760, %v16362_v49  ;;  %v2989_v49 = vunpack.c.3.s8 %v2905_v60 }
 0x5ff   : > { %9708 = vmatprep.subr.bf16.mxu0 %v9707_v45  ;;  %9828 = vmatprep.subr.bf16.mxu1 %v9827_v39  ;;  %v16367_v45 = vand.u32 4294901760, %v16366_v18  ;;  %v3157_v56 = vcvt.s32.f32 %v2965_v53  ;;  %v16379_v18 = vld [vmem:[#allocation83_spill] sm:$0xff] }
 0x600   : > { %v9715_v54 = vpack.c.bf16 %v16363_v33, %v16361_v7  ;;  %v2977_v7 = vunpack.c.2.s8 %v2905_v60  ;;  %v16376_v33 = vld [vmem:[#allocation45_spill] sm:$0xff] }
 0x601   : > { %v9717_v39 = vpack.c.bf16 %v16367_v45, %v16365_v31  ;;  %v16378_v31 = vld [vmem:[#allocation47_spill] sm:$0xff]  ;;  %v2917_v60 = vld [vmem:[#allocation18 + $0x98] sm:$0xff] }
 0x602   : > { %9710 = vmatpush1.bf16.msra.mxu0 %v9709_v0  ;;  %9830 = vmatpush1.bf16.msra.mxu1 %v9829_v28  ;;  %v9843_v0 = vpack.c.bf16 %v13660_v35, %v13639_v14  ;;  %v16369_v28 = vld [vmem:[#allocation35_spill] sm:$0xff] }
 0x603   : > { %9712 = vmatprep.subr.bf16.mxu0 %v9711_v8  ;;  %9832 = vmatprep.subr.bf16.mxu1 %v9831_v34  ;;  %v2904_v8 = vld [vmem:[#allocation18 + $0x30] sm:$0xff]  ;;  %v16372_v34 = vld [vmem:[#allocation54_spill] sm:$0xff] }
 0x606   : > { %9714 = vmatpush1.bf16.msra.mxu0 %v9713_v2  ;;  %9834 = vmatpush1.bf16.msra.mxu1 %v9833_v16  ;;  %v2952_v2 = vunpack.c.0.s8 %v2904_v8  ;;  %v2964_v16 = vunpack.c.1.s8 %v2904_v8 }
 0x607   : > { %9716 = vmatprep.subr.bf16.mxu0 %v9715_v54  ;;  %9836 = vmatprep.subr.bf16.mxu1 %v9835_v41  ;;  %v16377_v54 = vld [vmem:[#allocation82_spill] sm:$0xff]  ;;  %v3145_v41 = vcvt.s32.f32 %v2953_v22  ;;  %v16383_v22 = vld [vmem:[#allocation57_spill] sm:$0xff] }
 0x608   : > { %v3144_v45 = vcvt.s32.f32 %v2952_v2 }
 0x60a   : > { %9718 = vmatpush1.bf16.msra.mxu0 %v9717_v39  ;;  %9838 = vmatpush1.bf16.msra.mxu1 %v9837_v48  ;;  %v3156_v39 = vcvt.s32.f32 %v2964_v16  ;;  %v2976_v48 = vunpack.c.2.s8 %v2904_v8  ;;  %v5897_v53 = vand.u32 4294901760, %v3144_v45 }
 0x60b   : > { %9720 = vmatprep.subr.bf16.mxu0 %v16368_v20  ;;  %9840 = vmatprep.subr.bf16.mxu1 %v9839_v1  ;;  %v2988_v1 = vunpack.c.3.s8 %v2904_v8  ;;  %v3181_v20 = vcvt.s32.f32 %v2989_v49  ;;  %v2916_v8 = vld [vmem:[#allocation18 + $0x90] sm:$0xff]  ;;  %v3013_v49 = vunpack.c.1.s8 %v2917_v60 }
 0x60c   : > { %v3168_v2 = vcvt.s32.f32 %v2976_v48  ;;  %v13848_v35 = vsub.f32 %v3144_v45, %v5897_v53  ;;  %v3024_v40 = vunpack.c.2.s8 %v2916_v8  ;;  %v3036_v57 = vunpack.c.3.s8 %v2916_v8  ;;  %v16395_v45 = vld [vmem:[#allocation64_spill] sm:$0xff] }
 0x60d   : > { %4930 = vmatmul.mubr.f32.vlgmr.msra.gmra.mrb[2].mxu0 %v16055_v42  ;;  %v3180_v16 = vcvt.s32.f32 %v2988_v1 }
 0x60e   : > { %9722 = vmatpush1.bf16.msra.mxu0 %v16369_v28  ;;  %9842 = vmatpush1.bf16.msra.mxu1 %v9841_v3  ;;  %v3169_v3 = vcvt.s32.f32 %v2977_v7  ;;  %v16381_v28 = vld [vmem:[#allocation52_spill] sm:$0xff]  ;;  %v3001_v7 = vunpack.c.0.s8 %v2917_v60  ;;  %v5905_v1 = vand.u32 4294901760, %v3168_v2 }
 0x60f   : > { %9724 = vmatprep.subr.bf16.mxu0 %v16371_v63  ;;  %9844 = vmatprep.subr.bf16.mxu1 %v9843_v0  ;;  %v16380_v0 = vld [vmem:[#allocation48_spill] sm:$0xff]  ;;  %v5899_v63 = vand.u32 4294901760, %v3157_v56  ;;  %v5909_v5 = vand.u32 4294901760, %v3180_v16 }
 0x610   : > { %5032 = vmatprep.mubr.f32.mxu0 %v15970_v59  ;;  %v3193_v36 = vcvt.s32.f32 %v3001_v7 }
 0x611   : > { %v13846_v9 = vsub.f32 %v3157_v56, %v5899_v63  ;;  %v16394_v56 = vld [vmem:[#allocation91_spill] sm:$0xff] }
 0x612   : > { %9726 = vmatpush1.bf16.msra.mxu0 %v16372_v34  ;;  %9846 = vmatpush1.bf16.msra.mxu1 %v9845_v25  ;;  %v5895_v25 = vand.u32 4294901760, %v3145_v41  ;;  %v16382_v34 = vld [vmem:[#allocation49_spill] sm:$0xff] }
 0x613   : > { %9728 = vmatprep.subr.bf16.mxu0 %v16373_v24  ;;  %9848 = vmatprep.subr.bf16.mxu1 %v16374_v13  ;;  %v5901_v24 = vand.u32 4294901760, %v3156_v39 }
 0x614   : > { %v13842_v13 = vsub.f32 %v3145_v41, %v5895_v25  ;;  %v16393_v41 = vld [vmem:[#allocation63_spill] sm:$0xff] }
 0x615   : > { %5511 = vmatmul.mubr.f32.vlgmr.msra.gmra.mrb[12].mxu1 %v16375_v38  ;;  %v16384_v38 = vld [vmem:[#allocation72_spill] sm:$0xff]  ;;  %v13844_v48 = vpack.c.bf16 %v5901_v24, %v5897_v53  ;;  %v13850_v14 = vsub.f32 %v3156_v39, %v5901_v24  ;;  %v13864_v53 = vsub.f32 %v3168_v2, %v5905_v1  ;;  %v13866_v24 = vsub.f32 %v3180_v16, %v5909_v5  ;;  %v16406_v16 = vld [vmem:[#allocation66_spill] sm:$0xff] }
 0x616   : > { %9730 = vmatpush1.bf16.msra.mxu0 %v16376_v33  ;;  %9850 = vmatpush1.bf16.msra.mxu1 %v16377_v54  ;;  %v5903_v33 = vand.u32 4294901760, %v3169_v3  ;;  %v3012_v54 = vunpack.c.1.s8 %v2916_v8  ;;  %v16404_v2 = vand.u32 4294901760, %v13349_v61 }
 0x617   : > { %9732 = vmatprep.subr.bf16.mxu0 %v16378_v31  ;;  %9852 = vmatprep.subr.bf16.mxu1 %v16379_v18  ;;  %v5907_v31 = vand.u32 4294901760, %v3181_v20  ;;  %v3000_v18 = vunpack.c.0.s8 %v2916_v8  ;;  %16389 = vst [vmem:[#allocation36_spill] sm:$0xff] %v13844_v48  ;;  %16390 = vst [vmem:[#allocation37_spill] sm:$0xff] %v13850_v14  ;;  %v16401_v8 = vand.u32 4294901760, %v13343_v37  ;;  %v3228_v37 = vcvt.s32.f32 %v3036_v57 }
 0x618   : > { %5613 = vmatprep.mubr.f32.mxu1 %v15970_v59  ;;  %16399 = vst [vmem:[#allocation42_spill] sm:$0xff] %v13864_v53  ;;  %16400 = vst [vmem:[#allocation44_spill] sm:$0xff] %v13866_v24 }
 0x619   : > { %v13852_v10 = vpack.c.bf16 %v5907_v31, %v5903_v33  ;;  %v13860_v39 = vsub.f32 %v3181_v20, %v5907_v31 }
 0x61a   : > { %9734 = vmatpush1.bf16.msra.mxu0 %v16380_v0  ;;  %9854 = vmatpush1.bf16.msra.mxu1 %v16381_v28  ;;  %v16385_v0 = vld [vmem:[#allocation59_spill] sm:$0xff]  ;;  %v13838_v28 = vpack.c.bf16 %v5899_v63, %v5895_v25  ;;  %v3192_v25 = vcvt.s32.f32 %v3000_v18  ;;  %v13858_v63 = vsub.f32 %v3169_v3, %v5903_v33  ;;  %v2929_v18 = vld [vmem:[#allocation18 + $0xf8] sm:$0xff]  ;;  %v5911_v3 = vand.u32 4294901760, %v3193_v36 }
 0x61b   : > { %9736 = vmatprep.subr.bf16.mxu0 %v16382_v34  ;;  %9856 = vmatprep.subr.bf16.mxu1 %v16383_v22  ;;  %v16387_v34 = vld [vmem:[#allocation86_spill] sm:$0xff]  ;;  %16391 = vst [vmem:[#allocation38_spill] sm:$0xff] %v13852_v10  ;;  %16397 = vst [vmem:[#allocation53_spill] sm:$0xff] %v13860_v39  ;;  %v16403_v33 = vand.u32 4294901760, %v13347_v11 }
 0x61c   : > { %16386 = vst [vmem:[#allocation74_spill] sm:$0xff] %v13838_v28  ;;  %v16388_v22 = vld [vmem:[#allocation62_spill] sm:$0xff]  ;;  %16396 = vst [vmem:[#allocation40_spill] sm:$0xff] %v13858_v63  ;;  %v5925_v63 = vand.u32 4294901760, %v3228_v37 }
 0x61d   : > { %v13880_v31 = vpack.c.bf16 %v16404_v2, %v16403_v33 }
 0x61e   : > { %9738 = vmatpush1.bf16.msra.mxu0 %v16384_v38  ;;  %9858 = vmatpush1.bf16.msra.mxu1 %v16385_v0  ;;  %v3025_v38 = vunpack.c.2.s8 %v2917_v60  ;;  %v3037_v0 = vunpack.c.3.s8 %v2917_v60  ;;  %v13862_v60 = vpack.c.bf16 %v5909_v5, %v5905_v1  ;;  %v16405_v5 = vld [vmem:[#allocation94_spill] sm:$0xff] }
 0x61f   : > { %9740 = vmatprep.subr.bf16.mxu0 %v16387_v34  ;;  %9860 = vmatprep.subr.bf16.mxu1 %v16388_v22  ;;  %v3205_v34 = vcvt.s32.f32 %v3013_v49  ;;  %v3204_v22 = vcvt.s32.f32 %v3012_v54  ;;  %v13868_v54 = vld [vmem:[#allocation18 + $0xf0] sm:$0xff]  ;;  %v16402_v49 = vand.u32 4294901760, %v13345_v29  ;;  %v16408_v29 = vld [vmem:[#allocation67_spill] sm:$0xff] }
 0x620   : > { %16398 = vst [vmem:[#allocation41_spill] sm:$0xff] %v13862_v60  ;;  %v3229_v7 = vcvt.s32.f32 %v3037_v0  ;;  %v5913_v0 = vand.u32 4294901760, %v3192_v25  ;;  %v3048_v11 = vunpack.c.0.s8 %v13868_v54  ;;  %v3060_v61 = vunpack.c.1.s8 %v13868_v54 }
 0x621   : > { %v5915_v20 = vand.u32 4294901760, %v3205_v34  ;;  %v5917_v1 = vand.u32 4294901760, %v3204_v22 }
 0x622   : > { %9742 = vmatpush1.bf16.msra.mxu0 %v16392_v32  ;;  %9862 = vmatpush1.bf16.msra.mxu1 %v16393_v41  ;;  %v3217_v32 = vcvt.s32.f32 %v3025_v38  ;;  %v3216_v38 = vcvt.s32.f32 %v3024_v40  ;;  %v5923_v2 = vand.u32 4294901760, %v3229_v7  ;;  %v3073_v41 = vunpack.c.2.s8 %v2929_v18 }
 0x623   : > { %9744 = vmatprep.subr.bf16.mxu0 %v16394_v56  ;;  %9864 = vmatprep.subr.bf16.mxu1 %v16395_v45  ;;  %v13874_v56 = vpack.c.bf16 %v16402_v49, %v16401_v8  ;;  %v16407_v45 = vld [vmem:[#allocation95_spill] sm:$0xff]  ;;  %v3049_v8 = vunpack.c.0.s8 %v2929_v18  ;;  %v3061_v49 = vunpack.c.1.s8 %v2929_v18  ;;  %v13888_v24 = vpack.c.bf16 %v5915_v20, %v5911_v3 }
 0x624   : > { %v5919_v33 = vand.u32 4294901760, %v3217_v32  ;;  %v13892_v40 = vsub.f32 %v3205_v34, %v5915_v20  ;;  %v13894_v57 = vsub.f32 %v3192_v25, %v5913_v0  ;;  %v13900_v53 = vsub.f32 %v3204_v22, %v5917_v1 }
 0x625   : > { %16409 = vst [vmem:[#allocation46_spill] sm:$0xff] %v13888_v24  ;;  %v5921_v39 = vand.u32 4294901760, %v3216_v38  ;;  %v3240_v34 = vcvt.s32.f32 %v3048_v11  ;;  %v16415_v25 = vand.u32 4294901760, %v13357_v50  ;;  %v16422_v50 = vand.u32 4294901760, %v13385_v27 }
 0x626   : > { %9746 = vmatpush1.bf16.msra.mxu0 %v16405_v5  ;;  %9866 = vmatpush1.bf16.msra.mxu1 %v16406_v16  ;;  %v3085_v5 = vunpack.c.3.s8 %v2929_v18  ;;  %v13890_v16 = vsub.f32 %v3193_v36, %v5911_v3  ;;  %16411 = vst [vmem:[#allocation71_spill] sm:$0xff] %v13892_v40  ;;  %v3241_v36 = vcvt.s32.f32 %v3049_v8  ;;  %v3253_v18 = vcvt.s32.f32 %v3061_v49 }
 0x627   : > { %9748 = vmatprep.subr.bf16.mxu0 %v16407_v45  ;;  %9868 = vmatprep.subr.bf16.mxu1 %v16408_v29  ;;  %v16412_v45 = vld [vmem:[#allocation68_spill] sm:$0xff]  ;;  %v13898_v29 = vpack.c.bf16 %v5917_v1, %v5913_v0  ;;  %v3252_v3 = vcvt.s32.f32 %v3060_v61  ;;  %v3265_v0 = vcvt.s32.f32 %v3073_v41  ;;  %v13911_v1 = vsub.f32 %v3217_v32, %v5919_v33 }
 0x628   : > { %16410 = vst [vmem:[#allocation50_spill] sm:$0xff] %v13890_v16  ;;  %v3277_v22 = vcvt.s32.f32 %v3085_v5  ;;  %v16420_v8 = vand.u32 4294901760, %v13370_v6  ;;  %v16421_v49 = vand.u32 4294901760, %v13372_v43  ;;  %v16424_v41 = vld [vmem:[#allocation76_spill] sm:$0xff]  ;;  %v13929_v32 = vpack.c.bf16 %v5925_v63, %v5921_v39  ;;  %v16428_v5 = vld [vmem:[#allocation97_spill] sm:$0xff] }
 0x629   : > { %16413 = vst [vmem:[#allocation84_spill] sm:$0xff] %v13898_v29  ;;  %16418 = vst [vmem:[#allocation85_spill] sm:$0xff] %v13911_v1  ;;  %v16427_v6 = vand.u32 4294901760, %v13401_v55  ;;  %v3072_v43 = vunpack.c.2.s8 %v13868_v54  ;;  %v3084_v27 = vunpack.c.3.s8 %v13868_v54  ;;  %v13947_v55 = vsub.f32 %v3228_v37, %v5925_v63 }
 0x62a   : > { %9750 = vmatpush1.bf16.msra.mxu0 %v16310_v52  ;;  %9870 = vmatpush1.bf16.msra.mxu1 %v16412_v45  ;;  %v16416_v52 = vand.u32 4294901760, %v13359_v62  ;;  %v13908_v45 = vpack.c.bf16 %v5923_v2, %v5919_v33  ;;  %v13919_v11 = vpack.c.bf16 %v16421_v49, %v16420_v8  ;;  %v16423_v62 = vand.u32 4294901760, %v13391_v12  ;;  %16425 = vst [vmem:[#allocation88_spill] sm:$0xff] %v13929_v32  ;;  %v13941_v12 = vld [vmem:[#allocation18 + $0x150] sm:$0xff] }
 0x62b   : > { %9872 = vmatprep.subr.bf16.mxu1 %v16414_v58  ;;  %9944 = vmatprep.subr.bf16.mxu0 %v13838_v28  ;;  %v13913_v58 = vsub.f32 %v3229_v7, %v5923_v2  ;;  %v16426_v7 = vand.u32 4294901760, %v16342_v23  ;;  %v13939_v2 = vld [vmem:[#allocation18 + $0x158] sm:$0xff]  ;;  %v5929_v8 = vand.u32 4294901760, %v3240_v34  ;;  %v5933_v23 = vand.u32 4294901760, %v3252_v3 }
 0x62c   : > { %v9883_v20 = vpack.c.bf16 %v16416_v52, %v16415_v25  ;;  %16417 = vst [vmem:[#allocation61_spill] sm:$0xff] %v13908_v45  ;;  %v13925_v61 = vpack.c.bf16 %v16423_v62, %v16422_v50  ;;  %v5927_v25 = vand.u32 4294901760, %v3241_v36  ;;  %v5931_v52 = vand.u32 4294901760, %v3253_v18 }
 0x62d   : > { %5034 = vmatmul.mubr.f32.vlgmr.msra.gmra.mrb[2].mxu0 %v16055_v42  ;;  %16419 = vst [vmem:[#allocation87_spill] sm:$0xff] %v13913_v58  ;;  %v13935_v33 = vpack.c.bf16 %v16427_v6, %v16426_v7  ;;  %v13945_v49 = vsub.f32 %v3216_v38, %v5921_v39  ;;  %v5935_v50 = vand.u32 4294901760, %v3265_v0  ;;  %v5939_v62 = vand.u32 4294901760, %v3277_v22 }
 0x62e   : > { %9874 = vmatpush1.bf16.msra.mxu1 %v16424_v41  ;;  %9946 = vmatpush1.bf16.msra.mxu0 %v13844_v48  ;;  %v13950_v54 = vsub.f32 %v3241_v36, %v5927_v25  ;;  %v3097_v7 = vunpack.c.0.s8 %v13939_v2  ;;  %v3109_v6 = vunpack.c.1.s8 %v13939_v2  ;;  %v16430_v48 = vld [vmem:[#allocation100_spill] sm:$0xff]  ;;  %v16431_v39 = vand.u32 4294901760, %v13408_v15 }
 0x62f   : > { %9876 = vmatprep.subr.bf16.mxu1 %v16428_v5  ;;  %9948 = vmatprep.subr.bf16.mxu0 %v13852_v10  ;;  %v3096_v10 = vunpack.c.0.s8 %v13941_v12  ;;  %v16432_v63 = vand.u32 4294901760, %v13410_v30  ;;  %v3264_v37 = vcvt.s32.f32 %v3072_v43  ;;  %v3276_v28 = vcvt.s32.f32 %v3084_v27 }
 0x630   : > { %5991 = vmatprep.mubr.f32.mxu0 %v15970_v59  ;;  %16429 = vst [vmem:[#allocation90_spill] sm:$0xff] %v13950_v54  ;;  %v3108_v36 = vunpack.c.1.s8 %v13941_v12  ;;  %v13966_v5 = vpack.c.bf16 %v5931_v52, %v5927_v25  ;;  %v13968_v41 = vsub.f32 %v3253_v18, %v5931_v52  ;;  %v13974_v15 = vsub.f32 %v3252_v3, %v5933_v23 }
 0x631   : > { %v13961_v38 = vpack.c.bf16 %v16432_v63, %v16431_v39  ;;  %v13976_v30 = vpack.c.bf16 %v5939_v62, %v5935_v50  ;;  %v16438_v43 = vand.u32 4294901760, %v13420_v44  ;;  %v16439_v27 = vand.u32 4294901760, %v13431_v26 }
 0x632   : > { %9878 = vmatpush1.bf16.msra.mxu1 %v16430_v48  ;;  %9950 = vmatpush1.bf16.msra.mxu0 %v13862_v60  ;;  %16433 = vst [vmem:[#allocation92_spill] sm:$0xff] %v13966_v5  ;;  %16434 = vst [vmem:[#allocation93_spill] sm:$0xff] %v13968_v41  ;;  %v13970_v48 = vpack.c.bf16 %v5933_v23, %v5929_v8  ;;  %v13972_v60 = vsub.f32 %v3240_v34, %v5929_v8  ;;  %v3289_v18 = vcvt.s32.f32 %v3097_v7 }
 0x633   : > { %9880 = vmatprep.subr.bf16.mxu1 %v13874_v56  ;;  %9952 = vmatprep.subr.bf16.mxu0 %v13888_v24  ;;  %16436 = vst [vmem:[#allocation73_spill] sm:$0xff] %v13974_v15  ;;  %16437 = vst [vmem:[#allocation75_spill] sm:$0xff] %v13976_v30  ;;  %v13982_v39 = vpack.c.bf16 %v16439_v27, %v16438_v43  ;;  %v13985_v56 = vsub.f32 %v3265_v0, %v5935_v50  ;;  %v3301_v25 = vcvt.s32.f32 %v3109_v6 }
 0x634   : > { %16435 = vst [vmem:[#allocation65_spill] sm:$0xff] %v13970_v48  ;;  %v3288_v52 = vcvt.s32.f32 %v3096_v10  ;;  %v5937_v34 = vand.u32 4294901760, %v3264_v37  ;;  %v5941_v3 = vand.u32 4294901760, %v3276_v28  ;;  %v3300_v8 = vcvt.s32.f32 %v3108_v36 }
 0x635   : > { %5617 = vmatmul.mubr.f32.vlgmr.msra.gmra.mrb[12].mxu1 %v16319_v46  ;;  %16440 = vst [vmem:[#allocation77_spill] sm:$0xff] %v13985_v56  ;;  %v3121_v44 = vunpack.c.2.s8 %v13939_v2  ;;  %v13991_v26 = vsub.f32 %v3277_v22, %v5939_v62  ;;  %v16442_v0 = vand.u32 4294901760, %v13442_v4  ;;  %v16443_v23 = vand.u32 4294901760, %v16355_v47  ;;  %v16465_v46 = vld [vmem:[#allocation44_spill] sm:$0xff] }
 0x636   : > { %9882 = vmatpush1.bf16.msra.mxu1 %v13880_v31  ;;  %9954 = vmatpush1.bf16.msra.mxu0 %v13898_v29  ;;  %v3133_v10 = vunpack.c.3.s8 %v13939_v2  ;;  %v3120_v31 = vunpack.c.2.s8 %v13941_v12  ;;  %v13999_v7 = vsub.f32 %v3264_v37, %v5937_v34  ;;  %v16445_v6 = vand.u32 4294901760, %v13459_v17 }
 0x637   : > { %9884 = vmatprep.subr.bf16.mxu1 %v9883_v20  ;;  %9956 = vmatprep.subr.bf16.mxu0 %v13908_v45  ;;  %16441 = vst [vmem:[#allocation78_spill] sm:$0xff] %v13991_v26  ;;  %v9895_v50 = vpack.c.bf16 %v16443_v23, %v16442_v0  ;;  %v16446_v63 = vand.u32 4294901760, %v13464_v19  ;;  %v3132_v22 = vunpack.c.3.s8 %v13941_v12  ;;  %v15744_v62 = vand.u32 4294901760, %v13842_v13 }
 0x638   : > { %16444 = vst [vmem:[#allocation79_spill] sm:$0xff] %v13999_v7  ;;  %5783 = vmatprep.mubr.f32.mxu1 %v15970_v59  ;;  %v5943_v4 = vand.u32 4294901760, %v3289_v18  ;;  %v5947_v47 = vand.u32 4294901760, %v3301_v25  ;;  %v5945_v36 = vand.u32 4294901760, %v3288_v52  ;;  %v15743_v2 = vand.u32 4294901760, %v13846_v9 }
 0x639   : > { %v14005_v20 = vpack.c.bf16 %v16446_v63, %v16445_v6  ;;  %v14013_v17 = vpack.c.bf16 %v5941_v3, %v5937_v34  ;;  %v5949_v19 = vand.u32 4294901760, %v3300_v8  ;;  %v16448_v37 = vand.u32 4294901760, %v13500_v21 }
 0x63a   : > { %9886 = vmatpush1.bf16.msra.mxu1 %v13919_v11  ;;  %9958 = vmatpush1.bf16.msra.mxu0 %v13929_v32  ;;  %v16449_v12 = vand.u32 4294901760, %v13511_v51  ;;  %v14021_v27 = vcvt.s32.f32 %v3121_v44  ;;  %v14025_v0 = vsub.f32 %v3276_v28, %v5941_v3  ;;  %v14027_v11 = vsub.f32 %v3289_v18, %v5943_v4 }
 0x63b   : > { %16447 = vst [vmem:[#allocation80_spill] sm:$0xff] %v14013_v17  ;;  %9888 = vmatprep.subr.bf16.mxu1 %v13925_v61  ;;  %9960 = vmatprep.subr.bf16.mxu0 %v13966_v5  ;;  %v14029_v34 = vcvt.s32.f32 %v3133_v10  ;;  %v14031_v23 = vcvt.s32.f32 %v3120_v31  ;;  %v14033_v6 = vcvt.s32.f32 %v3132_v22  ;;  %v6006_v21 = vsub.f32 %v13842_v13, %v15744_v62  ;;  %v16457_v22 = vld [vmem:[#allocation96_spill] sm:$0xff]  ;;  %v16470_v5 = vld [vmem:[#allocation102_spill] sm:$0xff] }
 0x63c   : > { %v14019_v43 = vpack.c.bf16 %v16449_v12, %v16448_v37  ;;  %16450 = vst [vmem:[#allocation51_spill] sm:$0xff] %v14025_v0  ;;  %16451 = vst [vmem:[#allocation35_spill] sm:$0xff] %v14027_v11  ;;  %v15748_v51 = vand.u32 4294901760, %v13848_v35  ;;  %v15755_v61 = vand.u32 4294901760, %v13850_v14  ;;  %v14040_v44 = vpack.c.bf16 %v5947_v47, %v5943_v4  ;;  %v16461_v12 = vld [vmem:[#allocation40_spill] sm:$0xff]  ;;  %v16464_v37 = vld [vmem:[#allocation42_spill] sm:$0xff] }
 0x63d   : > { %v14042_v28 = vsub.f32 %v3301_v25, %v5947_v47  ;;  %v14044_v18 = vsub.f32 %v3288_v52, %v5945_v36  ;;  %v6018_v3 = vsub.f32 %v13846_v9, %v15743_v2  ;;  %v14051_v10 = vpack.c.bf16 %v5949_v19, %v5945_v36  ;;  %v16459_v25 = vld [vmem:[#allocation98_spill] sm:$0xff]  ;;  %v16462_v2 = vld [vmem:[#allocation53_spill] sm:$0xff] }
 0x63e   : > { %16452 = vst [vmem:[#allocation39_spill] sm:$0xff] %v14040_v44  ;;  %9890 = vmatpush1.bf16.msra.mxu1 %v13935_v33  ;;  %9962 = vmatpush1.bf16.msra.mxu0 %v13970_v48  ;;  %v14053_v31 = vsub.f32 %v3300_v8, %v5949_v19  ;;  %v16458_v4 = vand.u32 4294901760, %v16457_v22  ;;  %v16460_v47 = vand.u32 4294901760, %v16459_v25  ;;  %v6007_v63 = vand.u32 4294901760, %v6006_v21  ;;  %v16466_v21 = vld [vmem:[#allocation99_spill] sm:$0xff] }
 0x63f   : > { %16453 = vst [vmem:[#allocation54_spill] sm:$0xff] %v14042_v28  ;;  %16454 = vst [vmem:[#allocation43_spill] sm:$0xff] %v14044_v18  ;;  %9892 = vmatprep.subr.bf16.mxu1 %v13961_v38  ;;  %9964 = vmatprep.subr.bf16.mxu0 %v13976_v30  ;;  %v2877_v19 = vpop.f32.mrb[0].mxu0  ;;  %v6012_v22 = vsub.f32 %v13848_v35, %v15748_v51  ;;  %v6024_v38 = vsub.f32 %v13850_v14, %v15755_v61  ;;  %v6019_v33 = vand.u32 4294901760, %v6018_v3  ;;  %v16468_v30 = vld [vmem:[#allocation101_spill] sm:$0xff]  ;;  %v16472_v61 = vld [vmem:[#allocation103_spill] sm:$0xff] }
 0x640   : > { %16455 = vst [vmem:[#allocation45_spill] sm:$0xff] %v14051_v10  ;;  %16456 = vst [vmem:[#allocation47_spill] sm:$0xff] %v14053_v31  ;;  %v9901_v52 = vpack.c.bf16 %v16460_v47, %v16458_v4  ;;  %v16463_v4 = vld [vmem:[#allocation70_spill] sm:$0xff]  ;;  %v9222_v47 = vpop.f32.mrb[1].mxu0  ;;  %v15759_v36 = vand.u32 4294901760, %v16464_v37  ;;  %v15758_v8 = vand.u32 4294901760, %v16465_v46 }
 0x641   : > { %v10551_v25 = vadd.f32 %v2877_v19, %v16463_v4  ;;  %v16467_v62 = vand.u32 4294901760, %v16466_v21  ;;  %v16469_v51 = vand.u32 4294901760, %v16468_v30  ;;  %v16471_v32 = vand.u32 4294901760, %v16470_v5 }
 0x642   : > { %9894 = vmatpush1.bf16.msra.mxu1 %v13982_v39  ;;  %9966 = vmatpush1.bf16.msra.mxu0 %v14013_v17  ;;  %v16473_v45 = vand.u32 4294901760, %v16472_v61  ;;  %v16474_v39 = vand.u32 4294901760, %v16461_v12  ;;  %v16475_v30 = vand.u32 4294901760, %v16462_v2  ;;  %v16476_v5 = vand.u32 4294901760, %v14021_v27 }
 0x643   : > { %v9903_v48 = vpack.c.bf16 %v16469_v51, %v16467_v62  ;;  %v2881_v47 = vmul.f32 %v10551_v25, %v10551_v25  ;;  %9896 = vmatprep.subr.bf16.mxu1 %v9895_v50  ;;  %9968 = vmatprep.subr.bf16.mxu0 %v14040_v44  ;;  %v16479_v51 = vand.u32 4294901760, %v14031_v23  ;;  %v16480_v50 = vand.u32 4294901760, %v14033_v6  ;;  %v16486_v44 = vld [vmem:[#allocation105_spill] sm:$0xff] }
 0x644   : > { %v9905_v19 = vpack.c.bf16 %v16473_v45, %v16471_v32  ;;  %v6030_v21 = vsub.f32 %v16461_v12, %v16474_v39  ;;  %v6042_v62 = vsub.f32 %v16462_v2, %v16475_v30  ;;  %v16477_v45 = vand.u32 4294901760, %v14029_v34 }
 0x645   : > { %v14105_v61 = vpack.c.bf16 %v16480_v50, %v16479_v51  ;;  %v6013_v25 = vand.u32 4294901760, %v6012_v22  ;;  %v6025_v4 = vand.u32 4294901760, %v6024_v38  ;;  %v2883_v39 = vsel %vm2882_vm1, %v2881_v47, 0.0 }
 0x646   : > { %v14099_v32 = vpack.c.bf16 %v16477_v45, %v16476_v5  ;;  %v9975_v3 = vpack.c.bf16 %v6019_v33, %v6007_v63  ;;  %v6036_v30 = vsub.f32 %v16464_v37, %v15759_v36  ;;  %v6048_v5 = vsub.f32 %v16465_v46, %v15758_v8  ;;  %9898 = vmatpush1.bf16.msra.mxu1 %v14005_v20  ;;  %v16484_v36 = vld [vmem:[#allocation104_spill] sm:$0xff] }
 0x647   : > { %16481 = vst [vmem:[#allocation49_spill] sm:$0xff] %v14105_v61  ;;  %9970 = vmatpush1.bf16.msra.mxu0 %v14051_v10  ;;  %v16482_v45 = vand.u32 4294901760, %v13890_v16  ;;  %v16483_v38 = vand.u32 4294901760, %v13892_v40  ;;  %2884 = vadd.xlane.f32.xlu0 %v2883_v39  ;;  %v6031_v51 = vand.u32 4294901760, %v6030_v21  ;;  %v6043_v50 = vand.u32 4294901760, %v6042_v62 }
 0x648   : > { %16478 = vst [vmem:[#allocation48_spill] sm:$0xff] %v14099_v32  ;;  %9900 = vmatprep.subr.bf16.mxu1 %v14019_v43  ;;  %v15766_v20 = vand.u32 4294901760, %v13911_v1  ;;  %9972 = vmatprep.subr.bf16.mxu0 %v14099_v32  ;;  %v16485_v10 = vand.u32 4294901760, %v16484_v36  ;;  %v15767_v33 = vand.u32 4294901760, %v13945_v49  ;;  %v15768_v39 = vand.u32 4294901760, %v13947_v55 }
 0x649   : > { %v6054_v22 = vsub.f32 %v13890_v16, %v16482_v45  ;;  %v6066_v63 = vsub.f32 %v13892_v40, %v16483_v38  ;;  %v9977_v45 = vpack.c.bf16 %v6025_v4, %v6013_v25  ;;  %v16487_v38 = vand.u32 4294901760, %v16486_v44 }
 0x64a   : > { %v6037_v47 = vand.u32 4294901760, %v6036_v30  ;;  %v6049_v43 = vand.u32 4294901760, %v6048_v5  ;;  %v15775_v21 = vand.u32 4294901760, %v13950_v54  ;;  %9902 = vmatpush1.bf16.msra.mxu1 %v9901_v52  ;;  %v16488_v36 = vand.u32 4294901760, %v13894_v57 }
 0x64b   : > { %v9907_v17 = vpack.c.bf16 %v16487_v38, %v16485_v10  ;;  %9974 = vmatpush1.bf16.msra.mxu0 %v14105_v61  ;;  %v6055_v8 = vand.u32 4294901760, %v6054_v22  ;;  %v6067_v4 = vand.u32 4294901760, %v6066_v63  ;;  %v16489_v10 = vand.u32 4294901760, %v13900_v53  ;;  %9904 = vmatprep.subr.bf16.mxu1 %v9903_v48 }
 0x64c   : > { %v6060_v44 = vsub.f32 %v13894_v57, %v16488_v36  ;;  %9976 = vmatprep.subr.bf16.mxu0 %v9975_v3  ;;  %v9979_v30 = vpack.c.bf16 %v6043_v50, %v6031_v51  ;;  %v6078_v5 = vsub.f32 %v13911_v1, %v15766_v20  ;;  %v16490_v52 = vand.u32 4294901760, %v13913_v58  ;;  %v16493_v36 = vld [vmem:[#allocation60_spill] sm:$0xff]  ;;  %v16496_v20 = vld [vmem:[#allocation107_spill] sm:$0xff] }
 0x64d   : > { %v6072_v25 = vsub.f32 %v13900_v53, %v16489_v10  ;;  %v6084_v63 = vsub.f32 %v13945_v49, %v15767_v33  ;;  %v6096_v38 = vsub.f32 %v13947_v55, %v15768_v39  ;;  %v16491_v51 = vand.u32 4294901760, %v14021_v27  ;;  %v16494_v10 = vld [vmem:[#allocation106_spill] sm:$0xff] }
 0x64e   : > { %v6090_v22 = vsub.f32 %v13913_v58, %v16490_v52  ;;  %5997 = vmatmul.mubr.f32.vlgmr.msra.gmra.mrb[4].mxu0 %v16493_v36  ;;  %v16495_v52 = vand.u32 4294901760, %v16494_v10  ;;  %v16497_v62 = vand.u32 4294901760, %v16496_v20  ;;  %v6102_v39 = vsub.f32 %v13950_v54, %v15775_v21  ;;  %9906 = vmatpush1.bf16.msra.mxu1 %v9905_v19 }
 0x64f   : > { %v14160_v50 = vsub.f32 %v14021_v27, %v16491_v51  ;;  %v16498_v48 = vand.u32 4294901760, %v13968_v41  ;;  %9978 = vmatpush1.bf16.msra.mxu0 %v9977_v45  ;;  %v9981_v61 = vpack.c.bf16 %v6049_v43, %v6037_v47  ;;  %v9983_v27 = vpack.c.bf16 %v6067_v4, %v6055_v8  ;;  %9908 = vmatprep.subr.bf16.mxu1 %v9907_v17 }
 0x650   : > { %v9909_v33 = vpack.c.bf16 %v16497_v62, %v16495_v52  ;;  %v6061_v51 = vand.u32 4294901760, %v6060_v44  ;;  %v6073_v32 = vand.u32 4294901760, %v6072_v25  ;;  %9980 = vmatprep.subr.bf16.mxu0 %v9979_v30  ;;  %v6079_v10 = vand.u32 4294901760, %v6078_v5  ;;  %6227 = vmatprep.mubr.f32.mxu0 %v15970_v59 }
 0x651   : > { %16492 = vst [vmem:[#allocation72_spill] sm:$0xff] %v14160_v50  ;;  %v6114_v3 = vsub.f32 %v13968_v41, %v16498_v48  ;;  %v6091_v29 = vand.u32 4294901760, %v6090_v22  ;;  %v15785_v20 = vand.u32 4294901760, %v13985_v56  ;;  %v15784_v62 = vand.u32 4294901760, %v13991_v26  ;;  %v16503_v22 = vld [vmem:[#allocation81_spill] sm:$0xff] }
 0x652   : > { %v6085_v52 = vand.u32 4294901760, %v6084_v63  ;;  %v6097_v21 = vand.u32 4294901760, %v6096_v38  ;;  %v16499_v36 = vand.u32 4294901760, %v13972_v60  ;;  %v16500_v19 = vand.u32 4294901760, %v13974_v15  ;;  %9910 = vmatpush1.bf16.msra.mxu1 %v9909_v33 }
 0x653   : > { %v6103_v17 = vand.u32 4294901760, %v6102_v39  ;;  %v6115_v47 = vand.u32 4294901760, %v6114_v3  ;;  %v15783_v45 = vand.u32 4294901760, %v13999_v7  ;;  %v15782_v43 = vand.u32 4294901760, %v14025_v0  ;;  %9982 = vmatpush1.bf16.msra.mxu0 %v9981_v61  ;;  %9912 = vmatprep.subr.bf16.mxu1 %v16503_v22 }
 0x654   : > { %v6108_v48 = vsub.f32 %v13972_v60, %v16499_v36  ;;  %v6120_v8 = vsub.f32 %v13974_v15, %v16500_v19  ;;  %v16501_v4 = vand.u32 4294901760, %v14029_v34  ;;  %v9985_v25 = vpack.c.bf16 %v6073_v32, %v6061_v51  ;;  %9984 = vmatprep.subr.bf16.mxu0 %v9983_v27  ;;  %v16509_v19 = vld [vmem:[#allocation83_spill] sm:$0xff] }
 0x655   : > { %v15777_v30 = vand.u32 4294901760, %v14027_v11  ;;  %v15776_v5 = vand.u32 4294901760, %v14042_v28  ;;  %v9987_v39 = vpack.c.bf16 %v6091_v29, %v6079_v10  ;;  %v6126_v63 = vsub.f32 %v13985_v56, %v15785_v20  ;;  %5785 = vmatmul.mubr.f32.vlgmr.msra.gmra.mrb[12].mxu1 %v16055_v42  ;;  %v16508_v10 = vld [vmem:[#allocation82_spill] sm:$0xff] }
 0x656   : > { %v14187_v44 = vsub.f32 %v14029_v34, %v16501_v4  ;;  %v6138_v34 = vsub.f32 %v13991_v26, %v15784_v62  ;;  %v16504_v33 = vand.u32 4294901760, %v14031_v23  ;;  %v16506_v61 = vand.u32 4294901760, %v14033_v6  ;;  %9914 = vmatpush1.bf16.msra.mxu1 %v16508_v10  ;;  %5887 = vmatprep.mubr.f32.mxu1 %v15970_v59 }
 0x657   : > { %v6109_v3 = vand.u32 4294901760, %v6108_v48  ;;  %v6121_v29 = vand.u32 4294901760, %v6120_v8  ;;  %v9989_v36 = vpack.c.bf16 %v6097_v21, %v6085_v52  ;;  %v9991_v27 = vpack.c.bf16 %v6115_v47, %v6103_v17  ;;  %9986 = vmatpush1.bf16.msra.mxu0 %v9985_v25  ;;  %9916 = vmatprep.subr.bf16.mxu1 %v16509_v19 }
 0x658   : > { %16502 = vst [vmem:[#allocation86_spill] sm:$0xff] %v14187_v44  ;;  %v14201_v32 = vsub.f32 %v14031_v23, %v16504_v33  ;;  %v14206_v38 = vsub.f32 %v14033_v6, %v16506_v61  ;;  %v6132_v51 = vsub.f32 %v13999_v7, %v15783_v45  ;;  %v6144_v23 = vsub.f32 %v14025_v0, %v15782_v43 }
 0x659   : > { %v6150_v6 = vsub.f32 %v14027_v11, %v15777_v30  ;;  %v6162_v21 = vsub.f32 %v14042_v28, %v15776_v5  ;;  %v15780_v52 = vand.u32 4294901760, %v14044_v18  ;;  %v15779_v48 = vand.u32 4294901760, %v14053_v31  ;;  %9988 = vmatprep.subr.bf16.mxu0 %v9987_v39  ;;  %v2907_v5 = vld [vmem:[#allocation18 + $0x48] sm:$0xff]  ;;  %v16510_v30 = vld [vmem:[#allocation52_spill] sm:$0xff] }
 0x65a   : > { %16505 = vst [vmem:[#allocation89_spill] sm:$0xff] %v14201_v32  ;;  %16507 = vst [vmem:[#allocation91_spill] sm:$0xff] %v14206_v38  ;;  %v6127_v8 = vand.u32 4294901760, %v6126_v63  ;;  %v6139_v17 = vand.u32 4294901760, %v6138_v34  ;;  %v15778_v47 = vand.u32 4294901760, %v14160_v50  ;;  %v15781_v4 = vand.u32 4294901760, %v14187_v44  ;;  %9918 = vmatpush1.bf16.msra.mxu1 %v16510_v30 }
 0x65b   : > { %v9993_v25 = vpack.c.bf16 %v6121_v29, %v6109_v3  ;;  %v6133_v22 = vand.u32 4294901760, %v6132_v51  ;;  %v6145_v33 = vand.u32 4294901760, %v6144_v23  ;;  %v15786_v61 = vand.u32 4294901760, %v14201_v32  ;;  %9990 = vmatpush1.bf16.msra.mxu0 %v9989_v36  ;;  %v16511_v29 = vld [vmem:[#allocation57_spill] sm:$0xff] }
 0x65c   : > { %v15793_v10 = vand.u32 4294901760, %v14206_v38  ;;  %v6151_v39 = vand.u32 4294901760, %v6150_v6  ;;  %v6163_v63 = vand.u32 4294901760, %v6162_v21  ;;  %v6156_v34 = vsub.f32 %v14044_v18, %v15780_v52  ;;  %9920 = vmatprep.subr.bf16.mxu1 %v16511_v29  ;;  %9992 = vmatprep.subr.bf16.mxu0 %v9991_v27  ;;  %v2906_v21 = vld [vmem:[#allocation18 + $0x40] sm:$0xff] }
 0x65d   : > { %v6168_v3 = vsub.f32 %v14053_v31, %v15779_v48  ;;  %v9995_v51 = vpack.c.bf16 %v6139_v17, %v6127_v8  ;;  %v6174_v23 = vsub.f32 %v14160_v50, %v15778_v47  ;;  %v6186_v30 = vsub.f32 %v14187_v44, %v15781_v4  ;;  %v16512_v8 = vld [vmem:[#allocation59_spill] sm:$0xff]  ;;  %v16513_v52 = vld [vmem:[#allocation62_spill] sm:$0xff] }
 0x65e   : > { %v2955_v36 = vunpack.c.0.s8 %v2907_v5  ;;  %v2967_v6 = vunpack.c.1.s8 %v2907_v5  ;;  %v6180_v19 = vsub.f32 %v14201_v32, %v15786_v61  ;;  %v6192_v27 = vsub.f32 %v14206_v38, %v15793_v10  ;;  %9922 = vmatpush1.bf16.msra.mxu1 %v16512_v8  ;;  %v16514_v44 = vld [vmem:[#allocation63_spill] sm:$0xff] }
 0x65f   : > { %9994 = vmatpush1.bf16.msra.mxu0 %v9993_v25  ;;  %v9997_v17 = vpack.c.bf16 %v6145_v33, %v6133_v22  ;;  %v9999_v29 = vpack.c.bf16 %v6163_v63, %v6151_v39  ;;  %v6157_v47 = vand.u32 4294901760, %v6156_v34  ;;  %v6169_v48 = vand.u32 4294901760, %v6168_v3  ;;  %9924 = vmatprep.subr.bf16.mxu1 %v16513_v52  ;;  %v16515_v33 = vld [vmem:[#allocation64_spill] sm:$0xff]  ;;  %v2919_v34 = vld [vmem:[#allocation18 + $0xa8] sm:$0xff] }
 0x660   : > { %9996 = vmatprep.subr.bf16.mxu0 %v9995_v51  ;;  %v6175_v4 = vand.u32 4294901760, %v6174_v23  ;;  %v6187_v43 = vand.u32 4294901760, %v6186_v30  ;;  %v2954_v45 = vunpack.c.0.s8 %v2906_v21  ;;  %v2966_v62 = vunpack.c.1.s8 %v2906_v21 }
 0x661   : > { %v3147_v20 = vcvt.s32.f32 %v2955_v36  ;;  %v3159_v61 = vcvt.s32.f32 %v2967_v6  ;;  %v6181_v24 = vand.u32 4294901760, %v6180_v19  ;;  %v6193_v32 = vand.u32 4294901760, %v6192_v27 }
 0x662   : > { %9926 = vmatpush1.bf16.msra.mxu1 %v16514_v44  ;;  %v10001_v8 = vpack.c.bf16 %v6169_v48, %v6157_v47  ;;  %v2979_v25 = vunpack.c.2.s8 %v2907_v5  ;;  %v2991_v22 = vunpack.c.3.s8 %v2907_v5  ;;  %v10003_v39 = vpack.c.bf16 %v6187_v43, %v6175_v4  ;;  %v16516_v48 = vld [vmem:[#allocation66_spill] sm:$0xff] }
 0x663   : > { %9998 = vmatpush1.bf16.msra.mxu0 %v9997_v17  ;;  %9928 = vmatprep.subr.bf16.mxu1 %v16515_v33  ;;  %v3146_v52 = vcvt.s32.f32 %v2954_v45  ;;  %v3158_v63 = vcvt.s32.f32 %v2966_v62  ;;  %v6750_v3 = vand.u32 4294901760, %v3147_v20  ;;  %v6754_v51 = vand.u32 4294901760, %v3159_v61  ;;  %v14261_v4 = vld [vmem:[#allocation18 + $0xa0] sm:$0xff] }
 0x664   : > { %10000 = vmatprep.subr.bf16.mxu0 %v9999_v29  ;;  %v2978_v23 = vunpack.c.2.s8 %v2906_v21  ;;  %v2990_v30 = vunpack.c.3.s8 %v2906_v21  ;;  %v10005_v36 = vpack.c.bf16 %v6193_v32, %v6181_v24  ;;  %v10007_v6 = vpack.c.bf16 %v13846_v9, %v13842_v13  ;;  %v16517_v21 = vld [vmem:[#allocation67_spill] sm:$0xff] }
 0x665   : > { %v10009_v44 = vpack.c.bf16 %v13850_v14, %v13848_v35  ;;  %v10011_v5 = vpack.c.bf16 %v16462_v2, %v16461_v12  ;;  %v3171_v45 = vcvt.s32.f32 %v2979_v25  ;;  %v3183_v62 = vcvt.s32.f32 %v2991_v22 }
 0x666   : > { %9930 = vmatpush1.bf16.msra.mxu1 %v16516_v48  ;;  %v3003_v43 = vunpack.c.0.s8 %v2919_v34  ;;  %v3015_v47 = vunpack.c.1.s8 %v2919_v34  ;;  %v10013_v24 = vpack.c.bf16 %v16465_v46, %v16464_v37  ;;  %v10015_v32 = vpack.c.bf16 %v13892_v40, %v13890_v16 }
 0x667   : > { %10002 = vmatpush1.bf16.msra.mxu0 %v10001_v8  ;;  %9932 = vmatprep.subr.bf16.mxu1 %v16517_v21  ;;  %v6752_v19 = vand.u32 4294901760, %v3146_v52  ;;  %v6756_v27 = vand.u32 4294901760, %v3158_v63  ;;  %v14268_v17 = vpack.c.bf16 %v6754_v51, %v6750_v3  ;;  %v14270_v29 = vsub.f32 %v3147_v20, %v6750_v3  ;;  %v16519_v21 = vld [vmem:[#allocation68_spill] sm:$0xff]  ;;  %v16520_v20 = vld [vmem:[#allocation69_spill] sm:$0xff] }
 0x668   : > { %10004 = vmatprep.subr.bf16.mxu0 %v10003_v39  ;;  %v3170_v8 = vcvt.s32.f32 %v2978_v23  ;;  %v3182_v25 = vcvt.s32.f32 %v2990_v30  ;;  %v14272_v22 = vsub.f32 %v3159_v61, %v6754_v51  ;;  %v3002_v39 = vunpack.c.0.s8 %v14261_v4 }
 0x669   : > { %16518 = vst [vmem:[#allocation94_spill] sm:$0xff] %v14268_v17  ;;  %v3014_v48 = vunpack.c.1.s8 %v14261_v4  ;;  %v6758_v10 = vand.u32 4294901760, %v3171_v45  ;;  %v6762_v40 = vand.u32 4294901760, %v3183_v62  ;;  %v3195_v16 = vcvt.s32.f32 %v3003_v43 }
 0x66a   : > { %9934 = vmatpush1.bf16.msra.mxu1 %v16519_v21  ;;  %v3207_v46 = vcvt.s32.f32 %v3015_v47  ;;  %v14280_v3 = vpack.c.bf16 %v6756_v27, %v6752_v19  ;;  %v14282_v61 = vsub.f32 %v3146_v52, %v6752_v19  ;;  %v3027_v51 = vunpack.c.2.s8 %v2919_v34  ;;  %v14293_v52 = vld [vmem:[#allocation18 + $0x108] sm:$0xff]  ;;  %v16522_v19 = vld [vmem:[#allocation76_spill] sm:$0xff] }
 0x66b   : > { %10006 = vmatpush1.bf16.msra.mxu0 %v10005_v36  ;;  %9936 = vmatprep.subr.bf16.mxu1 %v16520_v20  ;;  %v3039_v23 = vunpack.c.3.s8 %v2919_v34  ;;  %v14284_v30 = vsub.f32 %v3158_v63, %v6756_v27  ;;  %v10019_v33 = vpack.c.bf16 %v13913_v58, %v13911_v1  ;;  %v6760_v21 = vand.u32 4294901760, %v3170_v8  ;;  %v16524_v1 = vld [vmem:[#allocation97_spill] sm:$0xff] }
 0x66c   : > { %10008 = vmatprep.subr.bf16.mxu0 %v10007_v6  ;;  %16521 = vst [vmem:[#allocation95_spill] sm:$0xff] %v14280_v3  ;;  %v6764_v36 = vand.u32 4294901760, %v3182_v25  ;;  %v14289_v43 = vsub.f32 %v3171_v45, %v6758_v10  ;;  %v3194_v47 = vcvt.s32.f32 %v3002_v39  ;;  %v3206_v20 = vcvt.s32.f32 %v3014_v48 }
 0x66d   : > { %v14296_v63 = vpack.c.bf16 %v6762_v40, %v6758_v10  ;;  %v14298_v34 = vsub.f32 %v3183_v62, %v6762_v40  ;;  %v6766_v27 = vand.u32 4294901760, %v3195_v16  ;;  %v6770_v58 = vand.u32 4294901760, %v3207_v46 }
 0x66e   : > { %6229 = vmatmul.mubr.f32.vlgmr.msra.gmra.mrb[4].mxu0 %v16055_v42  ;;  %9938 = vmatpush1.bf16.msra.mxu1 %v16522_v19  ;;  %v3219_v45 = vcvt.s32.f32 %v3027_v51  ;;  %v3231_v37 = vcvt.s32.f32 %v3039_v23  ;;  %v3026_v6 = vunpack.c.2.s8 %v14261_v4  ;;  %v3038_v39 = vunpack.c.3.s8 %v14261_v4  ;;  %v14314_v23 = vld [vmem:[#allocation18 + $0x100] sm:$0xff]  ;;  %v16526_v4 = vld [vmem:[#allocation100_spill] sm:$0xff] }
 0x66f   : > { %10010 = vmatpush1.bf16.msra.mxu0 %v10009_v44  ;;  %16523 = vst [vmem:[#allocation96_spill] sm:$0xff] %v14296_v63  ;;  %9940 = vmatprep.subr.bf16.mxu1 %v16524_v1  ;;  %v14303_v48 = vpack.c.bf16 %v6764_v36, %v6760_v21  ;;  %v10023_v44 = vpack.c.bf16 %v13968_v41, %v13950_v54  ;;  %v3051_v10 = vunpack.c.0.s8 %v14293_v52  ;;  %v3063_v40 = vunpack.c.1.s8 %v14293_v52 }
 0x670   : > { %10012 = vmatprep.subr.bf16.mxu0 %v10011_v5  ;;  %6363 = vmatprep.mubr.f32.mxu0 %v15970_v59  ;;  %v14310_v62 = vsub.f32 %v3170_v8, %v6760_v21  ;;  %v14312_v1 = vsub.f32 %v3182_v25, %v6764_v36  ;;  %v6768_v5 = vand.u32 4294901760, %v3194_v47  ;;  %v6772_v51 = vand.u32 4294901760, %v3206_v20 }
 0x671   : > { %16525 = vst [vmem:[#allocation98_spill] sm:$0xff] %v14303_v48  ;;  %v14317_v19 = vpack.c.bf16 %v6770_v58, %v6766_v27  ;;  %v14319_v41 = vsub.f32 %v3195_v16, %v6766_v27  ;;  %v10025_v54 = vpack.c.bf16 %v13974_v15, %v13972_v60  ;;  %v6774_v8 = vand.u32 4294901760, %v3219_v45 }
 0x672   : > { %9942 = vmatpush1.bf16.msra.mxu1 %v16526_v4  ;;  %v6778_v25 = vand.u32 4294901760, %v3231_v37  ;;  %v3218_v21 = vcvt.s32.f32 %v3026_v6  ;;  %v3230_v36 = vcvt.s32.f32 %v3038_v39  ;;  %v14324_v2 = vsub.f32 %v3207_v46, %v6770_v58 }
 0x673   : > { %10014 = vmatpush1.bf16.msra.mxu0 %v10013_v24  ;;  %16527 = vst [vmem:[#allocation70_spill] sm:$0xff] %v14317_v19  ;;  %10136 = vmatprep.subr.bf16.mxu1 %v14268_v17  ;;  %v3243_v12 = vcvt.s32.f32 %v3051_v10  ;;  %v3255_v14 = vcvt.s32.f32 %v3063_v40  ;;  %v3050_v24 = vunpack.c.0.s8 %v14314_v23  ;;  %v14328_v16 = vpack.c.bf16 %v6772_v51, %v6768_v5 }
 0x674   : > { %10016 = vmatprep.subr.bf16.mxu0 %v10015_v32  ;;  %v14330_v27 = vsub.f32 %v3194_v47, %v6768_v5  ;;  %v14332_v4 = vsub.f32 %v3206_v20, %v6772_v51  ;;  %v10027_v32 = vpack.c.bf16 %v13991_v26, %v13985_v56  ;;  %v16530_v6 = vpack.c.bf16 %v13900_v53, %v13894_v57  ;;  %v2942_v26 = vld [vmem:[#allocation18 + $0x160] sm:$0xff] }
 0x675   : > { %5889 = vmatmul.mubr.f32.vlgmr.msra.gmra.mrb[12].mxu1 %v16055_v42  ;;  %16528 = vst [vmem:[#allocation99_spill] sm:$0xff] %v14328_v16  ;;  %v10029_v58 = vpack.c.bf16 %v14025_v0, %v13999_v7  ;;  %v3062_v46 = vunpack.c.1.s8 %v14314_v23  ;;  %v3075_v39 = vunpack.c.2.s8 %v14293_v52  ;;  %v3087_v47 = vunpack.c.3.s8 %v14293_v52  ;;  %v2943_v0 = vld [vmem:[#allocation18 + $0x168] sm:$0xff] }
 0x676   : > { %16529 = vst [vmem:[#allocation101_spill] sm:$0xff] %v14330_v27  ;;  %10138 = vmatpush1.bf16.msra.mxu1 %v14280_v3  ;;  %v14346_v20 = vpack.c.bf16 %v6778_v25, %v6774_v8  ;;  %v6776_v10 = vand.u32 4294901760, %v3218_v21  ;;  %v6780_v40 = vand.u32 4294901760, %v3230_v36  ;;  %v10031_v5 = vpack.c.bf16 %v14042_v28, %v14027_v11  ;;  %6846 = vmatprep.mubr.f32.mxu1 %v15970_v59 }
 0x677   : > { %10018 = vmatpush1.bf16.msra.mxu0 %v16530_v6  ;;  %10140 = vmatprep.subr.bf16.mxu1 %v14296_v63  ;;  %v14350_v51 = vsub.f32 %v3219_v45, %v6774_v8  ;;  %v6782_v6 = vand.u32 4294901760, %v3243_v12  ;;  %v6786_v3 = vand.u32 4294901760, %v3255_v14  ;;  %v3242_v17 = vcvt.s32.f32 %v3050_v24 }
 0x678   : > { %10020 = vmatprep.subr.bf16.mxu0 %v10019_v33  ;;  %16531 = vst [vmem:[#allocation102_spill] sm:$0xff] %v14346_v20  ;;  %v14353_v7 = vsub.f32 %v3231_v37, %v6778_v25  ;;  %v3074_v52 = vunpack.c.2.s8 %v14314_v23  ;;  %v3086_v63 = vunpack.c.3.s8 %v14314_v23  ;;  %v16532_v45 = vpack.c.bf16 %v13947_v55, %v13945_v49 }
 0x679   : > { %v14363_v8 = vsub.f32 %v3218_v21, %v6776_v10  ;;  %v3254_v24 = vcvt.s32.f32 %v3062_v46  ;;  %v14365_v28 = vcvt.s32.f32 %v3075_v39  ;;  %v14367_v37 = vcvt.s32.f32 %v3087_v47  ;;  %v16536_v47 = vld [vmem:[#allocation86_spill] sm:$0xff] }
 0x67a   : > { %10142 = vmatpush1.bf16.msra.mxu1 %v14303_v48  ;;  %v14370_v25 = vpack.c.bf16 %v6780_v40, %v6776_v10  ;;  %v14372_v23 = vsub.f32 %v3230_v36, %v6780_v40  ;;  %v3099_v33 = vunpack.c.0.s8 %v2943_v0  ;;  %v3111_v11 = vunpack.c.1.s8 %v2943_v0 }
 0x67b   : > { %10022 = vmatpush1.bf16.msra.mxu0 %v16532_v45  ;;  %10144 = vmatprep.subr.bf16.mxu1 %v14317_v19  ;;  %v14374_v56 = vpack.c.bf16 %v6786_v3, %v6782_v6  ;;  %v6784_v45 = vand.u32 4294901760, %v3242_v17  ;;  %v3098_v48 = vunpack.c.0.s8 %v2942_v26  ;;  %v3110_v21 = vunpack.c.1.s8 %v2942_v26 }
 0x67c   : > { %10024 = vmatprep.subr.bf16.mxu0 %v10023_v44  ;;  %16533 = vst [vmem:[#allocation103_spill] sm:$0xff] %v14370_v25  ;;  %v14376_v15 = vsub.f32 %v3243_v12, %v6782_v6  ;;  %v14378_v46 = vsub.f32 %v3255_v14, %v6786_v3  ;;  %v14380_v39 = vcvt.s32.f32 %v3074_v52  ;;  %v14382_v44 = vcvt.s32.f32 %v3086_v63 }
 0x67d   : > { %16534 = vst [vmem:[#allocation104_spill] sm:$0xff] %v14374_v56  ;;  %v6788_v36 = vand.u32 4294901760, %v3254_v24  ;;  %v10035_v10 = vpack.c.bf16 %v16536_v47, %v14160_v50  ;;  %v6790_v40 = vand.u32 4294901760, %v14365_v28  ;;  %v6794_v19 = vand.u32 4294901760, %v14367_v37  ;;  %v16537_v47 = vld [vmem:[#allocation89_spill] sm:$0xff] }
 0x67e   : > { %16535 = vst [vmem:[#allocation105_spill] sm:$0xff] %v14378_v46  ;;  %10146 = vmatpush1.bf16.msra.mxu1 %v14328_v16  ;;  %v14390_v14 = vcvt.s32.f32 %v3099_v33  ;;  %v14392_v12 = vcvt.s32.f32 %v3111_v11  ;;  %v3123_v3 = vunpack.c.2.s8 %v2943_v0  ;;  %v3135_v63 = vunpack.c.3.s8 %v2943_v0 }
 0x67f   : > { %10026 = vmatpush1.bf16.msra.mxu0 %v10025_v54  ;;  %10148 = vmatprep.subr.bf16.mxu1 %v14346_v20  ;;  %v14394_v54 = vsub.f32 %v3242_v17, %v6784_v45  ;;  %v14396_v6 = vcvt.s32.f32 %v3098_v48  ;;  %v14398_v52 = vcvt.s32.f32 %v3110_v21  ;;  %v3122_v16 = vunpack.c.2.s8 %v2942_v26 }
 0x680   : > { %10028 = vmatprep.subr.bf16.mxu0 %v10027_v32  ;;  %v10037_v50 = vpack.c.bf16 %v14206_v38, %v16537_v47  ;;  %v6792_v32 = vand.u32 4294901760, %v14380_v39  ;;  %v6796_v20 = vand.u32 4294901760, %v14382_v44  ;;  %v3134_v33 = vunpack.c.3.s8 %v2942_v26 }
 0x681   : > { %v14405_v11 = vpack.c.bf16 %v6788_v36, %v6784_v45  ;;  %v14407_v0 = vpack.c.bf16 %v6794_v19, %v6790_v40  ;;  %v6798_v21 = vand.u32 4294901760, %v14390_v14  ;;  %v14414_v47 = vcvt.s32.f32 %v3123_v3 }
 0x682   : > { %10150 = vmatpush1.bf16.msra.mxu1 %v14370_v25  ;;  %v14416_v26 = vcvt.s32.f32 %v3135_v63  ;;  %v14420_v25 = vcvt.s32.f32 %v3122_v16  ;;  %v14423_v48 = vsub.f32 %v3254_v24, %v6788_v36  ;;  %v16541_v3 = vpack.c.bf16 %v14053_v31, %v14044_v18  ;;  %v16581_v18 = vld [vmem:[#allocation60_spill] sm:$0xff] }
 0x683   : > { %10030 = vmatpush1.bf16.msra.mxu0 %v10029_v58  ;;  %16538 = vst [vmem:[#allocation106_spill] sm:$0xff] %v14405_v11  ;;  %16539 = vst [vmem:[#allocation107_spill] sm:$0xff] %v14407_v0  ;;  %10152 = vmatprep.subr.bf16.mxu1 %v14374_v56  ;;  %v14427_v56 = vcvt.s32.f32 %v3134_v33  ;;  %v16542_v63 = vand.u32 4294901760, %v14270_v29  ;;  %v16543_v17 = vand.u32 4294901760, %v14272_v22  ;;  %v14444_v38 = vsub.f32 %v14365_v28, %v6790_v40 }
 0x684   : > { %10032 = vmatprep.subr.bf16.mxu0 %v10031_v5  ;;  %v14425_v5 = vpack.c.bf16 %v6796_v20, %v6792_v32  ;;  %v16548_v33 = vand.u32 4294901760, %v14398_v52  ;;  %v16550_v40 = vand.u32 4294901760, %v14282_v61  ;;  %v16553_v28 = vand.u32 4294901760, %v14289_v43 }
 0x685   : > { %v6861_v16 = vsub.f32 %v14270_v29, %v16542_v63  ;;  %v6873_v24 = vsub.f32 %v14272_v22, %v16543_v17  ;;  %v14455_v17 = vsub.f32 %v14367_v37, %v6794_v19  ;;  %v14483_v31 = vsub.f32 %v14380_v39, %v6792_v32 }
 0x686   : > { %16540 = vst [vmem:[#allocation81_spill] sm:$0xff] %v14425_v5  ;;  %10154 = vmatpush1.bf16.msra.mxu1 %v14405_v11  ;;  %v14496_v37 = vsub.f32 %v14382_v44, %v6796_v20  ;;  %v14499_v39 = vsub.f32 %v14390_v14, %v6798_v21  ;;  %v16564_v44 = vld [vmem:[#allocation36_spill] sm:$0xff]  ;;  %v16565_v14 = vand.u32 4294901760, %v14420_v25 }
 0x687   : > { %10034 = vmatpush1.bf16.msra.mxu0 %v16541_v3  ;;  %10156 = vmatprep.subr.bf16.mxu1 %v14407_v0  ;;  %v16544_v3 = vand.u32 4294901760, %v14392_v12  ;;  %v16568_v0 = vld [vmem:[#allocation38_spill] sm:$0xff] }
 0x688   : > { %10036 = vmatprep.subr.bf16.mxu0 %v10035_v10  ;;  %v14452_v11 = vpop.f32.mrb[10].mxu1  ;;  %v16547_v10 = vand.u32 4294901760, %v14396_v6  ;;  %16559 = vst [vmem:[#allocation62_spill] sm:$0xff] %v14496_v37  ;;  %16560 = vst [vmem:[#allocation63_spill] sm:$0xff] %v14499_v39 }
 0x689   : > { %v14448_v45 = vpack.c.bf16 %v16544_v3, %v6798_v21  ;;  %16546 = vst [vmem:[#allocation83_spill] sm:$0xff] %v14452_v11  ;;  %v6867_v3 = vsub.f32 %v14282_v61, %v16550_v40  ;;  %v14467_v63 = vpop.f32.mrb[11].mxu1  ;;  %v16552_v11 = vand.u32 4294901760, %v14284_v30  ;;  %v6885_v40 = vsub.f32 %v14289_v43, %v16553_v28 }
 0x68a   : > { %v14461_v36 = vpack.c.bf16 %v16548_v33, %v16547_v10  ;;  %16551 = vst [vmem:[#allocation57_spill] sm:$0xff] %v14467_v63  ;;  %10158 = vmatpush1.bf16.msra.mxu1 %v14425_v5  ;;  %v6862_v33 = vand.u32 4294901760, %v6861_v16  ;;  %v6874_v10 = vand.u32 4294901760, %v6873_v24  ;;  %v16554_v63 = vand.u32 4294901760, %v14298_v34 }
 0x68b   : > { %16545 = vst [vmem:[#allocation82_spill] sm:$0xff] %v14448_v45  ;;  %v6879_v19 = vsub.f32 %v14284_v30, %v16552_v11  ;;  %10038 = vmatpush1.bf16.msra.mxu0 %v10037_v50  ;;  %v16555_v11 = vld [vmem:[#allocation74_spill] sm:$0xff]  ;;  %10160 = vmatprep.subr.bf16.mxu1 %v14448_v45  ;;  %v16556_v50 = vand.u32 4294901760, %v14414_v47  ;;  %v16557_v16 = vand.u32 4294901760, %v14416_v26  ;;  %v16561_v45 = vld [vmem:[#allocation56_spill] sm:$0xff]  ;;  %v6868_v5 = vand.u32 4294901760, %v6867_v3 }
 0x68c   : > { %16549 = vst [vmem:[#allocation52_spill] sm:$0xff] %v14461_v36  ;;  %v6897_v58 = vsub.f32 %v14298_v34, %v16554_v63  ;;  %10040 = vmatprep.subr.bf16.mxu0 %v16555_v11  ;;  %v16563_v28 = vand.u32 4294901760, %v14312_v1  ;;  %v16566_v21 = vand.u32 4294901760, %v14427_v56  ;;  %v10167_v3 = vpack.c.bf16 %v6874_v10, %v6862_v33 }
 0x68d   : > { %v14491_v24 = vpack.c.bf16 %v16557_v16, %v16556_v50  ;;  %v6880_v11 = vand.u32 4294901760, %v6879_v19  ;;  %v16562_v50 = vand.u32 4294901760, %v14310_v62  ;;  %v6886_v19 = vand.u32 4294901760, %v6885_v40 }
 0x68e   : > { %6366 = vmatmul.mubr.f32.vlgmr.msra.gmra.mrb[4].mxu0 %v16561_v45  ;;  %v6903_v20 = vsub.f32 %v14312_v1, %v16563_v28  ;;  %10162 = vmatpush1.bf16.msra.mxu1 %v14461_v36  ;;  %v14516_v63 = vpack.c.bf16 %v16566_v21, %v16565_v14  ;;  %v6898_v32 = vand.u32 4294901760, %v6897_v58  ;;  %v16570_v45 = vand.u32 4294901760, %v14324_v2 }
 0x68f   : > { %16558 = vst [vmem:[#allocation59_spill] sm:$0xff] %v14491_v24  ;;  %v6891_v16 = vsub.f32 %v14310_v62, %v16562_v50  ;;  %10042 = vmatpush1.bf16.msra.mxu0 %v16564_v44  ;;  %10164 = vmatprep.subr.bf16.mxu1 %v14491_v24  ;;  %v16569_v50 = vand.u32 4294901760, %v14319_v41  ;;  %v16571_v33 = vand.u32 4294901760, %v14392_v12  ;;  %v16573_v10 = vand.u32 4294901760, %v14396_v6 }
 0x690   : > { %16567 = vst [vmem:[#allocation64_spill] sm:$0xff] %v14516_v63  ;;  %10044 = vmatprep.subr.bf16.mxu0 %v16568_v0  ;;  %v6921_v36 = vsub.f32 %v14324_v2, %v16570_v45  ;;  %v16575_v21 = vand.u32 4294901760, %v14330_v27  ;;  %v16576_v45 = vand.u32 4294901760, %v14332_v4  ;;  %6468 = vmatprep.mubr.f32.mxu0 %v15970_v59  ;;  %v10169_v14 = vpack.c.bf16 %v6880_v11, %v6868_v5 }
 0x691   : > { %v6909_v28 = vsub.f32 %v14319_v41, %v16569_v50  ;;  %v14531_v58 = vsub.f32 %v14392_v12, %v16571_v33  ;;  %v14536_v40 = vsub.f32 %v14396_v6, %v16573_v10  ;;  %v6892_v24 = vand.u32 4294901760, %v6891_v16  ;;  %v16577_v33 = vld [vmem:[#allocation41_spill] sm:$0xff] }
 0x692   : > { %v6915_v50 = vsub.f32 %v14330_v27, %v16575_v21  ;;  %v6927_v44 = vsub.f32 %v14332_v4, %v16576_v45  ;;  %v6904_v0 = vand.u32 4294901760, %v6903_v20  ;;  %10166 = vmatpush1.bf16.msra.mxu1 %v14516_v63  ;;  %v10171_v6 = vpack.c.bf16 %v6898_v32, %v6886_v19  ;;  %v16578_v27 = vld [vmem:[#allocation46_spill] sm:$0xff] }
 0x693   : > { %16572 = vst [vmem:[#allocation66_spill] sm:$0xff] %v14531_v58  ;;  %16574 = vst [vmem:[#allocation67_spill] sm:$0xff] %v14536_v40  ;;  %10046 = vmatpush1.bf16.msra.mxu0 %v16577_v33  ;;  %10168 = vmatprep.subr.bf16.mxu1 %v10167_v3  ;;  %v6910_v45 = vand.u32 4294901760, %v6909_v28  ;;  %v6922_v5 = vand.u32 4294901760, %v6921_v36  ;;  %v16579_v11 = vand.u32 4294901760, %v14350_v51  ;;  %v16580_v20 = vand.u32 4294901760, %v14353_v7 }
 0x694   : > { %10048 = vmatprep.subr.bf16.mxu0 %v16578_v27  ;;  %v6916_v32 = vand.u32 4294901760, %v6915_v50  ;;  %v6928_v19 = vand.u32 4294901760, %v6927_v44  ;;  %v10173_v63 = vpack.c.bf16 %v6904_v0, %v6892_v24  ;;  %v16582_v3 = vand.u32 4294901760, %v14363_v8  ;;  %v16583_v27 = vld [vmem:[#allocation84_spill] sm:$0xff] }
 0x695   : > { %v6933_v16 = vsub.f32 %v14350_v51, %v16579_v11  ;;  %v6945_v12 = vsub.f32 %v14353_v7, %v16580_v20  ;;  %6852 = vmatmul.mubr.f32.vlgmr.msra.gmra.mrb[14].mxu1 %v16581_v18  ;;  %v16584_v44 = vand.u32 4294901760, %v14372_v23  ;;  %v16585_v20 = vand.u32 4294901760, %v14376_v15  ;;  %v16589_v11 = vld [vmem:[#allocation61_spill] sm:$0xff] }
 0x696   : > { %v6939_v36 = vsub.f32 %v14363_v8, %v16582_v3  ;;  %10170 = vmatpush1.bf16.msra.mxu1 %v10169_v14  ;;  %v16586_v0 = vand.u32 4294901760, %v14378_v46  ;;  %v16587_v3 = vand.u32 4294901760, %v14398_v52  ;;  %v10175_v14 = vpack.c.bf16 %v6922_v5, %v6910_v45  ;;  %7082 = vmatprep.mubr.f32.mxu1 %v15970_v59  ;;  %v16606_v5 = vld [vmem:[#allocation65_spill] sm:$0xff] }
 0x697   : > { %10050 = vmatpush1.bf16.msra.mxu0 %v16583_v27  ;;  %v6951_v50 = vsub.f32 %v14372_v23, %v16584_v44  ;;  %v6957_v21 = vsub.f32 %v14376_v15, %v16585_v20  ;;  %10172 = vmatprep.subr.bf16.mxu1 %v10171_v6  ;;  %v6934_v10 = vand.u32 4294901760, %v6933_v16  ;;  %v6946_v18 = vand.u32 4294901760, %v6945_v12 }
 0x698   : > { %v6969_v24 = vsub.f32 %v14378_v46, %v16586_v0  ;;  %v14579_v28 = vsub.f32 %v14398_v52, %v16587_v3  ;;  %10052 = vmatprep.subr.bf16.mxu0 %v16589_v11  ;;  %v16590_v44 = vand.u32 4294901760, %v14414_v47  ;;  %v10177_v20 = vpack.c.bf16 %v6928_v19, %v6916_v32  ;;  %v16596_v32 = vld [vmem:[#allocation88_spill] sm:$0xff] }
 0x699   : > { %v16592_v33 = vand.u32 4294901760, %v14394_v54  ;;  %v16593_v46 = vand.u32 4294901760, %v14423_v48  ;;  %v16594_v6 = vand.u32 4294901760, %v14444_v38  ;;  %v16595_v45 = vand.u32 4294901760, %v14455_v17 }
 0x69a   : > { %16588 = vst [vmem:[#allocation68_spill] sm:$0xff] %v14579_v28  ;;  %v14585_v27 = vsub.f32 %v14414_v47, %v16590_v44  ;;  %10174 = vmatpush1.bf16.msra.mxu1 %v10173_v63  ;;  %v6952_v19 = vand.u32 4294901760, %v6951_v50  ;;  %v6970_v3 = vand.u32 4294901760, %v6969_v24  ;;  %v16597_v44 = vand.u32 4294901760, %v14416_v26 }
 0x69b   : > { %v6963_v0 = vsub.f32 %v14394_v54, %v16592_v33  ;;  %v6975_v52 = vsub.f32 %v14423_v48, %v16593_v46  ;;  %v6981_v12 = vsub.f32 %v14444_v38, %v16594_v6  ;;  %v6993_v47 = vsub.f32 %v14455_v17, %v16595_v45  ;;  %10054 = vmatpush1.bf16.msra.mxu0 %v16596_v32  ;;  %v16599_v6 = vld [vmem:[#allocation92_spill] sm:$0xff] }
 0x69c   : > { %16591 = vst [vmem:[#allocation69_spill] sm:$0xff] %v14585_v27  ;;  %v6940_v33 = vand.u32 4294901760, %v6939_v36  ;;  %v6958_v46 = vand.u32 4294901760, %v6957_v21  ;;  %v14606_v11 = vsub.f32 %v14416_v26, %v16597_v44  ;;  %10056 = vmatprep.subr.bf16.mxu0 %v16599_v6  ;;  %10176 = vmatprep.subr.bf16.mxu1 %v10175_v14  ;;  %v10179_v45 = vpack.c.bf16 %v6946_v18, %v6934_v10 }
 0x69d   : > { %v16600_v32 = vand.u32 4294901760, %v14420_v25  ;;  %v16602_v21 = vand.u32 4294901760, %v14427_v56  ;;  %v6964_v26 = vand.u32 4294901760, %v6963_v0  ;;  %v6976_v50 = vand.u32 4294901760, %v6975_v52  ;;  %v16607_v52 = vld [vmem:[#allocation75_spill] sm:$0xff]  ;;  %v16610_v0 = vld [vmem:[#allocation80_spill] sm:$0xff] }
 0x69e   : > { %16598 = vst [vmem:[#allocation76_spill] sm:$0xff] %v14606_v11  ;;  %v6982_v24 = vand.u32 4294901760, %v6981_v12  ;;  %v6994_v44 = vand.u32 4294901760, %v6993_v47  ;;  %v16604_v18 = vand.u32 4294901760, %v14483_v31  ;;  %v16605_v14 = vand.u32 4294901760, %v14496_v37  ;;  %10178 = vmatpush1.bf16.msra.mxu1 %v10177_v20  ;;  %v16612_v20 = vld [vmem:[#allocation39_spill] sm:$0xff] }
 0x69f   : > { %v14614_v63 = vsub.f32 %v14420_v25, %v16600_v32  ;;  %v14619_v36 = vsub.f32 %v14427_v56, %v16602_v21  ;;  %10058 = vmatpush1.bf16.msra.mxu0 %v16606_v5  ;;  %v10181_v25 = vpack.c.bf16 %v6952_v19, %v6940_v33  ;;  %v10183_v32 = vpack.c.bf16 %v6970_v3, %v6958_v46 }
 0x6a0   : > { %v6987_v10 = vsub.f32 %v14483_v31, %v16604_v18  ;;  %v6999_v16 = vsub.f32 %v14496_v37, %v16605_v14  ;;  %v15854_v56 = vand.u32 4294901760, %v14536_v40  ;;  %10060 = vmatprep.subr.bf16.mxu0 %v16607_v52  ;;  %10180 = vmatprep.subr.bf16.mxu1 %v10179_v45  ;;  %v16608_v12 = vand.u32 4294901760, %v14499_v39 }
 0x6a1   : > { %16601 = vst [vmem:[#allocation97_spill] sm:$0xff] %v14614_v63  ;;  %16603 = vst [vmem:[#allocation100_spill] sm:$0xff] %v14619_v36  ;;  %v16609_v21 = vand.u32 4294901760, %v14531_v58  ;;  %v10185_v33 = vpack.c.bf16 %v6976_v50, %v6964_v26  ;;  %v10187_v19 = vpack.c.bf16 %v6994_v44, %v6982_v24  ;;  %v16613_v50 = vand.u32 4294901760, %v14585_v27 }
 0x6a2   : > { %v7005_v47 = vsub.f32 %v14499_v39, %v16608_v12  ;;  %v6988_v46 = vand.u32 4294901760, %v6987_v10  ;;  %v7000_v3 = vand.u32 4294901760, %v6999_v16  ;;  %10182 = vmatpush1.bf16.msra.mxu1 %v10181_v25  ;;  %v7011_v45 = vsub.f32 %v14536_v40, %v15854_v56  ;;  %v16615_v56 = vld [vmem:[#allocation45_spill] sm:$0xff] }
 0x6a3   : > { %v7017_v18 = vsub.f32 %v14531_v58, %v16609_v21  ;;  %10062 = vmatpush1.bf16.msra.mxu0 %v16610_v0  ;;  %v16611_v12 = vand.u32 4294901760, %v14579_v28  ;;  %10184 = vmatprep.subr.bf16.mxu1 %v10183_v32  ;;  %v7029_v24 = vsub.f32 %v14585_v27, %v16613_v50  ;;  %v16614_v44 = vand.u32 4294901760, %v14606_v11 }
 0x6a4   : > { %10064 = vmatprep.subr.bf16.mxu0 %v16612_v20  ;;  %v7006_v26 = vand.u32 4294901760, %v7005_v47  ;;  %v10189_v25 = vpack.c.bf16 %v7000_v3, %v6988_v46  ;;  %v16616_v14 = vand.u32 4294901760, %v14614_v63  ;;  %v16617_v47 = vand.u32 4294901760, %v14619_v36  ;;  %v16618_v20 = vld [vmem:[#allocation48_spill] sm:$0xff] }
 0x6a5   : > { %v7023_v52 = vsub.f32 %v14579_v28, %v16611_v12  ;;  %v7018_v16 = vand.u32 4294901760, %v7017_v18  ;;  %v7041_v10 = vsub.f32 %v14606_v11, %v16614_v44  ;;  %v7012_v12 = vand.u32 4294901760, %v7011_v45 }
 0x6a6   : > { %10186 = vmatpush1.bf16.msra.mxu1 %v10185_v33  ;;  %v7035_v32 = vsub.f32 %v14614_v63, %v16616_v14  ;;  %v7047_v18 = vsub.f32 %v14619_v36, %v16617_v47  ;;  %v16619_v50 = vand.u32 4294901760, %v13842_v13  ;;  %v16620_v46 = vand.u32 4294901760, %v13846_v9  ;;  %v16625_v13 = vld [vmem:[#allocation40_spill] sm:$0xff]  ;;  %v16627_v9 = vld [vmem:[#allocation53_spill] sm:$0xff] }
 0x6a7   : > { %10066 = vmatpush1.bf16.msra.mxu0 %v16615_v56  ;;  %v7024_v21 = vand.u32 4294901760, %v7023_v52  ;;  %10188 = vmatprep.subr.bf16.mxu1 %v10187_v19  ;;  %v10191_v44 = vpack.c.bf16 %v7018_v16, %v7006_v26  ;;  %v7030_v33 = vand.u32 4294901760, %v7029_v24  ;;  %v7042_v45 = vand.u32 4294901760, %v7041_v10  ;;  %v16621_v52 = vld [vmem:[#allocation49_spill] sm:$0xff]  ;;  %v16629_v24 = vld [vmem:[#allocation58_spill] sm:$0xff] }
 0x6a8   : > { %10068 = vmatprep.subr.bf16.mxu0 %v16618_v20  ;;  %v10071_v3 = vpack.c.bf16 %v16620_v46, %v16619_v50  ;;  %v16622_v14 = vand.u32 4294901760, %v13848_v35  ;;  %v16623_v56 = vld [vmem:[#allocation37_spill] sm:$0xff]  ;;  %v7036_v6 = vand.u32 4294901760, %v7035_v32  ;;  %v7048_v20 = vand.u32 4294901760, %v7047_v18  ;;  %v16630_v10 = vld [vmem:[#allocation42_spill] sm:$0xff]  ;;  %v16636_v18 = vld [vmem:[#allocation71_spill] sm:$0xff] }
 0x6a9   : > { %v16624_v0 = vand.u32 4294901760, %v16623_v56  ;;  %v10193_v47 = vpack.c.bf16 %v7024_v21, %v7012_v12  ;;  %v16626_v19 = vand.u32 4294901760, %v16625_v13  ;;  %v16628_v50 = vand.u32 4294901760, %v16627_v9  ;;  %v16634_v12 = vld [vmem:[#allocation50_spill] sm:$0xff] }
 0x6aa   : > { %10190 = vmatpush1.bf16.msra.mxu1 %v10189_v25  ;;  %v10195_v16 = vpack.c.bf16 %v7042_v45, %v7030_v33  ;;  %v16631_v35 = vand.u32 4294901760, %v16630_v10  ;;  %v16632_v25 = vld [vmem:[#allocation44_spill] sm:$0xff]  ;;  %v10197_v21 = vpack.c.bf16 %v7048_v20, %v7036_v6  ;;  %v16635_v32 = vand.u32 4294901760, %v16634_v12  ;;  %v16640_v20 = vld [vmem:[#allocation85_spill] sm:$0xff] }
 0x6ab   : > { %10070 = vmatpush1.bf16.msra.mxu0 %v16621_v52  ;;  %v10073_v5 = vpack.c.bf16 %v16624_v0, %v16622_v14  ;;  %10192 = vmatprep.subr.bf16.mxu1 %v10191_v44  ;;  %v10075_v26 = vpack.c.bf16 %v16628_v50, %v16626_v19  ;;  %v16633_v56 = vand.u32 4294901760, %v16632_v25  ;;  %v16637_v46 = vand.u32 4294901760, %v16636_v18 }
 0x6ac   : > { %10072 = vmatprep.subr.bf16.mxu0 %v10071_v3  ;;  %v10199_v44 = vpack.c.bf16 %v14272_v22, %v14270_v29  ;;  %v16639_v33 = vand.u32 4294901760, %v13900_v53  ;;  %v10201_v6 = vpack.c.bf16 %v14284_v30, %v14282_v61  ;;  %v16641_v14 = vand.u32 4294901760, %v16640_v20  ;;  %v16660_v20 = vld [vmem:[#allocation51_spill] sm:$0xff] }
 0x6ad   : > { %v10077_v0 = vpack.c.bf16 %v16633_v56, %v16631_v35  ;;  %v10079_v3 = vpack.c.bf16 %v16637_v46, %v16635_v32  ;;  %v10203_v9 = vpack.c.bf16 %v14298_v34, %v14289_v43  ;;  %v16644_v53 = vand.u32 4294901760, %v13945_v49  ;;  %v16648_v35 = vld [vmem:[#allocation93_spill] sm:$0xff] }
 0x6ae   : > { %6472 = vmatmul.mubr.f32.vlgmr.msra.gmra.mrb[4].mxu0 %v16629_v24  ;;  %10194 = vmatpush1.bf16.msra.mxu1 %v10193_v47  ;;  %v16642_v47 = vld [vmem:[#allocation87_spill] sm:$0xff]  ;;  %v16649_v25 = vand.u32 4294901760, %v16648_v35  ;;  %v16650_v49 = vand.u32 4294901760, %v13972_v60  ;;  %v16653_v32 = vld [vmem:[#allocation101_spill] sm:$0xff] }
 0x6af   : > { %10074 = vmatpush1.bf16.msra.mxu0 %v10073_v5  ;;  %10196 = vmatprep.subr.bf16.mxu1 %v10195_v16  ;;  %v16638_v5 = vand.u32 4294901760, %v13894_v57  ;;  %v16643_v13 = vand.u32 4294901760, %v16642_v47  ;;  %v16645_v57 = vand.u32 4294901760, %v13947_v55  ;;  %v16646_v16 = vld [vmem:[#allocation90_spill] sm:$0xff]  ;;  %v16651_v55 = vld [vmem:[#allocation73_spill] sm:$0xff]  ;;  %v10209_v18 = vpack.c.bf16 %v14332_v4, %v16653_v32 }
 0x6b0   : > { %10076 = vmatprep.subr.bf16.mxu0 %v10075_v26  ;;  %6638 = vmatprep.mubr.f32.mxu0 %v15970_v59  ;;  %v10205_v26 = vpack.c.bf16 %v14312_v1, %v14310_v62  ;;  %v16647_v10 = vand.u32 4294901760, %v16646_v16  ;;  %v16654_v46 = vld [vmem:[#allocation77_spill] sm:$0xff] }
 0x6b1   : > { %v10081_v45 = vpack.c.bf16 %v16639_v33, %v16638_v5  ;;  %v10083_v19 = vpack.c.bf16 %v16643_v13, %v16641_v14  ;;  %v10085_v50 = vpack.c.bf16 %v16645_v57, %v16644_v53  ;;  %v16661_v14 = vand.u32 4294901760, %v16660_v20  ;;  %v16664_v53 = vld [vmem:[#allocation54_spill] sm:$0xff] }
 0x6b2   : > { %10198 = vmatpush1.bf16.msra.mxu1 %v10197_v21  ;;  %v10087_v56 = vpack.c.bf16 %v16649_v25, %v16647_v10  ;;  %v16652_v21 = vand.u32 4294901760, %v16651_v55  ;;  %v10213_v13 = vpack.c.bf16 %v14372_v23, %v14363_v8  ;;  %v16665_v57 = vand.u32 4294901760, %v16664_v53  ;;  %v16667_v10 = vld [vmem:[#allocation43_spill] sm:$0xff]  ;;  %v16671_v55 = vld [vmem:[#allocation72_spill] sm:$0xff]  ;;  %v16681_v53 = vld [vmem:[#allocation38_spill] sm:$0xff] }
 0x6b3   : > { %10078 = vmatpush1.bf16.msra.mxu0 %v10077_v0  ;;  %10200 = vmatprep.subr.bf16.mxu1 %v10199_v44  ;;  %v10207_v0 = vpack.c.bf16 %v14324_v2, %v14319_v41  ;;  %v16656_v44 = vld [vmem:[#allocation78_spill] sm:$0xff]  ;;  %v16668_v35 = vand.u32 4294901760, %v16667_v10  ;;  %v16669_v25 = vld [vmem:[#allocation47_spill] sm:$0xff]  ;;  %v10223_v20 = vpack.c.bf16 %v14531_v58, %v14499_v39 }
 0x6b4   : > { %10080 = vmatprep.subr.bf16.mxu0 %v10079_v3  ;;  %v10089_v12 = vpack.c.bf16 %v16652_v21, %v16650_v49  ;;  %v16655_v3 = vand.u32 4294901760, %v16654_v46  ;;  %v16657_v5 = vand.u32 4294901760, %v16656_v44  ;;  %v10217_v49 = vpack.c.bf16 %v14423_v48, %v14394_v54  ;;  %v16675_v44 = vld [vmem:[#allocation89_spill] sm:$0xff]  ;;  %v16683_v10 = vld [vmem:[#allocation46_spill] sm:$0xff] }
 0x6b5   : > { %7084 = vmatmul.mubr.f32.vlgmr.msra.gmra.mrb[14].mxu1 %v16055_v42  ;;  %v16672_v21 = vand.u32 4294901760, %v16671_v55  ;;  %v16685_v55 = vld [vmem:[#allocation56_spill] sm:$0xff] }
 0x6b6   : > { %10202 = vmatpush1.bf16.msra.mxu1 %v10201_v6  ;;  %7218 = vmatprep.mubr.f32.mxu1 %v15970_v59  ;;  %v10091_v33 = vpack.c.bf16 %v16657_v5, %v16655_v3  ;;  %v16658_v6 = vld [vmem:[#allocation79_spill] sm:$0xff]  ;;  %v10219_v3 = vpack.c.bf16 %v14455_v17, %v14444_v38  ;;  %v16676_v5 = vand.u32 4294901760, %v16675_v44  ;;  %v16688_v44 = vld [vmem:[#allocation61_spill] sm:$0xff] }
 0x6b7   : > { %10082 = vmatpush1.bf16.msra.mxu0 %v10081_v45  ;;  %10204 = vmatprep.subr.bf16.mxu1 %v10203_v9  ;;  %v10211_v45 = vpack.c.bf16 %v14353_v7, %v14350_v51  ;;  %v16659_v60 = vand.u32 4294901760, %v16658_v6 }
 0x6b8   : > { %10084 = vmatprep.subr.bf16.mxu0 %v10083_v19  ;;  %v16662_v19 = vld [vmem:[#allocation35_spill] sm:$0xff] }
 0x6b9   : > { %v10093_v47 = vpack.c.bf16 %v16661_v14, %v16659_v60  ;;  %v16663_v9 = vand.u32 4294901760, %v16662_v19  ;;  %v10221_v60 = vpack.c.bf16 %v14496_v37, %v14483_v31  ;;  %v10225_v14 = vpack.c.bf16 %v14579_v28, %v14536_v40  ;;  %v16680_v19 = vld [vmem:[#allocation36_spill] sm:$0xff] }
 0x6ba   : > { %10206 = vmatpush1.bf16.msra.mxu1 %v10205_v26  ;;  %v16666_v26 = vld [vmem:[#allocation105_spill] sm:$0xff] }
 0x6bb   : > { %10086 = vmatpush1.bf16.msra.mxu0 %v10085_v50  ;;  %10208 = vmatprep.subr.bf16.mxu1 %v10207_v0  ;;  %v10095_v50 = vpack.c.bf16 %v16665_v57, %v16663_v9  ;;  %v10215_v16 = vpack.c.bf16 %v16666_v26, %v14376_v15  ;;  %v10229_v9 = vpack.c.bf16 %v14619_v36, %v14614_v63  ;;  %v2909_v57 = vld [vmem:[#allocation18 + $0x58] sm:$0xff] }
 0x6bc   : > { %10088 = vmatprep.subr.bf16.mxu0 %v10087_v56  ;;  %v16670_v56 = vand.u32 4294901760, %v16669_v25 }
 0x6be   : > { %10210 = vmatpush1.bf16.msra.mxu1 %v10209_v18  ;;  %v10097_v0 = vpack.c.bf16 %v16670_v56, %v16668_v35  ;;  %v16684_v35 = vld [vmem:[#allocation94_spill] sm:$0xff]  ;;  %v2957_v56 = vunpack.c.0.s8 %v2909_v57 }
 0x6bf   : > { %10090 = vmatpush1.bf16.msra.mxu0 %v10089_v12  ;;  %10212 = vmatprep.subr.bf16.mxu1 %v10211_v45  ;;  %v16673_v12 = vld [vmem:[#allocation86_spill] sm:$0xff] }
 0x6c0   : > { %10092 = vmatprep.subr.bf16.mxu0 %v10091_v33  ;;  %v16674_v18 = vand.u32 4294901760, %v16673_v12  ;;  %v16677_v33 = vld [vmem:[#allocation91_spill] sm:$0xff]  ;;  %v16686_v12 = vld [vmem:[#allocation84_spill] sm:$0xff] }
 0x6c1   : > { %v16678_v45 = vand.u32 4294901760, %v16677_v33  ;;  %v2981_v33 = vunpack.c.2.s8 %v2909_v57 }
 0x6c2   : > { %10214 = vmatpush1.bf16.msra.mxu1 %v10213_v13  ;;  %v10099_v46 = vpack.c.bf16 %v16674_v18, %v16672_v21  ;;  %v10227_v13 = vpack.c.bf16 %v14606_v11, %v14585_v27  ;;  %v16687_v18 = vld [vmem:[#allocation95_spill] sm:$0xff] }
 0x6c3   : > { %10094 = vmatpush1.bf16.msra.mxu0 %v10093_v47  ;;  %10216 = vmatprep.subr.bf16.mxu1 %v10215_v16  ;;  %v10101_v6 = vpack.c.bf16 %v16678_v45, %v16676_v5  ;;  %v16679_v47 = vld [vmem:[#allocation74_spill] sm:$0xff]  ;;  %v2908_v16 = vld [vmem:[#allocation18 + $0x50] sm:$0xff]  ;;  %v2993_v45 = vunpack.c.3.s8 %v2909_v57 }
 0x6c4   : > { %10096 = vmatprep.subr.bf16.mxu0 %v10095_v50  ;;  %v16682_v50 = vld [vmem:[#allocation41_spill] sm:$0xff]  ;;  %v2956_v21 = vunpack.c.0.s8 %v2908_v16  ;;  %v16689_v5 = vld [vmem:[#allocation96_spill] sm:$0xff] }
 0x6c6   : > { %10218 = vmatpush1.bf16.msra.mxu1 %v10217_v49 }
 0x6c7   : > { %10098 = vmatpush1.bf16.msra.mxu0 %v10097_v0  ;;  %10220 = vmatprep.subr.bf16.mxu1 %v10219_v3  ;;  %v2969_v0 = vunpack.c.1.s8 %v2909_v57  ;;  %v16692_v57 = vld [vmem:[#allocation92_spill] sm:$0xff] }
 0x6c8   : > { %10100 = vmatprep.subr.bf16.mxu0 %v10099_v46  ;;  %v2968_v46 = vunpack.c.1.s8 %v2908_v16 }
 0x6ca   : > { %10222 = vmatpush1.bf16.msra.mxu1 %v10221_v60  ;;  %v3149_v60 = vcvt.s32.f32 %v2957_v56 }
 0x6cb   : > { %10102 = vmatpush1.bf16.msra.mxu0 %v10101_v6  ;;  %10224 = vmatprep.subr.bf16.mxu1 %v10223_v20  ;;  %v14777_v6 = vld [vmem:[#allocation18 + $0xb8] sm:$0xff]  ;;  %v3161_v20 = vcvt.s32.f32 %v2969_v0  ;;  %v3173_v0 = vcvt.s32.f32 %v2981_v33  ;;  %v16696_v33 = vld [vmem:[#allocation75_spill] sm:$0xff] }
 0x6cc   : > { %10104 = vmatprep.subr.bf16.mxu0 %v16679_v47  ;;  %v3148_v47 = vcvt.s32.f32 %v2956_v21  ;;  %v7605_v21 = vand.u32 4294901760, %v3149_v60 }
 0x6ce   : > { %6640 = vmatmul.mubr.f32.vlgmr.msra.gmra.mrb[4].mxu0 %v16055_v42  ;;  %10226 = vmatpush1.bf16.msra.mxu1 %v10225_v14 }
 0x6cf   : > { %10106 = vmatpush1.bf16.msra.mxu0 %v16680_v19  ;;  %10228 = vmatprep.subr.bf16.mxu1 %v10227_v13  ;;  %v2980_v13 = vunpack.c.2.s8 %v2908_v16  ;;  %v2992_v19 = vunpack.c.3.s8 %v2908_v16  ;;  %v7609_v16 = vand.u32 4294901760, %v3161_v20 }
 0x6d0   : > { %10108 = vmatprep.subr.bf16.mxu0 %v16681_v53  ;;  %6742 = vmatprep.mubr.f32.mxu0 %v15970_v59  ;;  %v16691_v53 = vld [vmem:[#allocation98_spill] sm:$0xff] }
 0x6d2   : > { %10230 = vmatpush1.bf16.msra.mxu1 %v10229_v9  ;;  %v16690_v9 = vld [vmem:[#allocation88_spill] sm:$0xff] }
 0x6d3   : > { %10110 = vmatpush1.bf16.msra.mxu0 %v16682_v50  ;;  %10232 = vmatprep.subr.bf16.mxu1 %v16684_v35  ;;  %v3160_v50 = vcvt.s32.f32 %v2968_v46  ;;  %v16694_v46 = vld [vmem:[#allocation65_spill] sm:$0xff] }
 0x6d4   : > { %10112 = vmatprep.subr.bf16.mxu0 %v16683_v10  ;;  %v2885_v25 = vpop.xlane.xlu0 %2884  ;;  %v3005_v10 = vunpack.c.0.s8 %v14777_v6 }
 0x6d5   : > { %v2886_v49 = vrot.slane %v2885_v25, 4  ;;  %7221 = vmatmul.mubr.f32.vlgmr.msra.gmra.mrb[14].mxu1 %v16685_v55  ;;  %v7611_v35 = vand.u32 4294901760, %v3160_v50 }
 0x6d6   : > { %10234 = vmatpush1.bf16.msra.mxu1 %v16687_v18  ;;  %7323 = vmatprep.mubr.f32.mxu1 %v15970_v59  ;;  %v16695_v18 = vld [vmem:[#allocation99_spill] sm:$0xff]  ;;  %v3197_v36 = vcvt.s32.f32 %v3005_v10 }
 0x6d7   : > { %10114 = vmatpush1.bf16.msra.mxu0 %v16686_v12  ;;  %v2887_v3 = vadd.f32 %v2886_v49, %v2885_v25  ;;  %10236 = vmatprep.subr.bf16.mxu1 %v16689_v5  ;;  %v3017_v25 = vunpack.c.1.s8 %v14777_v6  ;;  %v16693_v49 = vld [vmem:[#allocation70_spill] sm:$0xff]  ;;  %v3185_v12 = vcvt.s32.f32 %v2993_v45  ;;  %v3172_v5 = vcvt.s32.f32 %v2980_v13 }
 0x6d8   : > { %10116 = vmatprep.subr.bf16.mxu0 %v16688_v44  ;;  %v14786_v44 = vld [vmem:[#allocation18 + $0xb0] sm:$0xff]  ;;  %v16697_v45 = vld [vmem:[#allocation102_spill] sm:$0xff]  ;;  %v14794_v13 = vpack.c.bf16 %v7609_v16, %v7605_v21  ;;  %v7621_v27 = vand.u32 4294901760, %v3197_v36 }
 0x6d9   : > { %v2888_v14 = vrot.slane %v2887_v3, 2  ;;  %v7617_v63 = vand.u32 4294901760, %v3185_v12  ;;  %v3016_v11 = vunpack.c.1.s8 %v14786_v44  ;;  %v7615_v10 = vand.u32 4294901760, %v3172_v5 }
 0x6da   : > { %10238 = vmatpush1.bf16.msra.mxu1 %v16691_v53  ;;  %v3184_v53 = vcvt.s32.f32 %v2992_v19  ;;  %16698 = vst [vmem:[#allocation49_spill] sm:$0xff] %v14794_v13  ;;  %v14796_v19 = vsub.f32 %v3149_v60, %v7605_v21  ;;  %v16702_v60 = vld [vmem:[#allocation39_spill] sm:$0xff]  ;;  %v3040_v39 = vunpack.c.3.s8 %v14786_v44 }
 0x6db   : > { %10118 = vmatpush1.bf16.msra.mxu0 %v16690_v9  ;;  %10240 = vmatprep.subr.bf16.mxu1 %v16693_v49  ;;  %v2889_v56 = vadd.f32 %v2888_v14, %v2887_v3  ;;  %v7607_v9 = vand.u32 4294901760, %v3148_v47  ;;  %v3004_v49 = vunpack.c.0.s8 %v14786_v44  ;;  %v7613_v14 = vand.u32 4294901760, %v3173_v0 }
 0x6dc   : > { %10120 = vmatprep.subr.bf16.mxu0 %v16692_v57  ;;  %v3209_v57 = vcvt.s32.f32 %v3017_v25  ;;  %v7619_v25 = vand.u32 4294901760, %v3184_v53 }
 0x6dd   : > { %v2890_v55 = vrot.slane %v2889_v56, 1  ;;  %v3196_v40 = vcvt.s32.f32 %v3004_v49  ;;  %v14808_v21 = vsub.f32 %v3148_v47, %v7607_v9  ;;  %v14814_v58 = vsub.f32 %v3173_v0, %v7613_v14  ;;  %v2933_v49 = vld [vmem:[#allocation18 + $0x118] sm:$0xff] }
 0x6de   : > { %10242 = vmatpush1.bf16.msra.mxu1 %v16695_v18  ;;  %v3029_v18 = vunpack.c.2.s8 %v14777_v6  ;;  %v7625_v28 = vand.u32 4294901760, %v3209_v57  ;;  %v14820_v37 = vpack.c.bf16 %v7619_v25, %v7615_v10  ;;  %v16711_v0 = vand.u32 4294901760, %v14272_v22 }
 0x6df   : > { %10122 = vmatpush1.bf16.msra.mxu0 %v16694_v46  ;;  %v2891_v3 = vadd.f32 %v2890_v55, %v2889_v56  ;;  %10244 = vmatprep.subr.bf16.mxu1 %v16697_v45  ;;  %v14798_v46 = vsub.f32 %v3161_v20, %v7609_v16  ;;  %v3041_v55 = vunpack.c.3.s8 %v14777_v6  ;;  %v16699_v56 = vld [vmem:[#allocation80_spill] sm:$0xff]  ;;  %v14804_v45 = vpack.c.bf16 %v7611_v35, %v7607_v9 }
 0x6e0   : > { %10124 = vmatprep.subr.bf16.mxu0 %v16696_v33  ;;  %v16700_v33 = vld [vmem:[#allocation103_spill] sm:$0xff]  ;;  %v16703_v20 = vld [vmem:[#allocation104_spill] sm:$0xff]  ;;  %v14810_v16 = vsub.f32 %v3160_v50, %v7611_v35  ;;  %v3208_v6 = vcvt.s32.f32 %v3016_v11  ;;  %16705 = vst [vmem:[#allocation53_spill] sm:$0xff] %v14820_v37  ;;  %v3221_v47 = vcvt.s32.f32 %v3029_v18  ;;  %v16707_v35 = vld [vmem:[#allocation45_spill] sm:$0xff]  ;;  %v14826_v11 = vsub.f32 %v3184_v53, %v7619_v25 }
 0x6e1   : > { %10624 = vpush %v2891_v3  ;;  %16701 = vst [vmem:[#allocation37_spill] sm:$0xff] %v14804_v45  ;;  %v14812_v3 = vpack.c.bf16 %v7617_v63, %v7613_v14  ;;  %v3233_v9 = vcvt.s32.f32 %v3041_v55  ;;  %v16708_v50 = vld [vmem:[#allocation106_spill] sm:$0xff]  ;;  %v7623_v14 = vand.u32 4294901760, %v3196_v40  ;;  %v16713_v18 = vld [vmem:[#allocation107_spill] sm:$0xff]  ;;  %v3053_v53 = vunpack.c.0.s8 %v2933_v49 }
 0x6e2   : > { %10246 = vmatpush1.bf16.msra.mxu1 %v16700_v33  ;;  %v3028_v33 = vunpack.c.2.s8 %v14786_v44  ;;  %16709 = vst [vmem:[#allocation44_spill] sm:$0xff] %v14826_v11  ;;  %v14834_v44 = vpack.c.bf16 %v7625_v28, %v7621_v27  ;;  %v7627_v55 = vand.u32 4294901760, %v3208_v6  ;;  %v3065_v25 = vunpack.c.1.s8 %v2933_v49 }
 0x6e3   : > { %10126 = vmatpush1.bf16.msra.mxu0 %v16699_v56  ;;  %10248 = vmatprep.subr.bf16.mxu1 %v16703_v20  ;;  %16704 = vst [vmem:[#allocation40_spill] sm:$0xff] %v14812_v3  ;;  %v14816_v56 = vsub.f32 %v3185_v12, %v7617_v63  ;;  %v16710_v63 = vand.u32 4294901760, %v14270_v29  ;;  %v14836_v20 = vld [vmem:[#allocation18 + $0x110] sm:$0xff]  ;;  %v16714_v29 = vand.u32 4294901760, %v14282_v61  ;;  %v16715_v22 = vand.u32 4294901760, %v14284_v30 }
 0x6e4   : > { %10128 = vmatprep.subr.bf16.mxu0 %v16702_v60  ;;  %v14822_v60 = vsub.f32 %v3172_v5, %v7615_v10  ;;  %v16712_v5 = vld [vmem:[#allocation48_spill] sm:$0xff]  ;;  %v14840_v10 = vsub.f32 %v3197_v36, %v7621_v27  ;;  %v7629_v11 = vand.u32 4294901760, %v3221_v47  ;;  %v3064_v27 = vunpack.c.1.s8 %v14836_v20  ;;  %v16716_v36 = vld [vmem:[#allocation81_spill] sm:$0xff] }
 0x6e5   : > { %v14832_v12 = vpack.c.bf16 %v16711_v0, %v16710_v63  ;;  %v14848_v63 = vpack.c.bf16 %v16715_v22, %v16714_v29  ;;  %v3220_v0 = vcvt.s32.f32 %v3028_v33  ;;  %v16718_v61 = vand.u32 4294901760, %v14289_v43  ;;  %v16720_v29 = vld [vmem:[#allocation82_spill] sm:$0xff] }
 0x6e6   : > { %16706 = vst [vmem:[#allocation42_spill] sm:$0xff] %v14822_v60  ;;  %10250 = vmatpush1.bf16.msra.mxu1 %v16708_v50  ;;  %v3232_v50 = vcvt.s32.f32 %v3040_v39  ;;  %v7633_v60 = vand.u32 4294901760, %v3233_v9  ;;  %v16719_v30 = vand.u32 4294901760, %v14298_v34  ;;  %v3077_v33 = vunpack.c.2.s8 %v2933_v49 }
 0x6e7   : > { %10130 = vmatpush1.bf16.msra.mxu0 %v16707_v35  ;;  %10252 = vmatprep.subr.bf16.mxu1 %v16713_v18  ;;  %v14842_v35 = vsub.f32 %v3209_v57, %v7625_v28  ;;  %v14854_v28 = vsub.f32 %v3196_v40, %v7623_v14  ;;  %v3089_v39 = vunpack.c.3.s8 %v2933_v49  ;;  %v14864_v22 = vpack.c.bf16 %v7627_v55, %v7623_v14 }
 0x6e8   : > { %10132 = vmatprep.subr.bf16.mxu0 %v16712_v5  ;;  %v3052_v5 = vunpack.c.0.s8 %v14836_v20  ;;  %v14860_v57 = vpack.c.bf16 %v16719_v30, %v16718_v61  ;;  %v3245_v18 = vcvt.s32.f32 %v3053_v53  ;;  %v3257_v43 = vcvt.s32.f32 %v3065_v25  ;;  %v16724_v25 = vld [vmem:[#allocation59_spill] sm:$0xff] }
 0x6e9   : > { %16717 = vst [vmem:[#allocation50_spill] sm:$0xff] %v14854_v28  ;;  %v14872_v28 = vsub.f32 %v3208_v6, %v7627_v55  ;;  %v14874_v34 = vsub.f32 %v3221_v47, %v7629_v11  ;;  %v7631_v61 = vand.u32 4294901760, %v3220_v0  ;;  %v7635_v49 = vand.u32 4294901760, %v3232_v50 }
 0x6ea   : > { %10254 = vmatpush1.bf16.msra.mxu1 %v16716_v36  ;;  %v16722_v36 = vand.u32 4294901760, %v14312_v1  ;;  %v14877_v30 = vpack.c.bf16 %v7633_v60, %v7629_v11  ;;  %v3244_v14 = vcvt.s32.f32 %v3052_v5  ;;  %v16723_v1 = vld [vmem:[#allocation52_spill] sm:$0xff]  ;;  %v14884_v6 = vsub.f32 %v3233_v9, %v7633_v60 }
 0x6eb   : > { %10134 = vmatpush1.bf16.msra.mxu0 %v16621_v52  ;;  %10256 = vmatprep.subr.bf16.mxu1 %v16720_v29  ;;  %v16721_v52 = vand.u32 4294901760, %v14310_v62  ;;  %v3076_v62 = vunpack.c.2.s8 %v14836_v20  ;;  %v14880_v29 = vld [vmem:[#allocation18 + $0x178] sm:$0xff]  ;;  %v3269_v47 = vcvt.s32.f32 %v3077_v33  ;;  %v3281_v55 = vcvt.s32.f32 %v3089_v39 }
 0x6ec   : > { %10328 = vmatprep.subr.bf16.mxu0 %v14794_v13  ;;  %v3256_v13 = vcvt.s32.f32 %v3064_v27  ;;  %v3088_v53 = vunpack.c.3.s8 %v14836_v20  ;;  %v16725_v11 = vand.u32 4294901760, %v14319_v41  ;;  %v16726_v5 = vand.u32 4294901760, %v14324_v2  ;;  %v2944_v41 = vld [vmem:[#allocation18 + $0x170] sm:$0xff] }
 0x6ed   : > { %v14870_v40 = vpack.c.bf16 %v16722_v36, %v16721_v52  ;;  %v7637_v36 = vand.u32 4294901760, %v3245_v18  ;;  %v7641_v52 = vand.u32 4294901760, %v3257_v43  ;;  %v16728_v60 = vand.u32 4294901760, %v14332_v4 }
 0x6ee   : > { %6744 = vmatmul.mubr.f32.vlgmr.msra.gmra.mrb[4].mxu0 %v16055_v42  ;;  %10258 = vmatpush1.bf16.msra.mxu1 %v16723_v1  ;;  %v10271_v27 = vpack.c.bf16 %v16726_v5, %v16725_v11  ;;  %v16727_v1 = vand.u32 4294901760, %v16653_v32  ;;  %v14899_v33 = vpack.c.bf16 %v7635_v49, %v7631_v61  ;;  %v14901_v20 = vsub.f32 %v3220_v0, %v7631_v61 }
 0x6ef   : > { %10330 = vmatpush1.bf16.msra.mxu0 %v14804_v45  ;;  %10260 = vmatprep.subr.bf16.mxu1 %v16724_v25  ;;  %v3101_v39 = vunpack.c.0.s8 %v14880_v29  ;;  %v14906_v2 = vsub.f32 %v3232_v50, %v7635_v49  ;;  %v7639_v11 = vand.u32 4294901760, %v3244_v14  ;;  %v7643_v5 = vand.u32 4294901760, %v3256_v13  ;;  %v16730_v45 = vld [vmem:[#allocation64_spill] sm:$0xff] }
 0x6f0   : > { %10332 = vmatprep.subr.bf16.mxu0 %v14812_v3  ;;  %v14897_v9 = vpack.c.bf16 %v16728_v60, %v16727_v1  ;;  %16729 = vst [vmem:[#allocation71_spill] sm:$0xff] %v14899_v33  ;;  %v3113_v3 = vunpack.c.1.s8 %v14880_v29  ;;  %7701 = vmatprep.mubr.f32.mxu0 %v15970_v59  ;;  %v3268_v32 = vcvt.s32.f32 %v3076_v62  ;;  %v14910_v4 = vsub.f32 %v3245_v18, %v7637_v36 }
 0x6f1   : > { %v7645_v0 = vand.u32 4294901760, %v3269_v47  ;;  %v7649_v61 = vand.u32 4294901760, %v3281_v55  ;;  %v3280_v1 = vcvt.s32.f32 %v3088_v53  ;;  %v14914_v60 = vpack.c.bf16 %v7641_v52, %v7637_v36 }
 0x6f2   : > { %10262 = vmatpush1.bf16.msra.mxu1 %v16730_v45  ;;  %16731 = vst [vmem:[#allocation85_spill] sm:$0xff] %v14910_v4  ;;  %v14916_v50 = vsub.f32 %v3257_v43, %v7641_v52  ;;  %v3100_v49 = vunpack.c.0.s8 %v2944_v41  ;;  %v3112_v25 = vunpack.c.1.s8 %v2944_v41  ;;  %v16733_v62 = vand.u32 4294901760, %v14350_v51 }
 0x6f3   : > { %10334 = vmatpush1.bf16.msra.mxu0 %v14820_v37  ;;  %10264 = vmatprep.subr.bf16.mxu1 %v14832_v12  ;;  %16732 = vst [vmem:[#allocation87_spill] sm:$0xff] %v14914_v60  ;;  %v16734_v45 = vand.u32 4294901760, %v14353_v7  ;;  %v16735_v18 = vand.u32 4294901760, %v14363_v8  ;;  %v16736_v42 = vand.u32 4294901760, %v14372_v23  ;;  %v3293_v12 = vcvt.s32.f32 %v3101_v39 }
 0x6f4   : > { %10336 = vmatprep.subr.bf16.mxu0 %v14834_v44  ;;  %v3305_v4 = vcvt.s32.f32 %v3113_v3  ;;  %v14929_v36 = vpack.c.bf16 %v7643_v5, %v7639_v11  ;;  %v14931_v43 = vsub.f32 %v3244_v14, %v7639_v11  ;;  %v14933_v52 = vsub.f32 %v3256_v13, %v7643_v5 }
 0x6f5   : > { %v10275_v37 = vpack.c.bf16 %v16734_v45, %v16733_v62  ;;  %v14926_v53 = vpack.c.bf16 %v16736_v42, %v16735_v18  ;;  %7327 = vmatmul.mubr.f32.vlgmr.msra.gmra.mrb[14].mxu1 %v16629_v24  ;;  %v7647_v51 = vand.u32 4294901760, %v3268_v32  ;;  %v14937_v7 = vpack.c.bf16 %v7649_v61, %v7645_v0 }
 0x6f6   : > { %16737 = vst [vmem:[#allocation90_spill] sm:$0xff] %v14929_v36  ;;  %10266 = vmatpush1.bf16.msra.mxu1 %v14848_v63  ;;  %v14939_v8 = vsub.f32 %v3269_v47, %v7645_v0  ;;  %v14941_v42 = vsub.f32 %v3281_v55, %v7649_v61  ;;  %v7651_v23 = vand.u32 4294901760, %v3280_v1  ;;  %v3292_v45 = vcvt.s32.f32 %v3100_v49  ;;  %7493 = vmatprep.mubr.f32.mxu1 %v15970_v59 }
 0x6f7   : > { %10338 = vmatpush1.bf16.msra.mxu0 %v14864_v22  ;;  %16738 = vst [vmem:[#allocation93_spill] sm:$0xff] %v14937_v7  ;;  %10268 = vmatprep.subr.bf16.mxu1 %v14860_v57  ;;  %v3304_v3 = vcvt.s32.f32 %v3112_v25  ;;  %v3125_v13 = vunpack.c.2.s8 %v14880_v29  ;;  %v3137_v14 = vunpack.c.3.s8 %v14880_v29  ;;  %v7653_v63 = vand.u32 4294901760, %v3293_v12 }
 0x6f8   : > { %10340 = vmatprep.subr.bf16.mxu0 %v14877_v30  ;;  %v7657_v39 = vand.u32 4294901760, %v3305_v4  ;;  %v3124_v11 = vunpack.c.2.s8 %v2944_v41  ;;  %v3136_v5 = vunpack.c.3.s8 %v2944_v41  ;;  %v14948_v47 = vsub.f32 %v3268_v32, %v7647_v51 }
 0x6f9   : > { %v16739_v55 = vand.u32 4294901760, %v14376_v15  ;;  %v16740_v57 = vand.u32 4294901760, %v16666_v26  ;;  %v16741_v61 = vand.u32 4294901760, %v14394_v54  ;;  %v16742_v25 = vand.u32 4294901760, %v14423_v48 }
 0x6fa   : > { %v15878_v29 = vand.u32 4294901760, %v14796_v19  ;;  %10270 = vmatpush1.bf16.msra.mxu1 %v14870_v40  ;;  %v14963_v41 = vpack.c.bf16 %v7651_v23, %v7647_v51  ;;  %v14965_v32 = vsub.f32 %v3280_v1, %v7651_v23  ;;  %v16744_v15 = vand.u32 4294901760, %v14444_v38 }
 0x6fb   : > { %v10279_v0 = vpack.c.bf16 %v16740_v57, %v16739_v55  ;;  %v14958_v49 = vpack.c.bf16 %v16742_v25, %v16741_v61  ;;  %10342 = vmatpush1.bf16.msra.mxu0 %v14899_v33  ;;  %v16745_v26 = vand.u32 4294901760, %v14455_v17  ;;  %v15877_v54 = vand.u32 4294901760, %v14798_v46  ;;  %10272 = vmatprep.subr.bf16.mxu1 %v10271_v27 }
 0x6fc   : > { %16743 = vst [vmem:[#allocation73_spill] sm:$0xff] %v14963_v41  ;;  %10344 = vmatprep.subr.bf16.mxu0 %v14914_v60  ;;  %v7655_v48 = vand.u32 4294901760, %v3292_v45  ;;  %v7659_v18 = vand.u32 4294901760, %v3304_v3  ;;  %v3317_v40 = vcvt.s32.f32 %v3125_v13  ;;  %v14975_v55 = vcvt.s32.f32 %v3137_v14 }
 0x6fd   : > { %v14971_v62 = vpack.c.bf16 %v16745_v26, %v16744_v15  ;;  %v14977_v51 = vpack.c.bf16 %v7657_v39, %v7653_v63  ;;  %v14979_v1 = vcvt.s32.f32 %v3124_v11  ;;  %v14981_v23 = vcvt.s32.f32 %v3136_v5  ;;  %v16748_v11 = vld [vmem:[#allocation62_spill] sm:$0xff] }
 0x6fe   : > { %v15882_v38 = vand.u32 4294901760, %v14808_v21  ;;  %v14984_v17 = vsub.f32 %v3293_v12, %v7653_v63  ;;  %v14986_v57 = vsub.f32 %v3305_v4, %v7657_v39  ;;  %v7716_v27 = vsub.f32 %v14796_v19, %v15878_v29  ;;  %10274 = vmatpush1.bf16.msra.mxu1 %v14897_v9  ;;  %v16752_v26 = vld [vmem:[#allocation66_spill] sm:$0xff] }
 0x6ff   : > { %16746 = vst [vmem:[#allocation101_spill] sm:$0xff] %v14977_v51  ;;  %10346 = vmatpush1.bf16.msra.mxu0 %v14929_v36  ;;  %v16747_v14 = vand.u32 4294901760, %v14483_v31  ;;  %v16749_v5 = vand.u32 4294901760, %v16748_v11  ;;  %v7728_v4 = vsub.f32 %v14798_v46, %v15877_v54  ;;  %10276 = vmatprep.subr.bf16.mxu1 %v10275_v37  ;;  %v15004_v39 = vpack.c.bf16 %v7659_v18, %v7655_v48  ;;  %v16750_v31 = vld [vmem:[#allocation63_spill] sm:$0xff] }
 0x700   : > { %10348 = vmatprep.subr.bf16.mxu0 %v14937_v7  ;;  %v7661_v9 = vand.u32 4294901760, %v3317_v40  ;;  %v7665_v25 = vand.u32 4294901760, %v14975_v55  ;;  %v16751_v15 = vand.u32 4294901760, %v16750_v31  ;;  %v15013_v54 = vsub.f32 %v3292_v45, %v7655_v48  ;;  %v16757_v45 = vld [vmem:[#allocation83_spill] sm:$0xff] }
 0x701   : > { %v10285_v61 = vpack.c.bf16 %v16749_v5, %v16747_v14  ;;  %v16753_v14 = vand.u32 4294901760, %v16752_v26  ;;  %v15011_v5 = vpop.f32.mrb[2].mxu0  ;;  %v7722_v63 = vsub.f32 %v14808_v21, %v15882_v38  ;;  %v7717_v13 = vand.u32 4294901760, %v7716_v27  ;;  %v16755_v26 = vld [vmem:[#allocation42_spill] sm:$0xff] }
 0x702   : > { %v5037_v12 = vpop.f32.mrb[3].mxu0  ;;  %v16754_v24 = vand.u32 4294901760, %v14810_v16  ;;  %10278 = vmatpush1.bf16.msra.mxu1 %v14926_v53  ;;  %v7729_v37 = vand.u32 4294901760, %v7728_v4  ;;  %v16759_v38 = vand.u32 4294901760, %v14814_v58  ;;  %v16760_v29 = vand.u32 4294901760, %v14816_v56 }
 0x703   : > { %v10287_v11 = vpack.c.bf16 %v16753_v14, %v16751_v15  ;;  %v16756_v14 = vld [vmem:[#allocation44_spill] sm:$0xff]  ;;  %v15026_v48 = vsub.f32 %v5037_v12, %v16757_v45  ;;  %10350 = vmatpush1.bf16.msra.mxu0 %v14963_v41  ;;  %10280 = vmatprep.subr.bf16.mxu1 %v10279_v0  ;;  %v15037_v7 = vsub.f32 %v3304_v3, %v7659_v18  ;;  %v7723_v18 = vand.u32 4294901760, %v7722_v63 }
 0x704   : > { %v7734_v31 = vsub.f32 %v14810_v16, %v16754_v24  ;;  %v7740_v27 = vsub.f32 %v14814_v58, %v16759_v38  ;;  %v7752_v24 = vsub.f32 %v14816_v56, %v16760_v29  ;;  %10352 = vmatprep.subr.bf16.mxu0 %v14977_v51  ;;  %v15039_v12 = vpack.c.bf16 %v7665_v25, %v7661_v9  ;;  %v16765_v29 = vld [vmem:[#allocation67_spill] sm:$0xff]  ;;  %v16767_v41 = vld [vmem:[#allocation68_spill] sm:$0xff] }
 0x705   : > { %16758 = vst [vmem:[#allocation77_spill] sm:$0xff] %v15026_v48  ;;  %v15043_v4 = vsub.f32 %v3317_v40, %v7661_v9  ;;  %v16762_v48 = vand.u32 4294901760, %v14979_v1  ;;  %v16763_v38 = vand.u32 4294901760, %v14981_v23  ;;  %v16766_v0 = vand.u32 4294901760, %v16765_v29  ;;  %v16771_v9 = vld [vmem:[#allocation50_spill] sm:$0xff] }
 0x706   : > { %16761 = vst [vmem:[#allocation78_spill] sm:$0xff] %v15039_v12  ;;  %v16768_v51 = vand.u32 4294901760, %v16767_v41  ;;  %v16769_v36 = vand.u32 4294901760, %v16755_v26  ;;  %v16770_v15 = vand.u32 4294901760, %v16756_v14  ;;  %10282 = vmatpush1.bf16.msra.mxu1 %v14958_v49  ;;  %v7735_v41 = vand.u32 4294901760, %v7734_v31 }
 0x707   : > { %v15049_v45 = vpack.c.bf16 %v16763_v38, %v16762_v48  ;;  %10354 = vmatpush1.bf16.msra.mxu0 %v15004_v39  ;;  %v10359_v48 = vpack.c.bf16 %v7729_v37, %v7717_v13  ;;  %v7753_v63 = vand.u32 4294901760, %v7752_v24  ;;  %10284 = vmatprep.subr.bf16.mxu1 %v14971_v62  ;;  %v16773_v38 = vand.u32 4294901760, %v14842_v35  ;;  %v16774_v37 = vld [vmem:[#allocation69_spill] sm:$0xff]  ;;  %v16776_v62 = vld [vmem:[#allocation76_spill] sm:$0xff] }
 0x708   : > { %v10289_v3 = vpack.c.bf16 %v16768_v51, %v16766_v0  ;;  %v7746_v53 = vsub.f32 %v16755_v26, %v16769_v36  ;;  %v7758_v40 = vsub.f32 %v16756_v14, %v16770_v15  ;;  %v7741_v51 = vand.u32 4294901760, %v7740_v27  ;;  %10356 = vmatprep.subr.bf16.mxu0 %v15039_v12 }
 0x709   : > { %16764 = vst [vmem:[#allocation79_spill] sm:$0xff] %v15049_v45  ;;  %v16772_v36 = vand.u32 4294901760, %v14840_v10  ;;  %v7776_v29 = vsub.f32 %v14842_v35, %v16773_v38  ;;  %v15076_v13 = vsub.f32 %v14975_v55, %v7665_v25  ;;  %v16775_v31 = vand.u32 4294901760, %v16774_v37 }
 0x70a   : > { %v16777_v27 = vand.u32 4294901760, %v16776_v62  ;;  %v7747_v60 = vand.u32 4294901760, %v7746_v53  ;;  %v7759_v12 = vand.u32 4294901760, %v7758_v40  ;;  %v16778_v38 = vand.u32 4294901760, %v16771_v9  ;;  %10286 = vmatpush1.bf16.msra.mxu1 %v10285_v61 }
 0x70b   : > { %v7764_v15 = vsub.f32 %v14840_v10, %v16772_v36  ;;  %v16779_v0 = vand.u32 4294901760, %v14872_v28  ;;  %10358 = vmatpush1.bf16.msra.mxu0 %v15049_v45  ;;  %v10361_v25 = vpack.c.bf16 %v7735_v41, %v7723_v18  ;;  %v10363_v37 = vpack.c.bf16 %v7753_v63, %v7741_v51  ;;  %10288 = vmatprep.subr.bf16.mxu1 %v10287_v11  ;;  %v16785_v18 = vld [vmem:[#allocation100_spill] sm:$0xff] }
 0x70c   : > { %v10291_v24 = vpack.c.bf16 %v16777_v27, %v16775_v31  ;;  %v7770_v49 = vsub.f32 %v16771_v9, %v16778_v38  ;;  %v16780_v31 = vld [vmem:[#allocation85_spill] sm:$0xff]  ;;  %10360 = vmatprep.subr.bf16.mxu0 %v10359_v48  ;;  %v7777_v40 = vand.u32 4294901760, %v7776_v29  ;;  %v16781_v36 = vand.u32 4294901760, %v14874_v34 }
 0x70d   : > { %v7782_v55 = vsub.f32 %v14872_v28, %v16779_v0  ;;  %v7765_v53 = vand.u32 4294901760, %v7764_v15  ;;  %v16782_v33 = vand.u32 4294901760, %v14884_v6  ;;  %v16783_v0 = vld [vmem:[#allocation97_spill] sm:$0xff]  ;;  %v16786_v41 = vand.u32 4294901760, %v16785_v18 }
 0x70e   : > { %v7788_v38 = vsub.f32 %v14874_v34, %v16781_v36  ;;  %v16784_v45 = vand.u32 4294901760, %v16783_v0  ;;  %v16787_v63 = vand.u32 4294901760, %v14901_v20  ;;  %v16788_v48 = vand.u32 4294901760, %v14906_v2  ;;  %v16789_v36 = vld [vmem:[#allocation60_spill] sm:$0xff]  ;;  %10290 = vmatpush1.bf16.msra.mxu1 %v10289_v3 }
 0x70f   : > { %v7800_v61 = vsub.f32 %v14884_v6, %v16782_v33  ;;  %7707 = vmatmul.mubr.f32.vlgmr.msra.gmra.mrb[6].mxu0 %v16789_v36  ;;  %v10365_v27 = vpack.c.bf16 %v7759_v12, %v7747_v60  ;;  %v7771_v62 = vand.u32 4294901760, %v7770_v49  ;;  %v7783_v33 = vand.u32 4294901760, %v7782_v55  ;;  %10292 = vmatprep.subr.bf16.mxu1 %v10291_v24 }
 0x710   : > { %v10293_v51 = vpack.c.bf16 %v16786_v41, %v16784_v45  ;;  %v7794_v11 = vsub.f32 %v14901_v20, %v16787_v63  ;;  %v7806_v15 = vsub.f32 %v14906_v2, %v16788_v48  ;;  %v15899_v0 = vand.u32 4294901760, %v14933_v52  ;;  %10362 = vmatpush1.bf16.msra.mxu0 %v10361_v25  ;;  %7937 = vmatprep.mubr.f32.mxu0 %v15970_v59 }
 0x711   : > { %v16790_v45 = vand.u32 4294901760, %v16780_v31  ;;  %v16791_v41 = vand.u32 4294901760, %v14916_v50  ;;  %v15898_v48 = vand.u32 4294901760, %v14939_v8  ;;  %v16792_v60 = vand.u32 4294901760, %v14979_v1  ;;  %10364 = vmatprep.subr.bf16.mxu0 %v10363_v37 }
 0x712   : > { %v10367_v3 = vpack.c.bf16 %v7777_v40, %v7765_v53  ;;  %v7789_v49 = vand.u32 4294901760, %v7788_v38  ;;  %v7801_v55 = vand.u32 4294901760, %v7800_v61  ;;  %v7795_v25 = vand.u32 4294901760, %v7794_v11  ;;  %s10625_s17 = spop %10624  ;;  %10294 = vmatpush1.bf16.msra.mxu1 %v10293_v51 }
 0x713   : > { %v7812_v18 = vsub.f32 %v16780_v31, %v16790_v45  ;;  %v7824_v63 = vsub.f32 %v14916_v50, %v16791_v41  ;;  %v15123_v12 = vsub.f32 %v14979_v1, %v16792_v60  ;;  %v7807_v36 = vand.u32 4294901760, %v7806_v15  ;;  %v16795_v15 = vld [vmem:[#allocation94_spill] sm:$0xff] }
 0x714   : > { %v16793_v45 = vand.u32 4294901760, %v14931_v43  ;;  %v10369_v29 = vpack.c.bf16 %v7783_v33, %v7771_v62  ;;  %v7830_v1 = vsub.f32 %v14933_v52, %v15899_v0  ;;  %v15909_v24 = vand.u32 4294901760, %v14948_v47  ;;  %10366 = vmatpush1.bf16.msra.mxu0 %v10365_v27  ;;  %10296 = vmatprep.subr.bf16.mxu1 %v16795_v15  ;;  %v16797_v0 = vld [vmem:[#allocation55_spill] sm:$0xff] }
 0x715   : > { %v15902_v37 = vand.u32 4294901760, %v14965_v32  ;;  %v7813_v53 = vand.u32 4294901760, %v7812_v18  ;;  %v7825_v40 = vand.u32 4294901760, %v7824_v63  ;;  %v7836_v38 = vsub.f32 %v14939_v8, %v15898_v48  ;;  %10368 = vmatprep.subr.bf16.mxu0 %v10367_v3  ;;  %7495 = vmatmul.mubr.f32.vlgmr.msra.gmra.mrb[14].mxu1 %v16797_v0 }
 0x716   : > { %v7818_v41 = vsub.f32 %v14931_v43, %v16793_v45  ;;  %v16794_v61 = vand.u32 4294901760, %v14941_v42  ;;  %v2893_v11 = vstv %s10625_s17  ;;  %v10371_v33 = vpack.c.bf16 %v7801_v55, %v7789_v49  ;;  %7597 = vmatprep.mubr.f32.mxu1 %v15970_v59 }
 0x717   : > { %v15901_v60 = vand.u32 4294901760, %v14984_v17  ;;  %v15900_v51 = vand.u32 4294901760, %v14986_v57  ;;  %v16796_v27 = vand.u32 4294901760, %v14981_v23  ;;  %v2895_v63 = vmul.f32 0.5, %v2893_v11  ;;  %v16799_v11 = vld [vmem:[#allocation96_spill] sm:$0xff] }
 0x718   : > { %v7848_v62 = vsub.f32 %v14941_v42, %v16794_v61  ;;  %v10373_v45 = vpack.c.bf16 %v7807_v36, %v7795_v25  ;;  %v7819_v48 = vand.u32 4294901760, %v7818_v41  ;;  %v7831_v61 = vand.u32 4294901760, %v7830_v1  ;;  %10370 = vmatpush1.bf16.msra.mxu0 %v10369_v29 }
 0x719   : > { %v15146_v18 = vsub.f32 %v14981_v23, %v16796_v27  ;;  %v7842_v3 = vsub.f32 %v14948_v47, %v15909_v24  ;;  %v7854_v49 = vsub.f32 %v14965_v32, %v15902_v37  ;;  %v15908_v55 = vand.u32 4294901760, %v15013_v54  ;;  %2897 = vst.msk [vmem:[#allocation22] sm:$0x1] %vm2896_vm2, %v2895_v63  ;;  %v16798_v23 = vld [vmem:[#allocation95_spill] sm:$0xff]  ;;  %10372 = vmatprep.subr.bf16.mxu0 %v10371_v33  ;;  %v16800_v33 = vld [vmem:[#allocation98_spill] sm:$0xff] }
 0x71a   : > { %10298 = vmatpush1.bf16.msra.mxu1 %v16798_v23  ;;  %v10375_v25 = vpack.c.bf16 %v7825_v40, %v7813_v53  ;;  %v7837_v36 = vand.u32 4294901760, %v7836_v38  ;;  %v7849_v41 = vand.u32 4294901760, %v7848_v62  ;;  %v15907_v1 = vand.u32 4294901760, %v15037_v7  ;;  %v16801_v37 = vld [vmem:[#allocation70_spill] sm:$0xff] }
 0x71b   : > { %10300 = vmatprep.subr.bf16.mxu1 %v16799_v11  ;;  %v7860_v15 = vsub.f32 %v14984_v17, %v15901_v60  ;;  %v7872_v27 = vsub.f32 %v14986_v57, %v15900_v51  ;;  %v15903_v63 = vand.u32 4294901760, %v15043_v4  ;;  %v15904_v29 = vand.u32 4294901760, %v15076_v13  ;;  %v16833_v24 = vld [vmem:[#allocation58_spill] sm:$0xff] }
 0x71c   : > { %v10377_v53 = vpack.c.bf16 %v7831_v61, %v7819_v48  ;;  %v7843_v40 = vand.u32 4294901760, %v7842_v3  ;;  %v7855_v38 = vand.u32 4294901760, %v7854_v49  ;;  %v7866_v62 = vsub.f32 %v15013_v54, %v15908_v55  ;;  %10374 = vmatpush1.bf16.msra.mxu0 %v10373_v45 }
 0x71d   : > { %v10379_v23 = vpack.c.bf16 %v7849_v41, %v7837_v36  ;;  %v7878_v11 = vsub.f32 %v15037_v7, %v15907_v1  ;;  %v15905_v51 = vand.u32 4294901760, %v15123_v12  ;;  %v15906_v60 = vand.u32 4294901760, %v15146_v18  ;;  %10376 = vmatprep.subr.bf16.mxu0 %v10375_v25  ;;  %v16802_v36 = vld [vmem:[#allocation99_spill] sm:$0xff] }
 0x71e   : > { %10302 = vmatpush1.bf16.msra.mxu1 %v16800_v33  ;;  %v7861_v48 = vand.u32 4294901760, %v7860_v15  ;;  %v7873_v61 = vand.u32 4294901760, %v7872_v27  ;;  %v7884_v3 = vsub.f32 %v15043_v4, %v15903_v63  ;;  %v7896_v45 = vsub.f32 %v15076_v13, %v15904_v29  ;;  %v16803_v15 = vld [vmem:[#allocation102_spill] sm:$0xff]  ;;  %v16807_v1 = vld [vmem:[#allocation107_spill] sm:$0xff] }
 0x71f   : > { %10304 = vmatprep.subr.bf16.mxu1 %v16801_v37  ;;  %v10381_v49 = vpack.c.bf16 %v7855_v38, %v7843_v40  ;;  %v7867_v41 = vand.u32 4294901760, %v7866_v62  ;;  %v7879_v33 = vand.u32 4294901760, %v7878_v11  ;;  %v7890_v37 = vsub.f32 %v15123_v12, %v15905_v51  ;;  %v16804_v40 = vld [vmem:[#allocation103_spill] sm:$0xff]  ;;  %v16805_v11 = vld [vmem:[#allocation104_spill] sm:$0xff]  ;;  %v16806_v51 = vld [vmem:[#allocation106_spill] sm:$0xff] }
 0x720   : > { %10378 = vmatpush1.bf16.msra.mxu0 %v10377_v53  ;;  %v7902_v25 = vsub.f32 %v15146_v18, %v15906_v60  ;;  %v10383_v27 = vpack.c.bf16 %v7873_v61, %v7861_v48  ;;  %v7885_v63 = vand.u32 4294901760, %v7884_v3  ;;  %v7897_v29 = vand.u32 4294901760, %v7896_v45  ;;  %v16808_v48 = vld [vmem:[#allocation81_spill] sm:$0xff]  ;;  %v16809_v3 = vld [vmem:[#allocation82_spill] sm:$0xff]  ;;  %v16812_v45 = vld [vmem:[#allocation64_spill] sm:$0xff] }
 0x721   : > { %10380 = vmatprep.subr.bf16.mxu0 %v10379_v23  ;;  %v10385_v53 = vpack.c.bf16 %v7879_v33, %v7867_v41  ;;  %v7891_v38 = vand.u32 4294901760, %v7890_v37  ;;  %v10391_v23 = vpack.c.bf16 %v14798_v46, %v14796_v19  ;;  %v10393_v61 = vpack.c.bf16 %v14810_v16, %v14808_v21 }
 0x722   : > { %10306 = vmatpush1.bf16.msra.mxu1 %v16802_v36  ;;  %v7903_v62 = vand.u32 4294901760, %v7902_v25  ;;  %v10387_v36 = vpack.c.bf16 %v7897_v29, %v7885_v63  ;;  %v16810_v63 = vld [vmem:[#allocation52_spill] sm:$0xff]  ;;  %v16811_v29 = vld [vmem:[#allocation59_spill] sm:$0xff]  ;;  %v10403_v41 = vpack.c.bf16 %v14884_v6, %v14874_v34  ;;  %v10405_v33 = vpack.c.bf16 %v14906_v2, %v14901_v20 }
 0x723   : > { %10308 = vmatprep.subr.bf16.mxu1 %v16803_v15  ;;  %v10407_v37 = vpack.c.bf16 %v14916_v50, %v16780_v31  ;;  %v10409_v25 = vpack.c.bf16 %v14933_v52, %v14931_v43  ;;  %v10411_v15 = vpack.c.bf16 %v14941_v42, %v14939_v8 }
 0x724   : > { %10382 = vmatpush1.bf16.msra.mxu0 %v10381_v49  ;;  %v10389_v60 = vpack.c.bf16 %v7903_v62, %v7891_v38  ;;  %v10401_v49 = vpack.c.bf16 %v14872_v28, %v16771_v9  ;;  %v10419_v38 = vpack.c.bf16 %v15076_v13, %v15043_v4  ;;  %v10421_v62 = vpack.c.bf16 %v15146_v18, %v15123_v12 }
 0x725   : > { %10384 = vmatprep.subr.bf16.mxu0 %v10383_v27  ;;  %v10413_v27 = vpack.c.bf16 %v14965_v32, %v14948_v47 }
 0x726   : > { %10310 = vmatpush1.bf16.msra.mxu1 %v16804_v40  ;;  %v10415_v40 = vpack.c.bf16 %v14986_v57, %v14984_v17 }
 0x727   : > { %10312 = vmatprep.subr.bf16.mxu1 %v16805_v11 }
 0x728   : > { %10386 = vmatpush1.bf16.msra.mxu0 %v10385_v53  ;;  %v10417_v53 = vpack.c.bf16 %v15037_v7, %v15013_v54 }
 0x729   : > { %10388 = vmatprep.subr.bf16.mxu0 %v10387_v36  ;;  %v16813_v36 = vld [vmem:[#allocation57_spill] sm:$0xff] }
 0x72a   : > { %10314 = vmatpush1.bf16.msra.mxu1 %v16806_v51  ;;  %v10395_v51 = vpack.c.bf16 %v14816_v56, %v14814_v58 }
 0x72b   : > { %10316 = vmatprep.subr.bf16.mxu1 %v16807_v1  ;;  %v10397_v1 = vpack.c.bf16 %v16756_v14, %v16755_v26 }
 0x72c   : > { %10390 = vmatpush1.bf16.msra.mxu0 %v10389_v60  ;;  %v10399_v60 = vpack.c.bf16 %v14842_v35, %v14840_v10 }
 0x72d   : > { %10392 = vmatprep.subr.bf16.mxu0 %v10391_v23 }
 0x72e   : > { %10318 = vmatpush1.bf16.msra.mxu1 %v16808_v48 }
 0x72f   : > { %10320 = vmatprep.subr.bf16.mxu1 %v16809_v3  ;;  %7939 = vmatmul.mubr.f32.vlgmr.msra.gmra.mrb[6].mxu0 %v16797_v0  ;;  %v16814_v3 = vld [vmem:[#allocation49_spill] sm:$0xff] }
 0x730   : > { %10394 = vmatpush1.bf16.msra.mxu0 %v10393_v61  ;;  %8073 = vmatprep.mubr.f32.mxu0 %v15970_v59 }
 0x731   : > { %10396 = vmatprep.subr.bf16.mxu0 %v10395_v51  ;;  %v16815_v51 = vld [vmem:[#allocation56_spill] sm:$0xff] }
 0x732   : > { %10322 = vmatpush1.bf16.msra.mxu1 %v16810_v63  ;;  %v16816_v63 = vld [vmem:[#allocation37_spill] sm:$0xff] }
 0x733   : > { %10324 = vmatprep.subr.bf16.mxu1 %v16811_v29  ;;  %v16818_v29 = vld [vmem:[#allocation53_spill] sm:$0xff] }
 0x734   : > { %10398 = vmatpush1.bf16.msra.mxu0 %v10397_v1  ;;  %v16817_v1 = vld [vmem:[#allocation40_spill] sm:$0xff] }
 0x735   : > { %10400 = vmatprep.subr.bf16.mxu0 %v10399_v60  ;;  %v16819_v60 = vld [vmem:[#allocation71_spill] sm:$0xff] }
 0x736   : > { %10326 = vmatpush1.bf16.msra.mxu1 %v16812_v45  ;;  %v16820_v45 = vld [vmem:[#allocation87_spill] sm:$0xff] }
 0x738   : > { %10402 = vmatpush1.bf16.msra.mxu0 %v10401_v49  ;;  %v16821_v49 = vld [vmem:[#allocation90_spill] sm:$0xff] }
 0x739   : > { %7599 = vmatmul.mubr.f32.vlgmr.msra.gmra.mrb[14].mxu1 %v16797_v0  ;;  %10404 = vmatprep.subr.bf16.mxu0 %v10403_v41  ;;  %v16822_v41 = vld [vmem:[#allocation93_spill] sm:$0xff] }
 0x73c   : > { %10406 = vmatpush1.bf16.msra.mxu0 %v10405_v33  ;;  %v16823_v33 = vld [vmem:[#allocation73_spill] sm:$0xff] }
 0x73d   : > { %10408 = vmatprep.subr.bf16.mxu0 %v10407_v37  ;;  %v16824_v37 = vld [vmem:[#allocation101_spill] sm:$0xff] }
 0x740   : > { %10410 = vmatpush1.bf16.msra.mxu0 %v10409_v25  ;;  %v16825_v25 = vld [vmem:[#allocation78_spill] sm:$0xff] }
 0x741   : > { %10412 = vmatprep.subr.bf16.mxu0 %v10411_v15  ;;  %v16826_v15 = vand.u32 4294901760, %v14796_v19  ;;  %v16834_v19 = vand.u32 4294901760, %v16755_v26  ;;  %v16840_v26 = vand.u32 4294901760, %v14874_v34  ;;  %v16847_v34 = vand.u32 4294901760, %v14933_v52 }
 0x742   : > { %v16854_v52 = vand.u32 4294901760, %v15013_v54 }
 0x744   : > { %10414 = vmatpush1.bf16.msra.mxu0 %v10413_v27  ;;  %v16827_v27 = vand.u32 4294901760, %v14798_v46  ;;  %v16835_v46 = vand.u32 4294901760, %v16756_v14  ;;  %v16841_v14 = vand.u32 4294901760, %v14884_v6  ;;  %v16848_v6 = vand.u32 4294901760, %v14939_v8 }
 0x745   : > { %10416 = vmatprep.subr.bf16.mxu0 %v10415_v40  ;;  %v16855_v8 = vand.u32 4294901760, %v15037_v7 }
 0x746   : > { %v10455_v40 = vpack.c.bf16 %v16827_v27, %v16826_v15  ;;  %v10461_v15 = vpack.c.bf16 %v16835_v46, %v16834_v19 }
 0x747   : > { %v10481_v46 = vpack.c.bf16 %v16855_v8, %v16854_v52 }
 0x748   : > { %10418 = vmatpush1.bf16.msra.mxu0 %v10417_v53  ;;  %v5890_v11 = vpop.f32.mrb[12].mxu1  ;;  %v16828_v53 = vld [vmem:[#allocation79_spill] sm:$0xff] }
 0x749   : > { %10420 = vmatprep.subr.bf16.mxu0 %v10419_v38  ;;  %v15238_v23 = vsub.f32 %v5890_v11, %v16813_v36  ;;  %v5892_v48 = vpop.f32.mrb[13].mxu1  ;;  %v16829_v38 = vand.u32 4294901760, %v14808_v21  ;;  %v16836_v21 = vand.u32 4294901760, %v14840_v10  ;;  %v16843_v10 = vand.u32 4294901760, %v14906_v2 }
 0x74a   : > { %v15241_v61 = vsub.f32 %v5892_v48, %v15011_v5  ;;  %v16831_v48 = vand.u32 4294901760, %v14814_v58  ;;  %v16838_v58 = vand.u32 4294901760, %v16771_v9  ;;  %v16845_v9 = vand.u32 4294901760, %v14916_v50 }
 0x74b   : > { %v16850_v2 = vand.u32 4294901760, %v14948_v47  ;;  %v16852_v50 = vand.u32 4294901760, %v14984_v17  ;;  %v16857_v47 = vand.u32 4294901760, %v15076_v13  ;;  %v16859_v17 = vand.u32 4294901760, %v15146_v18  ;;  %v16861_v18 = vld [vmem:[#allocation77_spill] sm:$0xff] }
 0x74c   : > { %10422 = vmatpush1.bf16.msra.mxu0 %v10421_v62  ;;  %v16830_v62 = vand.u32 4294901760, %v14810_v16  ;;  %v16837_v16 = vand.u32 4294901760, %v14842_v35  ;;  %v16844_v35 = vand.u32 4294901760, %v16780_v31  ;;  %v16851_v31 = vand.u32 4294901760, %v14965_v32 }
 0x74d   : > { %10424 = vmatprep.subr.bf16.mxu0 %v16814_v3  ;;  %v16858_v32 = vand.u32 4294901760, %v15123_v12  ;;  %v8470_v13 = vmul.f32 %v15238_v23, %v15238_v23 }
 0x74e   : > { %v10457_v11 = vpack.c.bf16 %v16830_v62, %v16829_v38  ;;  %v10463_v27 = vpack.c.bf16 %v16837_v16, %v16836_v21  ;;  %v10471_v62 = vpack.c.bf16 %v16845_v9, %v16844_v35 }
 0x74f   : > { %8076 = vmatmul.mubr.f32.vlgmr.msra.gmra.mrb[6].mxu0 %v16815_v51  ;;  %v16832_v51 = vand.u32 4294901760, %v14816_v56  ;;  %v16839_v56 = vand.u32 4294901760, %v14872_v28  ;;  %v16846_v28 = vand.u32 4294901760, %v14931_v43  ;;  %v16853_v43 = vand.u32 4294901760, %v14986_v57 }
 0x750   : > { %10426 = vmatpush1.bf16.msra.mxu0 %v16816_v63  ;;  %8178 = vmatprep.mubr.f32.mxu0 %v15970_v59  ;;  %v10485_v21 = vpack.c.bf16 %v16859_v17, %v16858_v32 }
 0x751   : > { %10428 = vmatprep.subr.bf16.mxu0 %v16817_v1  ;;  %v10459_v55 = vpack.c.bf16 %v16832_v51, %v16831_v48  ;;  %v10477_v51 = vpack.c.bf16 %v16851_v31, %v16850_v2  ;;  %v10479_v19 = vpack.c.bf16 %v16853_v43, %v16852_v50 }
 0x754   : > { %10430 = vmatpush1.bf16.msra.mxu0 %v16818_v29 }
 0x755   : > { %10432 = vmatprep.subr.bf16.mxu0 %v14834_v44 }
 0x758   : > { %10434 = vmatpush1.bf16.msra.mxu0 %v14864_v22 }
 0x759   : > { %10436 = vmatprep.subr.bf16.mxu0 %v14877_v30 }
 0x75c   : > { %10438 = vmatpush1.bf16.msra.mxu0 %v16819_v60 }
 0x75d   : > { %10440 = vmatprep.subr.bf16.mxu0 %v16820_v45 }
 0x760   : > { %10442 = vmatpush1.bf16.msra.mxu0 %v16821_v49 }
 0x761   : > { %10444 = vmatprep.subr.bf16.mxu0 %v16822_v41 }
 0x764   : > { %10446 = vmatpush1.bf16.msra.mxu0 %v16823_v33 }
 0x765   : > { %10448 = vmatprep.subr.bf16.mxu0 %v16824_v37 }
 0x768   : > { %10450 = vmatpush1.bf16.msra.mxu0 %v15004_v39 }
 0x769   : > { %10452 = vmatprep.subr.bf16.mxu0 %v16825_v25 }
 0x76c   : > { %10454 = vmatpush1.bf16.msra.mxu0 %v16828_v53 }
 0x76d   : > { %10456 = vmatprep.subr.bf16.mxu0 %v10455_v40  ;;  %v10467_v40 = vpack.c.bf16 %v16841_v14, %v16840_v26 }
 0x76f   : > { %8182 = vmatmul.mubr.f32.vlgmr.msra.gmra.mrb[6].mxu0 %v16833_v24  ;;  %v10465_v24 = vpack.c.bf16 %v16839_v56, %v16838_v58 }
 0x770   : > { %10458 = vmatpush1.bf16.msra.mxu0 %v10457_v11  ;;  %8348 = vmatprep.mubr.f32.mxu0 %v15970_v59  ;;  %v10473_v11 = vpack.c.bf16 %v16847_v34, %v16846_v28 }
 0x771   : > { %10460 = vmatprep.subr.bf16.mxu0 %v10459_v55  ;;  %v16842_v55 = vand.u32 4294901760, %v14901_v20  ;;  %v16849_v20 = vand.u32 4294901760, %v14941_v42  ;;  %v16856_v42 = vand.u32 4294901760, %v15043_v4 }
 0x773   : > { %v10469_v38 = vpack.c.bf16 %v16843_v10, %v16842_v55  ;;  %v10475_v48 = vpack.c.bf16 %v16849_v20, %v16848_v6 }
 0x774   : > { %10462 = vmatpush1.bf16.msra.mxu0 %v10461_v15  ;;  %v10483_v15 = vpack.c.bf16 %v16857_v47, %v16856_v42 }
 0x775   : > { %10464 = vmatprep.subr.bf16.mxu0 %v10463_v27 }
 0x778   : > { %10466 = vmatpush1.bf16.msra.mxu0 %v10465_v24 }
 0x779   : > { %10468 = vmatprep.subr.bf16.mxu0 %v10467_v40 }
 0x77c   : > { %10470 = vmatpush1.bf16.msra.mxu0 %v10469_v38 }
 0x77d   : > { %10472 = vmatprep.subr.bf16.mxu0 %v10471_v62 }
 0x780   : > { %10474 = vmatpush1.bf16.msra.mxu0 %v10473_v11 }
 0x781   : > { %10476 = vmatprep.subr.bf16.mxu0 %v10475_v48 }
 0x784   : > { %10478 = vmatpush1.bf16.msra.mxu0 %v10477_v51 }
 0x785   : > { %10480 = vmatprep.subr.bf16.mxu0 %v10479_v19 }
 0x788   : > { %10482 = vmatpush1.bf16.msra.mxu0 %v10481_v46 }
 0x789   : > { %10484 = vmatprep.subr.bf16.mxu0 %v10483_v15 }
 0x78c   : > { %10486 = vmatpush1.bf16.msra.mxu0 %v10485_v21 }
 0x78d   : > { %10488 = vmatprep.subr.bf16.mxu0 %v16814_v3  ;;  %v8469_v3 = vmul.f32 %v16861_v18, %v16861_v18 }
 0x78f   : > { %8350 = vmatmul.mubr.f32.vlgmr.msra.gmra.mrb[6].mxu0 %v16797_v0 }
 0x790   : > { %10490 = vmatpush1.bf16.msra.mxu0 %v16816_v63  ;;  %8452 = vmatprep.mubr.f32.mxu0 %v15970_v59 }
 0x791   : > { %10492 = vmatprep.subr.bf16.mxu0 %v16817_v1  ;;  %v8471_v1 = vadd.f32 %v8470_v13, %v8469_v3 }
 0x794   : > { %10494 = vmatpush1.bf16.msra.mxu0 %v16818_v29  ;;  %v8472_v29 = vmul.f32 %v15241_v61, %v15241_v61 }
 0x795   : > { %10496 = vmatprep.subr.bf16.mxu0 %v14834_v44  ;;  %v16860_v44 = vld [vmem:[#allocation83_spill] sm:$0xff] }
 0x798   : > { %10498 = vmatpush1.bf16.msra.mxu0 %v14864_v22 }
 0x799   : > { %10500 = vmatprep.subr.bf16.mxu0 %v14877_v30 }
 0x79c   : > { %10502 = vmatpush1.bf16.msra.mxu0 %v16819_v60 }
 0x79d   : > { %10504 = vmatprep.subr.bf16.mxu0 %v16820_v45 }
 0x7a0   : > { %10506 = vmatpush1.bf16.msra.mxu0 %v16821_v49  ;;  %v8473_v49 = vadd.f32 %v8472_v29, %v8471_v1 }
 0x7a1   : > { %10508 = vmatprep.subr.bf16.mxu0 %v16822_v41 }
 0x7a4   : > { %10510 = vmatpush1.bf16.msra.mxu0 %v16823_v33  ;;  %v8484_v33 = vadd.f32 1e-06, %v8473_v49 }
 0x7a5   : > { %10512 = vmatprep.subr.bf16.mxu0 %v16824_v37 }
 0x7a6   : > { %vm8487_vm4 = vcmp.eq.f32.partialorder %v8484_v33, inf  ;;  %v8490_v55 = vand.u32 2147483648, %v8484_v33  ;;  %vm8489_vm6 = vcmp.eq.f32.partialorder %v8484_v33, 0.0 }
 0x7a8   : > { %10514 = vmatpush1.bf16.msra.mxu0 %v15004_v39 }
 0x7a9   : > { %10516 = vmatprep.subr.bf16.mxu0 %v16825_v25 }
 0x7ac   : > { %10518 = vmatpush1.bf16.msra.mxu0 %v16828_v53 }
 0x7af   : > { %8454 = vmatmul.mubr.f32.vlgmr.msra.gmra.mrb[6].mxu0 %v16797_v0 }
 0x7c1   : > { %v6745_v59 = vpop.f32.mrb[4].mxu0 }
 0x7c2   : > { %v15347_v22 = vsub.f32 %v6745_v59, %v16860_v44  ;;  %v6747_v30 = vpop.f32.mrb[5].mxu0 }
 0x7c3   : > { %v15350_v7 = vsub.f32 %v6747_v30, %v16813_v36 }
 0x7c4   : > { %v8474_v0 = vmul.f32 %v15347_v22, %v15347_v22  ;;  %v8508_v16 = vmul.f32 %v15347_v22, %v16861_v18 }
 0x7c5   : > { %v8475_v12 = vmul.f32 %v15350_v7, %v15350_v7  ;;  %v8509_v27 = vmul.f32 %v15350_v7, %v15238_v23 }
 0x7c7   : > { %v8476_v60 = vadd.f32 %v8475_v12, %v8474_v0  ;;  %v8510_v26 = vadd.f32 %v8509_v27, %v8508_v16 }
 0x80c   : > { %v7600_v54 = vpop.f32.mrb[14].mxu1 }
 0x80d   : > { %v15353_v57 = vsub.f32 %v7600_v54, %v15011_v5  ;;  %v7602_v4 = vpop.f32.mrb[15].mxu1 }
 0x80e   : > { %v15356_v39 = vsub.f32 %v7602_v4, %v16860_v44 }
 0x80f   : > { %v8477_v63 = vmul.f32 %v15353_v57, %v15353_v57  ;;  %v8511_v56 = vmul.f32 %v15353_v57, %v15241_v61 }
 0x810   : > { %v8479_v11 = vmul.f32 %v15356_v39, %v15356_v39  ;;  %v8513_v6 = vmul.f32 %v15356_v39, %v16861_v18 }
 0x811   : > { %v8478_v45 = vadd.f32 %v8477_v63, %v8476_v60  ;;  %v8512_v35 = vadd.f32 %v8511_v56, %v8510_v26 }
 0x813   : > { %v8492_v41 = vadd.f32 1e-06, %v8478_v45 }
 0x815   : > { %10899 = vrsqrt.f32 %v8492_v41  ;;  %vm8495_vm3 = vcmp.eq.f32.partialorder %v8492_v41, inf  ;;  %v8498_v40 = vand.u32 2147483648, %v8492_v41  ;;  %vm8497_vm5 = vcmp.eq.f32.partialorder %v8492_v41, 0.0 }
 0x816   : > { %10901 = vrsqrt.f32 %v8484_v33 }
 0x817   : > { %10903 = vrcp.f32 %v8484_v33 }
 0x81f   : > { %v10900_v37 = vpop.eup %10899 }
 0x820   : > { %v10902_v25 = vpop.eup %10901  ;;  %v8494_v53 = vmul.f32 %v10900_v37, %v8492_v41 }
 0x821   : > { %v8486_v58 = vmul.f32 %v10902_v25, %v8484_v33  ;;  %v10904_v2 = vpop.eup %10903 }
 0x822   : > { %v8496_v24 = vsel %vm8495_vm3, %v8492_v41, %v8494_v53 }
 0x823   : > { %v8488_v14 = vsel %vm8487_vm4, %v8484_v33, %v8486_v58  ;;  %v15376_v38 = vsel %vm8497_vm5, %v8498_v40, %v8496_v24 }
 0x824   : > { %v8491_v28 = vsel %vm8489_vm6, %v8490_v55, %v8488_v14 }
 0x825   : > { %v8518_v31 = vmul.f32 %v15376_v38, %v8491_v28 }
 0x827   : > { %v8519_v8 = vadd.f32 1e-06, %v8518_v31 }
 0x882   : > { %v8455_v10 = vpop.f32.mrb[6].mxu0 }
 0x883   : > { %v8467_v9 = vsub.f32 %v8455_v10, %v16813_v36  ;;  %v8457_v62 = vpop.f32.mrb[7].mxu0  ;;  %v8547_v36 = vmul.f32 %v10904_v2, %v8512_v35 }
 0x884   : > { %v8468_v34 = vsub.f32 %v8457_v62, %v15011_v5 }
 0x885   : > { %v8480_v20 = vmul.f32 %v8467_v9, %v8467_v9  ;;  %v8514_v48 = vmul.f32 %v8467_v9, %v15238_v23  ;;  %v8549_v46 = vmul.f32 %v8547_v36, %v16861_v18  ;;  %v8553_v42 = vmul.f32 %v8547_v36, %v15241_v61 }
 0x886   : > { %v8482_v51 = vmul.f32 %v8468_v34, %v8468_v34  ;;  %v8516_v50 = vmul.f32 %v8468_v34, %v15241_v61  ;;  %v8551_v32 = vmul.f32 %v8547_v36, %v15238_v23 }
 0x887   : > { %v8481_v43 = vadd.f32 %v8480_v20, %v8479_v11  ;;  %v8515_v19 = vadd.f32 %v8514_v48, %v8513_v6  ;;  %v8554_v44 = vsub.f32 %v15353_v57, %v8553_v42  ;;  %v8550_v30 = vsub.f32 %v15347_v22, %v8549_v46 }
 0x888   : > { %v8552_v4 = vsub.f32 %v15350_v7, %v8551_v32 }
 0x889   : > { %v8483_v52 = vadd.f32 %v8482_v51, %v8481_v43  ;;  %v8517_v5 = vadd.f32 %v8516_v50, %v8515_v19 }
 0x88b   : > { %v8500_v47 = vadd.f32 1e-06, %v8483_v52  ;;  %v8548_v15 = vmul.f32 %v10904_v2, %v8517_v5  ;;  %v8898_v2 = vld [vmem:[#allocation20] ss:$0 sm:$0xff] }
 0x88d   : > { %10905 = vrsqrt.f32 %v8500_v47  ;;  %v8555_v17 = vmul.f32 %v8548_v15, %v16861_v18  ;;  %v8557_v21 = vmul.f32 %v8548_v15, %v15238_v23  ;;  %v8559_v59 = vmul.f32 %v8548_v15, %v15241_v61 }
 0x88e   : > { %10907 = vrcp.f32 %v8519_v8  ;;  %vm8503_vm7 = vcmp.eq.f32.partialorder %v8500_v47, inf  ;;  %v8506_v61 = vand.u32 2147483648, %v8500_v47  ;;  %vm8505_vm8 = vcmp.eq.f32.partialorder %v8500_v47, 0.0 }
 0x88f   : > { %v8560_v54 = vsub.f32 %v8468_v34, %v8559_v59  ;;  %v8556_v13 = vsub.f32 %v15356_v39, %v8555_v17  ;;  %v8558_v0 = vsub.f32 %v8467_v9, %v8557_v21 }
 0x891   : > { %v8566_v12 = vmul.f32 %v8560_v54, %v8554_v44  ;;  %v8563_v3 = vmul.f32 %v8556_v13, %v8550_v30  ;;  %v8564_v63 = vmul.f32 %v8558_v0, %v8552_v4 }
 0x893   : > { %v8565_v1 = vadd.f32 %v8564_v63, %v8563_v3 }
 0x895   : > { %v8567_v29 = vadd.f32 %v8566_v12, %v8565_v1 }
 0x897   : > { %v10906_v18 = vpop.eup %10905 }
 0x898   : > { %v10908_v60 = vpop.eup %10907  ;;  %v8502_v23 = vmul.f32 %v10906_v18, %v8500_v47 }
 0x899   : > { %v8521_v57 = vmul.f32 %v10908_v60, %v8512_v35 }
 0x89a   : > { %v8504_v45 = vsel %vm8503_vm7, %v8500_v47, %v8502_v23 }
 0x89b   : > { %v8507_v22 = vsel %vm8505_vm8, %v8506_v61, %v8504_v45  ;;  %v8526_v7 = vmul.f32 %v8521_v57, %v8521_v57 }
 0x89c   : > { %v8522_v49 = vmul.f32 %v8507_v22, %v8491_v28 }
 0x89d   : > { %v8527_v39 = vsub.f32 1.0, %v8526_v7 }
 0x89e   : > { %v8523_v41 = vadd.f32 1e-06, %v8522_v49 }
 0x89f   : > { %v8528_v33 = vadd.f32 1e-06, %v8527_v39 }
 0x8a0   : > { %10909 = vrcp.f32 %v8523_v41 }
 0x8a1   : > { %10911 = vrsqrt.f32 %v8528_v33  ;;  %vm8531_vm9 = vcmp.eq.f32.partialorder %v8528_v33, inf  ;;  %v8534_v14 = vand.u32 2147483648, %v8528_v33  ;;  %vm8533_vm10 = vcmp.eq.f32.partialorder %v8528_v33, 0.0 }
 0x8aa   : > { %v10910_v37 = vpop.eup %10909 }
 0x8ab   : > { %v8525_v25 = vmul.f32 %v10910_v37, %v8517_v5  ;;  %v10912_v58 = vpop.eup %10911 }
 0x8ac   : > { %v8530_v56 = vmul.f32 %v10912_v58, %v8528_v33 }
 0x8ad   : > { %v8536_v53 = vmul.f32 %v8525_v25, %v8525_v25 }
 0x8ae   : > { %v8532_v24 = vsel %vm8531_vm9, %v8528_v33, %v8530_v56 }
 0x8af   : > { %v8537_v16 = vsub.f32 1.0, %v8536_v53  ;;  %v8535_v55 = vsel %vm8533_vm10, %v8534_v14, %v8532_v24 }
 0x8b0   : > { %v8561_v62 = vmul.f32 %v8535_v55, %v15376_v38 }
 0x8b1   : > { %v8538_v27 = vadd.f32 1e-06, %v8537_v16 }
 0x8b3   : > { %10913 = vrsqrt.f32 %v8538_v27  ;;  %vm8541_vm11 = vcmp.eq.f32.partialorder %v8538_v27, inf  ;;  %v8544_v10 = vand.u32 2147483648, %v8538_v27  ;;  %vm8543_vm12 = vcmp.eq.f32.partialorder %v8538_v27, 0.0 }
 0x8bd   : > { %v10914_v26 = vpop.eup %10913 }
 0x8be   : > { %v8540_v40 = vmul.f32 %v10914_v26, %v8538_v27 }
 0x8c0   : > { %v8542_v35 = vsel %vm8541_vm11, %v8538_v27, %v8540_v40 }
 0x8c1   : > { %v8545_v9 = vsel %vm8543_vm12, %v8544_v10, %v8542_v35 }
 0x8c2   : > { %v8562_v28 = vmul.f32 %v8545_v9, %v8507_v22 }
 0x8c4   : > { %v8568_v34 = vmul.f32 %v8562_v28, %v8561_v62 }
 0x8c6   : > { %v8569_v11 = vadd.f32 1e-06, %v8568_v34 }
 0x8c8   : > { %10915 = vrcp.f32 %v8569_v11 }
 0x8d2   : > { %v10916_v6 = vpop.eup %10915 }
 0x8d3   : > { %v8571_v20 = vmul.f32 %v10916_v6, %v8567_v29 }
 0x8d5   : > { %v8572_v48 = vadd.f32 1.0, %v8571_v20 }
 0x8d7   : > { %v8573_v31 = vmul.f32 %v8572_v48, %v8572_v48 }
 0x8d9   : > { %v8581_v51 = vmul.f32 %v8898_v2, %v8573_v31 }
 0x8db   : > { %v8582_v50 = vsel %vm2882_vm1, %v8581_v51, 0.0 }
 0x8dc   : > { %8583 = vadd.xlane.f32.xlu0 %v8582_v50 }
 0x969   : > { %v8584_v36 = vpop.xlane.xlu0 %8583 }
 0x96a   : > { %v8585_v43 = vrot.slane %v8584_v36, 4 }
 0x96c   : > { %v8586_v19 = vadd.f32 %v8585_v43, %v8584_v36 }
 0x96e   : > { %v8587_v52 = vrot.slane %v8586_v19, 2 }
 0x970   : > { %v8588_v5 = vadd.f32 %v8587_v52, %v8586_v19 }
 0x972   : > { %v8589_v8 = vrot.slane %v8588_v5, 1 }
 0x974   : > { %v8590_v38 = vadd.f32 %v8589_v8, %v8588_v5 }
 0x976   : > { %10626 = vpush %v8590_v38 }
 0x9a7   : > { %s10627_s29 = spop %10626 }
 0x9a8   : > { %v8592_v46 = vstv %s10627_s29 }
 0x9a9   : > { %v8593_v42 = vmul.f32 0.5, %v8592_v46 }
 0x9ab   : > { %8594 = vst.msk [vmem:[#allocation24] sm:$0x1] %vm2896_vm2, %v8593_v42 }
 0x9ac PF: > { %p10734_p7 = scmp.eq.s32.totalorder %s11492_s14, 2  ;;  %s11398_s16 = smov [#allocation22]  }
 0x9ad   : > { %s8613_s15 = sshll.u32 %s11398_s16, 4  ;;  %s11399_s11 = smov [#allocation21]   ;;  %s8614_s15 = int_to_ptr.vmem [resolvable:$true] %s8613_s15 }
 0x9ae   : > { %s8602_s12 = sshll.u32 %s11399_s11, 4  ;;  %s11229_s0 = scalar_lea.vmem %s8614_s15, 16  ;;  %s8603_s12 = int_to_ptr.vmem [resolvable:$true] %s8602_s12 }
 0x9af   : > { %p11230_p10 = scmp.ne.s32.totalorder %s8614_s15, %s11229_s0  ;;  %s11235_s13 = scalar_lea.vmem %s8614_s15, 32 }
 0x9b0   : > { %p11236_p9 = scmp.lt.s32.totalorder %s8614_s15, %s8614_s15  ;;  %p11237_p3 = scmp.lt.s32.totalorder %s11235_s13, %s11229_s0 }
 0x9b1   : > { %p11231_p6 = pnand %p11230_p10, %p10734_p7 }
 0x9b2   : > { %p11238_p12 = por %p11237_p3, %p11236_p9 }
 0x9b3   : > { %p11232_p1 = pneg %p11231_p6 }
 0x9b5   : > { %p11239_p8 = pnand %p11238_p12, %p11232_p1 }
 0x9b7   : > { %11242 = shalt.err (!%p11239_p8)
}
 0x9b8   : > { %s16862_s25 = sld [smem:[#allocation111_spill]] }
 0x9be   : > { %s16863_s23 = smov %s16862_s25  ;;  %s11243_s28 = scalar_lea.hbm %s16862_s25, 16 }
 0x9bf   : > { %p11244_p5 = scmp.ne.s32.totalorder %s16863_s23, %s11243_s28  ;;  %p11249_p0 = scmp.lt.u32.totalorder %s11243_s28, %s16863_s23 }
 0x9c1   : > { %p11245_p13 = pnand %p11244_p5, %p10734_p7 }
 0x9c3   : > { %p11246_p11 = pneg %p11245_p13 }
 0x9c5   : > { %p11251_p4 = pnand %p11249_p0, %p11246_p11 }
 0x9c7   : > { %11254 = shalt.err (!%p11251_p4)
}
 0x9c8   : > { %10671 = dma.vmem_to_hbm [thread:$0]  (%p10734_p7), %s8614_s15, 16, %s16863_s23, [#allocation23]  }
 0x9c9   : > { %s11255_s16 = scalar_lea.vmem %s8603_s12, 32  ;;  %p11262_p1 = scmp.lt.s32.totalorder %s8603_s12, %s8603_s12 }
 0x9ca   : > { %p11256_p2 = scmp.ne.s32.totalorder %s8603_s12, %s11255_s16  ;;  %p11263_p9 = scmp.lt.s32.totalorder %s11255_s16, %s11255_s16 }
 0x9cc   : > { %p11257_p10 = pnand %p11256_p2, %p10734_p7  ;;  %p11264_p3 = por %p11263_p9, %p11262_p1 }
 0x9ce   : > { %p11258_p6 = pneg %p11257_p10 }
 0x9d0   : > { %p11265_p12 = pnand %p11264_p3, %p11258_p6 }
 0x9d2   : > { %11268 = shalt.err (!%p11265_p12)
}
 0x9d3   : > { %s16864_s13 = sld [smem:[#allocation110_spill]] }
 0x9d9   : > { %s11269_s22 = scalar_lea.hbm %s16864_s13, 32 }
 0x9da   : > { %p11270_p8 = scmp.ne.s32.totalorder %s16864_s13, %s11269_s22  ;;  %p11275_p11 = scmp.lt.u32.totalorder %s11269_s22, %s16864_s13 }
 0x9dc   : > { %p11271_p5 = pnand %p11270_p8, %p10734_p7 }
 0x9de   : > { %p11272_p13 = pneg %p11271_p5 }
 0x9e0   : > { %p11277_p0 = pnand %p11275_p11, %p11272_p13 }
 0x9e2   : > { %11280 = shalt.err (!%p11277_p0)
}
 0x9e3   : > { %10669 = dma.vmem_to_hbm [thread:$0]  (%p10734_p7), %s8603_s12, 32, %s16864_s13, [#allocation5]  }
 0x9e4   : > { %s11400_s24 = smov [#allocation24]  }
 0x9e5   : > { %s8624_s20 = sshll.u32 %s11400_s24, 4  ;;  %s8625_s20 = int_to_ptr.vmem [resolvable:$true] %s8624_s20 }
 0x9e6   : > { %s11281_s17 = scalar_lea.vmem %s8625_s20, 16  ;;  %s11287_s29 = scalar_lea.vmem %s8625_s20, 32 }
 0x9e7   : > { %p11282_p4 = scmp.ne.s32.totalorder %s8625_s20, %s11281_s17  ;;  %p11288_p6 = scmp.lt.s32.totalorder %s8625_s20, %s8625_s20 }
 0x9e8   : > { %p11289_p1 = scmp.lt.s32.totalorder %s11287_s29, %s11281_s17 }
 0x9e9   : > { %p11283_p2 = pnand %p11282_p4, %p10734_p7 }
 0x9ea   : > { %p11290_p9 = por %p11289_p1, %p11288_p6 }
 0x9eb   : > { %p11284_p10 = pneg %p11283_p2 }
 0x9ed   : > { %p11291_p3 = pnand %p11290_p9, %p11284_p10 }
 0x9ef   : > { %11294 = shalt.err (!%p11291_p3)
}
 0x9f0   : > { %s16865_s0 = sld [smem:[#allocation112_spill]] }
 0x9f6   : > { %s11295_s22 = scalar_lea.hbm %s16865_s0, 16 }
 0x9f7   : > { %p11296_p12 = scmp.ne.s32.totalorder %s16865_s0, %s11295_s22  ;;  %p11301_p13 = scmp.lt.u32.totalorder %s11295_s22, %s16865_s0 }
 0x9f9   : > { %p11297_p8 = pnand %p11296_p12, %p10734_p7 }
 0x9fb   : > { %p11298_p5 = pneg %p11297_p8 }
 0x9fd   : > { %p11303_p11 = pnand %p11301_p13, %p11298_p5 }
 0x9ff   : > { %11306 = shalt.err (!%p11303_p11)
}
 0xa00   : > { %10673 = dma.vmem_to_hbm [thread:$0]  (%p10734_p7), %s8625_s20, 16, %s16865_s0, [#allocation23]  }
 0xa01   : > { %11352 = dma.done.wait (%p10734_p7), [#allocation5], 32  }
 0xa02   : > { %11354 = vsyncadd (%p10734_p7), [#allocation5], 4294967264 }
 0xa03   : > { %11356 = dma.done.wait (%p10734_p7), [#allocation23], 32  }
 0xa04   : > { %11358 = vsyncadd (%p10734_p7), [#allocation23], 4294967264 }
 0xa05 PF: > { %p33_p0 = scmp.ge.s32.totalorder %s11716_s18, 5   ;;  %s16866_s25 = smov %s11365_s26 }
 0xa06   : > { %s16867_s26 = smov %s11369_s27  ;;  %s16868_s27 = smov %s11727_s21 }
 0xa07   : > { %s16869_s28 = smov %s11716_s18  ;;  %35 = sbr.rel (!%p33_p0) target bundleno = 17 (0x11), region = 174 }
 0xa0e   :  { %8645 = vsyncpa [#allocation4], 1 }
 0xa0f   :  { %8647 = vsyncpa [#allocation4 + $0x1], 1 }
 0xa10   :  { %8648 = vsyncpa [#allocation7], 1 }
 0xa11   :  { %8650 = vsyncpa [#allocation7 + $0x1], 1 }
 0xa12   :  { %8651 = vsyncpa [#allocation10], 1 }
 0xa13   :  { %8652 = vsyncpa [#allocation13], 1 }
 0xa14   :  { %8653 = vsyncpa [#allocation16], 1 }
 0xa15   :  { %8654 = vsyncpa [#allocation19], 1 }
 0xa16   :  { %8655 = vsyncpa [#allocation5], 1 }
 0xa17   :  { %8657 = vsyncpa [#allocation5 + $0x1], 1 }
 0xa18   :  { %8658 = vsyncpa [#allocation23], 1 }

</bundles_post_ra>
